<compile_context>
chip_gen: v7x
topology: tpu7x:2x2x1
jax: 0.10.0
libtpu: 0.0.40
codegen_flags: <defaults>
</compile_context>

<pallas_src>
import functools
import math

import numpy as np
import jax
import jax.numpy as jnp
from jax.experimental import pallas as pl
from jax.experimental.pallas import tpu as pltpu


# ----------------------------------------------------------------------------
# In-kernel helpers
# ----------------------------------------------------------------------------
def _gelu(x):
    # tanh-form GELU: one EUP tanh + a handful of VALU ops (review: the erf polynomial was the
    # first VALU-slot saturator; exact-erf precision buys nothing here).
    c = 0.7978845608028654  # sqrt(2/pi)
    return 0.5 * x * (1.0 + jnp.tanh(c * (x + 0.044715 * x * x * x)))


def _cp(sem=None):
    return pltpu.CompilerParams(dimension_semantics=sem,
                                vmem_limit_bytes=32 * 1024 * 1024)


def _pick_tile_m(m):
    # Single full-width step at small M (don't split just to reach 2 grid steps on 1-TC chips);
    # tile in 256-lane chunks only once M is big enough to give >= 4 steps.
    if m >= 1024 and m % 256 == 0:
        return 256
    return m


# ----------------------------------------------------------------------------
# Pallas kernel: channel-major fused linear  out(Cout,M) = W(Cout,K) @ X(K,M) + b [+ res] [GELU]
# Lane axis carries M = N*H*W -> every store is a full 128-lane vreg.
# ----------------------------------------------------------------------------
def _linear_cm_kernel(x_ref, w_ref, b_ref, o_ref, *, act):
    acc = jnp.dot(w_ref[...], x_ref[...], preferred_element_type=jnp.float32) + b_ref[...]
    if act:
        acc = _gelu(acc)
    o_ref[...] = acc.astype(o_ref.dtype)


def _linear_cm_res_kernel(x_ref, w_ref, b_ref, r_ref, o_ref, *, act):
    acc = jnp.dot(w_ref[...], x_ref[...], preferred_element_type=jnp.float32)
    acc = acc + b_ref[...] + r_ref[...]
    if act:
        acc = _gelu(acc)
    o_ref[...] = acc.astype(o_ref.dtype)


def fused_linear_cm(x, w, b, res=None, act=False):
    """x: (K, M); w: (Cout, K); b: (Cout, 1); res: optional (Cout, M). Returns (Cout, M)."""
    K, M = x.shape
    cout = w.shape[0]
    tm = _pick_tile_m(M)
    grid = (pl.cdiv(M, tm),)
    x_spec = pl.BlockSpec((K, tm), lambda i: (0, i))
    w_spec = pl.BlockSpec((cout, K), lambda i: (0, 0))
    b_spec = pl.BlockSpec((cout, 1), lambda i: (0, 0))
    o_spec = pl.BlockSpec((cout, tm), lambda i: (0, i))
    out_shape = jax.ShapeDtypeStruct((cout, M), jnp.float32)
    cp = _cp(("parallel",))
    if res is None:
        return pl.pallas_call(
            functools.partial(_linear_cm_kernel, act=act),
            out_shape=out_shape, grid=grid,
            in_specs=[x_spec, w_spec, b_spec], out_specs=o_spec,
            compiler_params=cp,
        )(x, w, b)
    r_spec = pl.BlockSpec((cout, tm), lambda i: (0, i))
    return pl.pallas_call(
        functools.partial(_linear_cm_res_kernel, act=act),
        out_shape=out_shape, grid=grid,
        in_specs=[x_spec, w_spec, b_spec, r_spec], out_specs=o_spec,
        compiler_params=cp,
    )(x, w, b, res)


# ----------------------------------------------------------------------------
# Pallas kernel: fused lift MLP  (Linear->GELU->Linear->GELU->Linear), tiny rows.
# ----------------------------------------------------------------------------
def _mlp3_kernel(x_ref, w0_ref, b0_ref, w1_ref, b1_ref, w2_ref, b2_ref, o_ref):
    h = _gelu(jnp.dot(x_ref[...], w0_ref[...], preferred_element_type=jnp.float32) + b0_ref[...])
    h = _gelu(jnp.dot(h, w1_ref[...], preferred_element_type=jnp.float32) + b1_ref[...])
    o = jnp.dot(h, w2_ref[...], preferred_element_type=jnp.float32) + b2_ref[...]
    o_ref[...] = o.astype(o_ref.dtype)


def lift_mlp_pallas(x, w0, b0, w1, b1, w2, b2):
    M = x.shape[0]
    P = w2.shape[1]
    return pl.pallas_call(
        _mlp3_kernel,
        out_shape=jax.ShapeDtypeStruct((M, P), jnp.float32),
        compiler_params=_cp(None),
    )(x, w0, b0, w1, b1, w2, b2)


# ----------------------------------------------------------------------------
# Pallas kernel: fused Conv2d(3x3, pad=1) + InstanceNorm2d(affine=False) + GELU, NHWC.
# Grid over batch; the padded image tile stays in VMEM and the 9-tap accumulation is done with
# 9 shifted (H*W, C) @ (C, Cout) matmuls into a VMEM accumulator; IN stats + GELU fused before
# the single store.
# ----------------------------------------------------------------------------
def _conv3x3_in_gelu_kernel(x_ref, w_ref, b_ref, o_ref, *, H, W, eps):
    C = x_ref.shape[-1]
    Cout = w_ref.shape[-1]
    acc = jnp.zeros((H * W, Cout), jnp.float32)
    for dh in range(3):
        for dw in range(3):
            patch = x_ref[0, dh:dh + H, dw:dw + W, :].reshape(H * W, C)
            acc = acc + jnp.dot(patch, w_ref[dh * 3 + dw],
                                preferred_element_type=jnp.float32)
    acc = acc + b_ref[...]
    mean = jnp.mean(acc, axis=0, keepdims=True)
    xc = acc - mean
    var = jnp.mean(xc * xc, axis=0, keepdims=True)
    y = xc * jax.lax.rsqrt(var + eps)
    y = _gelu(y)
    o_ref[...] = y[None, :, :].astype(o_ref.dtype)


def conv3x3_in_gelu(x, w9, b, eps=1e-5):
    """x: (N,H,W,C) NHWC; w9: (9, Cin, Cout) in (kh, kw) row-major tap order; b: (1, Cout)."""
    N, H, W, C = x.shape
    Cout = w9.shape[-1]
    xp = jnp.pad(x, ((0, 0), (1, 1), (1, 1), (0, 0)))
    # TODO(synk): one image per block -> tile spatially (two-pass IN stats) for large resolutions.
    y = pl.pallas_call(
        functools.partial(_conv3x3_in_gelu_kernel, H=H, W=W, eps=eps),
        out_shape=jax.ShapeDtypeStruct((N, H * W, Cout), jnp.float32),
        grid=(N,),
        in_specs=[pl.BlockSpec((1, H + 2, W + 2, C), lambda n: (n, 0, 0, 0)),
                  pl.BlockSpec((9, C, Cout), lambda n: (0, 0, 0)),
                  pl.BlockSpec((1, Cout), lambda n: (0, 0))],
        out_specs=pl.BlockSpec((1, H * W, Cout), lambda n: (n, 0, 0)),
        compiler_params=_cp(("parallel",)),
    )(xp, w9, b)
    return y.reshape(N, H, W, Cout)


# ----------------------------------------------------------------------------
# Pallas kernel: WaveConv2d channel mixing  einsum('bixy,ioxy->boxy')
# All 4 coarsest sub-bands, mode count padded per sub-band to a 128-lane multiple; gridded over
# lane chunks ("parallel" -> both v7x TensorCores).  Accumulator (N, Cout, ts) uses full vregs.
#   xs:   (Cin, N, Spad);  wmix: (Cin, Cout, Spad);  out: (N, Cout, Spad)
# ----------------------------------------------------------------------------
def _wave_mix_kernel(x_ref, w_ref, o_ref):
    cin = x_ref.shape[0]
    acc = jnp.zeros(o_ref.shape, jnp.float32)
    for i in range(cin):                               # unrolled MAC over input channels (VPU)
        acc = acc + x_ref[i][:, None, :] * w_ref[i][None, :, :]
    o_ref[...] = acc.astype(o_ref.dtype)


def wave_mix_pallas(xs, wmix):
    cin, n, spad = xs.shape
    cout = wmix.shape[1]
    ts = 256 if (spad % 256 == 0 and spad > 256) else spad
    grid = (spad // ts,)
    return pl.pallas_call(
        _wave_mix_kernel,
        out_shape=jax.ShapeDtypeStruct((n, cout, spad), jnp.float32),
        grid=grid,
        in_specs=[pl.BlockSpec((cin, n, ts), lambda j: (0, 0, j)),
                  pl.BlockSpec((cin, cout, ts), lambda j: (0, 0, j))],
        out_specs=pl.BlockSpec((n, cout, ts), lambda j: (0, 0, j)),
        compiler_params=_cp(("parallel",)),
    )(xs, wmix)


# ----------------------------------------------------------------------------
# Pallas kernel: fused head  fc1(width->192) -> GELU -> fc2(192->out_channels), channel-major.
# Only the (out_channels, M) lane-dense slab hits HBM.
# ----------------------------------------------------------------------------
def _head_cm_kernel(x_ref, w1_ref, b1_ref, w2_ref, b2_ref, o_ref):
    h = jnp.dot(w1_ref[...], x_ref[...], preferred_element_type=jnp.float32) + b1_ref[...]
    h = _gelu(h)
    o = jnp.dot(w2_ref[...], h, preferred_element_type=jnp.float32) + b2_ref[...]
    o_ref[...] = o.astype(o_ref.dtype)


def head_pallas_cm(x, w1, b1, w2, b2):
    K, M = x.shape
    kh = w1.shape[0]
    no = w2.shape[0]
    tm = _pick_tile_m(M)
    grid = (pl.cdiv(M, tm),)
    return pl.pallas_call(
        _head_cm_kernel,
        out_shape=jax.ShapeDtypeStruct((no, M), jnp.float32),
        grid=grid,
        in_specs=[pl.BlockSpec((K, tm), lambda i: (0, i)),
                  pl.BlockSpec((kh, K), lambda i: (0, 0)),
                  pl.BlockSpec((kh, 1), lambda i: (0, 0)),
                  pl.BlockSpec((no, kh), lambda i: (0, 0)),
                  pl.BlockSpec((no, 1), lambda i: (0, 0))],
        out_specs=pl.BlockSpec((no, tm), lambda i: (0, i)),
        compiler_params=_cp(("parallel",)),
    )(x, w1, b1, w2, b2)


# ----------------------------------------------------------------------------
# db4 DWT / IDWT (mode='symmetric'), matching pytorch_wavelets AFB1D/SFB1D, expressed as dense
# per-level analysis / synthesis matrices (built in numpy at trace time) and applied with XLA
# einsums on channel-major tensors.
# ----------------------------------------------------------------------------
_DB4_REC_LO = np.array([0.23037781330885523, 0.7148465705525415, 0.6308807679295904,
                        -0.02798376941698385, -0.18703481171888114, 0.030841381835986965,
                        0.032883011666982945, -0.010597401784997278], dtype=np.float64)
_DB4_DEC_LO = _DB4_REC_LO[::-1].copy()
_DB4_DEC_HI = np.array([(-1.0) ** (k + 1) * _DB4_REC_LO[k] for k in range(8)], dtype=np.float64)
_DB4_REC_HI = np.array([(-1.0) ** k * _DB4_DEC_LO[k] for k in range(8)], dtype=np.float64)
_L = 8


def _sym_idx(i, n):
    period = 2 * n
    i = i % period
    if i < 0:
        i += period
    return i if i < n else period - 1 - i


def _dwt_len(n):
    return (n + _L - 1) // 2


def _analysis_matrices(n):
    out = _dwt_len(n)
    p = 2 * (out - 1) - n + _L
    pb = p // 2
    h0 = _DB4_DEC_LO[::-1]
    h1 = _DB4_DEC_HI[::-1]
    A0 = np.zeros((out, n), np.float64)
    A1 = np.zeros((out, n), np.float64)
    for k in range(out):
        for t in range(_L):
            j = _sym_idx(2 * k + t - pb, n)
            A0[k, j] += h0[t]
            A1[k, j] += h1[t]
    return A0.astype(np.float32), A1.astype(np.float32)


def _synthesis_matrices(n_in):
    m = 2 * n_in - _L + 2
    S0 = np.zeros((m, n_in), np.float64)
    S1 = np.zeros((m, n_in), np.float64)
    for j in range(m):
        for k in range(n_in):
            t = j + (_L - 2) - 2 * k
            if 0 <= t < _L:
                S0[j, k] = _DB4_REC_LO[t]
                S1[j, k] = _DB4_REC_HI[t]
    return S0.astype(np.float32), S1.astype(np.float32)


def build_wavelet_ops(out_size, level):
    hs, ws = [out_size[0]], [out_size[1]]
    for _ in range(level):
        hs.append(_dwt_len(hs[-1]))
        ws.append(_dwt_len(ws[-1]))
    analysis, synthesis = [], []
    for lev in range(level):
        Ah0, Ah1, Aw0, Aw1 = (*_analysis_matrices(hs[lev]), *_analysis_matrices(ws[lev]))
        analysis.append(tuple(jnp.asarray(a) for a in (Ah0, Ah1, Aw0, Aw1)))
        Sh0, Sh1 = _synthesis_matrices(hs[lev + 1])
        Sw0, Sw1 = _synthesis_matrices(ws[lev + 1])
        synthesis.append(tuple(jnp.asarray(s) for s in (Sh0, Sh1, Sw0, Sw1)))
    P = hs[level] * ws[level]
    return {'analysis': analysis, 'synthesis': synthesis,
            'modes': (hs[level], ws[level]),
            'ppad': ((P + 127) // 128) * 128}


def wave_conv2d_cm(h_cm, wmix, wave_ops, level, N, H, W):
    """WaveConv2d.forward on a channel-major slab h_cm (C, N*H*W) -> (Cout, N*H*W)."""
    C = h_cm.shape[0]
    # TODO(synk): DWT/IDWT boundary-handled filter banks stay as XLA einsums (no Pallas equivalent).
    ll = h_cm.reshape(C, N, H, W)
    details = []
    for lev in range(level):
        Ah0, Ah1, Aw0, Aw1 = wave_ops['analysis'][lev]
        lo_w = jnp.einsum('cnhw,vw->cnhv', ll, Aw0)
        hi_w = jnp.einsum('cnhw,vw->cnhv', ll, Aw1)
        new_ll = jnp.einsum('cnhv,mh->cnmv', lo_w, Ah0)
        lh = jnp.einsum('cnhv,mh->cnmv', lo_w, Ah1)     # hi along H, lo along W  (weights2)
        hl = jnp.einsum('cnhv,mh->cnmv', hi_w, Ah0)     # lo along H, hi along W  (weights3)
        hh = jnp.einsum('cnhv,mh->cnmv', hi_w, Ah1)     # hi/hi                   (weights4)
        details.append([lh, hl, hh])
        ll = new_ll

    m1, m2 = ll.shape[2], ll.shape[3]
    P = m1 * m2
    Ppad = wave_ops['ppad']
    lh, hl, hh = details[-1]
    # sub-band order [LL, LH, HL, HH] matches weight stacking [w1, w2, w3, w4]
    stack = jnp.stack([ll, lh, hl, hh], axis=2).reshape(C, N, 4, P)
    xs = jnp.pad(stack, ((0, 0), (0, 0), (0, 0), (0, Ppad - P))).reshape(C, N, 4 * Ppad)

    mixed = wave_mix_pallas(xs, wmix)                                 # (N, Cout, 4*Ppad)
    cout = mixed.shape[1]
    mixed = mixed.reshape(N, cout, 4, Ppad)[..., :P].reshape(N, cout, 4, m1, m2)
    mixed = jnp.transpose(mixed, (2, 1, 0, 3, 4))                     # (4, Cout, N, m1, m2)

    y = mixed[0]
    details[-1] = [mixed[1], mixed[2], mixed[3]]
    for lev in range(level - 1, -1, -1):
        lh, hl, hh = details[lev]
        if y.shape[2] > lh.shape[2]:
            y = y[:, :, :-1, :]
        if y.shape[3] > lh.shape[3]:
            y = y[:, :, :, :-1]
        Sh0, Sh1, Sw0, Sw1 = wave_ops['synthesis'][lev]
        lo = jnp.einsum('cnmv,hm->cnhv', y, Sh0) + jnp.einsum('cnmv,hm->cnhv', lh, Sh1)
        hi = jnp.einsum('cnmv,hm->cnhv', hl, Sh0) + jnp.einsum('cnmv,hm->cnhv', hh, Sh1)
        y = jnp.einsum('cnhv,wv->cnhw', lo, Sw0) + jnp.einsum('cnhv,wv->cnhw', hi, Sw1)
    return y.reshape(C, N * H * W)


# ----------------------------------------------------------------------------
# Plain-JAX glue: nearest interpolation.
# ----------------------------------------------------------------------------
def interp_nearest_nhwc(x, out_hw):
    """F.interpolate(mode='nearest'): src = floor(dst * in / out)."""
    N, H, W, C = x.shape
    oh, ow = out_hw
    hi = (jnp.arange(oh, dtype=jnp.int32) * H) // oh
    wi = (jnp.arange(ow, dtype=jnp.int32) * W) // ow
    return x[:, hi][:, :, wi]


# ----------------------------------------------------------------------------
# WNORecon forward
# ----------------------------------------------------------------------------
def wno_recon_forward(params, x, *, fc_size, out_size, width, level, out_channels=1):
    N = x.shape[0]
    fh, fw = fc_size

    # fc: Linear(sensor,128)->GELU->Linear(128,256)->GELU->Linear(256, fh*fw)  (one fused kernel)
    f = lift_mlp_pallas(x, params['mlp0_w'], params['mlp0_b'],
                        params['mlp1_w'], params['mlp1_b'],
                        params['mlp2_w'], params['mlp2_b'])          # (N, fh*fw)
    h = f.reshape(N, fh, fw, 1)

    # embedding Conv2d(1, width, 1): pure channel broadcast (K=1) -> tiny fused XLA mul-add
    h = h * params['emb_w'].reshape(1, 1, 1, width) + params['emb_b'].reshape(1, 1, 1, width)

    # conv_smooth(F.interpolate(x, scale_factor=2)): fused (Conv3x3 + IN + GELU) x 2
    h = interp_nearest_nhwc(h, (2 * fh, 2 * fw))
    h = conv3x3_in_gelu(h, params['cs0_w'], params['cs0_b'])
    h = conv3x3_in_gelu(h, params['cs1_w'], params['cs1_b'])

    # interpolate to out_size, switch to channel-major (C, M) lane-dense layout for the main chain
    h = interp_nearest_nhwc(h, out_size)
    H, W = out_size
    M = N * H * W
    h_cm = jnp.transpose(h, (3, 0, 1, 2)).reshape(width, M)

    # fc0: Linear(width+2, width) with the coordinate-grid columns folded into a rank-1 bias
    gx = jnp.linspace(0.0, 1.0, H, dtype=jnp.float32)
    gy = jnp.linspace(0.0, 1.0, W, dtype=jnp.float32)
    gx_m = jnp.tile(jnp.repeat(gx, W), N)                            # varies along H
    gy_m = jnp.tile(gy, N * H)                                       # varies along W
    grid_bias = (params['fc0_wx'][:, None] * gx_m[None, :]
                 + params['fc0_wy'][:, None] * gy_m[None, :])        # (width, M)
    h_cm = fused_linear_cm(h_cm, params['fc0_w'], params['fc0_b'],
                           res=grid_bias, act=False)
    # padding == 0 in the reference configuration -> F.pad is a no-op

    # 4 WNO blocks:  x = gelu(WaveConv2d(x) + w_i(x))  (no GELU after the 4th)
    wave_ops = build_wavelet_ops(out_size, level)
    for i in range(4):
        x1 = wave_conv2d_cm(h_cm, params[f'wc{i}_w'], wave_ops, level, N, H, W)
        h_cm = fused_linear_cm(h_cm, params[f'w{i}_w'], params[f'w{i}_b'],
                               res=x1, act=(i < 3))

    # head: fc1(width,192) -> GELU -> fc2(192, out_channels)  (one fused kernel, (oc, M) output)
    out_cm = head_pallas_cm(h_cm, params['fc1_w'], params['fc1_b'],
                            params['fc2_w'], params['fc2_b'])        # (out_channels, M)
    out = out_cm.reshape(out_channels, N, H, W)
    return jnp.transpose(out, (1, 0, 2, 3))                          # (N, out_channels, H, W)


# ----------------------------------------------------------------------------
# Deterministic parameter init (shapes from WNORecon.__init__, kernel-friendly layouts).
#   lift MLP Linear:       (in, out)            == torch (out, in).T
#   channel-major Linear:  (out, in)            == torch layout directly
#   Conv1x1 (w_i):         (Cout, Cin)
#   Conv3x3:               (9, Cin, Cout)       in (kh, kw) row-major tap order
#   WaveConv2d: weights1..4 stacked -> (Cin, Cout, 4*Ppad), [LL, LH, HL, HH], zero-padded modes
# ----------------------------------------------------------------------------
def init_params(key, sensor_num, fc_size, out_size, width, level, out_channels=1):
    keys = iter(jax.random.split(key, 64))
    p = {}

    def uniform(shape, bound):
        return jax.random.uniform(next(keys), shape, jnp.float32, -bound, bound)

    def lin_rm(name, fin, fout):
        bnd = 1.0 / math.sqrt(fin)
        p[name + '_w'] = uniform((fin, fout), bnd)
        p[name + '_b'] = uniform((1, fout), bnd)

    P = fc_size[0] * fc_size[1]
    lin_rm('mlp0', sensor_num, 128)
    lin_rm('mlp1', 128, 256)
    lin_rm('mlp2', 256, P)

    p['emb_w'] = uniform((width,), 1.0)        # Conv2d(1, width, 1): fan_in = 1
    p['emb_b'] = uniform((width,), 1.0)

    for name in ('cs0', 'cs1'):                # Conv2d(width, width, 3)
        bnd = 1.0 / math.sqrt(width * 9)
        p[name + '_w'] = uniform((9, width, width), bnd)
        p[name + '_b'] = uniform((1, width), bnd)

    bnd = 1.0 / math.sqrt(width + 2)           # Linear(width+2, width)
    fc0_full = uniform((width, width + 2), bnd)
    p['fc0_w'] = fc0_full[:, :width]
    p['fc0_wx'] = fc0_full[:, width]
    p['fc0_wy'] = fc0_full[:, width + 1]
    p['fc0_b'] = uniform((width, 1), bnd)

    m1, m2 = out_size
    for _ in range(level):
        m1, m2 = _dwt_len(m1), _dwt_len(m2)
    Pm = m1 * m2
    Ppad = ((Pm + 127) // 128) * 128
    scale = 1.0 / (width * width)
    for i in range(4):
        w4 = scale * jax.random.uniform(next(keys), (width, width, 4, m1, m2), jnp.float32)
        w4 = jnp.pad(w4.reshape(width, width, 4, Pm),
                     ((0, 0), (0, 0), (0, 0), (0, Ppad - Pm)))
        p[f'wc{i}_w'] = w4.reshape(width, width, 4 * Ppad)
        bnd = 1.0 / math.sqrt(width)           # Conv2d(width, width, 1)
        p[f'w{i}_w'] = uniform((width, width), bnd)
        p[f'w{i}_b'] = uniform((width, 1), bnd)

    bnd = 1.0 / math.sqrt(width)               # Linear(width, 192)
    p['fc1_w'] = uniform((192, width), bnd)
    p['fc1_b'] = uniform((192, 1), bnd)
    bnd = 1.0 / math.sqrt(192)                 # Linear(192, out_channels)
    p['fc2_w'] = uniform((out_channels, 192), bnd)
    p['fc2_b'] = uniform((out_channels, 1), bnd)
    return p


if __name__ == "__main__":
    N, sensor_num = 2, 8
    fc_size = (4, 4)
    out_size = (16, 16)
    width = 32
    level = 2
    out_channels = 1

    root = jax.random.PRNGKey(0)
    k_params, k_x = jax.random.split(root)
    params = init_params(k_params, sensor_num, fc_size, out_size, width, level, out_channels)
    x = jax.random.normal(k_x, (N, sensor_num), dtype=jnp.float32)

    fwd = jax.jit(functools.partial(
        wno_recon_forward, fc_size=fc_size, out_size=out_size,
        width=width, level=level, out_channels=out_channels))

    y = fwd(params, x)
    y = jax.block_until_ready(y)
    assert y.shape == (N, out_channels, out_size[0], out_size[1]), y.shape
    assert bool(jnp.all(jnp.isfinite(y)))
    print("KERNEL_OK")
</pallas_src>

<mosaic_0001>
module attributes {stable_mosaic.version = 11 : i64} {
  func.func @_mlp3_kernel(%arg0: memref<2x8xf32, #tpu.memory_space<vmem>>, %arg1: memref<8x128xf32, #tpu.memory_space<vmem>>, %arg2: memref<1x128xf32, #tpu.memory_space<vmem>>, %arg3: memref<128x256xf32, #tpu.memory_space<vmem>>, %arg4: memref<1x256xf32, #tpu.memory_space<vmem>>, %arg5: memref<256x16xf32, #tpu.memory_space<vmem>>, %arg6: memref<1x16xf32, #tpu.memory_space<vmem>>, %arg7: memref<2x16xf32, #tpu.memory_space<vmem>>) attributes {dimension_semantics = [], scalar_prefetch = 0 : i64, scratch_operands = 0 : i64, tpu.core_type = #tpu.core_type<tc>} {
    %c0 = arith.constant 0 : index
    %c0_0 = arith.constant 0 : index
    %0 = vector.load %arg0[%c0, %c0_0] : memref<2x8xf32, #tpu.memory_space<vmem>>, vector<2x8xf32>
    %c0_1 = arith.constant 0 : index
    %c0_2 = arith.constant 0 : index
    %1 = vector.load %arg1[%c0_1, %c0_2] : memref<8x128xf32, #tpu.memory_space<vmem>>, vector<8x128xf32>
    %cst = arith.constant dense<0.000000e+00> : vector<2x128xf32>
    %2 = tpu.matmul %0, %1, %cst {dimension_numbers = #tpu.dot_dimension_numbers<[1], [0], [0], [1], [0, 0, 1, 1], [], []>} : vector<2x8xf32>, vector<8x128xf32>, vector<2x128xf32> -> vector<2x128xf32>
    %c0_3 = arith.constant 0 : index
    %c0_4 = arith.constant 0 : index
    %3 = vector.load %arg2[%c0_3, %c0_4] : memref<1x128xf32, #tpu.memory_space<vmem>>, vector<1x128xf32>
    %4 = vector.broadcast %3 : vector<1x128xf32> to vector<2x128xf32>
    %5 = arith.addf %2, %4 : vector<2x128xf32>
    %cst_5 = arith.constant 5.000000e-01 : f32
    %6 = vector.broadcast %cst_5 : f32 to vector<2x128xf32>
    %7 = arith.mulf %6, %5 : vector<2x128xf32>
    %cst_6 = arith.constant 4.471500e-02 : f32
    %8 = vector.broadcast %cst_6 : f32 to vector<2x128xf32>
    %9 = arith.mulf %8, %5 : vector<2x128xf32>
    %10 = arith.mulf %9, %5 : vector<2x128xf32>
    %11 = arith.mulf %10, %5 : vector<2x128xf32>
    %12 = arith.addf %5, %11 : vector<2x128xf32>
    %cst_7 = arith.constant 0.797884583 : f32
    %13 = vector.broadcast %cst_7 : f32 to vector<2x128xf32>
    %14 = arith.mulf %13, %12 : vector<2x128xf32>
    %15 = math.tanh %14 : vector<2x128xf32>
    %cst_8 = arith.constant 1.000000e+00 : f32
    %16 = vector.broadcast %cst_8 : f32 to vector<2x128xf32>
    %17 = arith.addf %16, %15 : vector<2x128xf32>
    %18 = arith.mulf %7, %17 : vector<2x128xf32>
    %c0_9 = arith.constant 0 : index
    %c0_10 = arith.constant 0 : index
    %19 = vector.load %arg3[%c0_9, %c0_10] : memref<128x256xf32, #tpu.memory_space<vmem>>, vector<128x256xf32>
    %cst_11 = arith.constant dense<0.000000e+00> : vector<2x256xf32>
    %20 = tpu.matmul %18, %19, %cst_11 {dimension_numbers = #tpu.dot_dimension_numbers<[1], [0], [0], [1], [0, 0, 1, 1], [], []>} : vector<2x128xf32>, vector<128x256xf32>, vector<2x256xf32> -> vector<2x256xf32>
    %c0_12 = arith.constant 0 : index
    %c0_13 = arith.constant 0 : index
    %21 = vector.load %arg4[%c0_12, %c0_13] : memref<1x256xf32, #tpu.memory_space<vmem>>, vector<1x256xf32>
    %22 = vector.broadcast %21 : vector<1x256xf32> to vector<2x256xf32>
    %23 = arith.addf %20, %22 : vector<2x256xf32>
    %cst_14 = arith.constant 5.000000e-01 : f32
    %24 = vector.broadcast %cst_14 : f32 to vector<2x256xf32>
    %25 = arith.mulf %24, %23 : vector<2x256xf32>
    %cst_15 = arith.constant 4.471500e-02 : f32
    %26 = vector.broadcast %cst_15 : f32 to vector<2x256xf32>
    %27 = arith.mulf %26, %23 : vector<2x256xf32>
    %28 = arith.mulf %27, %23 : vector<2x256xf32>
    %29 = arith.mulf %28, %23 : vector<2x256xf32>
    %30 = arith.addf %23, %29 : vector<2x256xf32>
    %cst_16 = arith.constant 0.797884583 : f32
    %31 = vector.broadcast %cst_16 : f32 to vector<2x256xf32>
    %32 = arith.mulf %31, %30 : vector<2x256xf32>
    %33 = math.tanh %32 : vector<2x256xf32>
    %cst_17 = arith.constant 1.000000e+00 : f32
    %34 = vector.broadcast %cst_17 : f32 to vector<2x256xf32>
    %35 = arith.addf %34, %33 : vector<2x256xf32>
    %36 = arith.mulf %25, %35 : vector<2x256xf32>
    %c0_18 = arith.constant 0 : index
    %c0_19 = arith.constant 0 : index
    %37 = vector.load %arg5[%c0_18, %c0_19] : memref<256x16xf32, #tpu.memory_space<vmem>>, vector<256x16xf32>
    %cst_20 = arith.constant dense<0.000000e+00> : vector<2x16xf32>
    %38 = tpu.matmul %36, %37, %cst_20 {dimension_numbers = #tpu.dot_dimension_numbers<[1], [0], [0], [1], [0, 0, 1, 1], [], []>} : vector<2x256xf32>, vector<256x16xf32>, vector<2x16xf32> -> vector<2x16xf32>
    %c0_21 = arith.constant 0 : index
    %c0_22 = arith.constant 0 : index
    %39 = vector.load %arg6[%c0_21, %c0_22] : memref<1x16xf32, #tpu.memory_space<vmem>>, vector<1x16xf32>
    %40 = vector.broadcast %39 : vector<1x16xf32> to vector<2x16xf32>
    %41 = arith.addf %38, %40 : vector<2x16xf32>
    %c0_23 = arith.constant 0 : index
    %c0_24 = arith.constant 0 : index
    %42 = vector.load %arg7[%c0_23, %c0_24] : memref<2x16xf32, #tpu.memory_space<vmem>>, vector<2x16xf32>
    tpu.vector_store %arg7[%c0_23, %c0_24], %41 {strides = array<i32>} : memref<2x16xf32, #tpu.memory_space<vmem>>, vector<2x16xf32>,
    return
  }
}

module attributes {stable_mosaic.version = 11 : i64} {
  func.func @_conv3x3_in_gelu_kernel(%arg0: i32, %arg1: memref<1x10x10x32xf32, #tpu.memory_space<vmem>>, %arg2: memref<9x32x32xf32, #tpu.memory_space<vmem>>, %arg3: memref<1x32xf32, #tpu.memory_space<vmem>>, %arg4: memref<1x64x32xf32, #tpu.memory_space<vmem>>) attributes {dimension_semantics = [#tpu.dimension_semantics<parallel>], iteration_bounds = array<i64: 2>, scalar_prefetch = 0 : i64, scratch_operands = 0 : i64, tpu.core_type = #tpu.core_type<tc>, window_params = [{transform_indices = @transform_0, window_bounds = array<i64: 1, 10, 10, 32>}, {pipeline_mode = #tpu.pipeline_mode<synchronous>, transform_indices = @transform_1, window_bounds = array<i64: 9, 32, 32>}, {pipeline_mode = #tpu.pipeline_mode<synchronous>, transform_indices = @transform_2, window_bounds = array<i64: 1, 32>}, {transform_indices = @transform_3, window_bounds = array<i64: 1, 64, 32>}]} {
    %cst = arith.constant 0.000000e+00 : f32
    %0 = vector.broadcast %cst : f32 to vector<64x32xf32>
    %c0 = arith.constant 0 : index
    %c0_0 = arith.constant 0 : index
    %c0_1 = arith.constant 0 : index
    %c0_2 = arith.constant 0 : index
    %1 = vector.load %arg1[%c0, %c0_0, %c0_1, %c0_2] : memref<1x10x10x32xf32, #tpu.memory_space<vmem>>, vector<1x8x8x32xf32>
    %2 = vector.shape_cast %1 : vector<1x8x8x32xf32> to vector<8x8x32xf32>
    %3 = vector.shape_cast %2 : vector<8x8x32xf32> to vector<64x32xf32>
    %c0_3 = arith.constant 0 : index
    %c0_4 = arith.constant 0 : index
    %c0_5 = arith.constant 0 : index
    %4 = vector.load %arg2[%c0_3, %c0_4, %c0_5] : memref<9x32x32xf32, #tpu.memory_space<vmem>>, vector<1x32x32xf32>
    %5 = vector.shape_cast %4 : vector<1x32x32xf32> to vector<32x32xf32>
    %cst_6 = arith.constant dense<0.000000e+00> : vector<64x32xf32>
    %6 = tpu.matmul %3, %5, %cst_6 {dimension_numbers = #tpu.dot_dimension_numbers<[1], [0], [0], [1], [0, 0, 1, 1], [], []>} : vector<64x32xf32>, vector<32x32xf32>, vector<64x32xf32> -> vector<64x32xf32>
    %7 = arith.addf %0, %6 : vector<64x32xf32>
    %c0_7 = arith.constant 0 : index
    %c0_8 = arith.constant 0 : index
    %c1 = arith.constant 1 : index
    %c0_9 = arith.constant 0 : index
    %8 = vector.load %arg1[%c0_7, %c0_8, %c1, %c0_9] : memref<1x10x10x32xf32, #tpu.memory_space<vmem>>, vector<1x8x8x32xf32>
    %9 = vector.shape_cast %8 : vector<1x8x8x32xf32> to vector<8x8x32xf32>
    %10 = vector.shape_cast %9 : vector<8x8x32xf32> to vector<64x32xf32>
    %c1_10 = arith.constant 1 : index
    %c0_11 = arith.constant 0 : index
    %c0_12 = arith.constant 0 : index
    %11 = vector.load %arg2[%c1_10, %c0_11, %c0_12] : memref<9x32x32xf32, #tpu.memory_space<vmem>>, vector<1x32x32xf32>
    %12 = vector.shape_cast %11 : vector<1x32x32xf32> to vector<32x32xf32>
    %cst_13 = arith.constant dense<0.000000e+00> : vector<64x32xf32>
    %13 = tpu.matmul %10, %12, %cst_13 {dimension_numbers = #tpu.dot_dimension_numbers<[1], [0], [0], [1], [0, 0, 1, 1], [], []>} : vector<64x32xf32>, vector<32x32xf32>, vector<64x32xf32> -> vector<64x32xf32>
    %14 = arith.addf %7, %13 : vector<64x32xf32>
    %c0_14 = arith.constant 0 : index
    %c0_15 = arith.constant 0 : index
    %c2 = arith.constant 2 : index
    %c0_16 = arith.constant 0 : index
    %15 = vector.load %arg1[%c0_14, %c0_15, %c2, %c0_16] : memref<1x10x10x32xf32, #tpu.memory_space<vmem>>, vector<1x8x8x32xf32>
    %16 = vector.shape_cast %15 : vector<1x8x8x32xf32> to vector<8x8x32xf32>
    %17 = vector.shape_cast %16 : vector<8x8x32xf32> to vector<64x32xf32>
    %c2_17 = arith.constant 2 : index
    %c0_18 = arith.constant 0 : index
    %c0_19 = arith.constant 0 : index
    %18 = vector.load %arg2[%c2_17, %c0_18, %c0_19] : memref<9x32x32xf32, #tpu.memory_space<vmem>>, vector<1x32x32xf32>
    %19 = vector.shape_cast %18 : vector<1x32x32xf32> to vector<32x32xf32>
    %cst_20 = arith.constant dense<0.000000e+00> : vector<64x32xf32>
    %20 = tpu.matmul %17, %19, %cst_20 {dimension_numbers = #tpu.dot_dimension_numbers<[1], [0], [0], [1], [0, 0, 1, 1], [], []>} : vector<64x32xf32>, vector<32x32xf32>, vector<64x32xf32> -> vector<64x32xf32>
    %21 = arith.addf %14, %20 : vector<64x32xf32>
    %c0_21 = arith.constant 0 : index
    %c1_22 = arith.constant 1 : index
    %c0_23 = arith.constant 0 : index
    %c0_24 = arith.constant 0 : index
    %22 = vector.load %arg1[%c0_21, %c1_22, %c0_23, %c0_24] : memref<1x10x10x32xf32, #tpu.memory_space<vmem>>, vector<1x8x8x32xf32>
    %23 = vector.shape_cast %22 : vector<1x8x8x32xf32> to vector<8x8x32xf32>
    %24 = vector.shape_cast %23 : vector<8x8x32xf32> to vector<64x32xf32>
    %c3 = arith.constant 3 : index
    %c0_25 = arith.constant 0 : index
    %c0_26 = arith.constant 0 : index
    %25 = vector.load %arg2[%c3, %c0_25, %c0_26] : memref<9x32x32xf32, #tpu.memory_space<vmem>>, vector<1x32x32xf32>
    %26 = vector.shape_cast %25 : vector<1x32x32xf32> to vector<32x32xf32>
    %cst_27 = arith.constant dense<0.000000e+00> : vector<64x32xf32>
    %27 = tpu.matmul %24, %26, %cst_27 {dimension_numbers = #tpu.dot_dimension_numbers<[1], [0], [0], [1], [0, 0, 1, 1], [], []>} : vector<64x32xf32>, vector<32x32xf32>, vector<64x32xf32> -> vector<64x32xf32>
    %28 = arith.addf %21, %27 : vector<64x32xf32>
    %c0_28 = arith.constant 0 : index
    %c1_29 = arith.constant 1 : index
    %c1_30 = arith.constant 1 : index
    %c0_31 = arith.constant 0 : index
    %29 = vector.load %arg1[%c0_28, %c1_29, %c1_30, %c0_31] : memref<1x10x10x32xf32, #tpu.memory_space<vmem>>, vector<1x8x8x32xf32>
    %30 = vector.shape_cast %29 : vector<1x8x8x32xf32> to vector<8x8x32xf32>
    %31 = vector.shape_cast %30 : vector<8x8x32xf32> to vector<64x32xf32>
    %c4 = arith.constant 4 : index
    %c0_32 = arith.constant 0 : index
    %c0_33 = arith.constant 0 : index
    %32 = vector.load %arg2[%c4, %c0_32, %c0_33] : memref<9x32x32xf32, #tpu.memory_space<vmem>>, vector<1x32x32xf32>
    %33 = vector.shape_cast %32 : vector<1x32x32xf32> to vector<32x32xf32>
    %cst_34 = arith.constant dense<0.000000e+00> : vector<64x32xf32>
    %34 = tpu.matmul %31, %33, %cst_34 {dimension_numbers = #tpu.dot_dimension_numbers<[1], [0], [0], [1], [0, 0, 1, 1], [], []>} : vector<64x32xf32>, vector<32x32xf32>, vector<64x32xf32> -> vector<64x32xf32>
    %35 = arith.addf %28, %34 : vector<64x32xf32>
    %c0_35 = arith.constant 0 : index
    %c1_36 = arith.constant 1 : index
    %c2_37 = arith.constant 2 : index
    %c0_38 = arith.constant 0 : index
    %36 = vector.load %arg1[%c0_35, %c1_36, %c2_37, %c0_38] : memref<1x10x10x32xf32, #tpu.memory_space<vmem>>, vector<1x8x8x32xf32>
    %37 = vector.shape_cast %36 : vector<1x8x8x32xf32> to vector<8x8x32xf32>
    %38 = vector.shape_cast %37 : vector<8x8x32xf32> to vector<64x32xf32>
    %c5 = arith.constant 5 : index
    %c0_39 = arith.constant 0 : index
    %c0_40 = arith.constant 0 : index
    %39 = vector.load %arg2[%c5, %c0_39, %c0_40] : memref<9x32x32xf32, #tpu.memory_space<vmem>>, vector<1x32x32xf32>
    %40 = vector.shape_cast %39 : vector<1x32x32xf32> to vector<32x32xf32>
    %cst_41 = arith.constant dense<0.000000e+00> : vector<64x32xf32>
    %41 = tpu.matmul %38, %40, %cst_41 {dimension_numbers = #tpu.dot_dimension_numbers<[1], [0], [0], [1], [0, 0, 1, 1], [], []>} : vector<64x32xf32>, vector<32x32xf32>, vector<64x32xf32> -> vector<64x32xf32>
    %42 = arith.addf %35, %41 : vector<64x32xf32>
    %c0_42 = arith.constant 0 : index
    %c2_43 = arith.constant 2 : index
    %c0_44 = arith.constant 0 : index
    %c0_45 = arith.constant 0 : index
    %43 = vector.load %arg1[%c0_42, %c2_43, %c0_44, %c0_45] : memref<1x10x10x32xf32, #tpu.memory_space<vmem>>, vector<1x8x8x32xf32>
    %44 = vector.shape_cast %43 : vector<1x8x8x32xf32> to vector<8x8x32xf32>
    %45 = vector.shape_cast %44 : vector<8x8x32xf32> to vector<64x32xf32>
    %c6 = arith.constant 6 : index
    %c0_46 = arith.constant 0 : index
    %c0_47 = arith.constant 0 : index
    %46 = vector.load %arg2[%c6, %c0_46, %c0_47] : memref<9x32x32xf32, #tpu.memory_space<vmem>>, vector<1x32x32xf32>
    %47 = vector.shape_cast %46 : vector<1x32x32xf32> to vector<32x32xf32>
    %cst_48 = arith.constant dense<0.000000e+00> : vector<64x32xf32>
    %48 = tpu.matmul %45, %47, %cst_48 {dimension_numbers = #tpu.dot_dimension_numbers<[1], [0], [0], [1], [0, 0, 1, 1], [], []>} : vector<64x32xf32>, vector<32x32xf32>, vector<64x32xf32> -> vector<64x32xf32>
    %49 = arith.addf %42, %48 : vector<64x32xf32>
    %c0_49 = arith.constant 0 : index
    %c2_50 = arith.constant 2 : index
    %c1_51 = arith.constant 1 : index
    %c0_52 = arith.constant 0 : index
    %50 = vector.load %arg1[%c0_49, %c2_50, %c1_51, %c0_52] : memref<1x10x10x32xf32, #tpu.memory_space<vmem>>, vector<1x8x8x32xf32>
    %51 = vector.shape_cast %50 : vector<1x8x8x32xf32> to vector<8x8x32xf32>
    %52 = vector.shape_cast %51 : vector<8x8x32xf32> to vector<64x32xf32>
    %c7 = arith.constant 7 : index
    %c0_53 = arith.constant 0 : index
    %c0_54 = arith.constant 0 : index
    %53 = vector.load %arg2[%c7, %c0_53, %c0_54] : memref<9x32x32xf32, #tpu.memory_space<vmem>>, vector<1x32x32xf32>
    %54 = vector.shape_cast %53 : vector<1x32x32xf32> to vector<32x32xf32>
    %cst_55 = arith.constant dense<0.000000e+00> : vector<64x32xf32>
    %55 = tpu.matmul %52, %54, %cst_55 {dimension_numbers = #tpu.dot_dimension_numbers<[1], [0], [0], [1], [0, 0, 1, 1], [], []>} : vector<64x32xf32>, vector<32x32xf32>, vector<64x32xf32> -> vector<64x32xf32>
    %56 = arith.addf %49, %55 : vector<64x32xf32>
    %c0_56 = arith.constant 0 : index
    %c2_57 = arith.constant 2 : index
    %c2_58 = arith.constant 2 : index
    %c0_59 = arith.constant 0 : index
    %57 = vector.load %arg1[%c0_56, %c2_57, %c2_58, %c0_59] : memref<1x10x10x32xf32, #tpu.memory_space<vmem>>, vector<1x8x8x32xf32>
    %58 = vector.shape_cast %57 : vector<1x8x8x32xf32> to vector<8x8x32xf32>
    %59 = vector.shape_cast %58 : vector<8x8x32xf32> to vector<64x32xf32>
    %c8 = arith.constant 8 : index
    %c0_60 = arith.constant 0 : index
    %c0_61 = arith.constant 0 : index
    %60 = vector.load %arg2[%c8, %c0_60, %c0_61] : memref<9x32x32xf32, #tpu.memory_space<vmem>>, vector<1x32x32xf32>
    %61 = vector.shape_cast %60 : vector<1x32x32xf32> to vector<32x32xf32>
    %cst_62 = arith.constant dense<0.000000e+00> : vector<64x32xf32>
    %62 = tpu.matmul %59, %61, %cst_62 {dimension_numbers = #tpu.dot_dimension_numbers<[1], [0], [0], [1], [0, 0, 1, 1], [], []>} : vector<64x32xf32>, vector<32x32xf32>, vector<64x32xf32> -> vector<64x32xf32>
    %63 = arith.addf %56, %62 : vector<64x32xf32>
    %c0_63 = arith.constant 0 : index
    %c0_64 = arith.constant 0 : index
    %64 = vector.load %arg3[%c0_63, %c0_64] : memref<1x32xf32, #tpu.memory_space<vmem>>, vector<1x32xf32>
    %65 = vector.broadcast %64 : vector<1x32xf32> to vector<64x32xf32>
    %66 = arith.addf %63, %65 : vector<64x32xf32>
    %cst_65 = arith.constant dense<0.000000e+00> : vector<32xf32>
    %67 = vector.multi_reduction <add>, %66, %cst_65 [0] : vector<64x32xf32> to vector<32xf32>
    %68 = vector.shape_cast %67 : vector<32xf32> to vector<1x32xf32>
    %cst_66 = arith.constant 6.400000e+01 : f32
    %69 = vector.broadcast %cst_66 : f32 to vector<1x32xf32>
    %70 = arith.divf %68, %69 : vector<1x32xf32>
    %71 = vector.broadcast %70 : vector<1x32xf32> to vector<64x32xf32>
    %72 = arith.subf %66, %71 : vector<64x32xf32>
    %73 = arith.mulf %72, %72 : vector<64x32xf32>
    %cst_67 = arith.constant dense<0.000000e+00> : vector<32xf32>
    %74 = vector.multi_reduction <add>, %73, %cst_67 [0] : vector<64x32xf32> to vector<32xf32>
    %75 = vector.shape_cast %74 : vector<32xf32> to vector<1x32xf32>
    %cst_68 = arith.constant 6.400000e+01 : f32
    %76 = vector.broadcast %cst_68 : f32 to vector<1x32xf32>
    %77 = arith.divf %75, %76 : vector<1x32xf32>
    %cst_69 = arith.constant 9.99999974E-6 : f32
    %78 = vector.broadcast %cst_69 : f32 to vector<1x32xf32>
    %79 = arith.addf %77, %78 : vector<1x32xf32>
    %80 = math.rsqrt %79 : vector<1x32xf32>
    %81 = vector.broadcast %80 : vector<1x32xf32> to vector<64x32xf32>
    %82 = arith.mulf %72, %81 : vector<64x32xf32>
    %cst_70 = arith.constant 5.000000e-01 : f32
    %83 = vector.broadcast %cst_70 : f32 to vector<64x32xf32>
    %84 = arith.mulf %83, %82 : vector<64x32xf32>
    %cst_71 = arith.constant 4.471500e-02 : f32
    %85 = vector.broadcast %cst_71 : f32 to vector<64x32xf32>
    %86 = arith.mulf %85, %82 : vector<64x32xf32>
    %87 = arith.mulf %86, %82 : vector<64x32xf32>
    %88 = arith.mulf %87, %82 : vector<64x32xf32>
    %89 = arith.addf %82, %88 : vector<64x32xf32>
    %cst_72 = arith.constant 0.797884583 : f32
    %90 = vector.broadcast %cst_72 : f32 to vector<64x32xf32>
    %91 = arith.mulf %90, %89 : vector<64x32xf32>
    %92 = math.tanh %91 : vector<64x32xf32>
    %cst_73 = arith.constant 1.000000e+00 : f32
    %93 = vector.broadcast %cst_73 : f32 to vector<64x32xf32>
    %94 = arith.addf %93, %92 : vector<64x32xf32>
    %95 = arith.mulf %84, %94 : vector<64x32xf32>
    %96 = vector.shape_cast %95 : vector<64x32xf32> to vector<1x64x32xf32>
    %c0_74 = arith.constant 0 : index
    %c0_75 = arith.constant 0 : index
    %c0_76 = arith.constant 0 : index
    %97 = vector.load %arg4[%c0_74, %c0_75, %c0_76] : memref<1x64x32xf32, #tpu.memory_space<vmem>>, vector<1x64x32xf32>
    tpu.vector_store %arg4[%c0_74, %c0_75, %c0_76], %96 {strides = array<i32>} : memref<1x64x32xf32, #tpu.memory_space<vmem>>, vector<1x64x32xf32>,
    return
  }
  func.func @transform_0(%arg0: i32) -> (i32, i32, i32, i32) {
    %c0_i32 = arith.constant 0 : i32
    %c0_i32_0 = arith.constant 0 : i32
    %c0_i32_1 = arith.constant 0 : i32
    %c0_i32_2 = arith.constant 0 : i32
    return %arg0, %c0_i32, %c0_i32_0, %c0_i32_1 : i32, i32, i32, i32
  }
  func.func @transform_1(%arg0: i32) -> (i32, i32, i32) {
    %c0_i32 = arith.constant 0 : i32
    %c0_i32_0 = arith.constant 0 : i32
    %c0_i32_1 = arith.constant 0 : i32
    %c0_i32_2 = arith.constant 0 : i32
    return %c0_i32, %c0_i32_0, %c0_i32_1 : i32, i32, i32
  }
  func.func @transform_2(%arg0: i32) -> (i32, i32) {
    %c0_i32 = arith.constant 0 : i32
    %c0_i32_0 = arith.constant 0 : i32
    %c0_i32_1 = arith.constant 0 : i32
    return %c0_i32, %c0_i32_0 : i32, i32
  }
  func.func @transform_3(%arg0: i32) -> (i32, i32, i32) {
    %c0_i32 = arith.constant 0 : i32
    %c0_i32_0 = arith.constant 0 : i32
    %c0_i32_1 = arith.constant 0 : i32
    return %arg0, %c0_i32, %c0_i32_0 : i32, i32, i32
  }
}

module attributes {stable_mosaic.version = 11 : i64} {
  func.func @_linear_cm_res_kernel(%arg0: i32, %arg1: memref<32x512xf32, #tpu.memory_space<vmem>>, %arg2: memref<32x32xf32, #tpu.memory_space<vmem>>, %arg3: memref<32x1xf32, #tpu.memory_space<vmem>>, %arg4: memref<32x512xf32, #tpu.memory_space<vmem>>, %arg5: memref<32x512xf32, #tpu.memory_space<vmem>>) attributes {dimension_semantics = [#tpu.dimension_semantics<parallel>], iteration_bounds = array<i64: 1>, scalar_prefetch = 0 : i64, scratch_operands = 0 : i64, tpu.core_type = #tpu.core_type<tc>, window_params = [{transform_indices = @transform_0, window_bounds = array<i64: 32, 512>}, {pipeline_mode = #tpu.pipeline_mode<synchronous>, transform_indices = @transform_1, window_bounds = array<i64: 32, 32>}, {pipeline_mode = #tpu.pipeline_mode<synchronous>, transform_indices = @transform_2, window_bounds = array<i64: 32, 1>}, {transform_indices = @transform_3, window_bounds = array<i64: 32, 512>}, {transform_indices = @transform_4, window_bounds = array<i64: 32, 512>}]} {
    %c0 = arith.constant 0 : index
    %c0_0 = arith.constant 0 : index
    %0 = vector.load %arg2[%c0, %c0_0] : memref<32x32xf32, #tpu.memory_space<vmem>>, vector<32x32xf32>
    %c0_1 = arith.constant 0 : index
    %c0_2 = arith.constant 0 : index
    %1 = vector.load %arg1[%c0_1, %c0_2] : memref<32x512xf32, #tpu.memory_space<vmem>>, vector<32x512xf32>
    %cst = arith.constant dense<0.000000e+00> : vector<32x512xf32>
    %2 = tpu.matmul %0, %1, %cst {dimension_numbers = #tpu.dot_dimension_numbers<[1], [0], [0], [1], [0, 0, 1, 1], [], []>} : vector<32x32xf32>, vector<32x512xf32>, vector<32x512xf32> -> vector<32x512xf32>
    %c0_3 = arith.constant 0 : index
    %c0_4 = arith.constant 0 : index
    %3 = vector.load %arg3[%c0_3, %c0_4] : memref<32x1xf32, #tpu.memory_space<vmem>>, vector<32x1xf32>
    %4 = vector.broadcast %3 : vector<32x1xf32> to vector<32x512xf32>
    %5 = arith.addf %2, %4 : vector<32x512xf32>
    %c0_5 = arith.constant 0 : index
    %c0_6 = arith.constant 0 : index
    %6 = vector.load %arg4[%c0_5, %c0_6] : memref<32x512xf32, #tpu.memory_space<vmem>>, vector<32x512xf32>
    %7 = arith.addf %5, %6 : vector<32x512xf32>
    %c0_7 = arith.constant 0 : index
    %c0_8 = arith.constant 0 : index
    %8 = vector.load %arg5[%c0_7, %c0_8] : memref<32x512xf32, #tpu.memory_space<vmem>>, vector<32x512xf32>
    tpu.vector_store %arg5[%c0_7, %c0_8], %7 {strides = array<i32>} : memref<32x512xf32, #tpu.memory_space<vmem>>, vector<32x512xf32>,
    return
  }
  func.func @transform_0(%arg0: i32) -> (i32, i32) {
    %c0_i32 = arith.constant 0 : i32
    %c0_i32_0 = arith.constant 0 : i32
    return %c0_i32, %arg0 : i32, i32
  }
  func.func @transform_1(%arg0: i32) -> (i32, i32) {
    %c0_i32 = arith.constant 0 : i32
    %c0_i32_0 = arith.constant 0 : i32
    %c0_i32_1 = arith.constant 0 : i32
    return %c0_i32, %c0_i32_0 : i32, i32
  }
  func.func @transform_2(%arg0: i32) -> (i32, i32) {
    %c0_i32 = arith.constant 0 : i32
    %c0_i32_0 = arith.constant 0 : i32
    %c0_i32_1 = arith.constant 0 : i32
    return %c0_i32, %c0_i32_0 : i32, i32
  }
  func.func @transform_3(%arg0: i32) -> (i32, i32) {
    %c0_i32 = arith.constant 0 : i32
    %c0_i32_0 = arith.constant 0 : i32
    return %c0_i32, %arg0 : i32, i32
  }
  func.func @transform_4(%arg0: i32) -> (i32, i32) {
    %c0_i32 = arith.constant 0 : i32
    %c0_i32_0 = arith.constant 0 : i32
    return %c0_i32, %arg0 : i32, i32
  }
}

module attributes {stable_mosaic.version = 11 : i64} {
  func.func @_wave_mix_kernel(%arg0: i32, %arg1: memref<32x2x256xf32, #tpu.memory_space<vmem>>, %arg2: memref<32x32x256xf32, #tpu.memory_space<vmem>>, %arg3: memref<2x32x256xf32, #tpu.memory_space<vmem>>) attributes {dimension_semantics = [#tpu.dimension_semantics<parallel>], iteration_bounds = array<i64: 2>, scalar_prefetch = 0 : i64, scratch_operands = 0 : i64, tpu.core_type = #tpu.core_type<tc>, window_params = [{transform_indices = @transform_0, window_bounds = array<i64: 32, 2, 256>}, {transform_indices = @transform_1, window_bounds = array<i64: 32, 32, 256>}, {transform_indices = @transform_2, window_bounds = array<i64: 2, 32, 256>}]} {
    %cst = arith.constant 0.000000e+00 : f32
    %0 = vector.broadcast %cst : f32 to vector<2x32x256xf32>
    %c0 = arith.constant 0 : index
    %c0_0 = arith.constant 0 : index
    %c0_1 = arith.constant 0 : index
    %1 = vector.load %arg1[%c0, %c0_0, %c0_1] : memref<32x2x256xf32, #tpu.memory_space<vmem>>, vector<1x2x256xf32>
    %2 = vector.shape_cast %1 : vector<1x2x256xf32> to vector<2x256xf32>
    %3 = vector.shape_cast %2 : vector<2x256xf32> to vector<2x1x256xf32>
    %c0_2 = arith.constant 0 : index
    %c0_3 = arith.constant 0 : index
    %c0_4 = arith.constant 0 : index
    %4 = vector.load %arg2[%c0_2, %c0_3, %c0_4] : memref<32x32x256xf32, #tpu.memory_space<vmem>>, vector<1x32x256xf32>
    %5 = vector.shape_cast %4 : vector<1x32x256xf32> to vector<32x256xf32>
    %6 = vector.shape_cast %5 : vector<32x256xf32> to vector<1x32x256xf32>
    %7 = vector.broadcast %3 : vector<2x1x256xf32> to vector<2x32x256xf32>
    %8 = vector.broadcast %6 : vector<1x32x256xf32> to vector<2x32x256xf32>
    %9 = arith.mulf %7, %8 : vector<2x32x256xf32>
    %10 = arith.addf %0, %9 : vector<2x32x256xf32>
    %c1 = arith.constant 1 : index
    %c0_5 = arith.constant 0 : index
    %c0_6 = arith.constant 0 : index
    %11 = vector.load %arg1[%c1, %c0_5, %c0_6] : memref<32x2x256xf32, #tpu.memory_space<vmem>>, vector<1x2x256xf32>
    %12 = vector.shape_cast %11 : vector<1x2x256xf32> to vector<2x256xf32>
    %13 = vector.shape_cast %12 : vector<2x256xf32> to vector<2x1x256xf32>
    %c1_7 = arith.constant 1 : index
    %c0_8 = arith.constant 0 : index
    %c0_9 = arith.constant 0 : index
    %14 = vector.load %arg2[%c1_7, %c0_8, %c0_9] : memref<32x32x256xf32, #tpu.memory_space<vmem>>, vector<1x32x256xf32>
    %15 = vector.shape_cast %14 : vector<1x32x256xf32> to vector<32x256xf32>
    %16 = vector.shape_cast %15 : vector<32x256xf32> to vector<1x32x256xf32>
    %17 = vector.broadcast %13 : vector<2x1x256xf32> to vector<2x32x256xf32>
    %18 = vector.broadcast %16 : vector<1x32x256xf32> to vector<2x32x256xf32>
    %19 = arith.mulf %17, %18 : vector<2x32x256xf32>
    %20 = arith.addf %10, %19 : vector<2x32x256xf32>
    %c2 = arith.constant 2 : index
    %c0_10 = arith.constant 0 : index
    %c0_11 = arith.constant 0 : index
    %21 = vector.load %arg1[%c2, %c0_10, %c0_11] : memref<32x2x256xf32, #tpu.memory_space<vmem>>, vector<1x2x256xf32>
    %22 = vector.shape_cast %21 : vector<1x2x256xf32> to vector<2x256xf32>
    %23 = vector.shape_cast %22 : vector<2x256xf32> to vector<2x1x256xf32>
    %c2_12 = arith.constant 2 : index
    %c0_13 = arith.constant 0 : index
    %c0_14 = arith.constant 0 : index
    %24 = vector.load %arg2[%c2_12, %c0_13, %c0_14] : memref<32x32x256xf32, #tpu.memory_space<vmem>>, vector<1x32x256xf32>
    %25 = vector.shape_cast %24 : vector<1x32x256xf32> to vector<32x256xf32>
    %26 = vector.shape_cast %25 : vector<32x256xf32> to vector<1x32x256xf32>
    %27 = vector.broadcast %23 : vector<2x1x256xf32> to vector<2x32x256xf32>
    %28 = vector.broadcast %26 : vector<1x32x256xf32> to vector<2x32x256xf32>
    %29 = arith.mulf %27, %28 : vector<2x32x256xf32>
    %30 = arith.addf %20, %29 : vector<2x32x256xf32>
    %c3 = arith.constant 3 : index
    %c0_15 = arith.constant 0 : index
    %c0_16 = arith.constant 0 : index
    %31 = vector.load %arg1[%c3, %c0_15, %c0_16] : memref<32x2x256xf32, #tpu.memory_space<vmem>>, vector<1x2x256xf32>
    %32 = vector.shape_cast %31 : vector<1x2x256xf32> to vector<2x256xf32>
    %33 = vector.shape_cast %32 : vector<2x256xf32> to vector<2x1x256xf32>
    %c3_17 = arith.constant 3 : index
    %c0_18 = arith.constant 0 : index
    %c0_19 = arith.constant 0 : index
    %34 = vector.load %arg2[%c3_17, %c0_18, %c0_19] : memref<32x32x256xf32, #tpu.memory_space<vmem>>, vector<1x32x256xf32>
    %35 = vector.shape_cast %34 : vector<1x32x256xf32> to vector<32x256xf32>
    %36 = vector.shape_cast %35 : vector<32x256xf32> to vector<1x32x256xf32>
    %37 = vector.broadcast %33 : vector<2x1x256xf32> to vector<2x32x256xf32>
    %38 = vector.broadcast %36 : vector<1x32x256xf32> to vector<2x32x256xf32>
    %39 = arith.mulf %37, %38 : vector<2x32x256xf32>
    %40 = arith.addf %30, %39 : vector<2x32x256xf32>
    %c4 = arith.constant 4 : index
    %c0_20 = arith.constant 0 : index
    %c0_21 = arith.constant 0 : index
    %41 = vector.load %arg1[%c4, %c0_20, %c0_21] : memref<32x2x256xf32, #tpu.memory_space<vmem>>, vector<1x2x256xf32>
    %42 = vector.shape_cast %41 : vector<1x2x256xf32> to vector<2x256xf32>
    %43 = vector.shape_cast %42 : vector<2x256xf32> to vector<2x1x256xf32>
    %c4_22 = arith.constant 4 : index
    %c0_23 = arith.constant 0 : index
    %c0_24 = arith.constant 0 : index
    %44 = vector.load %arg2[%c4_22, %c0_23, %c0_24] : memref<32x32x256xf32, #tpu.memory_space<vmem>>, vector<1x32x256xf32>
    %45 = vector.shape_cast %44 : vector<1x32x256xf32> to vector<32x256xf32>
    %46 = vector.shape_cast %45 : vector<32x256xf32> to vector<1x32x256xf32>
    %47 = vector.broadcast %43 : vector<2x1x256xf32> to vector<2x32x256xf32>
    %48 = vector.broadcast %46 : vector<1x32x256xf32> to vector<2x32x256xf32>
    %49 = arith.mulf %47, %48 : vector<2x32x256xf32>
    %50 = arith.addf %40, %49 : vector<2x32x256xf32>
    %c5 = arith.constant 5 : index
    %c0_25 = arith.constant 0 : index
    %c0_26 = arith.constant 0 : index
    %51 = vector.load %arg1[%c5, %c0_25, %c0_26] : memref<32x2x256xf32, #tpu.memory_space<vmem>>, vector<1x2x256xf32>
    %52 = vector.shape_cast %51 : vector<1x2x256xf32> to vector<2x256xf32>
    %53 = vector.shape_cast %52 : vector<2x256xf32> to vector<2x1x256xf32>
    %c5_27 = arith.constant 5 : index
    %c0_28 = arith.constant 0 : index
    %c0_29 = arith.constant 0 : index
    %54 = vector.load %arg2[%c5_27, %c0_28, %c0_29] : memref<32x32x256xf32, #tpu.memory_space<vmem>>, vector<1x32x256xf32>
    %55 = vector.shape_cast %54 : vector<1x32x256xf32> to vector<32x256xf32>
    %56 = vector.shape_cast %55 : vector<32x256xf32> to vector<1x32x256xf32>
    %57 = vector.broadcast %53 : vector<2x1x256xf32> to vector<2x32x256xf32>
    %58 = vector.broadcast %56 : vector<1x32x256xf32> to vector<2x32x256xf32>
    %59 = arith.mulf %57, %58 : vector<2x32x256xf32>
    %60 = arith.addf %50, %59 : vector<2x32x256xf32>
    %c6 = arith.constant 6 : index
    %c0_30 = arith.constant 0 : index
    %c0_31 = arith.constant 0 : index
    %61 = vector.load %arg1[%c6, %c0_30, %c0_31] : memref<32x2x256xf32, #tpu.memory_space<vmem>>, vector<1x2x256xf32>
    %62 = vector.shape_cast %61 : vector<1x2x256xf32> to vector<2x256xf32>
    %63 = vector.shape_cast %62 : vector<2x256xf32> to vector<2x1x256xf32>
    %c6_32 = arith.constant 6 : index
    %c0_33 = arith.constant 0 : index
    %c0_34 = arith.constant 0 : index
    %64 = vector.load %arg2[%c6_32, %c0_33, %c0_34] : memref<32x32x256xf32, #tpu.memory_space<vmem>>, vector<1x32x256xf32>
    %65 = vector.shape_cast %64 : vector<1x32x256xf32> to vector<32x256xf32>
    %66 = vector.shape_cast %65 : vector<32x256xf32> to vector<1x32x256xf32>
    %67 = vector.broadcast %63 : vector<2x1x256xf32> to vector<2x32x256xf32>
    %68 = vector.broadcast %66 : vector<1x32x256xf32> to vector<2x32x256xf32>
    %69 = arith.mulf %67, %68 : vector<2x32x256xf32>
    %70 = arith.addf %60, %69 : vector<2x32x256xf32>
    %c7 = arith.constant 7 : index
    %c0_35 = arith.constant 0 : index
    %c0_36 = arith.constant 0 : index
    %71 = vector.load %arg1[%c7, %c0_35, %c0_36] : memref<32x2x256xf32, #tpu.memory_space<vmem>>, vector<1x2x256xf32>
    %72 = vector.shape_cast %71 : vector<1x2x256xf32> to vector<2x256xf32>
    %73 = vector.shape_cast %72 : vector<2x256xf32> to vector<2x1x256xf32>
    %c7_37 = arith.constant 7 : index
    %c0_38 = arith.constant 0 : index
    %c0_39 = arith.constant 0 : index
    %74 = vector.load %arg2[%c7_37, %c0_38, %c0_39] : memref<32x32x256xf32, #tpu.memory_space<vmem>>, vector<1x32x256xf32>
    %75 = vector.shape_cast %74 : vector<1x32x256xf32> to vector<32x256xf32>
    %76 = vector.shape_cast %75 : vector<32x256xf32> to vector<1x32x256xf32>
    %77 = vector.broadcast %73 : vector<2x1x256xf32> to vector<2x32x256xf32>
    %78 = vector.broadcast %76 : vector<1x32x256xf32> to vector<2x32x256xf32>
    %79 = arith.mulf %77, %78 : vector<2x32x256xf32>
    %80 = arith.addf %70, %79 : vector<2x32x256xf32>
    %c8 = arith.constant 8 : index
    %c0_40 = arith.constant 0 : index
    %c0_41 = arith.constant 0 : index
    %81 = vector.load %arg1[%c8, %c0_40, %c0_41] : memref<32x2x256xf32, #tpu.memory_space<vmem>>, vector<1x2x256xf32>
    %82 = vector.shape_cast %81 : vector<1x2x256xf32> to vector<2x256xf32>
    %83 = vector.shape_cast %82 : vector<2x256xf32> to vector<2x1x256xf32>
    %c8_42 = arith.constant 8 : index
    %c0_43 = arith.constant 0 : index
    %c0_44 = arith.constant 0 : index
    %84 = vector.load %arg2[%c8_42, %c0_43, %c0_44] : memref<32x32x256xf32, #tpu.memory_space<vmem>>, vector<1x32x256xf32>
    %85 = vector.shape_cast %84 : vector<1x32x256xf32> to vector<32x256xf32>
    %86 = vector.shape_cast %85 : vector<32x256xf32> to vector<1x32x256xf32>
    %87 = vector.broadcast %83 : vector<2x1x256xf32> to vector<2x32x256xf32>
    %88 = vector.broadcast %86 : vector<1x32x256xf32> to vector<2x32x256xf32>
    %89 = arith.mulf %87, %88 : vector<2x32x256xf32>
    %90 = arith.addf %80, %89 : vector<2x32x256xf32>
    %c9 = arith.constant 9 : index
    %c0_45 = arith.constant 0 : index
    %c0_46 = arith.constant 0 : index
    %91 = vector.load %arg1[%c9, %c0_45, %c0_46] : memref<32x2x256xf32, #tpu.memory_space<vmem>>, vector<1x2x256xf32>
    %92 = vector.shape_cast %91 : vector<1x2x256xf32> to vector<2x256xf32>
    %93 = vector.shape_cast %92 : vector<2x256xf32> to vector<2x1x256xf32>
    %c9_47 = arith.constant 9 : index
    %c0_48 = arith.constant 0 : index
    %c0_49 = arith.constant 0 : index
    %94 = vector.load %arg2[%c9_47, %c0_48, %c0_49] : memref<32x32x256xf32, #tpu.memory_space<vmem>>, vector<1x32x256xf32>
    %95 = vector.shape_cast %94 : vector<1x32x256xf32> to vector<32x256xf32>
    %96 = vector.shape_cast %95 : vector<32x256xf32> to vector<1x32x256xf32>
    %97 = vector.broadcast %93 : vector<2x1x256xf32> to vector<2x32x256xf32>
    %98 = vector.broadcast %96 : vector<1x32x256xf32> to vector<2x32x256xf32>
    %99 = arith.mulf %97, %98 : vector<2x32x256xf32>
    %100 = arith.addf %90, %99 : vector<2x32x256xf32>
    %c10 = arith.constant 10 : index
    %c0_50 = arith.constant 0 : index
    %c0_51 = arith.constant 0 : index
    %101 = vector.load %arg1[%c10, %c0_50, %c0_51] : memref<32x2x256xf32, #tpu.memory_space<vmem>>, vector<1x2x256xf32>
    %102 = vector.shape_cast %101 : vector<1x2x256xf32> to vector<2x256xf32>
    %103 = vector.shape_cast %102 : vector<2x256xf32> to vector<2x1x256xf32>
    %c10_52 = arith.constant 10 : index
    %c0_53 = arith.constant 0 : index
    %c0_54 = arith.constant 0 : index
    %104 = vector.load %arg2[%c10_52, %c0_53, %c0_54] : memref<32x32x256xf32, #tpu.memory_space<vmem>>, vector<1x32x256xf32>
    %105 = vector.shape_cast %104 : vector<1x32x256xf32> to vector<32x256xf32>
    %106 = vector.shape_cast %105 : vector<32x256xf32> to vector<1x32x256xf32>
    %107 = vector.broadcast %103 : vector<2x1x256xf32> to vector<2x32x256xf32>
    %108 = vector.broadcast %106 : vector<1x32x256xf32> to vector<2x32x256xf32>
    %109 = arith.mulf %107, %108 : vector<2x32x256xf32>
    %110 = arith.addf %100, %109 : vector<2x32x256xf32>
    %c11 = arith.constant 11 : index
    %c0_55 = arith.constant 0 : index
    %c0_56 = arith.constant 0 : index
    %111 = vector.load %arg1[%c11, %c0_55, %c0_56] : memref<32x2x256xf32, #tpu.memory_space<vmem>>, vector<1x2x256xf32>
    %112 = vector.shape_cast %111 : vector<1x2x256xf32> to vector<2x256xf32>
    %113 = vector.shape_cast %112 : vector<2x256xf32> to vector<2x1x256xf32>
    %c11_57 = arith.constant 11 : index
    %c0_58 = arith.constant 0 : index
    %c0_59 = arith.constant 0 : index
    %114 = vector.load %arg2[%c11_57, %c0_58, %c0_59] : memref<32x32x256xf32, #tpu.memory_space<vmem>>, vector<1x32x256xf32>
    %115 = vector.shape_cast %114 : vector<1x32x256xf32> to vector<32x256xf32>
    %116 = vector.shape_cast %115 : vector<32x256xf32> to vector<1x32x256xf32>
    %117 = vector.broadcast %113 : vector<2x1x256xf32> to vector<2x32x256xf32>
    %118 = vector.broadcast %116 : vector<1x32x256xf32> to vector<2x32x256xf32>
    %119 = arith.mulf %117, %118 : vector<2x32x256xf32>
    %120 = arith.addf %110, %119 : vector<2x32x256xf32>
    %c12 = arith.constant 12 : index
    %c0_60 = arith.constant 0 : index
    %c0_61 = arith.constant 0 : index
    %121 = vector.load %arg1[%c12, %c0_60, %c0_61] : memref<32x2x256xf32, #tpu.memory_space<vmem>>, vector<1x2x256xf32>
    %122 = vector.shape_cast %121 : vector<1x2x256xf32> to vector<2x256xf32>
    %123 = vector.shape_cast %122 : vector<2x256xf32> to vector<2x1x256xf32>
    %c12_62 = arith.constant 12 : index
    %c0_63 = arith.constant 0 : index
    %c0_64 = arith.constant 0 : index
    %124 = vector.load %arg2[%c12_62, %c0_63, %c0_64] : memref<32x32x256xf32, #tpu.memory_space<vmem>>, vector<1x32x256xf32>
    %125 = vector.shape_cast %124 : vector<1x32x256xf32> to vector<32x256xf32>
    %126 = vector.shape_cast %125 : vector<32x256xf32> to vector<1x32x256xf32>
    %127 = vector.broadcast %123 : vector<2x1x256xf32> to vector<2x32x256xf32>
    %128 = vector.broadcast %126 : vector<1x32x256xf32> to vector<2x32x256xf32>
    %129 = arith.mulf %127, %128 : vector<2x32x256xf32>
    %130 = arith.addf %120, %129 : vector<2x32x256xf32>
    %c13 = arith.constant 13 : index
    %c0_65 = arith.constant 0 : index
    %c0_66 = arith.constant 0 : index
    %131 = vector.load %arg1[%c13, %c0_65, %c0_66] : memref<32x2x256xf32, #tpu.memory_space<vmem>>, vector<1x2x256xf32>
    %132 = vector.shape_cast %131 : vector<1x2x256xf32> to vector<2x256xf32>
    %133 = vector.shape_cast %132 : vector<2x256xf32> to vector<2x1x256xf32>
    %c13_67 = arith.constant 13 : index
    %c0_68 = arith.constant 0 : index
    %c0_69 = arith.constant 0 : index
    %134 = vector.load %arg2[%c13_67, %c0_68, %c0_69] : memref<32x32x256xf32, #tpu.memory_space<vmem>>, vector<1x32x256xf32>
    %135 = vector.shape_cast %134 : vector<1x32x256xf32> to vector<32x256xf32>
    %136 = vector.shape_cast %135 : vector<32x256xf32> to vector<1x32x256xf32>
    %137 = vector.broadcast %133 : vector<2x1x256xf32> to vector<2x32x256xf32>
    %138 = vector.broadcast %136 : vector<1x32x256xf32> to vector<2x32x256xf32>
    %139 = arith.mulf %137, %138 : vector<2x32x256xf32>
    %140 = arith.addf %130, %139 : vector<2x32x256xf32>
    %c14 = arith.constant 14 : index
    %c0_70 = arith.constant 0 : index
    %c0_71 = arith.constant 0 : index
    %141 = vector.load %arg1[%c14, %c0_70, %c0_71] : memref<32x2x256xf32, #tpu.memory_space<vmem>>, vector<1x2x256xf32>
    %142 = vector.shape_cast %141 : vector<1x2x256xf32> to vector<2x256xf32>
    %143 = vector.shape_cast %142 : vector<2x256xf32> to vector<2x1x256xf32>
    %c14_72 = arith.constant 14 : index
    %c0_73 = arith.constant 0 : index
    %c0_74 = arith.constant 0 : index
    %144 = vector.load %arg2[%c14_72, %c0_73, %c0_74] : memref<32x32x256xf32, #tpu.memory_space<vmem>>, vector<1x32x256xf32>
    %145 = vector.shape_cast %144 : vector<1x32x256xf32> to vector<32x256xf32>
    %146 = vector.shape_cast %145 : vector<32x256xf32> to vector<1x32x256xf32>
    %147 = vector.broadcast %143 : vector<2x1x256xf32> to vector<2x32x256xf32>
    %148 = vector.broadcast %146 : vector<1x32x256xf32> to vector<2x32x256xf32>
    %149 = arith.mulf %147, %148 : vector<2x32x256xf32>
    %150 = arith.addf %140, %149 : vector<2x32x256xf32>
    %c15 = arith.constant 15 : index
    %c0_75 = arith.constant 0 : index
    %c0_76 = arith.constant 0 : index
    %151 = vector.load %arg1[%c15, %c0_75, %c0_76] : memref<32x2x256xf32, #tpu.memory_space<vmem>>, vector<1x2x256xf32>
    %152 = vector.shape_cast %151 : vector<1x2x256xf32> to vector<2x256xf32>
    %153 = vector.shape_cast %152 : vector<2x256xf32> to vector<2x1x256xf32>
    %c15_77 = arith.constant 15 : index
    %c0_78 = arith.constant 0 : index
    %c0_79 = arith.constant 0 : index
    %154 = vector.load %arg2[%c15_77, %c0_78, %c0_79] : memref<32x32x256xf32, #tpu.memory_space<vmem>>, vector<1x32x256xf32>
    %155 = vector.shape_cast %154 : vector<1x32x256xf32> to vector<32x256xf32>
    %156 = vector.shape_cast %155 : vector<32x256xf32> to vector<1x32x256xf32>
    %157 = vector.broadcast %153 : vector<2x1x256xf32> to vector<2x32x256xf32>
    %158 = vector.broadcast %156 : vector<1x32x256xf32> to vector<2x32x256xf32>
    %159 = arith.mulf %157, %158 : vector<2x32x256xf32>
    %160 = arith.addf %150, %159 : vector<2x32x256xf32>
    %c16 = arith.constant 16 : index
    %c0_80 = arith.constant 0 : index
    %c0_81 = arith.constant 0 : index
    %161 = vector.load %arg1[%c16, %c0_80, %c0_81] : memref<32x2x256xf32, #tpu.memory_space<vmem>>, vector<1x2x256xf32>
    %162 = vector.shape_cast %161 : vector<1x2x256xf32> to vector<2x256xf32>
    %163 = vector.shape_cast %162 : vector<2x256xf32> to vector<2x1x256xf32>
    %c16_82 = arith.constant 16 : index
    %c0_83 = arith.constant 0 : index
    %c0_84 = arith.constant 0 : index
    %164 = vector.load %arg2[%c16_82, %c0_83, %c0_84] : memref<32x32x256xf32, #tpu.memory_space<vmem>>, vector<1x32x256xf32>
    %165 = vector.shape_cast %164 : vector<1x32x256xf32> to vector<32x256xf32>
    %166 = vector.shape_cast %165 : vector<32x256xf32> to vector<1x32x256xf32>
    %167 = vector.broadcast %163 : vector<2x1x256xf32> to vector<2x32x256xf32>
    %168 = vector.broadcast %166 : vector<1x32x256xf32> to vector<2x32x256xf32>
    %169 = arith.mulf %167, %168 : vector<2x32x256xf32>
    %170 = arith.addf %160, %169 : vector<2x32x256xf32>
    %c17 = arith.constant 17 : index
    %c0_85 = arith.constant 0 : index
    %c0_86 = arith.constant 0 : index
    %171 = vector.load %arg1[%c17, %c0_85, %c0_86] : memref<32x2x256xf32, #tpu.memory_space<vmem>>, vector<1x2x256xf32>
    %172 = vector.shape_cast %171 : vector<1x2x256xf32> to vector<2x256xf32>
    %173 = vector.shape_cast %172 : vector<2x256xf32> to vector<2x1x256xf32>
    %c17_87 = arith.constant 17 : index
    %c0_88 = arith.constant 0 : index
    %c0_89 = arith.constant 0 : index
    %174 = vector.load %arg2[%c17_87, %c0_88, %c0_89] : memref<32x32x256xf32, #tpu.memory_space<vmem>>, vector<1x32x256xf32>
    %175 = vector.shape_cast %174 : vector<1x32x256xf32> to vector<32x256xf32>
    %176 = vector.shape_cast %175 : vector<32x256xf32> to vector<1x32x256xf32>
    %177 = vector.broadcast %173 : vector<2x1x256xf32> to vector<2x32x256xf32>
    %178 = vector.broadcast %176 : vector<1x32x256xf32> to vector<2x32x256xf32>
    %179 = arith.mulf %177, %178 : vector<2x32x256xf32>
    %180 = arith.addf %170, %179 : vector<2x32x256xf32>
    %c18 = arith.constant 18 : index
    %c0_90 = arith.constant 0 : index
    %c0_91 = arith.constant 0 : index
    %181 = vector.load %arg1[%c18, %c0_90, %c0_91] : memref<32x2x256xf32, #tpu.memory_space<vmem>>, vector<1x2x256xf32>
    %182 = vector.shape_cast %181 : vector<1x2x256xf32> to vector<2x256xf32>
    %183 = vector.shape_cast %182 : vector<2x256xf32> to vector<2x1x256xf32>
    %c18_92 = arith.constant 18 : index
    %c0_93 = arith.constant 0 : index
    %c0_94 = arith.constant 0 : index
    %184 = vector.load %arg2[%c18_92, %c0_93, %c0_94] : memref<32x32x256xf32, #tpu.memory_space<vmem>>, vector<1x32x256xf32>
    %185 = vector.shape_cast %184 : vector<1x32x256xf32> to vector<32x256xf32>
    %186 = vector.shape_cast %185 : vector<32x256xf32> to vector<1x32x256xf32>
    %187 = vector.broadcast %183 : vector<2x1x256xf32> to vector<2x32x256xf32>
    %188 = vector.broadcast %186 : vector<1x32x256xf32> to vector<2x32x256xf32>
    %189 = arith.mulf %187, %188 : vector<2x32x256xf32>
    %190 = arith.addf %180, %189 : vector<2x32x256xf32>
    %c19 = arith.constant 19 : index
    %c0_95 = arith.constant 0 : index
    %c0_96 = arith.constant 0 : index
    %191 = vector.load %arg1[%c19, %c0_95, %c0_96] : memref<32x2x256xf32, #tpu.memory_space<vmem>>, vector<1x2x256xf32>
    %192 = vector.shape_cast %191 : vector<1x2x256xf32> to vector<2x256xf32>
    %193 = vector.shape_cast %192 : vector<2x256xf32> to vector<2x1x256xf32>
    %c19_97 = arith.constant 19 : index
    %c0_98 = arith.constant 0 : index
    %c0_99 = arith.constant 0 : index
    %194 = vector.load %arg2[%c19_97, %c0_98, %c0_99] : memref<32x32x256xf32, #tpu.memory_space<vmem>>, vector<1x32x256xf32>
    %195 = vector.shape_cast %194 : vector<1x32x256xf32> to vector<32x256xf32>
    %196 = vector.shape_cast %195 : vector<32x256xf32> to vector<1x32x256xf32>
    %197 = vector.broadcast %193 : vector<2x1x256xf32> to vector<2x32x256xf32>
    %198 = vector.broadcast %196 : vector<1x32x256xf32> to vector<2x32x256xf32>
    %199 = arith.mulf %197, %198 : vector<2x32x256xf32>
    %200 = arith.addf %190, %199 : vector<2x32x256xf32>
    %c20 = arith.constant 20 : index
    %c0_100 = arith.constant 0 : index
    %c0_101 = arith.constant 0 : index
    %201 = vector.load %arg1[%c20, %c0_100, %c0_101] : memref<32x2x256xf32, #tpu.memory_space<vmem>>, vector<1x2x256xf32>
    %202 = vector.shape_cast %201 : vector<1x2x256xf32> to vector<2x256xf32>
    %203 = vector.shape_cast %202 : vector<2x256xf32> to vector<2x1x256xf32>
    %c20_102 = arith.constant 20 : index
    %c0_103 = arith.constant 0 : index
    %c0_104 = arith.constant 0 : index
    %204 = vector.load %arg2[%c20_102, %c0_103, %c0_104] : memref<32x32x256xf32, #tpu.memory_space<vmem>>, vector<1x32x256xf32>
    %205 = vector.shape_cast %204 : vector<1x32x256xf32> to vector<32x256xf32>
    %206 = vector.shape_cast %205 : vector<32x256xf32> to vector<1x32x256xf32>
    %207 = vector.broadcast %203 : vector<2x1x256xf32> to vector<2x32x256xf32>
    %208 = vector.broadcast %206 : vector<1x32x256xf32> to vector<2x32x256xf32>
    %209 = arith.mulf %207, %208 : vector<2x32x256xf32>
    %210 = arith.addf %200, %209 : vector<2x32x256xf32>
    %c21 = arith.constant 21 : index
    %c0_105 = arith.constant 0 : index
    %c0_106 = arith.constant 0 : index
    %211 = vector.load %arg1[%c21, %c0_105, %c0_106] : memref<32x2x256xf32, #tpu.memory_space<vmem>>, vector<1x2x256xf32>
    %212 = vector.shape_cast %211 : vector<1x2x256xf32> to vector<2x256xf32>
    %213 = vector.shape_cast %212 : vector<2x256xf32> to vector<2x1x256xf32>
    %c21_107 = arith.constant 21 : index
    %c0_108 = arith.constant 0 : index
    %c0_109 = arith.constant 0 : index
    %214 = vector.load %arg2[%c21_107, %c0_108, %c0_109] : memref<32x32x256xf32, #tpu.memory_space<vmem>>, vector<1x32x256xf32>
    %215 = vector.shape_cast %214 : vector<1x32x256xf32> to vector<32x256xf32>
    %216 = vector.shape_cast %215 : vector<32x256xf32> to vector<1x32x256xf32>
    %217 = vector.broadcast %213 : vector<2x1x256xf32> to vector<2x32x256xf32>
    %218 = vector.broadcast %216 : vector<1x32x256xf32> to vector<2x32x256xf32>
    %219 = arith.mulf %217, %218 : vector<2x32x256xf32>
    %220 = arith.addf %210, %219 : vector<2x32x256xf32>
    %c22 = arith.constant 22 : index
    %c0_110 = arith.constant 0 : index
    %c0_111 = arith.constant 0 : index
    %221 = vector.load %arg1[%c22, %c0_110, %c0_111] : memref<32x2x256xf32, #tpu.memory_space<vmem>>, vector<1x2x256xf32>
    %222 = vector.shape_cast %221 : vector<1x2x256xf32> to vector<2x256xf32>
    %223 = vector.shape_cast %222 : vector<2x256xf32> to vector<2x1x256xf32>
    %c22_112 = arith.constant 22 : index
    %c0_113 = arith.constant 0 : index
    %c0_114 = arith.constant 0 : index
    %224 = vector.load %arg2[%c22_112, %c0_113, %c0_114] : memref<32x32x256xf32, #tpu.memory_space<vmem>>, vector<1x32x256xf32>
    %225 = vector.shape_cast %224 : vector<1x32x256xf32> to vector<32x256xf32>
    %226 = vector.shape_cast %225 : vector<32x256xf32> to vector<1x32x256xf32>
    %227 = vector.broadcast %223 : vector<2x1x256xf32> to vector<2x32x256xf32>
    %228 = vector.broadcast %226 : vector<1x32x256xf32> to vector<2x32x256xf32>
    %229 = arith.mulf %227, %228 : vector<2x32x256xf32>
    %230 = arith.addf %220, %229 : vector<2x32x256xf32>
    %c23 = arith.constant 23 : index
    %c0_115 = arith.constant 0 : index
    %c0_116 = arith.constant 0 : index
    %231 = vector.load %arg1[%c23, %c0_115, %c0_116] : memref<32x2x256xf32, #tpu.memory_space<vmem>>, vector<1x2x256xf32>
    %232 = vector.shape_cast %231 : vector<1x2x256xf32> to vector<2x256xf32>
    %233 = vector.shape_cast %232 : vector<2x256xf32> to vector<2x1x256xf32>
    %c23_117 = arith.constant 23 : index
    %c0_118 = arith.constant 0 : index
    %c0_119 = arith.constant 0 : index
    %234 = vector.load %arg2[%c23_117, %c0_118, %c0_119] : memref<32x32x256xf32, #tpu.memory_space<vmem>>, vector<1x32x256xf32>
    %235 = vector.shape_cast %234 : vector<1x32x256xf32> to vector<32x256xf32>
    %236 = vector.shape_cast %235 : vector<32x256xf32> to vector<1x32x256xf32>
    %237 = vector.broadcast %233 : vector<2x1x256xf32> to vector<2x32x256xf32>
    %238 = vector.broadcast %236 : vector<1x32x256xf32> to vector<2x32x256xf32>
    %239 = arith.mulf %237, %238 : vector<2x32x256xf32>
    %240 = arith.addf %230, %239 : vector<2x32x256xf32>
    %c24 = arith.constant 24 : index
    %c0_120 = arith.constant 0 : index
    %c0_121 = arith.constant 0 : index
    %241 = vector.load %arg1[%c24, %c0_120, %c0_121] : memref<32x2x256xf32, #tpu.memory_space<vmem>>, vector<1x2x256xf32>
    %242 = vector.shape_cast %241 : vector<1x2x256xf32> to vector<2x256xf32>
    %243 = vector.shape_cast %242 : vector<2x256xf32> to vector<2x1x256xf32>
    %c24_122 = arith.constant 24 : index
    %c0_123 = arith.constant 0 : index
    %c0_124 = arith.constant 0 : index
    %244 = vector.load %arg2[%c24_122, %c0_123, %c0_124] : memref<32x32x256xf32, #tpu.memory_space<vmem>>, vector<1x32x256xf32>
    %245 = vector.shape_cast %244 : vector<1x32x256xf32> to vector<32x256xf32>
    %246 = vector.shape_cast %245 : vector<32x256xf32> to vector<1x32x256xf32>
    %247 = vector.broadcast %243 : vector<2x1x256xf32> to vector<2x32x256xf32>
    %248 = vector.broadcast %246 : vector<1x32x256xf32> to vector<2x32x256xf32>
    %249 = arith.mulf %247, %248 : vector<2x32x256xf32>
    %250 = arith.addf %240, %249 : vector<2x32x256xf32>
    %c25 = arith.constant 25 : index
    %c0_125 = arith.constant 0 : index
    %c0_126 = arith.constant 0 : index
    %251 = vector.load %arg1[%c25, %c0_125, %c0_126] : memref<32x2x256xf32, #tpu.memory_space<vmem>>, vector<1x2x256xf32>
    %252 = vector.shape_cast %251 : vector<1x2x256xf32> to vector<2x256xf32>
    %253 = vector.shape_cast %252 : vector<2x256xf32> to vector<2x1x256xf32>
    %c25_127 = arith.constant 25 : index
    %c0_128 = arith.constant 0 : index
    %c0_129 = arith.constant 0 : index
    %254 = vector.load %arg2[%c25_127, %c0_128, %c0_129] : memref<32x32x256xf32, #tpu.memory_space<vmem>>, vector<1x32x256xf32>
    %255 = vector.shape_cast %254 : vector<1x32x256xf32> to vector<32x256xf32>
    %256 = vector.shape_cast %255 : vector<32x256xf32> to vector<1x32x256xf32>
    %257 = vector.broadcast %253 : vector<2x1x256xf32> to vector<2x32x256xf32>
    %258 = vector.broadcast %256 : vector<1x32x256xf32> to vector<2x32x256xf32>
    %259 = arith.mulf %257, %258 : vector<2x32x256xf32>
    %260 = arith.addf %250, %259 : vector<2x32x256xf32>
    %c26 = arith.constant 26 : index
    %c0_130 = arith.constant 0 : index
    %c0_131 = arith.constant 0 : index
    %261 = vector.load %arg1[%c26, %c0_130, %c0_131] : memref<32x2x256xf32, #tpu.memory_space<vmem>>, vector<1x2x256xf32>
    %262 = vector.shape_cast %261 : vector<1x2x256xf32> to vector<2x256xf32>
    %263 = vector.shape_cast %262 : vector<2x256xf32> to vector<2x1x256xf32>
    %c26_132 = arith.constant 26 : index
    %c0_133 = arith.constant 0 : index
    %c0_134 = arith.constant 0 : index
    %264 = vector.load %arg2[%c26_132, %c0_133, %c0_134] : memref<32x32x256xf32, #tpu.memory_space<vmem>>, vector<1x32x256xf32>
    %265 = vector.shape_cast %264 : vector<1x32x256xf32> to vector<32x256xf32>
    %266 = vector.shape_cast %265 : vector<32x256xf32> to vector<1x32x256xf32>
    %267 = vector.broadcast %263 : vector<2x1x256xf32> to vector<2x32x256xf32>
    %268 = vector.broadcast %266 : vector<1x32x256xf32> to vector<2x32x256xf32>
    %269 = arith.mulf %267, %268 : vector<2x32x256xf32>
    %270 = arith.addf %260, %269 : vector<2x32x256xf32>
    %c27 = arith.constant 27 : index
    %c0_135 = arith.constant 0 : index
    %c0_136 = arith.constant 0 : index
    %271 = vector.load %arg1[%c27, %c0_135, %c0_136] : memref<32x2x256xf32, #tpu.memory_space<vmem>>, vector<1x2x256xf32>
    %272 = vector.shape_cast %271 : vector<1x2x256xf32> to vector<2x256xf32>
    %273 = vector.shape_cast %272 : vector<2x256xf32> to vector<2x1x256xf32>
    %c27_137 = arith.constant 27 : index
    %c0_138 = arith.constant 0 : index
    %c0_139 = arith.constant 0 : index
    %274 = vector.load %arg2[%c27_137, %c0_138, %c0_139] : memref<32x32x256xf32, #tpu.memory_space<vmem>>, vector<1x32x256xf32>
    %275 = vector.shape_cast %274 : vector<1x32x256xf32> to vector<32x256xf32>
    %276 = vector.shape_cast %275 : vector<32x256xf32> to vector<1x32x256xf32>
    %277 = vector.broadcast %273 : vector<2x1x256xf32> to vector<2x32x256xf32>
    %278 = vector.broadcast %276 : vector<1x32x256xf32> to vector<2x32x256xf32>
    %279 = arith.mulf %277, %278 : vector<2x32x256xf32>
    %280 = arith.addf %270, %279 : vector<2x32x256xf32>
    %c28 = arith.constant 28 : index
    %c0_140 = arith.constant 0 : index
    %c0_141 = arith.constant 0 : index
    %281 = vector.load %arg1[%c28, %c0_140, %c0_141] : memref<32x2x256xf32, #tpu.memory_space<vmem>>, vector<1x2x256xf32>
    %282 = vector.shape_cast %281 : vector<1x2x256xf32> to vector<2x256xf32>
    %283 = vector.shape_cast %282 : vector<2x256xf32> to vector<2x1x256xf32>
    %c28_142 = arith.constant 28 : index
    %c0_143 = arith.constant 0 : index
    %c0_144 = arith.constant 0 : index
    %284 = vector.load %arg2[%c28_142, %c0_143, %c0_144] : memref<32x32x256xf32, #tpu.memory_space<vmem>>, vector<1x32x256xf32>
    %285 = vector.shape_cast %284 : vector<1x32x256xf32> to vector<32x256xf32>
    %286 = vector.shape_cast %285 : vector<32x256xf32> to vector<1x32x256xf32>
    %287 = vector.broadcast %283 : vector<2x1x256xf32> to vector<2x32x256xf32>
    %288 = vector.broadcast %286 : vector<1x32x256xf32> to vector<2x32x256xf32>
    %289 = arith.mulf %287, %288 : vector<2x32x256xf32>
    %290 = arith.addf %280, %289 : vector<2x32x256xf32>
    %c29 = arith.constant 29 : index
    %c0_145 = arith.constant 0 : index
    %c0_146 = arith.constant 0 : index
    %291 = vector.load %arg1[%c29, %c0_145, %c0_146] : memref<32x2x256xf32, #tpu.memory_space<vmem>>, vector<1x2x256xf32>
    %292 = vector.shape_cast %291 : vector<1x2x256xf32> to vector<2x256xf32>
    %293 = vector.shape_cast %292 : vector<2x256xf32> to vector<2x1x256xf32>
    %c29_147 = arith.constant 29 : index
    %c0_148 = arith.constant 0 : index
    %c0_149 = arith.constant 0 : index
    %294 = vector.load %arg2[%c29_147, %c0_148, %c0_149] : memref<32x32x256xf32, #tpu.memory_space<vmem>>, vector<1x32x256xf32>
    %295 = vector.shape_cast %294 : vector<1x32x256xf32> to vector<32x256xf32>
    %296 = vector.shape_cast %295 : vector<32x256xf32> to vector<1x32x256xf32>
    %297 = vector.broadcast %293 : vector<2x1x256xf32> to vector<2x32x256xf32>
    %298 = vector.broadcast %296 : vector<1x32x256xf32> to vector<2x32x256xf32>
    %299 = arith.mulf %297, %298 : vector<2x32x256xf32>
    %300 = arith.addf %290, %299 : vector<2x32x256xf32>
    %c30 = arith.constant 30 : index
    %c0_150 = arith.constant 0 : index
    %c0_151 = arith.constant 0 : index
    %301 = vector.load %arg1[%c30, %c0_150, %c0_151] : memref<32x2x256xf32, #tpu.memory_space<vmem>>, vector<1x2x256xf32>
    %302 = vector.shape_cast %301 : vector<1x2x256xf32> to vector<2x256xf32>
    %303 = vector.shape_cast %302 : vector<2x256xf32> to vector<2x1x256xf32>
    %c30_152 = arith.constant 30 : index
    %c0_153 = arith.constant 0 : index
    %c0_154 = arith.constant 0 : index
    %304 = vector.load %arg2[%c30_152, %c0_153, %c0_154] : memref<32x32x256xf32, #tpu.memory_space<vmem>>, vector<1x32x256xf32>
    %305 = vector.shape_cast %304 : vector<1x32x256xf32> to vector<32x256xf32>
    %306 = vector.shape_cast %305 : vector<32x256xf32> to vector<1x32x256xf32>
    %307 = vector.broadcast %303 : vector<2x1x256xf32> to vector<2x32x256xf32>
    %308 = vector.broadcast %306 : vector<1x32x256xf32> to vector<2x32x256xf32>
    %309 = arith.mulf %307, %308 : vector<2x32x256xf32>
    %310 = arith.addf %300, %309 : vector<2x32x256xf32>
    %c31 = arith.constant 31 : index
    %c0_155 = arith.constant 0 : index
    %c0_156 = arith.constant 0 : index
    %311 = vector.load %arg1[%c31, %c0_155, %c0_156] : memref<32x2x256xf32, #tpu.memory_space<vmem>>, vector<1x2x256xf32>
    %312 = vector.shape_cast %311 : vector<1x2x256xf32> to vector<2x256xf32>
    %313 = vector.shape_cast %312 : vector<2x256xf32> to vector<2x1x256xf32>
    %c31_157 = arith.constant 31 : index
    %c0_158 = arith.constant 0 : index
    %c0_159 = arith.constant 0 : index
    %314 = vector.load %arg2[%c31_157, %c0_158, %c0_159] : memref<32x32x256xf32, #tpu.memory_space<vmem>>, vector<1x32x256xf32>
    %315 = vector.shape_cast %314 : vector<1x32x256xf32> to vector<32x256xf32>
    %316 = vector.shape_cast %315 : vector<32x256xf32> to vector<1x32x256xf32>
    %317 = vector.broadcast %313 : vector<2x1x256xf32> to vector<2x32x256xf32>
    %318 = vector.broadcast %316 : vector<1x32x256xf32> to vector<2x32x256xf32>
    %319 = arith.mulf %317, %318 : vector<2x32x256xf32>
    %320 = arith.addf %310, %319 : vector<2x32x256xf32>
    %c0_160 = arith.constant 0 : index
    %c0_161 = arith.constant 0 : index
    %c0_162 = arith.constant 0 : index
    %321 = vector.load %arg3[%c0_160, %c0_161, %c0_162] : memref<2x32x256xf32, #tpu.memory_space<vmem>>, vector<2x32x256xf32>
    tpu.vector_store %arg3[%c0_160, %c0_161, %c0_162], %320 {strides = array<i32>} : memref<2x32x256xf32, #tpu.memory_space<vmem>>, vector<2x32x256xf32>,
    return
  }
  func.func @transform_0(%arg0: i32) -> (i32, i32, i32) {
    %c0_i32 = arith.constant 0 : i32
    %c0_i32_0 = arith.constant 0 : i32
    %c0_i32_1 = arith.constant 0 : i32
    return %c0_i32, %c0_i32_0, %arg0 : i32, i32, i32
  }
  func.func @transform_1(%arg0: i32) -> (i32, i32, i32) {
    %c0_i32 = arith.constant 0 : i32
    %c0_i32_0 = arith.constant 0 : i32
    %c0_i32_1 = arith.constant 0 : i32
    return %c0_i32, %c0_i32_0, %arg0 : i32, i32, i32
  }
  func.func @transform_2(%arg0: i32) -> (i32, i32, i32) {
    %c0_i32 = arith.constant 0 : i32
    %c0_i32_0 = arith.constant 0 : i32
    %c0_i32_1 = arith.constant 0 : i32
    return %c0_i32, %c0_i32_0, %arg0 : i32, i32, i32
  }
}

module attributes {stable_mosaic.version = 11 : i64} {
  func.func @_linear_cm_res_kernel(%arg0: i32, %arg1: memref<32x512xf32, #tpu.memory_space<vmem>>, %arg2: memref<32x32xf32, #tpu.memory_space<vmem>>, %arg3: memref<32x1xf32, #tpu.memory_space<vmem>>, %arg4: memref<32x512xf32, #tpu.memory_space<vmem>>, %arg5: memref<32x512xf32, #tpu.memory_space<vmem>>) attributes {dimension_semantics = [#tpu.dimension_semantics<parallel>], iteration_bounds = array<i64: 1>, scalar_prefetch = 0 : i64, scratch_operands = 0 : i64, tpu.core_type = #tpu.core_type<tc>, window_params = [{transform_indices = @transform_0, window_bounds = array<i64: 32, 512>}, {pipeline_mode = #tpu.pipeline_mode<synchronous>, transform_indices = @transform_1, window_bounds = array<i64: 32, 32>}, {pipeline_mode = #tpu.pipeline_mode<synchronous>, transform_indices = @transform_2, window_bounds = array<i64: 32, 1>}, {transform_indices = @transform_3, window_bounds = array<i64: 32, 512>}, {transform_indices = @transform_4, window_bounds = array<i64: 32, 512>}]} {
    %c0 = arith.constant 0 : index
    %c0_0 = arith.constant 0 : index
    %0 = vector.load %arg2[%c0, %c0_0] : memref<32x32xf32, #tpu.memory_space<vmem>>, vector<32x32xf32>
    %c0_1 = arith.constant 0 : index
    %c0_2 = arith.constant 0 : index
    %1 = vector.load %arg1[%c0_1, %c0_2] : memref<32x512xf32, #tpu.memory_space<vmem>>, vector<32x512xf32>
    %cst = arith.constant dense<0.000000e+00> : vector<32x512xf32>
    %2 = tpu.matmul %0, %1, %cst {dimension_numbers = #tpu.dot_dimension_numbers<[1], [0], [0], [1], [0, 0, 1, 1], [], []>} : vector<32x32xf32>, vector<32x512xf32>, vector<32x512xf32> -> vector<32x512xf32>
    %c0_3 = arith.constant 0 : index
    %c0_4 = arith.constant 0 : index
    %3 = vector.load %arg3[%c0_3, %c0_4] : memref<32x1xf32, #tpu.memory_space<vmem>>, vector<32x1xf32>
    %4 = vector.broadcast %3 : vector<32x1xf32> to vector<32x512xf32>
    %5 = arith.addf %2, %4 : vector<32x512xf32>
    %c0_5 = arith.constant 0 : index
    %c0_6 = arith.constant 0 : index
    %6 = vector.load %arg4[%c0_5, %c0_6] : memref<32x512xf32, #tpu.memory_space<vmem>>, vector<32x512xf32>
    %7 = arith.addf %5, %6 : vector<32x512xf32>
    %cst_7 = arith.constant 5.000000e-01 : f32
    %8 = vector.broadcast %cst_7 : f32 to vector<32x512xf32>
    %9 = arith.mulf %8, %7 : vector<32x512xf32>
    %cst_8 = arith.constant 4.471500e-02 : f32
    %10 = vector.broadcast %cst_8 : f32 to vector<32x512xf32>
    %11 = arith.mulf %10, %7 : vector<32x512xf32>
    %12 = arith.mulf %11, %7 : vector<32x512xf32>
    %13 = arith.mulf %12, %7 : vector<32x512xf32>
    %14 = arith.addf %7, %13 : vector<32x512xf32>
    %cst_9 = arith.constant 0.797884583 : f32
    %15 = vector.broadcast %cst_9 : f32 to vector<32x512xf32>
    %16 = arith.mulf %15, %14 : vector<32x512xf32>
    %17 = math.tanh %16 : vector<32x512xf32>
    %cst_10 = arith.constant 1.000000e+00 : f32
    %18 = vector.broadcast %cst_10 : f32 to vector<32x512xf32>
    %19 = arith.addf %18, %17 : vector<32x512xf32>
    %20 = arith.mulf %9, %19 : vector<32x512xf32>
    %c0_11 = arith.constant 0 : index
    %c0_12 = arith.constant 0 : index
    %21 = vector.load %arg5[%c0_11, %c0_12] : memref<32x512xf32, #tpu.memory_space<vmem>>, vector<32x512xf32>
    tpu.vector_store %arg5[%c0_11, %c0_12], %20 {strides = array<i32>} : memref<32x512xf32, #tpu.memory_space<vmem>>, vector<32x512xf32>,
    return
  }
  func.func @transform_0(%arg0: i32) -> (i32, i32) {
    %c0_i32 = arith.constant 0 : i32
    %c0_i32_0 = arith.constant 0 : i32
    return %c0_i32, %arg0 : i32, i32
  }
  func.func @transform_1(%arg0: i32) -> (i32, i32) {
    %c0_i32 = arith.constant 0 : i32
    %c0_i32_0 = arith.constant 0 : i32
    %c0_i32_1 = arith.constant 0 : i32
    return %c0_i32, %c0_i32_0 : i32, i32
  }
  func.func @transform_2(%arg0: i32) -> (i32, i32) {
    %c0_i32 = arith.constant 0 : i32
    %c0_i32_0 = arith.constant 0 : i32
    %c0_i32_1 = arith.constant 0 : i32
    return %c0_i32, %c0_i32_0 : i32, i32
  }
  func.func @transform_3(%arg0: i32) -> (i32, i32) {
    %c0_i32 = arith.constant 0 : i32
    %c0_i32_0 = arith.constant 0 : i32
    return %c0_i32, %arg0 : i32, i32
  }
  func.func @transform_4(%arg0: i32) -> (i32, i32) {
    %c0_i32 = arith.constant 0 : i32
    %c0_i32_0 = arith.constant 0 : i32
    return %c0_i32, %arg0 : i32, i32
  }
}

module attributes {stable_mosaic.version = 11 : i64} {
  func.func @_head_cm_kernel(%arg0: i32, %arg1: memref<32x512xf32, #tpu.memory_space<vmem>>, %arg2: memref<192x32xf32, #tpu.memory_space<vmem>>, %arg3: memref<192x1xf32, #tpu.memory_space<vmem>>, %arg4: memref<1x192xf32, #tpu.memory_space<vmem>>, %arg5: memref<1x1xf32, #tpu.memory_space<vmem>>, %arg6: memref<1x512xf32, #tpu.memory_space<vmem>>) attributes {dimension_semantics = [#tpu.dimension_semantics<parallel>], iteration_bounds = array<i64: 1>, scalar_prefetch = 0 : i64, scratch_operands = 0 : i64, tpu.core_type = #tpu.core_type<tc>, window_params = [{transform_indices = @transform_0, window_bounds = array<i64: 32, 512>}, {pipeline_mode = #tpu.pipeline_mode<synchronous>, transform_indices = @transform_1, window_bounds = array<i64: 192, 32>}, {pipeline_mode = #tpu.pipeline_mode<synchronous>, transform_indices = @transform_2, window_bounds = array<i64: 192, 1>}, {pipeline_mode = #tpu.pipeline_mode<synchronous>, transform_indices = @transform_3, window_bounds = array<i64: 1, 192>}, {pipeline_mode = #tpu.pipeline_mode<synchronous>, transform_indices = @transform_4, window_bounds = array<i64: 1, 1>}, {transform_indices = @transform_5, window_bounds = array<i64: 1, 512>}]} {
    %c0 = arith.constant 0 : index
    %c0_0 = arith.constant 0 : index
    %0 = vector.load %arg2[%c0, %c0_0] : memref<192x32xf32, #tpu.memory_space<vmem>>, vector<192x32xf32>
    %c0_1 = arith.constant 0 : index
    %c0_2 = arith.constant 0 : index
    %1 = vector.load %arg1[%c0_1, %c0_2] : memref<32x512xf32, #tpu.memory_space<vmem>>, vector<32x512xf32>
    %cst = arith.constant dense<0.000000e+00> : vector<192x512xf32>
    %2 = tpu.matmul %0, %1, %cst {dimension_numbers = #tpu.dot_dimension_numbers<[1], [0], [0], [1], [0, 0, 1, 1], [], []>} : vector<192x32xf32>, vector<32x512xf32>, vector<192x512xf32> -> vector<192x512xf32>
    %c0_3 = arith.constant 0 : index
    %c0_4 = arith.constant 0 : index
    %3 = vector.load %arg3[%c0_3, %c0_4] : memref<192x1xf32, #tpu.memory_space<vmem>>, vector<192x1xf32>
    %4 = vector.broadcast %3 : vector<192x1xf32> to vector<192x512xf32>
    %5 = arith.addf %2, %4 : vector<192x512xf32>
    %cst_5 = arith.constant 5.000000e-01 : f32
    %6 = vector.broadcast %cst_5 : f32 to vector<192x512xf32>
    %7 = arith.mulf %6, %5 : vector<192x512xf32>
    %cst_6 = arith.constant 4.471500e-02 : f32
    %8 = vector.broadcast %cst_6 : f32 to vector<192x512xf32>
    %9 = arith.mulf %8, %5 : vector<192x512xf32>
    %10 = arith.mulf %9, %5 : vector<192x512xf32>
    %11 = arith.mulf %10, %5 : vector<192x512xf32>
    %12 = arith.addf %5, %11 : vector<192x512xf32>
    %cst_7 = arith.constant 0.797884583 : f32
    %13 = vector.broadcast %cst_7 : f32 to vector<192x512xf32>
    %14 = arith.mulf %13, %12 : vector<192x512xf32>
    %15 = math.tanh %14 : vector<192x512xf32>
    %cst_8 = arith.constant 1.000000e+00 : f32
    %16 = vector.broadcast %cst_8 : f32 to vector<192x512xf32>
    %17 = arith.addf %16, %15 : vector<192x512xf32>
    %18 = arith.mulf %7, %17 : vector<192x512xf32>
    %c0_9 = arith.constant 0 : index
    %c0_10 = arith.constant 0 : index
    %19 = vector.load %arg4[%c0_9, %c0_10] : memref<1x192xf32, #tpu.memory_space<vmem>>, vector<1x192xf32>
    %cst_11 = arith.constant dense<0.000000e+00> : vector<1x512xf32>
    %20 = tpu.matmul %19, %18, %cst_11 {dimension_numbers = #tpu.dot_dimension_numbers<[1], [0], [0], [1], [0, 0, 1, 1], [], []>} : vector<1x192xf32>, vector<192x512xf32>, vector<1x512xf32> -> vector<1x512xf32>
    %c0_12 = arith.constant 0 : index
    %c0_13 = arith.constant 0 : index
    %21 = vector.load %arg5[%c0_12, %c0_13] : memref<1x1xf32, #tpu.memory_space<vmem>>, vector<1x1xf32>
    %22 = vector.broadcast %21 : vector<1x1xf32> to vector<1x512xf32>
    %23 = arith.addf %20, %22 : vector<1x512xf32>
    %c0_14 = arith.constant 0 : index
    %c0_15 = arith.constant 0 : index
    %24 = vector.load %arg6[%c0_14, %c0_15] : memref<1x512xf32, #tpu.memory_space<vmem>>, vector<1x512xf32>
    tpu.vector_store %arg6[%c0_14, %c0_15], %23 {strides = array<i32>} : memref<1x512xf32, #tpu.memory_space<vmem>>, vector<1x512xf32>,
    return
  }
  func.func @transform_0(%arg0: i32) -> (i32, i32) {
    %c0_i32 = arith.constant 0 : i32
    %c0_i32_0 = arith.constant 0 : i32
    return %c0_i32, %arg0 : i32, i32
  }
  func.func @transform_1(%arg0: i32) -> (i32, i32) {
    %c0_i32 = arith.constant 0 : i32
    %c0_i32_0 = arith.constant 0 : i32
    %c0_i32_1 = arith.constant 0 : i32
    return %c0_i32, %c0_i32_0 : i32, i32
  }
  func.func @transform_2(%arg0: i32) -> (i32, i32) {
    %c0_i32 = arith.constant 0 : i32
    %c0_i32_0 = arith.constant 0 : i32
    %c0_i32_1 = arith.constant 0 : i32
    return %c0_i32, %c0_i32_0 : i32, i32
  }
  func.func @transform_3(%arg0: i32) -> (i32, i32) {
    %c0_i32 = arith.constant 0 : i32
    %c0_i32_0 = arith.constant 0 : i32
    %c0_i32_1 = arith.constant 0 : i32
    return %c0_i32, %c0_i32_0 : i32, i32
  }
  func.func @transform_4(%arg0: i32) -> (i32, i32) {
    %c0_i32 = arith.constant 0 : i32
    %c0_i32_0 = arith.constant 0 : i32
    %c0_i32_1 = arith.constant 0 : i32
    return %c0_i32, %c0_i32_0 : i32, i32
  }
  func.func @transform_5(%arg0: i32) -> (i32, i32) {
    %c0_i32 = arith.constant 0 : i32
    %c0_i32_0 = arith.constant 0 : i32
    return %c0_i32, %arg0 : i32, i32
  }
}

</mosaic_0001>

<bundles_post_ra>
// kernel: mul.42
= control target key start
LH: loop header
LB: loop body
LE: loop exit
PB: predicated region body
PF: predicated region fallthrough
CT: control target
= control target key end

     0   :  { %s43_s8 = smov 116   ;;  %vm7_vm0 = vcmask 31744   ;;  %s44_s9 = smov 120   ;;  %s64_s0 = inlined_call_operand.vmem [shape: f32[2,16], index: 0, kind: input, shape index: {}]   ;;  %s65_s1 = inlined_call_operand.vmem [shape: f32[2,4,4], index: 1, kind: output, shape index: {}]  }
   0x1   :  { %v4_v0 = vld [vmem:[%s64_s0] sm:$0x3]  ;;  %s42_s0 = smov 124  }
   0x2   :  { %5 = vst [vmem:[#allocation1] sm:$0x3] %v4_v0 }
   0x9   :  { %v9_v1 = vld [vmem:[#allocation1] sm:$0x3]  }
   0xa   :  { %v21_v2 = vld [vmem:[#allocation1] sm:$0x3]   ;;  %10 = vrot.lane.b32.xlu0 %v9_v1, %s42_s0 }
   0xb   :  { %22 = vrot.lane.b32.xlu1 %v21_v2, %s43_s8  ;;  %v6_v3 = vld [vmem:[#allocation1] sm:$0x3]  }
   0xc   :  { %v15_v4 = vld [vmem:[#allocation1] sm:$0x3]   ;;  %8 = vst.msk [vmem:[#allocation0] ss:$8 sm:$0x3] %vm7_vm0, %v6_v3  }
   0xe   :  { %16 = vrot.lane.b32.xlu0 %v15_v4, %s44_s9 }
  0x7c   :  { %v11_v5 = vpop.permute.xlu0 %10  }
  0x7d   :  { %v23_v6 = vpop.permute.xlu1 %22   ;;  %14 = vst.msk [vmem:[#allocation0 + $0x1] ss:$8 sm:$0x3] %vm7_vm0, %v11_v5  }
  0x7e   :  { %26 = vst.msk [vmem:[#allocation0 + $0x3] ss:$8 sm:$0x3] %vm7_vm0, %v23_v6  }
  0x80   :  { %v17_v7 = vpop.permute.xlu0 %16  }
  0x81   :  { %20 = vst.msk [vmem:[#allocation0 + $0x2] ss:$8 sm:$0x3] %vm7_vm0, %v17_v7  }
  0x88   :  { %v30_v8 = vld [vmem:[#allocation0] sm:$0xf]  ;;  %v34_v9 = vld [vmem:[#allocation0 + $0x8] sm:$0xf] }
  0x89   :  { %32 = vst [vmem:[%s65_s1] sm:$0xf] %v30_v8  ;;  %38 = vst [vmem:[%s65_s1 + $0x4] sm:$0xf] %v34_v9 }

// kernel: wno_recon_forward.13
= control target key start
LH: loop header
LB: loop body
LE: loop exit
PB: predicated region body
PF: predicated region fallthrough
CT: control target
= control target key end

     0   :  { %12 = vsyncpa [#allocation3], 0  ;;  %s935_s0 = inlined_call_operand.hbm [shape: f32[2,8], index: 0, kind: input, shape index: {}]   ;;  %s936_s1 = inlined_call_operand.hbm [shape: f32[8,128], index: 1, kind: input, shape index: {}]   ;;  %s937_s2 = inlined_call_operand.hbm [shape: f32[1,128], index: 2, kind: input, shape index: {}]   ;;  %s938_s3 = inlined_call_operand.hbm [shape: f32[128,256], index: 3, kind: input, shape index: {}]   ;;  %s939_s4 = inlined_call_operand.hbm [shape: f32[1,256], index: 4, kind: input, shape index: {}]   ;;  %s940_s5 = inlined_call_operand.vmem [shape: f32[256,16], index: 5, kind: input, shape index: {}]   ;;  %s941_s6 = inlined_call_operand.hbm [shape: f32[1,16], index: 6, kind: input, shape index: {}]   ;;  %s942_s7 = inlined_call_operand.vmem [shape: f32[2,16], index: 7, kind: output, shape index: {}]  }
   0x1   :  { %13 = vsyncpa [#allocation5], 0 }
   0x2   :  { %14 = vsyncpa [#allocation8], 0 }
   0x3   :  { %15 = vsyncpa [#allocation11], 0  ;;  %s707_s24 = smov [#allocation4]   ;;  %s708_s26 = smov [#allocation7]  }
   0x4   :  { %s32_s25 = sshll.u32 %s707_s24, 4  ;;  %s51_s27 = sshll.u32 %s708_s26, 4  ;;  %s33_s25 = int_to_ptr.vmem [resolvable:$true] %s32_s25  ;;  %s757_s27 = int_to_ptr.vmem [resolvable:$true] %s51_s27 }
   0x5   :  { %s567_s30 = scalar_lea.hbm %s936_s1, 128 }
   0x6   :  { %p568_p0 = scmp.ne.s32.totalorder %s936_s1, %s567_s30  ;;  %p571_p1 = scmp.lt.u32.totalorder %s567_s30, %s936_s1 }
   0x8   :  { %p573_p2 = pnand %p571_p1, %p568_p0 }
   0xa   :  { %576 = shalt.err (!%p573_p2)
}
   0xb   :  { %s577_s12 = scalar_lea.vmem %s33_s25, 128  ;;  %p582_p4 = scmp.lt.s32.totalorder %s33_s25, %s33_s25 }
   0xc   :  { %p578_p3 = scmp.ne.s32.totalorder %s33_s25, %s577_s12  ;;  %p583_p5 = scmp.lt.s32.totalorder %s577_s12, %s577_s12 }
   0xe   :  { %p584_p6 = por %p583_p5, %p582_p4 }
  0x10   :  { %p585_p7 = pnand %p584_p6, %p578_p3 }
  0x12   :  { %588 = shalt.err (!%p585_p7)
}
  0x13   :  { %35 = dma.hbm_to_vmem [thread:$0]  %s936_s1, 128, %s33_s25, [#allocation5]  }
  0x14   :  { %s589_s17 = scalar_lea.hbm %s938_s3, 4096 }
  0x15   :  { %p590_p8 = scmp.ne.s32.totalorder %s938_s3, %s589_s17  ;;  %p593_p9 = scmp.lt.u32.totalorder %s589_s17, %s938_s3 }
  0x17   :  { %p595_p10 = pnand %p593_p9, %p590_p8 }
  0x19   :  { %598 = shalt.err (!%p595_p10)
}
  0x1a   :  { %s599_s22 = scalar_lea.vmem %s757_s27, 4096  ;;  %p604_p12 = scmp.lt.s32.totalorder %s757_s27, %s757_s27 }
  0x1b   :  { %p600_p11 = scmp.ne.s32.totalorder %s757_s27, %s599_s22  ;;  %p605_p13 = scmp.lt.s32.totalorder %s599_s22, %s599_s22 }
  0x1d   :  { %p606_p0 = por %p605_p13, %p604_p12 }
  0x1f   :  { %p607_p1 = pnand %p606_p0, %p600_p11 }
  0x21   :  { %610 = shalt.err (!%p607_p1)
}
  0x22   :  { %s709_s1 = smov 256   ;;  %s710_s23 = smov 16  }
  0x23   :  { %57 = dma.hbm_to_vmem [thread:$0]  %s938_s3, 4096, %s757_s27, [#allocation8], %s709_s1, %s709_s1, %s710_s23  }
  0x24   :  { %s711_s26 = smov [#allocation2]   ;;  %s712_s29 = smov [#allocation6]  }
  0x25   :  { %s22_s28 = sshll.u32 %s711_s26, 4  ;;  %s42_s30 = sshll.u32 %s712_s29, 4  ;;  %s23_s28 = int_to_ptr.vmem [resolvable:$true] %s22_s28  ;;  %s43_s30 = int_to_ptr.vmem [resolvable:$true] %s42_s30 }
  0x26   :  { %s611_s10 = scalar_lea.hbm %s935_s0, 32 }
  0x27   :  { %p612_p2 = scmp.ne.s32.totalorder %s935_s0, %s611_s10  ;;  %p615_p3 = scmp.lt.u32.totalorder %s611_s10, %s935_s0 }
  0x29   :  { %p617_p4 = pnand %p615_p3, %p612_p2 }
  0x2b   :  { %620 = shalt.err (!%p617_p4)
}
  0x2c   :  { %s621_s3 = scalar_lea.vmem %s23_s28, 32  ;;  %p626_p6 = scmp.lt.s32.totalorder %s23_s28, %s23_s28 }
  0x2d   :  { %p622_p5 = scmp.ne.s32.totalorder %s23_s28, %s621_s3  ;;  %p627_p7 = scmp.lt.s32.totalorder %s621_s3, %s621_s3 }
  0x2f   :  { %p628_p8 = por %p627_p7, %p626_p6 }
  0x31   :  { %p629_p9 = pnand %p628_p8, %p622_p5 }
  0x33   :  { %632 = shalt.err (!%p629_p9)
}
  0x34   :  { %25 = dma.hbm_to_vmem [thread:$0]  %s935_s0, 32, %s23_s28, [#allocation3]  }
  0x35   :  { %s633_s18 = scalar_lea.hbm %s937_s2, 16 }
  0x36   :  { %p634_p10 = scmp.ne.s32.totalorder %s937_s2, %s633_s18  ;;  %p637_p11 = scmp.lt.u32.totalorder %s633_s18, %s937_s2 }
  0x38   :  { %p639_p12 = pnand %p637_p11, %p634_p10 }
  0x3a   :  { %642 = shalt.err (!%p639_p12)
}
  0x3b   :  { %s643_s1 = scalar_lea.vmem %s43_s30, 16  ;;  %s647_s23 = scalar_lea.vmem %s43_s30, 32 }
  0x3c   :  { %p644_p13 = scmp.ne.s32.totalorder %s43_s30, %s643_s1  ;;  %p648_p0 = scmp.lt.s32.totalorder %s43_s30, %s43_s30 }
  0x3d   :  { %p649_p1 = scmp.lt.s32.totalorder %s647_s23, %s643_s1 }
  0x3f   :  { %p650_p2 = por %p649_p1, %p648_p0 }
  0x41   :  { %p651_p3 = pnand %p650_p2, %p644_p13 }
  0x43   :  { %654 = shalt.err (!%p651_p3)
}
  0x44   :  { %45 = dma.hbm_to_vmem [thread:$0]  %s937_s2, 16, %s43_s30, [#allocation5]  }
  0x45   :  { %s713_s25 = smov [#allocation9]   ;;  %s714_s28 = smov [#allocation10]  }
  0x46   :  { %s64_s26 = sshll.u32 %s713_s25, 4  ;;  %s76_s29 = sshll.u32 %s714_s28, 4  ;;  %s65_s26 = int_to_ptr.vmem [resolvable:$true] %s64_s26  ;;  %s77_s29 = int_to_ptr.vmem [resolvable:$true] %s76_s29 }
  0x47   :  { %s655_s10 = scalar_lea.hbm %s939_s4, 32 }
  0x48   :  { %p656_p4 = scmp.ne.s32.totalorder %s939_s4, %s655_s10  ;;  %p659_p5 = scmp.lt.u32.totalorder %s655_s10, %s939_s4 }
  0x4a   :  { %p661_p6 = pnand %p659_p5, %p656_p4 }
  0x4c   :  { %664 = shalt.err (!%p661_p6)
}
  0x4d   :  { %s665_s2 = scalar_lea.vmem %s65_s26, 32  ;;  %p670_p8 = scmp.lt.s32.totalorder %s65_s26, %s65_s26 }
  0x4e   :  { %p666_p7 = scmp.ne.s32.totalorder %s65_s26, %s665_s2  ;;  %p671_p9 = scmp.lt.s32.totalorder %s665_s2, %s665_s2 }
  0x50   :  { %p672_p10 = por %p671_p9, %p670_p8 }
  0x52   :  { %p673_p11 = pnand %p672_p10, %p666_p7 }
  0x54   :  { %676 = shalt.err (!%p673_p11)
}
  0x55   :  { %67 = dma.hbm_to_vmem [thread:$0]  %s939_s4, 32, %s65_s26, [#allocation8]  }
  0x56   :  { %s677_s16 = scalar_lea.hbm %s941_s6, 16 }
  0x57   :  { %p678_p12 = scmp.ne.s32.totalorder %s941_s6, %s677_s16  ;;  %p681_p13 = scmp.lt.u32.totalorder %s677_s16, %s941_s6 }
  0x59   :  { %p683_p0 = pnand %p681_p13, %p678_p12 }
  0x5b   :  { %686 = shalt.err (!%p683_p0)
}
  0x5c   :  { %s687_s21 = scalar_lea.vmem %s77_s29, 16  ;;  %s691_s22 = scalar_lea.vmem %s77_s29, 32 }
  0x5d   :  { %p688_p1 = scmp.ne.s32.totalorder %s77_s29, %s687_s21  ;;  %p692_p2 = scmp.lt.s32.totalorder %s77_s29, %s77_s29 }
  0x5e   :  { %p693_p3 = scmp.lt.s32.totalorder %s691_s22, %s687_s21 }
  0x60   :  { %p694_p4 = por %p693_p3, %p692_p2 }
  0x62   :  { %p695_p5 = pnand %p694_p4, %p688_p1 }
  0x64   :  { %698 = shalt.err (!%p695_p5)
}
  0x65   :  { %79 = dma.hbm_to_vmem [thread:$0]  %s941_s6, 16, %s77_s29, [#allocation11]  }
  0x66   :  { %699 = dma.done.wait [#allocation3], 32  }
  0x67   :  { %700 = vsyncadd [#allocation3], 4294967264 }
  0x68   :  { %701 = dma.done.wait [#allocation5], 144  }
  0x69   :  { %702 = vsyncadd [#allocation5], 4294967152 }
  0x6a   :  { %703 = dma.done.wait [#allocation8], 4128  }
  0x6b   :  { %704 = vsyncadd [#allocation8], 4294963168 }
  0x6c   :  { %705 = dma.done.wait [#allocation11], 16  }
  0x6d   :  { %706 = vsyncadd [#allocation11], 4294967280  ;;  %v715_v0 = vmov 0.0   ;;  %vm716_vm0 = vmmov 0   ;;  %vm107_vm1 = vcmask 64512   ;;  %v99_v1 = vld [vmem:[#allocation4] sm:$0xff] }
  0x6e   :  { %482 = vmatprep.subr.mxu0 %v715_v0  ;;  %484 = vmatprep.mubr.msk.f32.mxu0 %vm716_vm0, %v715_v0  ;;  %v98_v2 = vld [vmem:[#allocation2] sm:$0x3]  ;;  %v191_v3 = vld [vmem:[#allocation7 + $0x8] sm:$0xff]  ;;  %v193_v4 = vld [vmem:[#allocation7 + $0x18] sm:$0xff]  ;;  %vm432_vm2 = vcmask 123904  }
  0x6f   :  { %298 = vmatprep.mubr.f32.mxu1 %v715_v0  ;;  %483 = vmatpush3.msra.mxu0 %v99_v1  ;;  %v190_v5 = vld [vmem:[#allocation7] sm:$0xff]  ;;  %v192_v6 = vld [vmem:[#allocation7 + $0x10] sm:$0xff]  ;;  %v487_v7 = vpack.c.bf16 %v193_v4, %v191_v3  ;;  %v195_v9 = vld [vmem:[#allocation7 + $0x28] sm:$0xff] }
  0x70   :  { %485 = vmatmul.mubr.msk.f32.vlgmr.msra.gmra.mrb[0].mxu0 %vm107_vm1, %v98_v2  ;;  %v489_v8 = vpack.c.bf16 %v192_v6, %v190_v5  ;;  %v197_v10 = vld [vmem:[#allocation7 + $0x38] sm:$0xff]  ;;  %v194_v12 = vld [vmem:[#allocation7 + $0x20] sm:$0xff]  ;;  %v196_v13 = vld [vmem:[#allocation7 + $0x30] sm:$0xff] }
  0x71   :  { %488 = vmatprep.subr.bf16.mxu1 %v487_v7  ;;  %v491_v11 = vpack.c.bf16 %v197_v10, %v195_v9  ;;  %v493_v14 = vpack.c.bf16 %v196_v13, %v194_v12  ;;  %v199_v15 = vld [vmem:[#allocation7 + $0x48] sm:$0xff]  ;;  %v201_v16 = vld [vmem:[#allocation7 + $0x58] sm:$0xff]  ;;  %v198_v18 = vld [vmem:[#allocation7 + $0x40] sm:$0xff] }
  0x72   :  { %490 = vmatpush1.bf16.msra.mxu1 %v489_v8  ;;  %v495_v17 = vpack.c.bf16 %v201_v16, %v199_v15  ;;  %v200_v19 = vld [vmem:[#allocation7 + $0x50] sm:$0xff]  ;;  %v203_v21 = vld [vmem:[#allocation7 + $0x68] sm:$0xff]  ;;  %v205_v22 = vld [vmem:[#allocation7 + $0x78] sm:$0xff] }
  0x73   :  { %492 = vmatprep.subr.bf16.mxu1 %v491_v11  ;;  %v497_v20 = vpack.c.bf16 %v200_v19, %v198_v18  ;;  %v202_v23 = vld [vmem:[#allocation7 + $0x60] sm:$0xff]  ;;  %v499_v24 = vpack.c.bf16 %v205_v22, %v203_v21  ;;  %v204_v25 = vld [vmem:[#allocation7 + $0x70] sm:$0xff]  ;;  %v207_v26 = vld [vmem:[#allocation7 + $0x88] sm:$0xff] }
  0x74   :  { %v209_v27 = vld [vmem:[#allocation7 + $0x98] sm:$0xff]  ;;  %v501_v28 = vpack.c.bf16 %v204_v25, %v202_v23  ;;  %v206_v30 = vld [vmem:[#allocation7 + $0x80] sm:$0xff]  ;;  %v208_v31 = vld [vmem:[#allocation7 + $0x90] sm:$0xff] }
  0x75   :  { %v503_v29 = vpack.c.bf16 %v209_v27, %v207_v26  ;;  %v211_v32 = vld [vmem:[#allocation7 + $0xa8] sm:$0xff]  ;;  %v213_v33 = vld [vmem:[#allocation7 + $0xb8] sm:$0xff]  ;;  %v505_v34 = vpack.c.bf16 %v208_v31, %v206_v30  ;;  %v210_v36 = vld [vmem:[#allocation7 + $0xa0] sm:$0xff] }
  0x76   :  { %494 = vmatpush1.bf16.msra.mxu1 %v493_v14  ;;  %v507_v35 = vpack.c.bf16 %v213_v33, %v211_v32  ;;  %v212_v37 = vld [vmem:[#allocation7 + $0xb0] sm:$0xff]  ;;  %v215_v38 = vld [vmem:[#allocation7 + $0xc8] sm:$0xff]  ;;  %v217_v39 = vld [vmem:[#allocation7 + $0xd8] sm:$0xff] }
  0x77   :  { %496 = vmatprep.subr.bf16.mxu1 %v495_v17  ;;  %v509_v40 = vpack.c.bf16 %v212_v37, %v210_v36  ;;  %v511_v41 = vpack.c.bf16 %v217_v39, %v215_v38  ;;  %v214_v42 = vld [vmem:[#allocation7 + $0xc0] sm:$0xff]  ;;  %v216_v43 = vld [vmem:[#allocation7 + $0xd0] sm:$0xff]  ;;  %v219_v44 = vld [vmem:[#allocation7 + $0xe8] sm:$0xff] }
  0x78   :  { %v221_v45 = vld [vmem:[#allocation7 + $0xf8] sm:$0xff]  ;;  %v513_v46 = vpack.c.bf16 %v216_v43, %v214_v42  ;;  %v218_v48 = vld [vmem:[#allocation7 + $0xe0] sm:$0xff]  ;;  %v220_v49 = vld [vmem:[#allocation7 + $0xf0] sm:$0xff] }
  0x79   :  { %v515_v47 = vpack.c.bf16 %v221_v45, %v219_v44  ;;  %v517_v50 = vpack.c.bf16 %v220_v49, %v218_v48  ;;  %v339_v51 = vld [vmem:[%s940_s5 + $0x80] sm:$0xff]  ;;  %v340_v52 = vld [vmem:[%s940_s5 + $0x88] sm:$0xff]  ;;  %v341_v6 = vld [vmem:[%s940_s5 + $0x90] sm:$0xff]  ;;  %v224_v48 = vlaneseq }
  0x7a   :  { %498 = vmatpush1.bf16.msra.mxu1 %v497_v20  ;;  %v323_v53 = vld [vmem:[%s940_s5] sm:$0xff]  ;;  %v519_v54 = vpack.c.bf16 %v340_v52, %v339_v51  ;;  %v324_v55 = vld [vmem:[%s940_s5 + $0x8] sm:$0xff]  ;;  %v342_v7 = vld [vmem:[%s940_s5 + $0x98] sm:$0xff] }
  0x7b   :  { %500 = vmatprep.subr.bf16.mxu1 %v499_v24  ;;  %v521_v56 = vpack.c.bf16 %v324_v55, %v323_v53  ;;  %v442_v57 = vld [vmem:[#allocation6] ss:$0 sm:$0xff]  ;;  %v523_v8 = vpack.c.bf16 %v342_v7, %v341_v6  ;;  %v325_v9 = vld [vmem:[%s940_s5 + $0x10] sm:$0xff]  ;;  %v326_v10 = vld [vmem:[%s940_s5 + $0x18] sm:$0xff]  ;;  %v225_v49 = vshrl.u32 %v224_v48, 7 }
  0x7c   :  { %520 = vmatprep.subr.bf16.mxu0 %v519_v54  ;;  %v525_v11 = vpack.c.bf16 %v326_v10, %v325_v9  ;;  %v343_v12 = vld [vmem:[%s940_s5 + $0xa0] sm:$0xff]  ;;  %v344_v13 = vld [vmem:[%s940_s5 + $0xa8] sm:$0xff]  ;;  %v345_v18 = vld [vmem:[%s940_s5 + $0xb0] sm:$0xff] }
  0x7d   :  { %522 = vmatpush3.bf16.msra.mxu0 %v521_v56  ;;  %v527_v14 = vpack.c.bf16 %v344_v13, %v343_v12  ;;  %v327_v15 = vld [vmem:[%s940_s5 + $0x20] sm:$0xff]  ;;  %v328_v16 = vld [vmem:[%s940_s5 + $0x28] sm:$0xff]  ;;  %v346_v19 = vld [vmem:[%s940_s5 + $0xb8] sm:$0xff]  ;;  %v230_v52 = vsub.s32 1, %v225_v49 }
  0x7e   :  { %502 = vmatpush1.bf16.msra.mxu1 %v501_v28  ;;  %524 = vmatprep.subr.bf16.mxu0 %v523_v8  ;;  %v529_v17 = vpack.c.bf16 %v328_v16, %v327_v15  ;;  %v531_v20 = vpack.c.bf16 %v346_v19, %v345_v18  ;;  %v329_v21 = vld [vmem:[%s940_s5 + $0x30] sm:$0xff]  ;;  %v330_v22 = vld [vmem:[%s940_s5 + $0x38] sm:$0xff]  ;;  %v347_v24 = vld [vmem:[%s940_s5 + $0xc0] sm:$0xff] }
  0x7f   :  { %504 = vmatprep.subr.bf16.mxu1 %v503_v29  ;;  %v533_v23 = vpack.c.bf16 %v330_v22, %v329_v21  ;;  %v348_v25 = vld [vmem:[%s940_s5 + $0xc8] sm:$0xff]  ;;  %v331_v26 = vld [vmem:[%s940_s5 + $0x40] sm:$0xff]  ;;  %v349_v29 = vld [vmem:[%s940_s5 + $0xd0] sm:$0xff] }
  0x80   :  { %v535_v27 = vpack.c.bf16 %v348_v25, %v347_v24  ;;  %v332_v28 = vld [vmem:[%s940_s5 + $0x48] sm:$0xff]  ;;  %v350_v30 = vld [vmem:[%s940_s5 + $0xd8] sm:$0xff]  ;;  %v333_v33 = vld [vmem:[%s940_s5 + $0x50] sm:$0xff] }
  0x81   :  { %526 = vmatpush3.bf16.msra.mxu0 %v525_v11  ;;  %v537_v31 = vpack.c.bf16 %v332_v28, %v331_v26  ;;  %v539_v32 = vpack.c.bf16 %v350_v30, %v349_v29  ;;  %v352_v36 = vld [vmem:[%s940_s5 + $0xe8] sm:$0xff]  ;;  %v335_v39 = vld [vmem:[%s940_s5 + $0x60] sm:$0xff]  ;;  %v354_v42 = vld [vmem:[%s940_s5 + $0xf8] sm:$0xff] }
  0x82   :  { %506 = vmatpush1.bf16.msra.mxu1 %v505_v34  ;;  %528 = vmatprep.subr.bf16.mxu0 %v527_v14  ;;  %v334_v34 = vld [vmem:[%s940_s5 + $0x58] sm:$0xff]  ;;  %v337_v45 = vld [vmem:[%s940_s5 + $0x70] sm:$0xff]  ;;  %v222_v51 = vld [vmem:[#allocation9] sm:$0x3] }
  0x83   :  { %508 = vmatprep.subr.bf16.mxu1 %v507_v35  ;;  %v351_v35 = vld [vmem:[%s940_s5 + $0xe0] sm:$0xff]  ;;  %v541_v37 = vpack.c.bf16 %v334_v34, %v333_v33  ;;  %v231_v54 = vrot.slane %v222_v51, %v230_v52  ;;  %v444_v14 = vld [vmem:[#allocation10] ss:$0 sm:$0xff] }
  0x84   :  { %v543_v38 = vpack.c.bf16 %v352_v36, %v351_v35 }
  0x85   :  { %530 = vmatpush3.bf16.msra.mxu0 %v529_v17 }
  0x86   :  { %510 = vmatpush1.bf16.msra.mxu1 %v509_v40  ;;  %532 = vmatprep.subr.bf16.mxu0 %v531_v20  ;;  %v336_v40 = vld [vmem:[%s940_s5 + $0x68] sm:$0xff] }
  0x87   :  { %512 = vmatprep.subr.bf16.mxu1 %v511_v41  ;;  %v353_v41 = vld [vmem:[%s940_s5 + $0xf0] sm:$0xff]  ;;  %v545_v43 = vpack.c.bf16 %v336_v40, %v335_v39 }
  0x88   :  { %v547_v44 = vpack.c.bf16 %v354_v42, %v353_v41 }
  0x89   :  { %534 = vmatpush3.bf16.msra.mxu0 %v533_v23 }
  0x8a   :  { %514 = vmatpush1.bf16.msra.mxu1 %v513_v46  ;;  %536 = vmatprep.subr.bf16.mxu0 %v535_v27  ;;  %v338_v46 = vld [vmem:[%s940_s5 + $0x78] sm:$0xff] }
  0x8b   :  { %516 = vmatprep.subr.bf16.mxu1 %v515_v47  ;;  %v549_v47 = vpack.c.bf16 %v338_v46, %v337_v45 }
  0x8d   :  { %538 = vmatpush3.bf16.msra.mxu0 %v537_v31 }
  0x8e   :  { %518 = vmatpush1.bf16.msra.mxu1 %v517_v50  ;;  %540 = vmatprep.subr.bf16.mxu0 %v539_v32  ;;  %v226_v50 = vsub.s32 0, %v225_v49 }
  0x90   :  { %v227_v53 = vrot.slane %v222_v51, %v226_v50 }
  0x91   :  { %542 = vmatpush3.bf16.msra.mxu0 %v541_v37 }
  0x92   :  { %544 = vmatprep.subr.bf16.mxu0 %v543_v38 }
  0x95   :  { %546 = vmatpush3.bf16.msra.mxu0 %v545_v43 }
  0x96   :  { %548 = vmatprep.subr.bf16.mxu0 %v547_v44 }
  0x99   :  { %550 = vmatpush3.bf16.msra.mxu0 %v549_v47 }
 0x143   :  { %v177_v58 = vpop.f32.mrb[0].mxu0 }
 0x144   :  { %v178_v59 = vadd.f32 %v442_v57, %v177_v58  ;;  %v486_v60 = vpop.f32.mrb[1].mxu0 }
 0x146   :  { %v182_v61 = vmul.f32 0.044715, %v178_v59  ;;  %v181_v3 = vmul.f32 0.5, %v178_v59 }
 0x148   :  { %v183_v62 = vmul.f32 %v182_v61, %v178_v59 }
 0x14a   :  { %v184_v63 = vmul.f32 %v183_v62, %v178_v59 }
 0x14c   :  { %v185_v0 = vadd.f32 %v184_v63, %v178_v59 }
 0x14e   :  { %v186_v1 = vmul.f32 0.7978846, %v185_v0 }
 0x150   :  { %561 = vtanh.f32 %v186_v1 }
 0x15a   :  { %v562_v2 = vpop.eup %561 }
 0x15b   :  { %v188_v4 = vadd.f32 1.0, %v562_v2 }
 0x15d   :  { %v189_v5 = vmul.f32 %v188_v4, %v181_v3 }
 0x15f   :  { %299 = vmatmul.mubr.f32.vlgmr.msra.gmra.mrb[0].mxu1 %v189_v5 }
 0x232   :  { %v300_v55 = vpop.f32.mrb[0].mxu1 }
 0x233   :  { %v301_v56 = vadd.f32 %v300_v55, %v227_v53  ;;  %v302_v57 = vpop.f32.mrb[1].mxu1 }
 0x234   :  { %v303_v58 = vadd.f32 %v302_v57, %v231_v54 }
 0x235   :  { %v307_v59 = vmul.f32 0.044715, %v301_v56  ;;  %v305_v10 = vmul.f32 0.5, %v301_v56 }
 0x236   :  { %v308_v60 = vmul.f32 0.044715, %v303_v58  ;;  %v306_v8 = vmul.f32 0.5, %v303_v58 }
 0x237   :  { %v309_v61 = vmul.f32 %v307_v59, %v301_v56 }
 0x238   :  { %v310_v62 = vmul.f32 %v308_v60, %v303_v58 }
 0x239   :  { %v311_v63 = vmul.f32 %v309_v61, %v301_v56 }
 0x23a   :  { %v312_v0 = vmul.f32 %v310_v62, %v303_v58 }
 0x23b   :  { %v313_v1 = vadd.f32 %v311_v63, %v301_v56 }
 0x23c   :  { %v314_v2 = vadd.f32 %v312_v0, %v303_v58 }
 0x23d   :  { %v315_v3 = vmul.f32 0.7978846, %v313_v1 }
 0x23e   :  { %v316_v4 = vmul.f32 0.7978846, %v314_v2 }
 0x23f   :  { %563 = vtanh.f32 %v315_v3 }
 0x240   :  { %565 = vtanh.f32 %v316_v4 }
 0x249   :  { %v564_v5 = vpop.eup %563 }
 0x24a   :  { %v566_v6 = vpop.eup %565  ;;  %v319_v7 = vadd.f32 1.0, %v564_v5 }
 0x24b   :  { %v320_v9 = vadd.f32 1.0, %v566_v6 }
 0x24c   :  { %v321_v12 = vmul.f32 %v319_v7, %v305_v10 }
 0x24d   :  { %v322_v11 = vmul.f32 %v320_v9, %v306_v8 }
 0x24f   :  { %426 = vmatprep.mubr.f32.mxu0 %v322_v11 }
 0x250   :  { %427 = vmatmul.mubr.f32.vlgmr.msra.gmra.mrb[2].mxu0 %v321_v12 }
 0x323   :  { %v479_v13 = vpop.f32.mrb[2].mxu0 }
 0x324   :  { %v480_v15 = vpop.f32.mrb[3].mxu0 }
 0x325   :  { %v481_v16 = vadd.f32 %v480_v15, %v479_v13 }
 0x327   :  { %v429_v17 = vadd.f32 %v481_v16, %v444_v14 }
 0x329   :  { %433 = vst.msk [vmem:[%s942_s7] sm:$0x3] %vm432_vm2, %v429_v17 }
 0x32a   :  { %438 = vsyncpa [#allocation3], 1 }
 0x32b   :  { %439 = vsyncpa [#allocation5], 1 }
 0x32c   :  { %440 = vsyncpa [#allocation8], 1 }
 0x32d   :  { %441 = vsyncpa [#allocation11], 1 }

// kernel: tile.15
= control target key start
LH: loop header
LB: loop body
LE: loop exit
PB: predicated region body
PF: predicated region fallthrough
CT: control target
= control target key end

     0   :  { %s40_s0 = inlined_call_operand.vmem [shape: f32[16], index: 0, kind: input, shape index: {}]   ;;  %s41_s1 = inlined_call_operand.vmem [shape: f32[32,16], index: 1, kind: output, shape index: {}]  }
   0x1   :  { %v4_v0 = vld [vmem:[%s40_s0] ss:$0 sm:$0xff] }
   0x2   :  { %5 = vst [vmem:[%s41_s1] sm:$0xff] %v4_v0  ;;  %12 = vst [vmem:[%s41_s1 + $0x8] sm:$0xff] %v4_v0 }
   0x3   :  { %13 = vst [vmem:[%s41_s1 + $0x10] sm:$0xff] %v4_v0  ;;  %14 = vst [vmem:[%s41_s1 + $0x18] sm:$0xff] %v4_v0 }

// kernel: mul.63
= control target key start
LH: loop header
LB: loop body
LE: loop exit
PB: predicated region body
PF: predicated region fallthrough
CT: control target
= control target key end

     0   :  { %s67_s8 = smov 112   ;;  %s68_s11 = smov 80   ;;  %vm3_vm0 = vcmask 130048   ;;  %vm9_vm1 = vcmask 1048448   ;;  %vm15_vm2 = vcmask 917248   ;;  %vm21_vm3 = vcmask 786048   ;;  %s111_s0 = inlined_call_operand.vmem [shape: f32[32,16], index: 0, kind: input, shape index: {}]   ;;  %s112_s1 = inlined_call_operand.vmem [shape: f32[512], index: 1, kind: output, shape index: {}]  }
   0x1   :  { %v53_v0 = vld [vmem:[%s111_s0 + $0x7] ss:$8 sm:$0xf]   ;;  %v55_v1 = vld [vmem:[%s111_s0 + $0x5] ss:$8 sm:$0xf]  }
   0x2   :  { %7 = vrot.lane.b32.xlu0 %v53_v0, %s67_s8  ;;  %19 = vrot.lane.b32.xlu1 %v55_v1, %s68_s11  ;;  %v54_v2 = vld [vmem:[%s111_s0 + $0x6] ss:$8 sm:$0xf]   ;;  %v56_v3 = vld [vmem:[%s111_s0 + $0x4] ss:$8 sm:$0xf]  }
   0x3   :  { %s69_s16 = smov 96   ;;  %v2_v4 = vld [vmem:[%s111_s0] ss:$8 sm:$0xf]   ;;  %s70_s19 = smov 64   ;;  %vm27_vm4 = vcmask 654848  }
   0x4   :  { %v57_v5 = vld [vmem:[%s111_s0 + $0x3] ss:$8 sm:$0xf]   ;;  %4 = vst.msk [vmem:[#allocation0] sm:$0xf] %vm3_vm0, %v2_v4   ;;  %s71_s24 = smov 48  }
   0x5   :  { %v58_v6 = vld [vmem:[%s111_s0 + $0x2] ss:$8 sm:$0xf]   ;;  %s72_s25 = smov 32   ;;  %vm33_vm5 = vcmask 523648   ;;  %vm39_vm6 = vcmask 392448  }
   0x6   :  { %13 = vrot.lane.b32.xlu0 %v54_v2, %s69_s16  ;;  %25 = vrot.lane.b32.xlu1 %v56_v3, %s70_s19  ;;  %v59_v7 = vld [vmem:[%s111_s0 + $0x1] ss:$8 sm:$0xf]   ;;  %s73_s0 = smov 16   ;;  %vm45_vm7 = vcmask 261248  }
   0xa   :  { %31 = vrot.lane.b32.xlu0 %v57_v5, %s71_s24  ;;  %37 = vrot.lane.b32.xlu1 %v58_v6, %s72_s25 }
   0xe   :  { %43 = vrot.lane.b32.xlu0 %v59_v7, %s73_s0 }
  0x74   :  { %v8_v8 = vpop.permute.xlu0 %7   ;;  %v20_v9 = vpop.permute.xlu1 %19  }
  0x75   :  { %10 = vst.msk [vmem:[#allocation0] sm:$0xf] %vm9_vm1, %v8_v8  }
  0x78   :  { %v14_v10 = vpop.permute.xlu0 %13   ;;  %v26_v11 = vpop.permute.xlu1 %25  }
  0x79   :  { %16 = vst.msk [vmem:[#allocation0] sm:$0xf] %vm15_vm2, %v14_v10  }
  0x7a   :  { %22 = vst.msk [vmem:[#allocation0] sm:$0xf] %vm21_vm3, %v20_v9  }
  0x7b   :  { %28 = vst.msk [vmem:[#allocation0] sm:$0xf] %vm27_vm4, %v26_v11  }
  0x7c   :  { %v32_v12 = vpop.permute.xlu0 %31   ;;  %v38_v13 = vpop.permute.xlu1 %37  }
  0x7d   :  { %34 = vst.msk [vmem:[#allocation0] sm:$0xf] %vm33_vm5, %v32_v12  }
  0x7e   :  { %40 = vst.msk [vmem:[#allocation0] sm:$0xf] %vm39_vm6, %v38_v13  }
  0x80   :  { %v44_v14 = vpop.permute.xlu0 %43  }
  0x81   :  { %46 = vst.msk [vmem:[#allocation0] sm:$0xf] %vm45_vm7, %v44_v14  }
  0x88   :  { %v50_v15 = vld [vmem:[#allocation0] sm:$0xf] }
  0x89   :  { %52 = vst [vmem:[%s112_s1] sm:$0xf] %v50_v15 }

// kernel: tile.10
= control target key start
LH: loop header
LB: loop body
LE: loop exit
PB: predicated region body
PF: predicated region fallthrough
CT: control target
= control target key end

     0   :  { %s7_s6 = smov 3  ;;  %s21_s9 = smov 3  ;;  %vm4_vm0 = vcmask 130048   ;;  %vm11_vm1 = vcmask 1048448   ;;  %vm18_vm2 = vcmask 917248   ;;  %vm25_vm3 = vcmask 786048   ;;  %s119_s0 = inlined_call_operand.vmem [shape: f32[16,16], index: 0, kind: input, shape index: {}]   ;;  %s120_s1 = inlined_call_operand.vmem [shape: f32[256], index: 1, kind: output, shape index: {}]  }
   0x1   :  { %v61_v0 = vld [vmem:[%s119_s0 + $0x7] ss:$8 sm:%s7_s6]   ;;  %s75_s10 = smov 112   ;;  %v63_v1 = vld [vmem:[%s119_s0 + $0x5] ss:$8 sm:%s21_s9]   ;;  %s14_s13 = smov 3 }
   0x2   :  { %9 = vrot.lane.b32.xlu0 %v61_v0, %s75_s10  ;;  %s76_s14 = smov 80   ;;  %v62_v2 = vld [vmem:[%s119_s0 + $0x6] ss:$8 sm:%s14_s13]   ;;  %s28_s17 = smov 3  ;;  %vm32_vm4 = vcmask 654848   ;;  %vm39_vm5 = vcmask 523648  }
   0x3   :  { %23 = vrot.lane.b32.xlu1 %v63_v1, %s76_s14  ;;  %v64_v3 = vld [vmem:[%s119_s0 + $0x4] ss:$8 sm:%s28_s17]   ;;  %s35_s20 = smov 3  ;;  %s42_s21 = smov 3  ;;  %vm46_vm6 = vcmask 392448   ;;  %vm53_vm7 = vcmask 261248  }
   0x4   :  { %s77_s22 = smov 96   ;;  %s78_s23 = smov 64   ;;  %v65_v4 = vld [vmem:[%s119_s0 + $0x3] ss:$8 sm:%s35_s20]   ;;  %v66_v5 = vld [vmem:[%s119_s0 + $0x2] ss:$8 sm:%s42_s21]  }
   0x5   :  { %s2_s26 = smov 3  ;;  %s49_s29 = smov 3 }
   0x6   :  { %16 = vrot.lane.b32.xlu0 %v62_v2, %s77_s22  ;;  %v3_v6 = vld [vmem:[%s119_s0] ss:$8 sm:%s2_s26]   ;;  %s79_s3 = smov 48   ;;  %s80_s4 = smov 32  }
   0x7   :  { %30 = vrot.lane.b32.xlu1 %v64_v3, %s78_s23  ;;  %5 = vst.msk [vmem:[#allocation0] sm:$0x3] %vm4_vm0, %v3_v6   ;;  %v67_v7 = vld [vmem:[%s119_s0 + $0x1] ss:$8 sm:%s49_s29]   ;;  %s81_s0 = smov 16  }
   0xa   :  { %37 = vrot.lane.b32.xlu0 %v65_v4, %s79_s3 }
   0xb   :  { %44 = vrot.lane.b32.xlu1 %v66_v5, %s80_s4 }
   0xe   :  { %51 = vrot.lane.b32.xlu0 %v67_v7, %s81_s0 }
  0x74   :  { %v10_v8 = vpop.permute.xlu0 %9  }
  0x75   :  { %12 = vst.msk [vmem:[#allocation0] sm:$0x3] %vm11_vm1, %v10_v8   ;;  %v24_v9 = vpop.permute.xlu1 %23  }
  0x78   :  { %v17_v10 = vpop.permute.xlu0 %16  }
  0x79   :  { %19 = vst.msk [vmem:[#allocation0] sm:$0x3] %vm18_vm2, %v17_v10   ;;  %v31_v11 = vpop.permute.xlu1 %30  }
  0x7a   :  { %26 = vst.msk [vmem:[#allocation0] sm:$0x3] %vm25_vm3, %v24_v9  }
  0x7b   :  { %33 = vst.msk [vmem:[#allocation0] sm:$0x3] %vm32_vm4, %v31_v11  }
  0x7c   :  { %v38_v12 = vpop.permute.xlu0 %37  }
  0x7d   :  { %40 = vst.msk [vmem:[#allocation0] sm:$0x3] %vm39_vm5, %v38_v12   ;;  %v45_v13 = vpop.permute.xlu1 %44  }
  0x7e   :  { %47 = vst.msk [vmem:[#allocation0] sm:$0x3] %vm46_vm6, %v45_v13  }
  0x80   :  { %v52_v14 = vpop.permute.xlu0 %51  }
  0x81   :  { %54 = vst.msk [vmem:[#allocation0] sm:$0x3] %vm53_vm7, %v52_v14  }
  0x88   :  { %v58_v15 = vld [vmem:[#allocation0] sm:$0x3] }
  0x89   :  { %60 = vst [vmem:[%s120_s1] sm:$0x3] %v58_v15 }

// kernel: wno_recon_forward.14
= control target key start
LH: loop header
LB: loop body
LE: loop exit
PB: predicated region body
PF: predicated region fallthrough
CT: control target
= control target key end

     0   :  { %8 = vsyncpa [#allocation3], 0  ;;  %s2875_s0 = inlined_call_operand.vmem [shape: f32[2,10,10,32], index: 0, kind: input, shape index: {}]   ;;  %s2876_s1 = inlined_call_operand.hbm [shape: f32[9,32,32], index: 1, kind: input, shape index: {}]   ;;  %s2877_s2 = inlined_call_operand.hbm [shape: f32[1,32], index: 2, kind: input, shape index: {}]   ;;  %s2878_s3 = inlined_call_operand.vmem [shape: f32[2,64,32], index: 3, kind: output, shape index: {}]  }
   0x1   :  { %9 = vsyncpa [#allocation5], 0  ;;  %s2488_s12 = smov 0  }
   0x2 LB: > { %s2494_s13 = sadd.s32 4294967295, %s2462_s12   ;;  %p1780_p0 = scmp.ge.s32.totalorder %s2462_s12, 1  ;;  %s2462_s12 = sphi %s2488_s12, %s15_s12  }
   0x3   : > { %p114_p1 = scmp.lt.s32.totalorder %s2462_s12, 3  ;;  %s2464_s14 = smov [#allocation2]  }
   0x4   : > { %s126_s15 = sshll.u32 %s2464_s14, 4  ;;  %p2879_p3 = scmp.eq.s32.totalorder %s2494_s13, 0  ;;  %s127_s15 = int_to_ptr.vmem [resolvable:$true] %s126_s15 }
   0x5   : > { %p2498_p2 = pnand %p1780_p0, %p114_p1  ;;  %s2465_s17 = smov [#allocation4]  }
   0x6   : > { %s140_s18 = sshll.u32 %s2465_s17, 4  ;;  %s2392_s22 = scalar_lea.hbm %s2876_s1, 4608  ;;  %s2511_s18 = int_to_ptr.vmem [resolvable:$true] %s140_s18 }
   0x7   : > { %s2881_s16 = scalar_select %p2498_p2, 1, 0 }
   0x8   : > { %p2351_p4 = pneg %p2498_p2  ;;  %p2393_p6 = scmp.ne.s32.totalorder %s2876_s1, %s2392_s22 }
   0x9   : > { %p2399_p10 = scmp.lt.u32.totalorder %s2392_s22, %s2876_s1 }
   0xa   : > { %p2507_p5 = pnand %p2879_p3, %p2351_p4 }
   0xc   : > { %p2394_p7 = pneg %p2507_p5 }
   0xe   : > { %p2395_p8 = pnand %p2394_p7, %p2393_p6 }
  0x10   : > { %p2396_p9 = pneg %p2395_p8 }
  0x12   : > { %p2401_p11 = pnand %p2399_p10, %p2396_p9 }
  0x14   : > { %2404 = shalt.err (!%p2401_p11)
}
  0x15   : > { %s2405_s27 = scalar_lea.vmem %s127_s15, 4608  ;;  %p2413_p1 = scmp.lt.s32.totalorder %s127_s15, %s127_s15 }
  0x16   : > { %p2406_p12 = scmp.ne.s32.totalorder %s127_s15, %s2405_s27  ;;  %p2414_p4 = scmp.lt.s32.totalorder %s2405_s27, %s2405_s27 }
  0x18   : > { %p2408_p13 = pnand %p2406_p12, %p2394_p7  ;;  %p2415_p3 = por %p2414_p4, %p2413_p1 }
  0x1a   : > { %p2409_p0 = pneg %p2408_p13 }
  0x1c   : > { %p2416_p2 = pnand %p2415_p3, %p2409_p0 }
  0x1e   : > { %2419 = shalt.err (!%p2416_p2)
}
  0x1f   : > { %s2466_s28 = smov 128   ;;  %s2467_s29 = smov 8  }
  0x20   : > { %2354 = dma.hbm_to_vmem [thread:$0]  (!%p2507_p5), %s2876_s1, 4608, %s127_s15, [#allocation3], %s2466_s28, %s2466_s28, %s2467_s29  }
  0x21   : > { %s2420_s7 = scalar_lea.hbm %s2877_s2, 16 }
  0x22   : > { %p2421_p6 = scmp.ne.s32.totalorder %s2877_s2, %s2420_s7  ;;  %p2427_p8 = scmp.lt.u32.totalorder %s2420_s7, %s2877_s2 }
  0x24   : > { %p2423_p2 = pnand %p2421_p6, %p2394_p7 }
  0x26   : > { %p2424_p3 = pneg %p2423_p2 }
  0x28   : > { %p2429_p9 = pnand %p2427_p8, %p2424_p3 }
  0x2a   : > { %2432 = shalt.err (!%p2429_p9)
}
  0x2b   : > { %s2433_s14 = scalar_lea.vmem %s2511_s18, 16  ;;  %s2440_s15 = scalar_lea.vmem %s2511_s18, 32 }
  0x2c   : > { %p2434_p10 = scmp.ne.s32.totalorder %s2511_s18, %s2433_s14  ;;  %p2441_p13 = scmp.lt.s32.totalorder %s2511_s18, %s2511_s18 }
  0x2d   : > { %p2442_p0 = scmp.lt.s32.totalorder %s2440_s15, %s2433_s14 }
  0x2e   : > { %p2436_p11 = pnand %p2434_p10, %p2394_p7 }
  0x2f   : > { %p2443_p1 = por %p2442_p0, %p2441_p13 }
  0x30   : > { %p2437_p12 = pneg %p2436_p11 }
  0x32   : > { %p2444_p4 = pnand %p2443_p1, %p2437_p12 }
  0x34   : > { %2447 = shalt.err (!%p2444_p4)
}
  0x35   : > { %2357 = dma.hbm_to_vmem [thread:$0]  (!%p2507_p5), %s2877_s2, 16, %s2511_s18, [#allocation5]  }
  0x36   : > { %p2883_p6 = scmp.ne.s32.totalorder %s2881_s16, 0 }
  0x37   : > { %p2884_p7 = scmp.eq.s32.totalorder (!%p2883_p6), %s2494_s13, 0 }
  0x38   : > { %161 = sbr.rel (%p2883_p6) target bundleno = 465 (0x1d1), region = 32 }
  0x3f   : > { %2453 = dma.done.wait (%p2884_p7), [#allocation3], 4608   ;;  %p2885_p2 = pmov %p2884_p7 }
  0x41   : > { %2455 = vsyncadd (%p2885_p2), [#allocation3], 4294962688  ;;  %p2886_p3 = pmov %p2885_p2 }
  0x42   : > { %p2887_p8 = pmov %p2885_p2 }
  0x43   : > { %2457 = dma.done.wait (%p2886_p3), [#allocation5], 16  }
  0x44   : > { %2459 = vsyncadd (%p2887_p8), [#allocation5], 4294967280  ;;  %p189_p9 = scmp.lt.s32.totalorder %s2494_s13, 1  ;;  %v220_v0 = vld [vmem:[#allocation2 + $0x20] sm:$0xff]  ;;  %v221_v1 = vld [vmem:[#allocation2 + $0x28] sm:$0xff]  ;;  %vm224_vm0 = vcmask 261120  }
  0x45   : > { %v793_v2 = vld [vmem:[#allocation2 + $0x80] sm:$0xff]  ;;  %v2202_v3 = vpack.c.bf16 %v221_v1, %v220_v0  ;;  %v794_v4 = vld [vmem:[#allocation2 + $0x88] sm:$0xff]  ;;  %v222_v5 = vld [vmem:[#allocation2 + $0x30] sm:$0xff] }
  0x46   : > { %s2889_s13 = smov (!%p189_p9, %s2494_s13), 1  ;;  %v223_v6 = vld [vmem:[#allocation2 + $0x38] sm:$0xff]  ;;  %v2581_v7 = vpack.c.bf16 %v794_v4, %v793_v2  ;;  %v795_v9 = vld [vmem:[#allocation2 + $0x90] sm:$0xff]  ;;  %v207_v14 = vld [vmem:[#allocation2] sm:$0xff] }
  0x47   : > { %s2342_s16 = smul.u32 160, %s2889_s13  ;;  %v2206_v8 = vpack.c.bf16 %v223_v6, %v222_v5  ;;  %v796_v10 = vld [vmem:[#allocation2 + $0x98] sm:$0xff]  ;;  %2203 = vmatprep.subr.bf16.mxu1 %v2202_v3  ;;  %v208_v15 = vld [vmem:[#allocation2 + $0x8] sm:$0xff]  ;;  %v943_v16 = vld [vmem:[#allocation2 + $0xa0] sm:$0xff]  ;;  %s1913_s22 = sshll.u32 %s2889_s13, 6 }
  0x48   : > { %v2584_v12 = vpack.c.bf16 %v796_v10, %v795_v9  ;;  %2235 = vmatprep.subr.bf16.mxu0 %v2581_v7  ;;  %2205 = vmatpush3.bf16.msra.mxu1 %v2202_v3  ;;  %v944_v17 = vld [vmem:[#allocation2 + $0xa8] sm:$0xff]  ;;  %v2210_v18 = vpack.c.bf16 %v208_v15, %v207_v14  ;;  %v945_v20 = vld [vmem:[#allocation2 + $0xb0] sm:$0xff]  ;;  %v946_v21 = vld [vmem:[#allocation2 + $0xb8] sm:$0xff]  ;;  %s2848_s25 = scalar_lea.vmem %s2878_s3, %s1913_s22 }
  0x49   : > { %s2579_s21 = scalar_lea.vmem %s2875_s0, %s2342_s16  ;;  %2237 = vmatpush3.bf16.msra.mxu0 %v2581_v7  ;;  %2207 = vmatprep.subr.bf16.mxu1 %v2206_v8  ;;  %v2242_v19 = vpack.c.bf16 %v944_v17, %v943_v16  ;;  %v209_v22 = vld [vmem:[#allocation2 + $0x10] sm:$0xff]  ;;  %v210_v23 = vld [vmem:[#allocation2 + $0x18] sm:$0xff]  ;;  %v2246_v25 = vpack.c.bf16 %v946_v21, %v945_v20  ;;  %v1094_v28 = vld [vmem:[#allocation2 + $0xc0] sm:$0xff] }
  0x4a   : > { %v211_v11 = vld [vmem:[%s2579_s21 + $0x1] sm:$0xff]  ;;  %v1830_v13 = vld [vmem:[%s2579_s21 + $0x11] sm:$0xff]  ;;  %2239 = vmatprep.subr.bf16.mxu0 %v2584_v12  ;;  %v2214_v27 = vpack.c.bf16 %v210_v23, %v209_v22 }
  0x4b   : > { %2030 = vmatprep.mubr.msk.f32.mxu1 %vm224_vm0, %v211_v11  ;;  %2110 = vmatprep.mubr.msk.f32.mxu0 %vm224_vm0, %v1830_v13  ;;  %v2594_v24 = vld [vmem:[%s2579_s21 + $0x21] sm:$0xff]  ;;  %v2598_v26 = vld [vmem:[%s2579_s21 + $0x31] sm:$0xff] }
  0x4c   : > { %2209 = vmatpush3.bf16.msra.mxu1 %v2206_v8  ;;  %v1095_v29 = vld [vmem:[#allocation2 + $0xc8] sm:$0xff]  ;;  %v492_v30 = vld [vmem:[#allocation2 + $0x40] sm:$0xff]  ;;  %v2610_v33 = vld [vmem:[%s2579_s21 + $0x12] sm:$0xff] }
  0x4d   : > { %2241 = vmatpush3.bf16.msra.mxu0 %v2584_v12  ;;  %2211 = vmatprep.subr.bf16.mxu1 %v2210_v18  ;;  %v493_v31 = vld [vmem:[#allocation2 + $0x48] sm:$0xff]  ;;  %v2250_v34 = vpack.c.bf16 %v1095_v29, %v1094_v28  ;;  %v1096_v36 = vld [vmem:[#allocation2 + $0xd0] sm:$0xff]  ;;  %v1097_v37 = vld [vmem:[#allocation2 + $0xd8] sm:$0xff] }
  0x4e   : > { %2243 = vmatprep.subr.bf16.mxu0 %v2242_v19  ;;  %v2605_v32 = vld [vmem:[%s2579_s21 + $0x41] sm:$0xff]  ;;  %v2218_v35 = vpack.c.bf16 %v493_v31, %v492_v30  ;;  %v2619_v38 = vld [vmem:[%s2579_s21 + $0x51] sm:$0xff]  ;;  %v2254_v42 = vpack.c.bf16 %v1097_v37, %v1096_v36 }
  0x4f   : > { %2031 = vmatmul.mubr.msk.f32.vlgmr.msra.gmra.mrb[0].mxu1 %vm224_vm0, %v1830_v13  ;;  %v2624_v39 = vld [vmem:[%s2579_s21 + $0x22] sm:$0xff]  ;;  %v2630_v41 = vld [vmem:[%s2579_s21 + $0x32] sm:$0xff] }
  0x50   : > { %2111 = vmatmul.mubr.msk.f32.vlgmr.msra.gmra.mrb[0].mxu0 %vm224_vm0, %v2594_v24  ;;  %2213 = vmatpush3.bf16.msra.mxu1 %v2210_v18  ;;  %v2627_v40 = vld [vmem:[%s2579_s21 + $0x61] sm:$0xff]  ;;  %v2639_v45 = vld [vmem:[%s2579_s21 + $0x71] sm:$0xff] }
  0x51   : > { %2245 = vmatpush3.bf16.msra.mxu0 %v2242_v19  ;;  %2033 = vmatprep.mubr.msk.f32.mxu1 %vm224_vm0, %v2594_v24  ;;  %v1244_v43 = vld [vmem:[#allocation2 + $0xe0] sm:$0xff]  ;;  %v1245_v44 = vld [vmem:[#allocation2 + $0xe8] sm:$0xff]  ;;  %v2648_v48 = vld [vmem:[%s2579_s21 + $0x52] sm:$0xff] }
  0x52   : > { %2113 = vmatprep.mubr.msk.f32.mxu0 %vm224_vm0, %v2598_v26  ;;  %2247 = vmatprep.subr.bf16.mxu0 %v2246_v25  ;;  %v2644_v46 = vld [vmem:[%s2579_s21 + $0x42] sm:$0xff]  ;;  %v2258_v49 = vpack.c.bf16 %v1245_v44, %v1244_v43  ;;  %v494_v50 = vld [vmem:[#allocation2 + $0x50] sm:$0xff]  ;;  %v495_v51 = vld [vmem:[#allocation2 + $0x58] sm:$0xff] }
  0x53   : > { %2034 = vmatmul.mubr.msk.f32.gmra.mrb[2].mxu1 %vm224_vm0, %v2598_v26  ;;  %2215 = vmatprep.subr.bf16.mxu1 %v2214_v27  ;;  %v199_v47 = vld [vmem:[%s2579_s21] sm:$0xff]  ;;  %v2656_v52 = vld [vmem:[%s2579_s21 + $0x10] sm:$0xff]  ;;  %v2222_v56 = vpack.c.bf16 %v495_v51, %v494_v50  ;;  %v644_v58 = vld [vmem:[#allocation2 + $0x68] sm:$0xff] }
  0x54   : > { %2114 = vmatmul.mubr.msk.f32.gmra.mrb[2].mxu0 %vm224_vm0, %v2605_v32  ;;  %2036 = vmatprep.mubr.msk.f32.mxu1 %vm224_vm0, %v2605_v32  ;;  %v2661_v53 = vld [vmem:[%s2579_s21 + $0x62] sm:$0xff]  ;;  %v2667_v55 = vld [vmem:[%s2579_s21 + $0x72] sm:$0xff] }
  0x55   : > { %2249 = vmatpush3.bf16.msra.mxu0 %v2246_v25  ;;  %2130 = vmatprep.mubr.msk.f32.mxu0 %vm224_vm0, %v2610_v33  ;;  %v2664_v54 = vld [vmem:[%s2579_s21 + $0x20] sm:$0xff]  ;;  %v2674_v59 = vld [vmem:[%s2579_s21 + $0x30] sm:$0xff]  ;;  %v1247_v0 = vld [vmem:[#allocation2 + $0xf8] sm:$0xff] }
  0x56   : > { %2251 = vmatprep.subr.bf16.mxu0 %v2250_v34  ;;  %2217 = vmatpush3.bf16.msra.mxu1 %v2214_v27  ;;  %v643_v57 = vld [vmem:[#allocation2 + $0x60] sm:$0xff]  ;;  %v1246_v63 = vld [vmem:[#allocation2 + $0xf0] sm:$0xff]  ;;  %v1395_v5 = vld [vmem:[#allocation2 + $0x108] sm:$0xff] }
  0x57   : > { %2037 = vmatmul.mubr.msk.f32.gmra.mrb[4].mxu1 %vm224_vm0, %v2619_v38  ;;  %2219 = vmatprep.subr.bf16.mxu1 %v2218_v35  ;;  %v2681_v60 = vld [vmem:[%s2579_s21 + $0x82] sm:$0xff]  ;;  %v2226_v62 = vpack.c.bf16 %v644_v58, %v643_v57  ;;  %v2693_v1 = vld [vmem:[%s2579_s21 + $0x50] sm:$0xff]  ;;  %v2262_v3 = vpack.c.bf16 %v1247_v0, %v1246_v63  ;;  %v646_v11 = vld [vmem:[#allocation2 + $0x78] sm:$0xff] }
  0x58   : > { %2131 = vmatmul.mubr.msk.f32.vlgmr.msra.gmra.mrb[0].mxu0 %vm224_vm0, %v2624_v39  ;;  %2039 = vmatprep.mubr.msk.f32.mxu1 %vm224_vm0, %v2627_v40  ;;  %v2684_v61 = vld [vmem:[%s2579_s21 + $0x40] sm:$0xff]  ;;  %v206_v6 = vld [vmem:[%s2579_s21 + $0x70] sm:$0xff]  ;;  %v1397_v17 = vld [vmem:[#allocation2 + $0x118] sm:$0xff] }
  0x59   : > { %2253 = vmatpush3.bf16.msra.mxu0 %v2250_v34  ;;  %2133 = vmatprep.mubr.msk.f32.mxu0 %vm224_vm0, %v2630_v41  ;;  %v2698_v2 = vld [vmem:[%s2579_s21 + $0x60] sm:$0xff]  ;;  %v645_v10 = vld [vmem:[#allocation2 + $0x70] sm:$0xff] }
  0x5a   : > { %2255 = vmatprep.subr.bf16.mxu0 %v2254_v42  ;;  %v1394_v4 = vld [vmem:[#allocation2 + $0x100] sm:$0xff]  ;;  %v2230_v14 = vpack.c.bf16 %v646_v11, %v645_v10  ;;  %v1869_v15 = vld [vmem:[%s2579_s21 + $0x90] sm:$0xff] }
  0x5b   : > { %2040 = vmatmul.mubr.msk.f32.gmra.mrb[6].mxu1 %vm224_vm0, %v2639_v45  ;;  %v483_v8 = vld [vmem:[%s2579_s21 + $0x2] sm:$0xff]  ;;  %v2266_v9 = vpack.c.bf16 %v1395_v5, %v1394_v4  ;;  %v1396_v16 = vld [vmem:[#allocation2 + $0x110] sm:$0xff]  ;;  %v1910_v25 = vld [vmem:[#allocation4] ss:$0 sm:$0xff] }
  0x5c   : > { %2134 = vmatmul.mubr.msk.f32.gmra.mrb[2].mxu0 %vm224_vm0, %v2644_v46  ;;  %2050 = vmatprep.mubr.msk.f32.mxu1 %vm224_vm0, %v199_v47  ;;  %v1868_v13 = vld [vmem:[%s2579_s21 + $0x80] sm:$0xff]  ;;  %v2270_v18 = vpack.c.bf16 %v1397_v17, %v1396_v16  ;;  %v1885_v20 = vld [vmem:[%s2579_s21 + $0x91] sm:$0xff] }
  0x5d   : > { %2136 = vmatprep.mubr.msk.f32.mxu0 %vm224_vm0, %v2648_v48  ;;  %2257 = vmatpush3.bf16.msra.mxu0 %v2254_v42  ;;  %v1884_v19 = vld [vmem:[%s2579_s21 + $0x81] sm:$0xff] }
  0x5e   : > { %2259 = vmatprep.subr.bf16.mxu0 %v2258_v49 }
  0x5f   : > { %2051 = vmatmul.mubr.msk.f32.vlgmr.msra.gmra.mrb[0].mxu1 %vm224_vm0, %v2656_v52 }
  0x60   : > { %2137 = vmatmul.mubr.msk.f32.gmra.mrb[4].mxu0 %vm224_vm0, %v2661_v53  ;;  %2221 = vmatpush3.bf16.msra.mxu1 %v2218_v35 }
  0x61   : > { %2053 = vmatprep.mubr.msk.f32.mxu1 %vm224_vm0, %v2664_v54  ;;  %2139 = vmatprep.mubr.msk.f32.mxu0 %vm224_vm0, %v2667_v55 }
  0x62   : > { %2223 = vmatprep.subr.bf16.mxu1 %v2222_v56 }
  0x63   : > { %2054 = vmatmul.mubr.msk.f32.gmra.mrb[2].mxu1 %vm224_vm0, %v2674_v59 }
  0x64   : > { %2140 = vmatmul.mubr.msk.f32.gmra.mrb[6].mxu0 %vm224_vm0, %v2681_v60  ;;  %2056 = vmatprep.mubr.msk.f32.mxu1 %vm224_vm0, %v2684_v61 }
  0x65   : > { %2150 = vmatprep.mubr.msk.f32.mxu0 %vm224_vm0, %v2664_v54  ;;  %2225 = vmatpush3.bf16.msra.mxu1 %v2222_v56 }
  0x66   : > { %2227 = vmatprep.subr.bf16.mxu1 %v2226_v62 }
  0x67   : > { %2057 = vmatmul.mubr.msk.f32.gmra.mrb[4].mxu1 %vm224_vm0, %v2693_v1 }
  0x68   : > { %2151 = vmatmul.mubr.msk.f32.vlgmr.msra.gmra.mrb[0].mxu0 %vm224_vm0, %v2674_v59  ;;  %2059 = vmatprep.mubr.msk.f32.mxu1 %vm224_vm0, %v2698_v2 }
  0x69   : > { %2261 = vmatpush3.bf16.msra.mxu0 %v2258_v49  ;;  %2153 = vmatprep.mubr.msk.f32.mxu0 %vm224_vm0, %v2684_v61 }
  0x6a   : > { %2263 = vmatprep.subr.bf16.mxu0 %v2262_v3 }
  0x6b   : > { %2060 = vmatmul.mubr.msk.f32.gmra.mrb[6].mxu1 %vm224_vm0, %v206_v6 }
  0x6c   : > { %2154 = vmatmul.mubr.msk.f32.gmra.mrb[2].mxu0 %vm224_vm0, %v2693_v1  ;;  %2070 = vmatprep.mubr.msk.f32.mxu1 %vm224_vm0, %v483_v8 }
  0x6d   : > { %2156 = vmatprep.mubr.msk.f32.mxu0 %vm224_vm0, %v2698_v2  ;;  %2265 = vmatpush3.bf16.msra.mxu0 %v2262_v3 }
  0x6e   : > { %2267 = vmatprep.subr.bf16.mxu0 %v2266_v9 }
  0x6f   : > { %2071 = vmatmul.mubr.msk.f32.vlgmr.msra.gmra.mrb[0].mxu1 %vm224_vm0, %v2610_v33 }
  0x70   : > { %2157 = vmatmul.mubr.msk.f32.gmra.mrb[4].mxu0 %vm224_vm0, %v206_v6  ;;  %2229 = vmatpush3.bf16.msra.mxu1 %v2226_v62 }
  0x71   : > { %2073 = vmatprep.mubr.msk.f32.mxu1 %vm224_vm0, %v2624_v39  ;;  %2159 = vmatprep.mubr.msk.f32.mxu0 %vm224_vm0, %v1868_v13 }
  0x72   : > { %2231 = vmatprep.subr.bf16.mxu1 %v2230_v14 }
  0x73   : > { %2074 = vmatmul.mubr.msk.f32.gmra.mrb[2].mxu1 %vm224_vm0, %v2630_v41 }
  0x74   : > { %2160 = vmatmul.mubr.msk.f32.gmra.mrb[6].mxu0 %vm224_vm0, %v1869_v15  ;;  %2076 = vmatprep.mubr.msk.f32.mxu1 %vm224_vm0, %v2644_v46 }
  0x75   : > { %2170 = vmatprep.mubr.msk.f32.mxu0 %vm224_vm0, %v2594_v24  ;;  %2233 = vmatpush3.bf16.msra.mxu1 %v2230_v14 }
  0x76   : > { %2274 = vmatprep.subr.bf16.mxu1 %v2581_v7 }
  0x77   : > { %2077 = vmatmul.mubr.msk.f32.gmra.mrb[4].mxu1 %vm224_vm0, %v2648_v48 }
  0x78   : > { %2171 = vmatmul.mubr.msk.f32.vlgmr.msra.gmra.mrb[0].mxu0 %vm224_vm0, %v2598_v26  ;;  %2079 = vmatprep.mubr.msk.f32.mxu1 %vm224_vm0, %v2661_v53 }
  0x79   : > { %2269 = vmatpush3.bf16.msra.mxu0 %v2266_v9  ;;  %2173 = vmatprep.mubr.msk.f32.mxu0 %vm224_vm0, %v2605_v32 }
  0x7a   : > { %2271 = vmatprep.subr.bf16.mxu0 %v2270_v18 }
  0x7b   : > { %2080 = vmatmul.mubr.msk.f32.gmra.mrb[6].mxu1 %vm224_vm0, %v2667_v55 }
  0x7c   : > { %2174 = vmatmul.mubr.msk.f32.gmra.mrb[2].mxu0 %vm224_vm0, %v2619_v38  ;;  %2090 = vmatprep.mubr.msk.f32.mxu1 %vm224_vm0, %v2656_v52 }
  0x7d   : > { %2176 = vmatprep.mubr.msk.f32.mxu0 %vm224_vm0, %v2627_v40  ;;  %2273 = vmatpush3.bf16.msra.mxu0 %v2270_v18 }
  0x7f   : > { %2091 = vmatmul.mubr.msk.f32.vlgmr.msra.gmra.mrb[0].mxu1 %vm224_vm0, %v2664_v54 }
  0x80   : > { %2177 = vmatmul.mubr.msk.f32.gmra.mrb[4].mxu0 %vm224_vm0, %v2639_v45  ;;  %2276 = vmatpush3.bf16.msra.mxu1 %v2581_v7  ;;  %v1901_v7 = vld [vmem:[%s2579_s21 + $0x92] sm:$0xff] }
  0x81   : > { %2093 = vmatprep.mubr.msk.f32.mxu1 %vm224_vm0, %v2674_v59  ;;  %2179 = vmatprep.mubr.msk.f32.mxu0 %vm224_vm0, %v1884_v19 }
  0x82   : > { %2275 = vmatprep.subr.bf16.mxu1 %v2584_v12 }
  0x83   : > { %2094 = vmatmul.mubr.msk.f32.gmra.mrb[2].mxu1 %vm224_vm0, %v2684_v61 }
  0x84   : > { %2180 = vmatmul.mubr.msk.f32.gmra.mrb[6].mxu0 %vm224_vm0, %v1885_v20  ;;  %2096 = vmatprep.mubr.msk.f32.mxu1 %vm224_vm0, %v2693_v1 }
  0x85   : > { %2190 = vmatprep.mubr.msk.f32.mxu0 %vm224_vm0, %v2624_v39  ;;  %2277 = vmatpush3.bf16.msra.mxu1 %v2584_v12 }
  0x87   : > { %2097 = vmatmul.mubr.msk.f32.gmra.mrb[4].mxu1 %vm224_vm0, %v2698_v2 }
  0x88   : > { %2191 = vmatmul.mubr.msk.f32.vlgmr.msra.gmra.mrb[0].mxu0 %vm224_vm0, %v2630_v41  ;;  %2099 = vmatprep.mubr.msk.f32.mxu1 %vm224_vm0, %v206_v6 }
  0x89   : > { %2193 = vmatprep.mubr.msk.f32.mxu0 %vm224_vm0, %v2644_v46 }
  0x8b   : > { %2100 = vmatmul.mubr.msk.f32.gmra.mrb[6].mxu1 %vm224_vm0, %v1868_v13 }
  0x8c   : > { %2194 = vmatmul.mubr.msk.f32.gmra.mrb[2].mxu0 %vm224_vm0, %v2648_v48  ;;  %2116 = vmatprep.mubr.msk.f32.mxu1 %vm224_vm0, %v2619_v38 }
  0x8d   : > { %2196 = vmatprep.mubr.msk.f32.mxu0 %vm224_vm0, %v2661_v53 }
  0x8f   : > { %2117 = vmatmul.mubr.msk.f32.vlgmr.msra.gmra.mrb[4].mxu1 %vm224_vm0, %v2627_v40 }
  0x90   : > { %2197 = vmatmul.mubr.msk.f32.gmra.mrb[4].mxu0 %vm224_vm0, %v2667_v55  ;;  %2119 = vmatprep.mubr.msk.f32.mxu1 %vm224_vm0, %v2639_v45 }
  0x91   : > { %2199 = vmatprep.mubr.msk.f32.mxu0 %vm224_vm0, %v2681_v60 }
  0x93   : > { %2120 = vmatmul.mubr.msk.f32.gmra.mrb[6].mxu1 %vm224_vm0, %v1884_v19 }
  0x94   : > { %2200 = vmatmul.mubr.msk.f32.gmra.mrb[6].mxu0 %vm224_vm0, %v1901_v7 }
 0x152   : > { %v2092_v12 = vpop.f32.mrb[0].mxu1 }
 0x153   : > { %v737_v21 = vpop.f32.mrb[1].mxu1 }
 0x156   : > { %v2095_v22 = vpop.f32.mrb[2].mxu1 }
 0x157   : > { %v747_v23 = vpop.f32.mrb[3].mxu1 }
 0x15b   : > { %v2192_v24 = vpop.f32.mrb[0].mxu0 }
 0x15c   : > { %v2278_v26 = vadd.f32 %v2192_v24, %v2092_v12  ;;  %v1488_v27 = vpop.f32.mrb[1].mxu0 }
 0x15d   : > { %v2279_v28 = vadd.f32 %v1488_v27, %v737_v21 }
 0x15e   : > { %v1543_v29 = vadd.f32 %v2278_v26, %v1910_v25 }
 0x15f   : > { %v1542_v30 = vadd.f32 %v2279_v28, %v1910_v25  ;;  %v2195_v31 = vpop.f32.mrb[2].mxu0 }
 0x160   : > { %v1551_v32 = vsel %vm224_vm0, %v1543_v29, 0.0  ;;  %v2280_v33 = vadd.f32 %v2195_v31, %v2095_v22  ;;  %v1498_v34 = vpop.f32.mrb[3].mxu0 }
 0x161   : > { %v1550_v35 = vsel %vm224_vm0, %v1542_v30, 0.0  ;;  %v2281_v36 = vadd.f32 %v1498_v34, %v747_v23 }
 0x162   : > { %v1552_v37 = vadd.f32 %v1551_v32, %v1550_v35  ;;  %v2118_v38 = vpop.f32.mrb[4].mxu1  ;;  %v1545_v39 = vadd.f32 %v2280_v33, %v1910_v25 }
 0x163   : > { %v1544_v40 = vadd.f32 %v2281_v36, %v1910_v25  ;;  %v2198_v41 = vpop.f32.mrb[4].mxu0  ;;  %v907_v42 = vpop.f32.mrb[5].mxu1 }
 0x164   : > { %v2282_v43 = vadd.f32 %v2198_v41, %v2118_v38  ;;  %v1508_v44 = vpop.f32.mrb[5].mxu0  ;;  %v1555_v49 = vsel %vm224_vm0, %v1545_v39, 0.0 }
 0x165   : > { %v1553_v45 = vsel %vm224_vm0, %v1544_v40, 0.0  ;;  %v2283_v46 = vadd.f32 %v1508_v44, %v907_v42 }
 0x166   : > { %v1554_v47 = vadd.f32 %v1553_v45, %v1552_v37  ;;  %v2121_v48 = vpop.f32.mrb[6].mxu1  ;;  %v1547_v50 = vadd.f32 %v2282_v43, %v1910_v25 }
 0x167   : > { %v1546_v51 = vadd.f32 %v2283_v46, %v1910_v25  ;;  %v2201_v52 = vpop.f32.mrb[6].mxu0  ;;  %v917_v53 = vpop.f32.mrb[7].mxu1 }
 0x168   : > { %v1556_v54 = vadd.f32 %v1555_v49, %v1554_v47  ;;  %v2284_v55 = vadd.f32 %v2201_v52, %v2121_v48  ;;  %v1518_v56 = vpop.f32.mrb[7].mxu0  ;;  %v1559_v60 = vsel %vm224_vm0, %v1547_v50, 0.0 }
 0x169   : > { %v1557_v57 = vsel %vm224_vm0, %v1546_v51, 0.0  ;;  %v2285_v58 = vadd.f32 %v1518_v56, %v917_v53 }
 0x16a   : > { %v1558_v59 = vadd.f32 %v1557_v57, %v1556_v54  ;;  %v1549_v61 = vadd.f32 %v2284_v55, %v1910_v25 }
 0x16b   : > { %v1548_v62 = vadd.f32 %v2285_v58, %v1910_v25 }
 0x16c   : > { %v1560_v63 = vadd.f32 %v1559_v60, %v1558_v59  ;;  %v1563_v2 = vsel %vm224_vm0, %v1549_v61, 0.0 }
 0x16d   : > { %v1561_v0 = vsel %vm224_vm0, %v1548_v62, 0.0 }
 0x16e   : > { %v1562_v1 = vadd.f32 %v1561_v0, %v1560_v63 }
 0x170   : > { %v1564_v3 = vadd.f32 %v1563_v2, %v1562_v1 }
 0x172   : > { %v1565_v4 = vrot.slane %v1564_v3, 4 }
 0x174   : > { %v1566_v5 = vadd.f32 %v1565_v4, %v1564_v3 }
 0x176   : > { %v1567_v6 = vrot.slane %v1566_v5, 2 }
 0x178   : > { %v1568_v8 = vadd.f32 %v1567_v6, %v1566_v5 }
 0x17a   : > { %v1569_v9 = vrot.slane %v1568_v8, 1 }
 0x17c   : > { %v1570_v10 = vadd.f32 %v1569_v9, %v1568_v8 }
 0x17e   : > { %v1572_v11 = vmul.f32 0.015625, %v1570_v10 }
 0x180   : > { %v1573_v13 = vsub.f32 %v1542_v30, %v1572_v11  ;;  %v1574_v14 = vsub.f32 %v1543_v29, %v1572_v11  ;;  %v1575_v15 = vsub.f32 %v1544_v40, %v1572_v11  ;;  %v1576_v16 = vsub.f32 %v1545_v39, %v1572_v11 }
 0x181   : > { %v1577_v17 = vsub.f32 %v1546_v51, %v1572_v11  ;;  %v1578_v18 = vsub.f32 %v1547_v50, %v1572_v11  ;;  %v1579_v19 = vsub.f32 %v1548_v62, %v1572_v11  ;;  %v1580_v20 = vsub.f32 %v1549_v61, %v1572_v11 }
 0x182   : > { %v1581_v7 = vmul.f32 %v1573_v13, %v1573_v13  ;;  %v1582_v12 = vmul.f32 %v1574_v14, %v1574_v14  ;;  %v1583_v21 = vmul.f32 %v1575_v15, %v1575_v15  ;;  %v1584_v22 = vmul.f32 %v1576_v16, %v1576_v16 }
 0x183   : > { %v1585_v26 = vmul.f32 %v1577_v17, %v1577_v17  ;;  %v1586_v29 = vmul.f32 %v1578_v18, %v1578_v18  ;;  %v1587_v32 = vmul.f32 %v1579_v19, %v1579_v19  ;;  %v1588_v35 = vmul.f32 %v1580_v20, %v1580_v20 }
 0x184   : > { %v1589_v23 = vsel %vm224_vm0, %v1581_v7, 0.0  ;;  %v1590_v24 = vsel %vm224_vm0, %v1582_v12, 0.0  ;;  %v1592_v27 = vsel %vm224_vm0, %v1583_v21, 0.0  ;;  %v1594_v30 = vsel %vm224_vm0, %v1584_v22, 0.0 }
 0x185   : > { %v1591_v25 = vadd.f32 %v1590_v24, %v1589_v23  ;;  %v1596_v33 = vsel %vm224_vm0, %v1585_v26, 0.0  ;;  %v1598_v36 = vsel %vm224_vm0, %v1586_v29, 0.0  ;;  %v1600_v38 = vsel %vm224_vm0, %v1587_v32, 0.0 }
 0x186   : > { %v1602_v40 = vsel %vm224_vm0, %v1588_v35, 0.0 }
 0x187   : > { %v1593_v28 = vadd.f32 %v1592_v27, %v1591_v25 }
 0x189   : > { %v1595_v31 = vadd.f32 %v1594_v30, %v1593_v28 }
 0x18b   : > { %v1597_v34 = vadd.f32 %v1596_v33, %v1595_v31 }
 0x18d   : > { %v1599_v37 = vadd.f32 %v1598_v36, %v1597_v34 }
 0x18f   : > { %v1601_v39 = vadd.f32 %v1600_v38, %v1599_v37 }
 0x191   : > { %v1603_v41 = vadd.f32 %v1602_v40, %v1601_v39 }
 0x193   : > { %v1604_v42 = vrot.slane %v1603_v41, 4 }
 0x195   : > { %v1605_v43 = vadd.f32 %v1604_v42, %v1603_v41 }
 0x197   : > { %v1606_v44 = vrot.slane %v1605_v43, 2 }
 0x199   : > { %v1607_v45 = vadd.f32 %v1606_v44, %v1605_v43 }
 0x19b   : > { %v1608_v46 = vrot.slane %v1607_v45, 1 }
 0x19d   : > { %v1609_v47 = vadd.f32 %v1608_v46, %v1607_v45 }
 0x19f   : > { %v1610_v48 = vmul.f32 0.015625, %v1609_v47 }
 0x1a1   : > { %v1611_v49 = vadd.f32 1e-05, %v1610_v48 }
 0x1a3   : > { %2374 = vrsqrt.f32 %v1611_v49 }
 0x1ad   : > { %v2375_v50 = vpop.eup %2374 }
 0x1ae   : > { %v1613_v51 = vmul.f32 %v2375_v50, %v1573_v13  ;;  %v1614_v52 = vmul.f32 %v2375_v50, %v1574_v14  ;;  %v2808_v53 = vmul.f32 %v2375_v50, %v1575_v15  ;;  %v2810_v54 = vmul.f32 %v2375_v50, %v1576_v16 }
 0x1af   : > { %v2812_v55 = vmul.f32 %v2375_v50, %v1577_v17  ;;  %v2814_v56 = vmul.f32 %v2375_v50, %v1578_v18  ;;  %v2816_v57 = vmul.f32 %v2375_v50, %v1579_v19  ;;  %v2818_v58 = vmul.f32 %v2375_v50, %v1580_v20 }
 0x1b0   : > { %v1629_v59 = vmul.f32 0.044715, %v1613_v51  ;;  %v1630_v60 = vmul.f32 0.044715, %v1614_v52  ;;  %v1631_v61 = vmul.f32 0.044715, %v2808_v53 }
 0x1b1   : > { %v1632_v62 = vmul.f32 0.044715, %v2810_v54  ;;  %v1633_v63 = vmul.f32 0.044715, %v2812_v55  ;;  %v1634_v0 = vmul.f32 0.044715, %v2814_v56 }
 0x1b2   : > { %v1635_v1 = vmul.f32 0.044715, %v2816_v57  ;;  %v1636_v2 = vmul.f32 0.044715, %v2818_v58  ;;  %v1637_v3 = vmul.f32 %v1629_v59, %v1613_v51  ;;  %v1638_v4 = vmul.f32 %v1630_v60, %v1614_v52 }
 0x1b3   : > { %v1639_v5 = vmul.f32 %v1631_v61, %v2808_v53  ;;  %v1640_v6 = vmul.f32 %v1632_v62, %v2810_v54  ;;  %v1641_v8 = vmul.f32 %v1633_v63, %v2812_v55  ;;  %v1642_v9 = vmul.f32 %v1634_v0, %v2814_v56 }
 0x1b4   : > { %v1643_v10 = vmul.f32 %v1635_v1, %v2816_v57  ;;  %v1644_v11 = vmul.f32 %v1636_v2, %v2818_v58  ;;  %v1645_v13 = vmul.f32 %v1637_v3, %v1613_v51  ;;  %v1646_v14 = vmul.f32 %v1638_v4, %v1614_v52 }
 0x1b5   : > { %v1647_v15 = vmul.f32 %v1639_v5, %v2808_v53  ;;  %v1648_v16 = vmul.f32 %v1640_v6, %v2810_v54  ;;  %v1649_v17 = vmul.f32 %v1641_v8, %v2812_v55  ;;  %v1650_v18 = vmul.f32 %v1642_v9, %v2814_v56 }
 0x1b6   : > { %v1651_v19 = vmul.f32 %v1643_v10, %v2816_v57  ;;  %v1652_v20 = vmul.f32 %v1644_v11, %v2818_v58  ;;  %v1653_v7 = vadd.f32 %v1645_v13, %v1613_v51  ;;  %v1654_v12 = vadd.f32 %v1646_v14, %v1614_v52 }
 0x1b7   : > { %v1655_v21 = vadd.f32 %v1647_v15, %v2808_v53  ;;  %v1656_v22 = vadd.f32 %v1648_v16, %v2810_v54  ;;  %v1657_v23 = vadd.f32 %v1649_v17, %v2812_v55  ;;  %v1658_v24 = vadd.f32 %v1650_v18, %v2814_v56 }
 0x1b8   : > { %v1659_v25 = vadd.f32 %v1651_v19, %v2816_v57  ;;  %v1661_v26 = vmul.f32 0.7978846, %v1653_v7  ;;  %v1662_v27 = vmul.f32 0.7978846, %v1654_v12  ;;  %v1660_v28 = vadd.f32 %v1652_v20, %v2818_v58 }
 0x1b9   : > { %v1663_v29 = vmul.f32 0.7978846, %v1655_v21  ;;  %v1664_v30 = vmul.f32 0.7978846, %v1656_v22  ;;  %v1665_v31 = vmul.f32 0.7978846, %v1657_v23 }
 0x1ba   : > { %2376 = vtanh.f32 %v1661_v26  ;;  %v1666_v32 = vmul.f32 0.7978846, %v1658_v24  ;;  %v1667_v33 = vmul.f32 0.7978846, %v1659_v25  ;;  %v1668_v34 = vmul.f32 0.7978846, %v1660_v28 }
 0x1bb   : > { %2378 = vtanh.f32 %v1662_v27  ;;  %v1621_v37 = vmul.f32 0.5, %v1613_v51  ;;  %v1622_v40 = vmul.f32 0.5, %v1614_v52  ;;  %v1623_v43 = vmul.f32 0.5, %v2808_v53 }
 0x1bc   : > { %2380 = vtanh.f32 %v1663_v29  ;;  %v1624_v47 = vmul.f32 0.5, %v2810_v54  ;;  %v1625_v51 = vmul.f32 0.5, %v2812_v55  ;;  %v1626_v53 = vmul.f32 0.5, %v2814_v56 }
 0x1bd   : > { %2382 = vtanh.f32 %v1664_v30  ;;  %v1627_v63 = vmul.f32 0.5, %v2816_v57  ;;  %v1628_v1 = vmul.f32 0.5, %v2818_v58 }
 0x1be   : > { %2384 = vtanh.f32 %v1665_v31 }
 0x1bf   : > { %2386 = vtanh.f32 %v1666_v32 }
 0x1c0   : > { %2388 = vtanh.f32 %v1667_v33 }
 0x1c1   : > { %2390 = vtanh.f32 %v1668_v34 }
 0x1c4   : > { %v2377_v35 = vpop.eup %2376 }
 0x1c5   : > { %v2379_v36 = vpop.eup %2378  ;;  %v1677_v38 = vadd.f32 1.0, %v2377_v35 }
 0x1c6   : > { %v2381_v39 = vpop.eup %2380  ;;  %v1678_v41 = vadd.f32 1.0, %v2379_v36 }
 0x1c7   : > { %v2383_v42 = vpop.eup %2382  ;;  %v1679_v44 = vadd.f32 1.0, %v2381_v39  ;;  %v1685_v45 = vmul.f32 %v1677_v38, %v1621_v37 }
 0x1c8   : > { %v2385_v46 = vpop.eup %2384  ;;  %v1680_v48 = vadd.f32 1.0, %v2383_v42  ;;  %v1686_v49 = vmul.f32 %v1678_v41, %v1622_v40 }
 0x1c9   : > { %v2387_v50 = vpop.eup %2386  ;;  %v1681_v59 = vadd.f32 1.0, %v2385_v46  ;;  %v1687_v60 = vmul.f32 %v1679_v44, %v1623_v43  ;;  %1693 = vst.msk [vmem:[%s2848_s25] sm:$0xff] %vm224_vm0, %v1685_v45 }
 0x1ca   : > { %v2389_v52 = vpop.eup %2388  ;;  %v1682_v61 = vadd.f32 1.0, %v2387_v50  ;;  %v1688_v62 = vmul.f32 %v1680_v48, %v1624_v47  ;;  %1694 = vst.msk [vmem:[%s2848_s25 + $0x8] sm:$0xff] %vm224_vm0, %v1686_v49 }
 0x1cb   : > { %v2391_v54 = vpop.eup %2390  ;;  %v1683_v55 = vadd.f32 1.0, %v2389_v52  ;;  %v1689_v0 = vmul.f32 %v1681_v59, %v1625_v51  ;;  %1695 = vst.msk [vmem:[%s2848_s25 + $0x10] sm:$0xff] %vm224_vm0, %v1687_v60 }
 0x1cc   : > { %v1684_v2 = vadd.f32 1.0, %v2391_v54  ;;  %v1690_v3 = vmul.f32 %v1682_v61, %v1626_v53  ;;  %1696 = vst.msk [vmem:[%s2848_s25 + $0x18] sm:$0xff] %vm224_vm0, %v1688_v62 }
 0x1cd   : > { %v1691_v56 = vmul.f32 %v1683_v55, %v1627_v63  ;;  %1697 = vst.msk [vmem:[%s2848_s25 + $0x20] sm:$0xff] %vm224_vm0, %v1689_v0 }
 0x1ce   : > { %v1692_v4 = vmul.f32 %v1684_v2, %v1628_v1  ;;  %1698 = vst.msk [vmem:[%s2848_s25 + $0x28] sm:$0xff] %vm224_vm0, %v1690_v3 }
 0x1cf   : > { %1699 = vst.msk [vmem:[%s2848_s25 + $0x30] sm:$0xff] %vm224_vm0, %v1691_v56 }
 0x1d0   : > { %1700 = vst.msk [vmem:[%s2848_s25 + $0x38] sm:$0xff] %vm224_vm0, %v1692_v4 }
 0x1d1 PF: > { %s15_s12 = sadd.s32 1, %s2462_s12  }
 0x1d2   : > { %p12_p5 = scmp.ge.s32.totalorder %s15_s12, 4  }
 0x1d4   :  { %14 = sbr.rel (!%p12_p5) target bundleno = 2 (0x2), region = 81 }
 0x1db   :  { %1722 = vsyncpa [#allocation3], 1 }
 0x1dc   :  { %1724 = vsyncpa [#allocation3 + $0x1], 1 }
 0x1dd   :  { %1725 = vsyncpa [#allocation5], 1 }

// kernel: wno_recon_forward.16
= control target key start
LH: loop header
LB: loop body
LE: loop exit
PB: predicated region body
PF: predicated region fallthrough
CT: control target
= control target key end

     0   :  { %v332_v3 = vmov 0.0   ;;  %v333_v8 = vmov 0   ;;  %vm61_vm0 = vcmask 261120   ;;  %s535_s0 = inlined_call_operand.vmem [shape: f32[32,512], index: 0, kind: input, shape index: {}]   ;;  %s536_s2 = inlined_call_operand.vmem [shape: f32[32,1], index: 2, kind: input, shape index: {}]   ;;  %s537_s1 = inlined_call_operand.vmem [shape: f32[32,32], index: 1, kind: input, shape index: {}]   ;;  %s538_s3 = inlined_call_operand.vmem [shape: f32[32,512], index: 3, kind: input, shape index: {}]   ;;  %s539_s4 = inlined_call_operand.vmem [shape: f32[32,512], index: 4, kind: output, shape index: {}]  }
   0x1   :  { %v22_v0 = vld [vmem:[%s535_s0 + $0x8] sm:$0xff]  ;;  %v24_v2 = vld [vmem:[%s535_s0 + $0x18] sm:$0xff]  ;;  %138 = vmatprep.mubr.f32.mxu0 %v332_v3  ;;  %227 = vmatprep.mubr.f32.mxu1 %v332_v3  ;;  %v21_v6 = vld [vmem:[%s535_s0] sm:$0xff] }
   0x2   :  { %v26_v1 = vld [vmem:[%s535_s0 + $0x28] sm:$0xff]  ;;  %v28_v5 = vld [vmem:[%s535_s0 + $0x38] sm:$0xff]  ;;  %v25_v7 = vld [vmem:[%s535_s0 + $0x20] sm:$0xff]  ;;  %330 = vset.pattern.permute.xlu0 %v333_v8  ;;  %331 = vset.pattern.permute.xlu1 %v333_v8 }
   0x3   :  { %v312_v4 = vpack.c.bf16 %v26_v1, %v22_v0  ;;  %v320_v9 = vpack.c.bf16 %v28_v5, %v24_v2  ;;  %v314_v10 = vpack.c.bf16 %v25_v7, %v21_v6  ;;  %v23_v11 = vld [vmem:[%s535_s0 + $0x10] sm:$0xff]  ;;  %v30_v13 = vld [vmem:[%s535_s0 + $0x48] sm:$0xff]  ;;  %v32_v16 = vld [vmem:[%s535_s0 + $0x58] sm:$0xff] }
   0x4   :  { %v27_v12 = vld [vmem:[%s535_s0 + $0x30] sm:$0xff]  ;;  %v34_v15 = vld [vmem:[%s535_s0 + $0x68] sm:$0xff]  ;;  %v36_v17 = vld [vmem:[%s535_s0 + $0x78] sm:$0xff] }
   0x5   :  { %313 = vmatprep.subr.bf16.mxu0 %v312_v4  ;;  %v322_v14 = vpack.c.bf16 %v27_v12, %v23_v11  ;;  %321 = vmatprep.subr.bf16.mxu1 %v320_v9  ;;  %v316_v18 = vpack.c.bf16 %v34_v15, %v30_v13  ;;  %v324_v19 = vpack.c.bf16 %v36_v17, %v32_v16  ;;  %v29_v20 = vld [vmem:[%s535_s0 + $0x40] sm:$0xff]  ;;  %v31_v22 = vld [vmem:[%s535_s0 + $0x50] sm:$0xff]  ;;  %v38_v29 = vld [vmem:[%s536_s2 + $0x8] sm:$0xff] }
   0x6   :  { %315 = vmatpush1.bf16.msra.mxu0 %v314_v10  ;;  %v33_v21 = vld [vmem:[%s535_s0 + $0x60] sm:$0xff]  ;;  %v35_v24 = vld [vmem:[%s535_s0 + $0x70] sm:$0xff]  ;;  %v40_v30 = vld [vmem:[%s536_s2 + $0x18] sm:$0xff] }
   0x7   :  { %323 = vmatpush1.bf16.msra.mxu1 %v322_v14  ;;  %v318_v23 = vpack.c.bf16 %v33_v21, %v29_v20  ;;  %317 = vmatprep.subr.bf16.mxu0 %v316_v18  ;;  %v326_v25 = vpack.c.bf16 %v35_v24, %v31_v22  ;;  %v37_v26 = vld [vmem:[%s536_s2] sm:$0xff]  ;;  %v39_v27 = vld [vmem:[%s536_s2 + $0x10] sm:$0xff]  ;;  %v18_v31 = vld [vmem:[%s537_s1 + $0x8] sm:$0xff] }
   0x8   :  { %325 = vmatprep.subr.bf16.mxu1 %v324_v19  ;;  %43 = vperm.xlu0 %330, %v37_v26   ;;  %v17_v28 = vld [vmem:[%s537_s1] sm:$0xff]  ;;  %v19_v32 = vld [vmem:[%s537_s1 + $0x10] sm:$0xff]  ;;  %v20_v33 = vld [vmem:[%s537_s1 + $0x18] sm:$0xff] }
   0x9   :  { %53 = vperm.xlu1 %331, %v39_v27   ;;  %v252_v36 = vld [vmem:[%s538_s3] sm:$0xff]  ;;  %v254_v39 = vld [vmem:[%s538_s3 + $0x10] sm:$0xff]  ;;  %v253_v41 = vld [vmem:[%s538_s3 + $0x8] sm:$0xff] }
   0xa   :  { %319 = vmatpush1.bf16.msra.mxu0 %v318_v23  ;;  %v255_v45 = vld [vmem:[%s538_s3 + $0x18] sm:$0xff]  ;;  %v256_v52 = vld [vmem:[%s538_s3 + $0x20] sm:$0xff]  ;;  %v258_v56 = vld [vmem:[%s538_s3 + $0x30] sm:$0xff] }
   0xb   :  { %327 = vmatpush1.bf16.msra.mxu1 %v326_v25  ;;  %v257_v58 = vld [vmem:[%s538_s3 + $0x28] sm:$0xff]  ;;  %v259_v63 = vld [vmem:[%s538_s3 + $0x38] sm:$0xff]  ;;  %v260_v5 = vld [vmem:[%s538_s3 + $0x40] sm:$0xff] }
   0xc   :  { %48 = vperm.xlu0 %330, %v38_v29   ;;  %v262_v9 = vld [vmem:[%s538_s3 + $0x50] sm:$0xff]  ;;  %v261_v11 = vld [vmem:[%s538_s3 + $0x48] sm:$0xff]  ;;  %v263_v15 = vld [vmem:[%s538_s3 + $0x58] sm:$0xff] }
   0xd   :  { %304 = vmatmul.mubr.msk.f32.vlgmr.msra.gmra.mrb[0].mxu0 %vm61_vm0, %v17_v28  ;;  %58 = vperm.xlu1 %331, %v40_v30   ;;  %v264_v22 = vld [vmem:[%s538_s3 + $0x60] sm:$0xff]  ;;  %v266_v26 = vld [vmem:[%s538_s3 + $0x70] sm:$0xff] }
   0xe   :  { %308 = vmatmul.mubr.msk.f32.vlgmr.msra.gmra.mrb[0].mxu1 %vm61_vm0, %v17_v28  ;;  %144 = vmatprep.mubr.f32.mxu0 %v332_v3  ;;  %v265_v28 = vld [vmem:[%s538_s3 + $0x68] sm:$0xff] }
   0xf   :  { %233 = vmatprep.mubr.f32.mxu1 %v332_v3 }
  0x11   :  { %305 = vmatmul.mubr.msk.f32.gmra.mrb[2].mxu0 %vm61_vm0, %v18_v31 }
  0x12   :  { %309 = vmatmul.mubr.msk.f32.gmra.mrb[2].mxu1 %vm61_vm0, %v18_v31  ;;  %150 = vmatprep.mubr.f32.mxu0 %v332_v3 }
  0x13   :  { %239 = vmatprep.mubr.f32.mxu1 %v332_v3 }
  0x15   :  { %306 = vmatmul.mubr.msk.f32.gmra.mrb[4].mxu0 %vm61_vm0, %v19_v32 }
  0x16   :  { %310 = vmatmul.mubr.msk.f32.gmra.mrb[4].mxu1 %vm61_vm0, %v19_v32  ;;  %156 = vmatprep.mubr.f32.mxu0 %v332_v3  ;;  %v267_v32 = vld [vmem:[%s538_s3 + $0x78] sm:$0xff] }
  0x17   :  { %245 = vmatprep.mubr.f32.mxu1 %v332_v3 }
  0x19   :  { %307 = vmatmul.mubr.msk.f32.gmra.mrb[6].mxu0 %vm61_vm0, %v20_v33 }
  0x1a   :  { %311 = vmatmul.mubr.msk.f32.gmra.mrb[6].mxu1 %vm61_vm0, %v20_v33 }
  0x87   :  { %v44_v34 = vpop.permute.xlu0 %43 }
  0x88   :  { %v54_v60 = vpop.permute.xlu1 %53 }
  0x8b   :  { %v49_v46 = vpop.permute.xlu0 %48 }
  0x8c   :  { %v59_v19 = vpop.permute.xlu1 %58 }
  0xe0   :  { %v140_v35 = vpop.f32.mrb[0].mxu0 }
  0xe1   :  { %v141_v37 = vadd.f32 %v140_v35, %v44_v34  ;;  %v229_v38 = vpop.f32.mrb[0].mxu1  ;;  %v142_v40 = vpop.f32.mrb[1].mxu0 }
  0xe2   :  { %v230_v42 = vadd.f32 %v229_v38, %v44_v34  ;;  %v143_v43 = vadd.f32 %v142_v40, %v44_v34  ;;  %v231_v44 = vpop.f32.mrb[1].mxu1 }
  0xe3   :  { %v268_v47 = vadd.f32 %v252_v36, %v141_v37  ;;  %v232_v48 = vadd.f32 %v231_v44, %v44_v34 }
  0xe4   :  { %v270_v49 = vadd.f32 %v254_v39, %v230_v42  ;;  %v269_v50 = vadd.f32 %v253_v41, %v143_v43  ;;  %v146_v51 = vpop.f32.mrb[2].mxu0 }
  0xe5   :  { %284 = vst [vmem:[%s539_s4] sm:$0xff] %v268_v47  ;;  %v271_v53 = vadd.f32 %v255_v45, %v232_v48  ;;  %v147_v54 = vadd.f32 %v146_v51, %v49_v46  ;;  %v235_v55 = vpop.f32.mrb[2].mxu1  ;;  %v148_v57 = vpop.f32.mrb[3].mxu0 }
  0xe6   :  { %286 = vst [vmem:[%s539_s4 + $0x10] sm:$0xff] %v270_v49  ;;  %285 = vst [vmem:[%s539_s4 + $0x8] sm:$0xff] %v269_v50  ;;  %v236_v59 = vadd.f32 %v235_v55, %v49_v46  ;;  %v149_v61 = vadd.f32 %v148_v57, %v49_v46  ;;  %v237_v62 = vpop.f32.mrb[3].mxu1 }
  0xe7   :  { %287 = vst [vmem:[%s539_s4 + $0x18] sm:$0xff] %v271_v53  ;;  %v272_v0 = vadd.f32 %v256_v52, %v147_v54  ;;  %v238_v1 = vadd.f32 %v237_v62, %v49_v46 }
  0xe8   :  { %v274_v2 = vadd.f32 %v258_v56, %v236_v59  ;;  %v273_v3 = vadd.f32 %v257_v58, %v149_v61  ;;  %v152_v4 = vpop.f32.mrb[4].mxu0 }
  0xe9   :  { %288 = vst [vmem:[%s539_s4 + $0x20] sm:$0xff] %v272_v0  ;;  %v275_v6 = vadd.f32 %v259_v63, %v238_v1  ;;  %v153_v7 = vadd.f32 %v152_v4, %v54_v60  ;;  %v241_v8 = vpop.f32.mrb[4].mxu1  ;;  %v154_v10 = vpop.f32.mrb[5].mxu0 }
  0xea   :  { %290 = vst [vmem:[%s539_s4 + $0x30] sm:$0xff] %v274_v2  ;;  %289 = vst [vmem:[%s539_s4 + $0x28] sm:$0xff] %v273_v3  ;;  %v242_v12 = vadd.f32 %v241_v8, %v54_v60  ;;  %v155_v13 = vadd.f32 %v154_v10, %v54_v60  ;;  %v243_v14 = vpop.f32.mrb[5].mxu1 }
  0xeb   :  { %291 = vst [vmem:[%s539_s4 + $0x38] sm:$0xff] %v275_v6  ;;  %v276_v16 = vadd.f32 %v260_v5, %v153_v7  ;;  %v244_v17 = vadd.f32 %v243_v14, %v54_v60 }
  0xec   :  { %v278_v18 = vadd.f32 %v262_v9, %v242_v12  ;;  %v277_v20 = vadd.f32 %v261_v11, %v155_v13  ;;  %v158_v21 = vpop.f32.mrb[6].mxu0 }
  0xed   :  { %292 = vst [vmem:[%s539_s4 + $0x40] sm:$0xff] %v276_v16  ;;  %v279_v23 = vadd.f32 %v263_v15, %v244_v17  ;;  %v159_v24 = vadd.f32 %v158_v21, %v59_v19  ;;  %v247_v25 = vpop.f32.mrb[6].mxu1  ;;  %v160_v27 = vpop.f32.mrb[7].mxu0 }
  0xee   :  { %294 = vst [vmem:[%s539_s4 + $0x50] sm:$0xff] %v278_v18  ;;  %293 = vst [vmem:[%s539_s4 + $0x48] sm:$0xff] %v277_v20  ;;  %v248_v29 = vadd.f32 %v247_v25, %v59_v19  ;;  %v161_v30 = vadd.f32 %v160_v27, %v59_v19  ;;  %v249_v31 = vpop.f32.mrb[7].mxu1 }
  0xef   :  { %295 = vst [vmem:[%s539_s4 + $0x58] sm:$0xff] %v279_v23  ;;  %v280_v33 = vadd.f32 %v264_v22, %v159_v24  ;;  %v250_v34 = vadd.f32 %v249_v31, %v59_v19 }
  0xf0   :  { %v282_v35 = vadd.f32 %v266_v26, %v248_v29  ;;  %v281_v36 = vadd.f32 %v265_v28, %v161_v30 }
  0xf1   :  { %296 = vst [vmem:[%s539_s4 + $0x60] sm:$0xff] %v280_v33  ;;  %v283_v37 = vadd.f32 %v267_v32, %v250_v34 }
  0xf2   :  { %298 = vst [vmem:[%s539_s4 + $0x70] sm:$0xff] %v282_v35  ;;  %297 = vst [vmem:[%s539_s4 + $0x68] sm:$0xff] %v281_v36 }
  0xf3   :  { %299 = vst [vmem:[%s539_s4 + $0x78] sm:$0xff] %v283_v37 }

// kernel: wno_recon_forward.17
= control target key start
LH: loop header
LB: loop body
LE: loop exit
PB: predicated region body
PF: predicated region fallthrough
CT: control target
= control target key end

     0   :  { %s3702_s9 = smov 0   ;;  %s3704_s10 = smov 0   ;;  %s4897_s0 = inlined_call_operand.vmem [shape: f32[32,2,512], index: 0, kind: input, shape index: {}]   ;;  %s4898_s1 = inlined_call_operand.vmem [shape: f32[32,32,512], index: 1, kind: input, shape index: {}]   ;;  %s4899_s2 = inlined_call_operand.vmem [shape: f32[2,32,512], index: 2, kind: output, shape index: {}]  }
   0x1   :  { %s3706_s11 = smov 0  }
   0x2 LB: > { %s3306_s12 = sadd.s32 4294967295, %s3685_s11   ;;  %s3719_s13 = sadd.s32 1, %s3685_s11   ;;  %s3685_s11 = sphi %s3706_s11, %s4904_s11   ;;  %s3681_s10 = sphi %s3704_s10, %s4903_s10   ;;  %s3677_s9 = sphi %s3702_s9, %s4902_s9  }
   0x3   : > { %s16_s14 = ssub.s32 %s3685_s11, %s3719_s13  ;;  %s19_s15 = sadd.s32 1, %s3681_s10 }
   0x4   : > { %p17_p0 = scmp.eq.s32.totalorder %s16_s14, 0  ;;  %p26_p1 = scmp.ne.s32.totalorder %s3681_s10, %s3677_s9 }
   0x5   : > { %p27_p2 = scmp.eq.s32.totalorder %s3685_s11, 0  ;;  %p82_p3 = scmp.eq.s32.totalorder %s3306_s12, 1 }
   0x6   : > { %s3730_s16 = scalar_select %p17_p0, %s3681_s10, %s19_s15  }
   0x7   : > { %p3732_p4 = por %p27_p2, %p26_p1  ;;  %p3736_p5 = por %p82_p3, %p26_p1 }
   0x8   : > { %p3309_p6 = scmp.ge.s32.totalorder %s3685_s11, 2 }
   0xa   : > { %104 = sbr.rel (%p3309_p6) target bundleno = 174 (0xae), region = 16 }
  0x11   : > { %107 = sbr.rel (!%p3732_p4) target bundleno = 42 (0x2a), region = 20  ;;  %s109_s19 = sand.u32 (%p3732_p4), 1, %s3681_s10  }
  0x12   : > { %s3636_s20 = sshll.u32 (%p3732_p4), %s3685_s11, 2  ;;  %s3310_s21 = sshll.u32 (%p3732_p4), %s109_s19, 7 }
  0x13   : > { %s3748_s24 = scalar_lea.vmem (%p3732_p4), %s4897_s0, %s3636_s20  ;;  %s3752_s25 = scalar_lea.vmem (%p3732_p4), [#allocation2], %s3310_s21 }
  0x14   : > { %v130_v0 = vld [vmem:[%s3748_s24] sm:$0xf] (%p3732_p4)  ;;  %v132_v1 = vld [vmem:[%s3748_s24 + $0x8] sm:$0xf] (%p3732_p4)  ;;  %v134_v2 = vld [vmem:[%s3748_s24 + $0x10] sm:$0xf] (%p3732_p4) }
  0x15   : > { %131 = vst [vmem:[%s3752_s25] sm:$0xf] (%p3732_p4), %v130_v0  ;;  %133 = vst [vmem:[%s3752_s25 + $0x4] sm:$0xf] (%p3732_p4), %v132_v1  ;;  %v136_v3 = vld [vmem:[%s3748_s24 + $0x18] sm:$0xf] (%p3732_p4) }
  0x16   : > { %v138_v4 = vld [vmem:[%s3748_s24 + $0x20] sm:$0xf] (%p3732_p4)  ;;  %135 = vst [vmem:[%s3752_s25 + $0x8] sm:$0xf] (%p3732_p4), %v134_v2  ;;  %137 = vst [vmem:[%s3752_s25 + $0xc] sm:$0xf] (%p3732_p4), %v136_v3 }
  0x17   : > { %139 = vst [vmem:[%s3752_s25 + $0x10] sm:$0xf] (%p3732_p4), %v138_v4  ;;  %v140_v5 = vld [vmem:[%s3748_s24 + $0x28] sm:$0xf] (%p3732_p4)  ;;  %v142_v6 = vld [vmem:[%s3748_s24 + $0x30] sm:$0xf] (%p3732_p4) }
  0x18   : > { %v144_v7 = vld [vmem:[%s3748_s24 + $0x38] sm:$0xf]  ;;  %141 = vst [vmem:[%s3752_s25 + $0x14] sm:$0xf] %v140_v5  ;;  %143 = vst [vmem:[%s3752_s25 + $0x18] sm:$0xf] %v142_v6 }
  0x19   : > { %145 = vst [vmem:[%s3752_s25 + $0x1c] sm:$0xf] %v144_v7  ;;  %v146_v8 = vld [vmem:[%s3748_s24 + $0x40] sm:$0xf]  ;;  %v148_v9 = vld [vmem:[%s3748_s24 + $0x48] sm:$0xf] }
  0x1a   : > { %v150_v10 = vld [vmem:[%s3748_s24 + $0x50] sm:$0xf]  ;;  %147 = vst [vmem:[%s3752_s25 + $0x20] sm:$0xf] %v146_v8  ;;  %149 = vst [vmem:[%s3752_s25 + $0x24] sm:$0xf] %v148_v9 }
  0x1b   : > { %151 = vst [vmem:[%s3752_s25 + $0x28] sm:$0xf] %v150_v10  ;;  %v152_v11 = vld [vmem:[%s3748_s24 + $0x58] sm:$0xf]  ;;  %v154_v12 = vld [vmem:[%s3748_s24 + $0x60] sm:$0xf] }
  0x1c   : > { %v156_v13 = vld [vmem:[%s3748_s24 + $0x68] sm:$0xf]  ;;  %153 = vst [vmem:[%s3752_s25 + $0x2c] sm:$0xf] %v152_v11  ;;  %155 = vst [vmem:[%s3752_s25 + $0x30] sm:$0xf] %v154_v12 }
  0x1d   : > { %157 = vst [vmem:[%s3752_s25 + $0x34] sm:$0xf] %v156_v13  ;;  %v158_v14 = vld [vmem:[%s3748_s24 + $0x70] sm:$0xf]  ;;  %v160_v15 = vld [vmem:[%s3748_s24 + $0x78] sm:$0xf] }
  0x1e   : > { %v162_v16 = vld [vmem:[%s3748_s24 + $0x80] sm:$0xf]  ;;  %159 = vst [vmem:[%s3752_s25 + $0x38] sm:$0xf] %v158_v14  ;;  %161 = vst [vmem:[%s3752_s25 + $0x3c] sm:$0xf] %v160_v15 }
  0x1f   : > { %163 = vst [vmem:[%s3752_s25 + $0x40] sm:$0xf] %v162_v16  ;;  %v164_v17 = vld [vmem:[%s3748_s24 + $0x88] sm:$0xf]  ;;  %v166_v18 = vld [vmem:[%s3748_s24 + $0x90] sm:$0xf] }
  0x20   : > { %v168_v19 = vld [vmem:[%s3748_s24 + $0x98] sm:$0xf]  ;;  %165 = vst [vmem:[%s3752_s25 + $0x44] sm:$0xf] %v164_v17  ;;  %167 = vst [vmem:[%s3752_s25 + $0x48] sm:$0xf] %v166_v18 }
  0x21   : > { %169 = vst [vmem:[%s3752_s25 + $0x4c] sm:$0xf] %v168_v19  ;;  %v170_v20 = vld [vmem:[%s3748_s24 + $0xa0] sm:$0xf]  ;;  %v172_v21 = vld [vmem:[%s3748_s24 + $0xa8] sm:$0xf] }
  0x22   : > { %v174_v22 = vld [vmem:[%s3748_s24 + $0xb0] sm:$0xf]  ;;  %171 = vst [vmem:[%s3752_s25 + $0x50] sm:$0xf] %v170_v20  ;;  %173 = vst [vmem:[%s3752_s25 + $0x54] sm:$0xf] %v172_v21 }
  0x23   : > { %175 = vst [vmem:[%s3752_s25 + $0x58] sm:$0xf] %v174_v22  ;;  %v176_v23 = vld [vmem:[%s3748_s24 + $0xb8] sm:$0xf]  ;;  %v178_v24 = vld [vmem:[%s3748_s24 + $0xc0] sm:$0xf] }
  0x24   : > { %v180_v25 = vld [vmem:[%s3748_s24 + $0xc8] sm:$0xf]  ;;  %177 = vst [vmem:[%s3752_s25 + $0x5c] sm:$0xf] %v176_v23  ;;  %179 = vst [vmem:[%s3752_s25 + $0x60] sm:$0xf] %v178_v24 }
  0x25   : > { %181 = vst [vmem:[%s3752_s25 + $0x64] sm:$0xf] %v180_v25  ;;  %v182_v26 = vld [vmem:[%s3748_s24 + $0xd0] sm:$0xf]  ;;  %v184_v27 = vld [vmem:[%s3748_s24 + $0xd8] sm:$0xf] }
  0x26   : > { %v186_v28 = vld [vmem:[%s3748_s24 + $0xe0] sm:$0xf]  ;;  %183 = vst [vmem:[%s3752_s25 + $0x68] sm:$0xf] %v182_v26  ;;  %185 = vst [vmem:[%s3752_s25 + $0x6c] sm:$0xf] %v184_v27 }
  0x27   : > { %187 = vst [vmem:[%s3752_s25 + $0x70] sm:$0xf] %v186_v28  ;;  %v188_v29 = vld [vmem:[%s3748_s24 + $0xe8] sm:$0xf]  ;;  %v190_v30 = vld [vmem:[%s3748_s24 + $0xf0] sm:$0xf] }
  0x28   : > { %v192_v31 = vld [vmem:[%s3748_s24 + $0xf8] sm:$0xf]  ;;  %189 = vst [vmem:[%s3752_s25 + $0x74] sm:$0xf] %v188_v29  ;;  %191 = vst [vmem:[%s3752_s25 + $0x78] sm:$0xf] %v190_v30 }
  0x29   : > { %193 = vst [vmem:[%s3752_s25 + $0x7c] sm:$0xf] %v192_v31 }
  0x2a PF: > { %280 = sbr.rel (!%p3732_p4) target bundleno = 174 (0xae), region = 61  ;;  %s282_s26 = sand.u32 (%p3732_p4), 1, %s3681_s10  }
  0x2b   : > { %s3637_s27 = sshll.u32 (%p3732_p4), %s3685_s11, 4  ;;  %s3313_s28 = sshll.u32 (%p3732_p4), %s282_s26, 11 }
  0x2c   : > { %s3823_s3 = scalar_lea.vmem (%p3732_p4), %s4898_s1, %s3637_s27  ;;  %s3828_s4 = scalar_lea.vmem (%p3732_p4), [#allocation3], %s3313_s28 }
  0x2d   : > { %v300_v32 = vld [vmem:[%s3823_s3] sm:$0xff] (%p3732_p4)  ;;  %v302_v33 = vld [vmem:[%s3823_s3 + $0x8] sm:$0xff] (%p3732_p4) }
  0x2e   : > { %v304_v34 = vld [vmem:[%s3823_s3 + $0x20] sm:$0xff] (%p3732_p4)  ;;  %301 = vst [vmem:[%s3828_s4] sm:$0xff] (%p3732_p4), %v300_v32  ;;  %303 = vst [vmem:[%s3828_s4 + $0x8] sm:$0xff] (%p3732_p4), %v302_v33  ;;  %v306_v35 = vld [vmem:[%s3823_s3 + $0x28] sm:$0xff] (%p3732_p4) }
  0x2f   : > { %305 = vst [vmem:[%s3828_s4 + $0x10] sm:$0xff] (%p3732_p4), %v304_v34  ;;  %v308_v36 = vld [vmem:[%s3823_s3 + $0x40] sm:$0xff] (%p3732_p4)  ;;  %v310_v37 = vld [vmem:[%s3823_s3 + $0x48] sm:$0xff] (%p3732_p4)  ;;  %307 = vst [vmem:[%s3828_s4 + $0x18] sm:$0xff] (%p3732_p4), %v306_v35 }
  0x30   : > { %309 = vst [vmem:[%s3828_s4 + $0x20] sm:$0xff] (%p3732_p4), %v308_v36  ;;  %311 = vst [vmem:[%s3828_s4 + $0x28] sm:$0xff] (%p3732_p4), %v310_v37  ;;  %v312_v38 = vld [vmem:[%s3823_s3 + $0x60] sm:$0xff] (%p3732_p4)  ;;  %v314_v39 = vld [vmem:[%s3823_s3 + $0x68] sm:$0xff] (%p3732_p4) }
  0x31   : > { %v316_v40 = vld [vmem:[%s3823_s3 + $0x80] sm:$0xff]  ;;  %313 = vst [vmem:[%s3828_s4 + $0x30] sm:$0xff] %v312_v38  ;;  %315 = vst [vmem:[%s3828_s4 + $0x38] sm:$0xff] %v314_v39  ;;  %v318_v41 = vld [vmem:[%s3823_s3 + $0x88] sm:$0xff] }
  0x32   : > { %317 = vst [vmem:[%s3828_s4 + $0x40] sm:$0xff] %v316_v40  ;;  %v320_v42 = vld [vmem:[%s3823_s3 + $0xa0] sm:$0xff]  ;;  %v322_v43 = vld [vmem:[%s3823_s3 + $0xa8] sm:$0xff]  ;;  %319 = vst [vmem:[%s3828_s4 + $0x48] sm:$0xff] %v318_v41 }
  0x33   : > { %321 = vst [vmem:[%s3828_s4 + $0x50] sm:$0xff] %v320_v42  ;;  %323 = vst [vmem:[%s3828_s4 + $0x58] sm:$0xff] %v322_v43  ;;  %v324_v44 = vld [vmem:[%s3823_s3 + $0xc0] sm:$0xff]  ;;  %v326_v45 = vld [vmem:[%s3823_s3 + $0xc8] sm:$0xff] }
  0x34   : > { %v328_v46 = vld [vmem:[%s3823_s3 + $0xe0] sm:$0xff]  ;;  %325 = vst [vmem:[%s3828_s4 + $0x60] sm:$0xff] %v324_v44  ;;  %327 = vst [vmem:[%s3828_s4 + $0x68] sm:$0xff] %v326_v45  ;;  %v330_v47 = vld [vmem:[%s3823_s3 + $0xe8] sm:$0xff] }
  0x35   : > { %329 = vst [vmem:[%s3828_s4 + $0x70] sm:$0xff] %v328_v46  ;;  %v332_v48 = vld [vmem:[%s3823_s3 + $0x100] sm:$0xff]  ;;  %v334_v49 = vld [vmem:[%s3823_s3 + $0x108] sm:$0xff]  ;;  %331 = vst [vmem:[%s3828_s4 + $0x78] sm:$0xff] %v330_v47 }
  0x36   : > { %333 = vst [vmem:[%s3828_s4 + $0x80] sm:$0xff] %v332_v48  ;;  %335 = vst [vmem:[%s3828_s4 + $0x88] sm:$0xff] %v334_v49  ;;  %v336_v50 = vld [vmem:[%s3823_s3 + $0x120] sm:$0xff]  ;;  %v338_v51 = vld [vmem:[%s3823_s3 + $0x128] sm:$0xff] }
  0x37   : > { %v340_v52 = vld [vmem:[%s3823_s3 + $0x140] sm:$0xff]  ;;  %337 = vst [vmem:[%s3828_s4 + $0x90] sm:$0xff] %v336_v50  ;;  %339 = vst [vmem:[%s3828_s4 + $0x98] sm:$0xff] %v338_v51  ;;  %v342_v53 = vld [vmem:[%s3823_s3 + $0x148] sm:$0xff] }
  0x38   : > { %341 = vst [vmem:[%s3828_s4 + $0xa0] sm:$0xff] %v340_v52  ;;  %v344_v54 = vld [vmem:[%s3823_s3 + $0x160] sm:$0xff]  ;;  %v346_v55 = vld [vmem:[%s3823_s3 + $0x168] sm:$0xff]  ;;  %343 = vst [vmem:[%s3828_s4 + $0xa8] sm:$0xff] %v342_v53 }
  0x39   : > { %345 = vst [vmem:[%s3828_s4 + $0xb0] sm:$0xff] %v344_v54  ;;  %347 = vst [vmem:[%s3828_s4 + $0xb8] sm:$0xff] %v346_v55  ;;  %v348_v56 = vld [vmem:[%s3823_s3 + $0x180] sm:$0xff]  ;;  %v350_v57 = vld [vmem:[%s3823_s3 + $0x188] sm:$0xff] }
  0x3a   : > { %v352_v58 = vld [vmem:[%s3823_s3 + $0x1a0] sm:$0xff]  ;;  %349 = vst [vmem:[%s3828_s4 + $0xc0] sm:$0xff] %v348_v56  ;;  %351 = vst [vmem:[%s3828_s4 + $0xc8] sm:$0xff] %v350_v57  ;;  %v354_v59 = vld [vmem:[%s3823_s3 + $0x1a8] sm:$0xff] }
  0x3b   : > { %353 = vst [vmem:[%s3828_s4 + $0xd0] sm:$0xff] %v352_v58  ;;  %v356_v60 = vld [vmem:[%s3823_s3 + $0x1c0] sm:$0xff]  ;;  %v358_v61 = vld [vmem:[%s3823_s3 + $0x1c8] sm:$0xff]  ;;  %355 = vst [vmem:[%s3828_s4 + $0xd8] sm:$0xff] %v354_v59 }
  0x3c   : > { %357 = vst [vmem:[%s3828_s4 + $0xe0] sm:$0xff] %v356_v60  ;;  %359 = vst [vmem:[%s3828_s4 + $0xe8] sm:$0xff] %v358_v61  ;;  %v360_v62 = vld [vmem:[%s3823_s3 + $0x1e0] sm:$0xff]  ;;  %v362_v63 = vld [vmem:[%s3823_s3 + $0x1e8] sm:$0xff] }
  0x3d   : > { %v364_v0 = vld [vmem:[%s3823_s3 + $0x200] sm:$0xff]  ;;  %361 = vst [vmem:[%s3828_s4 + $0xf0] sm:$0xff] %v360_v62  ;;  %363 = vst [vmem:[%s3828_s4 + $0xf8] sm:$0xff] %v362_v63  ;;  %v366_v1 = vld [vmem:[%s3823_s3 + $0x208] sm:$0xff] }
  0x3e   : > { %365 = vst [vmem:[%s3828_s4 + $0x100] sm:$0xff] %v364_v0  ;;  %v368_v2 = vld [vmem:[%s3823_s3 + $0x220] sm:$0xff]  ;;  %v370_v3 = vld [vmem:[%s3823_s3 + $0x228] sm:$0xff]  ;;  %367 = vst [vmem:[%s3828_s4 + $0x108] sm:$0xff] %v366_v1 }
  0x3f   : > { %369 = vst [vmem:[%s3828_s4 + $0x110] sm:$0xff] %v368_v2  ;;  %371 = vst [vmem:[%s3828_s4 + $0x118] sm:$0xff] %v370_v3  ;;  %v372_v4 = vld [vmem:[%s3823_s3 + $0x240] sm:$0xff]  ;;  %v374_v5 = vld [vmem:[%s3823_s3 + $0x248] sm:$0xff] }
  0x40   : > { %v376_v6 = vld [vmem:[%s3823_s3 + $0x260] sm:$0xff]  ;;  %373 = vst [vmem:[%s3828_s4 + $0x120] sm:$0xff] %v372_v4  ;;  %375 = vst [vmem:[%s3828_s4 + $0x128] sm:$0xff] %v374_v5  ;;  %v378_v7 = vld [vmem:[%s3823_s3 + $0x268] sm:$0xff] }
  0x41   : > { %377 = vst [vmem:[%s3828_s4 + $0x130] sm:$0xff] %v376_v6  ;;  %v380_v8 = vld [vmem:[%s3823_s3 + $0x280] sm:$0xff]  ;;  %v382_v9 = vld [vmem:[%s3823_s3 + $0x288] sm:$0xff]  ;;  %379 = vst [vmem:[%s3828_s4 + $0x138] sm:$0xff] %v378_v7 }
  0x42   : > { %381 = vst [vmem:[%s3828_s4 + $0x140] sm:$0xff] %v380_v8  ;;  %383 = vst [vmem:[%s3828_s4 + $0x148] sm:$0xff] %v382_v9  ;;  %v384_v10 = vld [vmem:[%s3823_s3 + $0x2a0] sm:$0xff]  ;;  %v386_v11 = vld [vmem:[%s3823_s3 + $0x2a8] sm:$0xff] }
  0x43   : > { %v388_v12 = vld [vmem:[%s3823_s3 + $0x2c0] sm:$0xff]  ;;  %385 = vst [vmem:[%s3828_s4 + $0x150] sm:$0xff] %v384_v10  ;;  %387 = vst [vmem:[%s3828_s4 + $0x158] sm:$0xff] %v386_v11  ;;  %v390_v13 = vld [vmem:[%s3823_s3 + $0x2c8] sm:$0xff] }
  0x44   : > { %389 = vst [vmem:[%s3828_s4 + $0x160] sm:$0xff] %v388_v12  ;;  %v392_v14 = vld [vmem:[%s3823_s3 + $0x2e0] sm:$0xff]  ;;  %v394_v15 = vld [vmem:[%s3823_s3 + $0x2e8] sm:$0xff]  ;;  %391 = vst [vmem:[%s3828_s4 + $0x168] sm:$0xff] %v390_v13 }
  0x45   : > { %393 = vst [vmem:[%s3828_s4 + $0x170] sm:$0xff] %v392_v14  ;;  %395 = vst [vmem:[%s3828_s4 + $0x178] sm:$0xff] %v394_v15  ;;  %v396_v16 = vld [vmem:[%s3823_s3 + $0x300] sm:$0xff]  ;;  %v398_v17 = vld [vmem:[%s3823_s3 + $0x308] sm:$0xff] }
  0x46   : > { %v400_v18 = vld [vmem:[%s3823_s3 + $0x320] sm:$0xff]  ;;  %397 = vst [vmem:[%s3828_s4 + $0x180] sm:$0xff] %v396_v16  ;;  %399 = vst [vmem:[%s3828_s4 + $0x188] sm:$0xff] %v398_v17  ;;  %v402_v19 = vld [vmem:[%s3823_s3 + $0x328] sm:$0xff] }
  0x47   : > { %401 = vst [vmem:[%s3828_s4 + $0x190] sm:$0xff] %v400_v18  ;;  %v404_v20 = vld [vmem:[%s3823_s3 + $0x340] sm:$0xff]  ;;  %v406_v21 = vld [vmem:[%s3823_s3 + $0x348] sm:$0xff]  ;;  %403 = vst [vmem:[%s3828_s4 + $0x198] sm:$0xff] %v402_v19 }
  0x48   : > { %405 = vst [vmem:[%s3828_s4 + $0x1a0] sm:$0xff] %v404_v20  ;;  %407 = vst [vmem:[%s3828_s4 + $0x1a8] sm:$0xff] %v406_v21  ;;  %v408_v22 = vld [vmem:[%s3823_s3 + $0x360] sm:$0xff]  ;;  %v410_v23 = vld [vmem:[%s3823_s3 + $0x368] sm:$0xff] }
  0x49   : > { %v412_v24 = vld [vmem:[%s3823_s3 + $0x380] sm:$0xff]  ;;  %409 = vst [vmem:[%s3828_s4 + $0x1b0] sm:$0xff] %v408_v22  ;;  %411 = vst [vmem:[%s3828_s4 + $0x1b8] sm:$0xff] %v410_v23  ;;  %v414_v25 = vld [vmem:[%s3823_s3 + $0x388] sm:$0xff] }
  0x4a   : > { %413 = vst [vmem:[%s3828_s4 + $0x1c0] sm:$0xff] %v412_v24  ;;  %v416_v26 = vld [vmem:[%s3823_s3 + $0x3a0] sm:$0xff]  ;;  %v418_v27 = vld [vmem:[%s3823_s3 + $0x3a8] sm:$0xff]  ;;  %415 = vst [vmem:[%s3828_s4 + $0x1c8] sm:$0xff] %v414_v25 }
  0x4b   : > { %417 = vst [vmem:[%s3828_s4 + $0x1d0] sm:$0xff] %v416_v26  ;;  %419 = vst [vmem:[%s3828_s4 + $0x1d8] sm:$0xff] %v418_v27  ;;  %v420_v28 = vld [vmem:[%s3823_s3 + $0x3c0] sm:$0xff]  ;;  %v422_v29 = vld [vmem:[%s3823_s3 + $0x3c8] sm:$0xff] }
  0x4c   : > { %v424_v30 = vld [vmem:[%s3823_s3 + $0x3e0] sm:$0xff]  ;;  %421 = vst [vmem:[%s3828_s4 + $0x1e0] sm:$0xff] %v420_v28  ;;  %423 = vst [vmem:[%s3828_s4 + $0x1e8] sm:$0xff] %v422_v29  ;;  %v426_v31 = vld [vmem:[%s3823_s3 + $0x3e8] sm:$0xff] }
  0x4d   : > { %425 = vst [vmem:[%s3828_s4 + $0x1f0] sm:$0xff] %v424_v30  ;;  %v428_v32 = vld [vmem:[%s3823_s3 + $0x400] sm:$0xff]  ;;  %v430_v33 = vld [vmem:[%s3823_s3 + $0x408] sm:$0xff]  ;;  %427 = vst [vmem:[%s3828_s4 + $0x1f8] sm:$0xff] %v426_v31 }
  0x4e   : > { %429 = vst [vmem:[%s3828_s4 + $0x200] sm:$0xff] %v428_v32  ;;  %431 = vst [vmem:[%s3828_s4 + $0x208] sm:$0xff] %v430_v33  ;;  %v432_v34 = vld [vmem:[%s3823_s3 + $0x420] sm:$0xff]  ;;  %v434_v35 = vld [vmem:[%s3823_s3 + $0x428] sm:$0xff] }
  0x4f   : > { %v436_v36 = vld [vmem:[%s3823_s3 + $0x440] sm:$0xff]  ;;  %433 = vst [vmem:[%s3828_s4 + $0x210] sm:$0xff] %v432_v34  ;;  %435 = vst [vmem:[%s3828_s4 + $0x218] sm:$0xff] %v434_v35  ;;  %v438_v37 = vld [vmem:[%s3823_s3 + $0x448] sm:$0xff] }
  0x50   : > { %437 = vst [vmem:[%s3828_s4 + $0x220] sm:$0xff] %v436_v36  ;;  %v440_v38 = vld [vmem:[%s3823_s3 + $0x460] sm:$0xff]  ;;  %v442_v39 = vld [vmem:[%s3823_s3 + $0x468] sm:$0xff]  ;;  %439 = vst [vmem:[%s3828_s4 + $0x228] sm:$0xff] %v438_v37 }
  0x51   : > { %441 = vst [vmem:[%s3828_s4 + $0x230] sm:$0xff] %v440_v38  ;;  %443 = vst [vmem:[%s3828_s4 + $0x238] sm:$0xff] %v442_v39  ;;  %v444_v40 = vld [vmem:[%s3823_s3 + $0x480] sm:$0xff]  ;;  %v446_v41 = vld [vmem:[%s3823_s3 + $0x488] sm:$0xff] }
  0x52   : > { %v448_v42 = vld [vmem:[%s3823_s3 + $0x4a0] sm:$0xff]  ;;  %445 = vst [vmem:[%s3828_s4 + $0x240] sm:$0xff] %v444_v40  ;;  %447 = vst [vmem:[%s3828_s4 + $0x248] sm:$0xff] %v446_v41  ;;  %v450_v43 = vld [vmem:[%s3823_s3 + $0x4a8] sm:$0xff] }
  0x53   : > { %449 = vst [vmem:[%s3828_s4 + $0x250] sm:$0xff] %v448_v42  ;;  %v452_v44 = vld [vmem:[%s3823_s3 + $0x4c0] sm:$0xff]  ;;  %v454_v45 = vld [vmem:[%s3823_s3 + $0x4c8] sm:$0xff]  ;;  %451 = vst [vmem:[%s3828_s4 + $0x258] sm:$0xff] %v450_v43 }
  0x54   : > { %453 = vst [vmem:[%s3828_s4 + $0x260] sm:$0xff] %v452_v44  ;;  %455 = vst [vmem:[%s3828_s4 + $0x268] sm:$0xff] %v454_v45  ;;  %v456_v46 = vld [vmem:[%s3823_s3 + $0x4e0] sm:$0xff]  ;;  %v458_v47 = vld [vmem:[%s3823_s3 + $0x4e8] sm:$0xff] }
  0x55   : > { %v460_v48 = vld [vmem:[%s3823_s3 + $0x500] sm:$0xff]  ;;  %457 = vst [vmem:[%s3828_s4 + $0x270] sm:$0xff] %v456_v46  ;;  %459 = vst [vmem:[%s3828_s4 + $0x278] sm:$0xff] %v458_v47  ;;  %v462_v49 = vld [vmem:[%s3823_s3 + $0x508] sm:$0xff] }
  0x56   : > { %461 = vst [vmem:[%s3828_s4 + $0x280] sm:$0xff] %v460_v48  ;;  %v464_v50 = vld [vmem:[%s3823_s3 + $0x520] sm:$0xff]  ;;  %v466_v51 = vld [vmem:[%s3823_s3 + $0x528] sm:$0xff]  ;;  %463 = vst [vmem:[%s3828_s4 + $0x288] sm:$0xff] %v462_v49 }
  0x57   : > { %465 = vst [vmem:[%s3828_s4 + $0x290] sm:$0xff] %v464_v50  ;;  %467 = vst [vmem:[%s3828_s4 + $0x298] sm:$0xff] %v466_v51  ;;  %v468_v52 = vld [vmem:[%s3823_s3 + $0x540] sm:$0xff]  ;;  %v470_v53 = vld [vmem:[%s3823_s3 + $0x548] sm:$0xff] }
  0x58   : > { %v472_v54 = vld [vmem:[%s3823_s3 + $0x560] sm:$0xff]  ;;  %469 = vst [vmem:[%s3828_s4 + $0x2a0] sm:$0xff] %v468_v52  ;;  %471 = vst [vmem:[%s3828_s4 + $0x2a8] sm:$0xff] %v470_v53  ;;  %v474_v55 = vld [vmem:[%s3823_s3 + $0x568] sm:$0xff] }
  0x59   : > { %473 = vst [vmem:[%s3828_s4 + $0x2b0] sm:$0xff] %v472_v54  ;;  %v476_v56 = vld [vmem:[%s3823_s3 + $0x580] sm:$0xff]  ;;  %v478_v57 = vld [vmem:[%s3823_s3 + $0x588] sm:$0xff]  ;;  %475 = vst [vmem:[%s3828_s4 + $0x2b8] sm:$0xff] %v474_v55 }
  0x5a   : > { %477 = vst [vmem:[%s3828_s4 + $0x2c0] sm:$0xff] %v476_v56  ;;  %479 = vst [vmem:[%s3828_s4 + $0x2c8] sm:$0xff] %v478_v57  ;;  %v480_v58 = vld [vmem:[%s3823_s3 + $0x5a0] sm:$0xff]  ;;  %v482_v59 = vld [vmem:[%s3823_s3 + $0x5a8] sm:$0xff] }
  0x5b   : > { %v484_v60 = vld [vmem:[%s3823_s3 + $0x5c0] sm:$0xff]  ;;  %481 = vst [vmem:[%s3828_s4 + $0x2d0] sm:$0xff] %v480_v58  ;;  %483 = vst [vmem:[%s3828_s4 + $0x2d8] sm:$0xff] %v482_v59  ;;  %v486_v61 = vld [vmem:[%s3823_s3 + $0x5c8] sm:$0xff] }
  0x5c   : > { %485 = vst [vmem:[%s3828_s4 + $0x2e0] sm:$0xff] %v484_v60  ;;  %v488_v62 = vld [vmem:[%s3823_s3 + $0x5e0] sm:$0xff]  ;;  %v490_v63 = vld [vmem:[%s3823_s3 + $0x5e8] sm:$0xff]  ;;  %487 = vst [vmem:[%s3828_s4 + $0x2e8] sm:$0xff] %v486_v61 }
  0x5d   : > { %489 = vst [vmem:[%s3828_s4 + $0x2f0] sm:$0xff] %v488_v62  ;;  %491 = vst [vmem:[%s3828_s4 + $0x2f8] sm:$0xff] %v490_v63  ;;  %v492_v0 = vld [vmem:[%s3823_s3 + $0x600] sm:$0xff]  ;;  %v494_v1 = vld [vmem:[%s3823_s3 + $0x608] sm:$0xff] }
  0x5e   : > { %v496_v2 = vld [vmem:[%s3823_s3 + $0x620] sm:$0xff]  ;;  %493 = vst [vmem:[%s3828_s4 + $0x300] sm:$0xff] %v492_v0  ;;  %495 = vst [vmem:[%s3828_s4 + $0x308] sm:$0xff] %v494_v1  ;;  %v498_v3 = vld [vmem:[%s3823_s3 + $0x628] sm:$0xff] }
  0x5f   : > { %497 = vst [vmem:[%s3828_s4 + $0x310] sm:$0xff] %v496_v2  ;;  %v500_v4 = vld [vmem:[%s3823_s3 + $0x640] sm:$0xff]  ;;  %v502_v5 = vld [vmem:[%s3823_s3 + $0x648] sm:$0xff]  ;;  %499 = vst [vmem:[%s3828_s4 + $0x318] sm:$0xff] %v498_v3 }
  0x60   : > { %501 = vst [vmem:[%s3828_s4 + $0x320] sm:$0xff] %v500_v4  ;;  %503 = vst [vmem:[%s3828_s4 + $0x328] sm:$0xff] %v502_v5  ;;  %v504_v6 = vld [vmem:[%s3823_s3 + $0x660] sm:$0xff]  ;;  %v506_v7 = vld [vmem:[%s3823_s3 + $0x668] sm:$0xff] }
  0x61   : > { %v508_v8 = vld [vmem:[%s3823_s3 + $0x680] sm:$0xff]  ;;  %505 = vst [vmem:[%s3828_s4 + $0x330] sm:$0xff] %v504_v6  ;;  %507 = vst [vmem:[%s3828_s4 + $0x338] sm:$0xff] %v506_v7  ;;  %v510_v9 = vld [vmem:[%s3823_s3 + $0x688] sm:$0xff] }
  0x62   : > { %509 = vst [vmem:[%s3828_s4 + $0x340] sm:$0xff] %v508_v8  ;;  %v512_v10 = vld [vmem:[%s3823_s3 + $0x6a0] sm:$0xff]  ;;  %v514_v11 = vld [vmem:[%s3823_s3 + $0x6a8] sm:$0xff]  ;;  %511 = vst [vmem:[%s3828_s4 + $0x348] sm:$0xff] %v510_v9 }
  0x63   : > { %513 = vst [vmem:[%s3828_s4 + $0x350] sm:$0xff] %v512_v10  ;;  %515 = vst [vmem:[%s3828_s4 + $0x358] sm:$0xff] %v514_v11  ;;  %v516_v12 = vld [vmem:[%s3823_s3 + $0x6c0] sm:$0xff]  ;;  %v518_v13 = vld [vmem:[%s3823_s3 + $0x6c8] sm:$0xff] }
  0x64   : > { %v520_v14 = vld [vmem:[%s3823_s3 + $0x6e0] sm:$0xff]  ;;  %517 = vst [vmem:[%s3828_s4 + $0x360] sm:$0xff] %v516_v12  ;;  %519 = vst [vmem:[%s3828_s4 + $0x368] sm:$0xff] %v518_v13  ;;  %v522_v15 = vld [vmem:[%s3823_s3 + $0x6e8] sm:$0xff] }
  0x65   : > { %521 = vst [vmem:[%s3828_s4 + $0x370] sm:$0xff] %v520_v14  ;;  %v524_v16 = vld [vmem:[%s3823_s3 + $0x700] sm:$0xff]  ;;  %v526_v17 = vld [vmem:[%s3823_s3 + $0x708] sm:$0xff]  ;;  %523 = vst [vmem:[%s3828_s4 + $0x378] sm:$0xff] %v522_v15 }
  0x66   : > { %525 = vst [vmem:[%s3828_s4 + $0x380] sm:$0xff] %v524_v16  ;;  %527 = vst [vmem:[%s3828_s4 + $0x388] sm:$0xff] %v526_v17  ;;  %v528_v18 = vld [vmem:[%s3823_s3 + $0x720] sm:$0xff]  ;;  %v530_v19 = vld [vmem:[%s3823_s3 + $0x728] sm:$0xff] }
  0x67   : > { %v532_v20 = vld [vmem:[%s3823_s3 + $0x740] sm:$0xff]  ;;  %529 = vst [vmem:[%s3828_s4 + $0x390] sm:$0xff] %v528_v18  ;;  %531 = vst [vmem:[%s3828_s4 + $0x398] sm:$0xff] %v530_v19  ;;  %v534_v21 = vld [vmem:[%s3823_s3 + $0x748] sm:$0xff] }
  0x68   : > { %533 = vst [vmem:[%s3828_s4 + $0x3a0] sm:$0xff] %v532_v20  ;;  %v536_v22 = vld [vmem:[%s3823_s3 + $0x760] sm:$0xff]  ;;  %v538_v23 = vld [vmem:[%s3823_s3 + $0x768] sm:$0xff]  ;;  %535 = vst [vmem:[%s3828_s4 + $0x3a8] sm:$0xff] %v534_v21 }
  0x69   : > { %537 = vst [vmem:[%s3828_s4 + $0x3b0] sm:$0xff] %v536_v22  ;;  %539 = vst [vmem:[%s3828_s4 + $0x3b8] sm:$0xff] %v538_v23  ;;  %v540_v24 = vld [vmem:[%s3823_s3 + $0x780] sm:$0xff]  ;;  %v542_v25 = vld [vmem:[%s3823_s3 + $0x788] sm:$0xff] }
  0x6a   : > { %v544_v26 = vld [vmem:[%s3823_s3 + $0x7a0] sm:$0xff]  ;;  %541 = vst [vmem:[%s3828_s4 + $0x3c0] sm:$0xff] %v540_v24  ;;  %543 = vst [vmem:[%s3828_s4 + $0x3c8] sm:$0xff] %v542_v25  ;;  %v546_v27 = vld [vmem:[%s3823_s3 + $0x7a8] sm:$0xff] }
  0x6b   : > { %545 = vst [vmem:[%s3828_s4 + $0x3d0] sm:$0xff] %v544_v26  ;;  %v548_v28 = vld [vmem:[%s3823_s3 + $0x7c0] sm:$0xff]  ;;  %v550_v29 = vld [vmem:[%s3823_s3 + $0x7c8] sm:$0xff]  ;;  %547 = vst [vmem:[%s3828_s4 + $0x3d8] sm:$0xff] %v546_v27 }
  0x6c   : > { %549 = vst [vmem:[%s3828_s4 + $0x3e0] sm:$0xff] %v548_v28  ;;  %551 = vst [vmem:[%s3828_s4 + $0x3e8] sm:$0xff] %v550_v29  ;;  %v552_v30 = vld [vmem:[%s3823_s3 + $0x7e0] sm:$0xff]  ;;  %v554_v31 = vld [vmem:[%s3823_s3 + $0x7e8] sm:$0xff] }
  0x6d   : > { %v556_v32 = vld [vmem:[%s3823_s3 + $0x800] sm:$0xff]  ;;  %553 = vst [vmem:[%s3828_s4 + $0x3f0] sm:$0xff] %v552_v30  ;;  %555 = vst [vmem:[%s3828_s4 + $0x3f8] sm:$0xff] %v554_v31  ;;  %v558_v33 = vld [vmem:[%s3823_s3 + $0x808] sm:$0xff] }
  0x6e   : > { %557 = vst [vmem:[%s3828_s4 + $0x400] sm:$0xff] %v556_v32  ;;  %v560_v34 = vld [vmem:[%s3823_s3 + $0x820] sm:$0xff]  ;;  %v562_v35 = vld [vmem:[%s3823_s3 + $0x828] sm:$0xff]  ;;  %559 = vst [vmem:[%s3828_s4 + $0x408] sm:$0xff] %v558_v33 }
  0x6f   : > { %561 = vst [vmem:[%s3828_s4 + $0x410] sm:$0xff] %v560_v34  ;;  %563 = vst [vmem:[%s3828_s4 + $0x418] sm:$0xff] %v562_v35  ;;  %v564_v36 = vld [vmem:[%s3823_s3 + $0x840] sm:$0xff]  ;;  %v566_v37 = vld [vmem:[%s3823_s3 + $0x848] sm:$0xff] }
  0x70   : > { %v568_v38 = vld [vmem:[%s3823_s3 + $0x860] sm:$0xff]  ;;  %565 = vst [vmem:[%s3828_s4 + $0x420] sm:$0xff] %v564_v36  ;;  %567 = vst [vmem:[%s3828_s4 + $0x428] sm:$0xff] %v566_v37  ;;  %v570_v39 = vld [vmem:[%s3823_s3 + $0x868] sm:$0xff] }
  0x71   : > { %569 = vst [vmem:[%s3828_s4 + $0x430] sm:$0xff] %v568_v38  ;;  %v572_v40 = vld [vmem:[%s3823_s3 + $0x880] sm:$0xff]  ;;  %v574_v41 = vld [vmem:[%s3823_s3 + $0x888] sm:$0xff]  ;;  %571 = vst [vmem:[%s3828_s4 + $0x438] sm:$0xff] %v570_v39 }
  0x72   : > { %573 = vst [vmem:[%s3828_s4 + $0x440] sm:$0xff] %v572_v40  ;;  %575 = vst [vmem:[%s3828_s4 + $0x448] sm:$0xff] %v574_v41  ;;  %v576_v42 = vld [vmem:[%s3823_s3 + $0x8a0] sm:$0xff]  ;;  %v578_v43 = vld [vmem:[%s3823_s3 + $0x8a8] sm:$0xff] }
  0x73   : > { %v580_v44 = vld [vmem:[%s3823_s3 + $0x8c0] sm:$0xff]  ;;  %577 = vst [vmem:[%s3828_s4 + $0x450] sm:$0xff] %v576_v42  ;;  %579 = vst [vmem:[%s3828_s4 + $0x458] sm:$0xff] %v578_v43  ;;  %v582_v45 = vld [vmem:[%s3823_s3 + $0x8c8] sm:$0xff] }
  0x74   : > { %581 = vst [vmem:[%s3828_s4 + $0x460] sm:$0xff] %v580_v44  ;;  %v584_v46 = vld [vmem:[%s3823_s3 + $0x8e0] sm:$0xff]  ;;  %v586_v47 = vld [vmem:[%s3823_s3 + $0x8e8] sm:$0xff]  ;;  %583 = vst [vmem:[%s3828_s4 + $0x468] sm:$0xff] %v582_v45 }
  0x75   : > { %585 = vst [vmem:[%s3828_s4 + $0x470] sm:$0xff] %v584_v46  ;;  %587 = vst [vmem:[%s3828_s4 + $0x478] sm:$0xff] %v586_v47  ;;  %v588_v48 = vld [vmem:[%s3823_s3 + $0x900] sm:$0xff]  ;;  %v590_v49 = vld [vmem:[%s3823_s3 + $0x908] sm:$0xff] }
  0x76   : > { %v592_v50 = vld [vmem:[%s3823_s3 + $0x920] sm:$0xff]  ;;  %589 = vst [vmem:[%s3828_s4 + $0x480] sm:$0xff] %v588_v48  ;;  %591 = vst [vmem:[%s3828_s4 + $0x488] sm:$0xff] %v590_v49  ;;  %v594_v51 = vld [vmem:[%s3823_s3 + $0x928] sm:$0xff] }
  0x77   : > { %593 = vst [vmem:[%s3828_s4 + $0x490] sm:$0xff] %v592_v50  ;;  %v596_v52 = vld [vmem:[%s3823_s3 + $0x940] sm:$0xff]  ;;  %v598_v53 = vld [vmem:[%s3823_s3 + $0x948] sm:$0xff]  ;;  %595 = vst [vmem:[%s3828_s4 + $0x498] sm:$0xff] %v594_v51 }
  0x78   : > { %597 = vst [vmem:[%s3828_s4 + $0x4a0] sm:$0xff] %v596_v52  ;;  %599 = vst [vmem:[%s3828_s4 + $0x4a8] sm:$0xff] %v598_v53  ;;  %v600_v54 = vld [vmem:[%s3823_s3 + $0x960] sm:$0xff]  ;;  %v602_v55 = vld [vmem:[%s3823_s3 + $0x968] sm:$0xff] }
  0x79   : > { %v604_v56 = vld [vmem:[%s3823_s3 + $0x980] sm:$0xff]  ;;  %601 = vst [vmem:[%s3828_s4 + $0x4b0] sm:$0xff] %v600_v54  ;;  %603 = vst [vmem:[%s3828_s4 + $0x4b8] sm:$0xff] %v602_v55  ;;  %v606_v57 = vld [vmem:[%s3823_s3 + $0x988] sm:$0xff] }
  0x7a   : > { %605 = vst [vmem:[%s3828_s4 + $0x4c0] sm:$0xff] %v604_v56  ;;  %v608_v58 = vld [vmem:[%s3823_s3 + $0x9a0] sm:$0xff]  ;;  %v610_v59 = vld [vmem:[%s3823_s3 + $0x9a8] sm:$0xff]  ;;  %607 = vst [vmem:[%s3828_s4 + $0x4c8] sm:$0xff] %v606_v57 }
  0x7b   : > { %609 = vst [vmem:[%s3828_s4 + $0x4d0] sm:$0xff] %v608_v58  ;;  %611 = vst [vmem:[%s3828_s4 + $0x4d8] sm:$0xff] %v610_v59  ;;  %v612_v60 = vld [vmem:[%s3823_s3 + $0x9c0] sm:$0xff]  ;;  %v614_v61 = vld [vmem:[%s3823_s3 + $0x9c8] sm:$0xff] }
  0x7c   : > { %v616_v62 = vld [vmem:[%s3823_s3 + $0x9e0] sm:$0xff]  ;;  %613 = vst [vmem:[%s3828_s4 + $0x4e0] sm:$0xff] %v612_v60  ;;  %615 = vst [vmem:[%s3828_s4 + $0x4e8] sm:$0xff] %v614_v61  ;;  %v618_v63 = vld [vmem:[%s3823_s3 + $0x9e8] sm:$0xff] }
  0x7d   : > { %617 = vst [vmem:[%s3828_s4 + $0x4f0] sm:$0xff] %v616_v62  ;;  %v620_v0 = vld [vmem:[%s3823_s3 + $0xa00] sm:$0xff]  ;;  %v622_v1 = vld [vmem:[%s3823_s3 + $0xa08] sm:$0xff]  ;;  %619 = vst [vmem:[%s3828_s4 + $0x4f8] sm:$0xff] %v618_v63 }
  0x7e   : > { %621 = vst [vmem:[%s3828_s4 + $0x500] sm:$0xff] %v620_v0  ;;  %623 = vst [vmem:[%s3828_s4 + $0x508] sm:$0xff] %v622_v1  ;;  %v624_v2 = vld [vmem:[%s3823_s3 + $0xa20] sm:$0xff]  ;;  %v626_v3 = vld [vmem:[%s3823_s3 + $0xa28] sm:$0xff] }
  0x7f   : > { %v628_v4 = vld [vmem:[%s3823_s3 + $0xa40] sm:$0xff]  ;;  %625 = vst [vmem:[%s3828_s4 + $0x510] sm:$0xff] %v624_v2  ;;  %627 = vst [vmem:[%s3828_s4 + $0x518] sm:$0xff] %v626_v3  ;;  %v630_v5 = vld [vmem:[%s3823_s3 + $0xa48] sm:$0xff] }
  0x80   : > { %629 = vst [vmem:[%s3828_s4 + $0x520] sm:$0xff] %v628_v4  ;;  %v632_v6 = vld [vmem:[%s3823_s3 + $0xa60] sm:$0xff]  ;;  %v634_v7 = vld [vmem:[%s3823_s3 + $0xa68] sm:$0xff]  ;;  %631 = vst [vmem:[%s3828_s4 + $0x528] sm:$0xff] %v630_v5 }
  0x81   : > { %633 = vst [vmem:[%s3828_s4 + $0x530] sm:$0xff] %v632_v6  ;;  %635 = vst [vmem:[%s3828_s4 + $0x538] sm:$0xff] %v634_v7  ;;  %v636_v8 = vld [vmem:[%s3823_s3 + $0xa80] sm:$0xff]  ;;  %v638_v9 = vld [vmem:[%s3823_s3 + $0xa88] sm:$0xff] }
  0x82   : > { %v640_v10 = vld [vmem:[%s3823_s3 + $0xaa0] sm:$0xff]  ;;  %637 = vst [vmem:[%s3828_s4 + $0x540] sm:$0xff] %v636_v8  ;;  %639 = vst [vmem:[%s3828_s4 + $0x548] sm:$0xff] %v638_v9  ;;  %v642_v11 = vld [vmem:[%s3823_s3 + $0xaa8] sm:$0xff] }
  0x83   : > { %641 = vst [vmem:[%s3828_s4 + $0x550] sm:$0xff] %v640_v10  ;;  %v644_v12 = vld [vmem:[%s3823_s3 + $0xac0] sm:$0xff]  ;;  %v646_v13 = vld [vmem:[%s3823_s3 + $0xac8] sm:$0xff]  ;;  %643 = vst [vmem:[%s3828_s4 + $0x558] sm:$0xff] %v642_v11 }
  0x84   : > { %645 = vst [vmem:[%s3828_s4 + $0x560] sm:$0xff] %v644_v12  ;;  %647 = vst [vmem:[%s3828_s4 + $0x568] sm:$0xff] %v646_v13  ;;  %v648_v14 = vld [vmem:[%s3823_s3 + $0xae0] sm:$0xff]  ;;  %v650_v15 = vld [vmem:[%s3823_s3 + $0xae8] sm:$0xff] }
  0x85   : > { %v652_v16 = vld [vmem:[%s3823_s3 + $0xb00] sm:$0xff]  ;;  %649 = vst [vmem:[%s3828_s4 + $0x570] sm:$0xff] %v648_v14  ;;  %651 = vst [vmem:[%s3828_s4 + $0x578] sm:$0xff] %v650_v15  ;;  %v654_v17 = vld [vmem:[%s3823_s3 + $0xb08] sm:$0xff] }
  0x86   : > { %653 = vst [vmem:[%s3828_s4 + $0x580] sm:$0xff] %v652_v16  ;;  %v656_v18 = vld [vmem:[%s3823_s3 + $0xb20] sm:$0xff]  ;;  %v658_v19 = vld [vmem:[%s3823_s3 + $0xb28] sm:$0xff]  ;;  %655 = vst [vmem:[%s3828_s4 + $0x588] sm:$0xff] %v654_v17 }
  0x87   : > { %657 = vst [vmem:[%s3828_s4 + $0x590] sm:$0xff] %v656_v18  ;;  %659 = vst [vmem:[%s3828_s4 + $0x598] sm:$0xff] %v658_v19  ;;  %v660_v20 = vld [vmem:[%s3823_s3 + $0xb40] sm:$0xff]  ;;  %v662_v21 = vld [vmem:[%s3823_s3 + $0xb48] sm:$0xff] }
  0x88   : > { %v664_v22 = vld [vmem:[%s3823_s3 + $0xb60] sm:$0xff]  ;;  %661 = vst [vmem:[%s3828_s4 + $0x5a0] sm:$0xff] %v660_v20  ;;  %663 = vst [vmem:[%s3828_s4 + $0x5a8] sm:$0xff] %v662_v21  ;;  %v666_v23 = vld [vmem:[%s3823_s3 + $0xb68] sm:$0xff] }
  0x89   : > { %665 = vst [vmem:[%s3828_s4 + $0x5b0] sm:$0xff] %v664_v22  ;;  %v668_v24 = vld [vmem:[%s3823_s3 + $0xb80] sm:$0xff]  ;;  %v670_v25 = vld [vmem:[%s3823_s3 + $0xb88] sm:$0xff]  ;;  %667 = vst [vmem:[%s3828_s4 + $0x5b8] sm:$0xff] %v666_v23 }
  0x8a   : > { %669 = vst [vmem:[%s3828_s4 + $0x5c0] sm:$0xff] %v668_v24  ;;  %671 = vst [vmem:[%s3828_s4 + $0x5c8] sm:$0xff] %v670_v25  ;;  %v672_v26 = vld [vmem:[%s3823_s3 + $0xba0] sm:$0xff]  ;;  %v674_v27 = vld [vmem:[%s3823_s3 + $0xba8] sm:$0xff] }
  0x8b   : > { %v676_v28 = vld [vmem:[%s3823_s3 + $0xbc0] sm:$0xff]  ;;  %673 = vst [vmem:[%s3828_s4 + $0x5d0] sm:$0xff] %v672_v26  ;;  %675 = vst [vmem:[%s3828_s4 + $0x5d8] sm:$0xff] %v674_v27  ;;  %v678_v29 = vld [vmem:[%s3823_s3 + $0xbc8] sm:$0xff] }
  0x8c   : > { %677 = vst [vmem:[%s3828_s4 + $0x5e0] sm:$0xff] %v676_v28  ;;  %v680_v30 = vld [vmem:[%s3823_s3 + $0xbe0] sm:$0xff]  ;;  %v682_v31 = vld [vmem:[%s3823_s3 + $0xbe8] sm:$0xff]  ;;  %679 = vst [vmem:[%s3828_s4 + $0x5e8] sm:$0xff] %v678_v29 }
  0x8d   : > { %681 = vst [vmem:[%s3828_s4 + $0x5f0] sm:$0xff] %v680_v30  ;;  %683 = vst [vmem:[%s3828_s4 + $0x5f8] sm:$0xff] %v682_v31  ;;  %v684_v32 = vld [vmem:[%s3823_s3 + $0xc00] sm:$0xff]  ;;  %v686_v33 = vld [vmem:[%s3823_s3 + $0xc08] sm:$0xff] }
  0x8e   : > { %v688_v34 = vld [vmem:[%s3823_s3 + $0xc20] sm:$0xff]  ;;  %685 = vst [vmem:[%s3828_s4 + $0x600] sm:$0xff] %v684_v32  ;;  %687 = vst [vmem:[%s3828_s4 + $0x608] sm:$0xff] %v686_v33  ;;  %v690_v35 = vld [vmem:[%s3823_s3 + $0xc28] sm:$0xff] }
  0x8f   : > { %689 = vst [vmem:[%s3828_s4 + $0x610] sm:$0xff] %v688_v34  ;;  %v692_v36 = vld [vmem:[%s3823_s3 + $0xc40] sm:$0xff]  ;;  %v694_v37 = vld [vmem:[%s3823_s3 + $0xc48] sm:$0xff]  ;;  %691 = vst [vmem:[%s3828_s4 + $0x618] sm:$0xff] %v690_v35 }
  0x90   : > { %693 = vst [vmem:[%s3828_s4 + $0x620] sm:$0xff] %v692_v36  ;;  %695 = vst [vmem:[%s3828_s4 + $0x628] sm:$0xff] %v694_v37  ;;  %v696_v38 = vld [vmem:[%s3823_s3 + $0xc60] sm:$0xff]  ;;  %v698_v39 = vld [vmem:[%s3823_s3 + $0xc68] sm:$0xff] }
  0x91   : > { %v700_v40 = vld [vmem:[%s3823_s3 + $0xc80] sm:$0xff]  ;;  %697 = vst [vmem:[%s3828_s4 + $0x630] sm:$0xff] %v696_v38  ;;  %699 = vst [vmem:[%s3828_s4 + $0x638] sm:$0xff] %v698_v39  ;;  %v702_v41 = vld [vmem:[%s3823_s3 + $0xc88] sm:$0xff] }
  0x92   : > { %701 = vst [vmem:[%s3828_s4 + $0x640] sm:$0xff] %v700_v40  ;;  %v704_v42 = vld [vmem:[%s3823_s3 + $0xca0] sm:$0xff]  ;;  %v706_v43 = vld [vmem:[%s3823_s3 + $0xca8] sm:$0xff]  ;;  %703 = vst [vmem:[%s3828_s4 + $0x648] sm:$0xff] %v702_v41 }
  0x93   : > { %705 = vst [vmem:[%s3828_s4 + $0x650] sm:$0xff] %v704_v42  ;;  %707 = vst [vmem:[%s3828_s4 + $0x658] sm:$0xff] %v706_v43  ;;  %v708_v44 = vld [vmem:[%s3823_s3 + $0xcc0] sm:$0xff]  ;;  %v710_v45 = vld [vmem:[%s3823_s3 + $0xcc8] sm:$0xff] }
  0x94   : > { %v712_v46 = vld [vmem:[%s3823_s3 + $0xce0] sm:$0xff]  ;;  %709 = vst [vmem:[%s3828_s4 + $0x660] sm:$0xff] %v708_v44  ;;  %711 = vst [vmem:[%s3828_s4 + $0x668] sm:$0xff] %v710_v45  ;;  %v714_v47 = vld [vmem:[%s3823_s3 + $0xce8] sm:$0xff] }
  0x95   : > { %713 = vst [vmem:[%s3828_s4 + $0x670] sm:$0xff] %v712_v46  ;;  %v716_v48 = vld [vmem:[%s3823_s3 + $0xd00] sm:$0xff]  ;;  %v718_v49 = vld [vmem:[%s3823_s3 + $0xd08] sm:$0xff]  ;;  %715 = vst [vmem:[%s3828_s4 + $0x678] sm:$0xff] %v714_v47 }
  0x96   : > { %717 = vst [vmem:[%s3828_s4 + $0x680] sm:$0xff] %v716_v48  ;;  %719 = vst [vmem:[%s3828_s4 + $0x688] sm:$0xff] %v718_v49  ;;  %v720_v50 = vld [vmem:[%s3823_s3 + $0xd20] sm:$0xff]  ;;  %v722_v51 = vld [vmem:[%s3823_s3 + $0xd28] sm:$0xff] }
  0x97   : > { %v724_v52 = vld [vmem:[%s3823_s3 + $0xd40] sm:$0xff]  ;;  %721 = vst [vmem:[%s3828_s4 + $0x690] sm:$0xff] %v720_v50  ;;  %723 = vst [vmem:[%s3828_s4 + $0x698] sm:$0xff] %v722_v51  ;;  %v726_v53 = vld [vmem:[%s3823_s3 + $0xd48] sm:$0xff] }
  0x98   : > { %725 = vst [vmem:[%s3828_s4 + $0x6a0] sm:$0xff] %v724_v52  ;;  %v728_v54 = vld [vmem:[%s3823_s3 + $0xd60] sm:$0xff]  ;;  %v730_v55 = vld [vmem:[%s3823_s3 + $0xd68] sm:$0xff]  ;;  %727 = vst [vmem:[%s3828_s4 + $0x6a8] sm:$0xff] %v726_v53 }
  0x99   : > { %729 = vst [vmem:[%s3828_s4 + $0x6b0] sm:$0xff] %v728_v54  ;;  %731 = vst [vmem:[%s3828_s4 + $0x6b8] sm:$0xff] %v730_v55  ;;  %v732_v56 = vld [vmem:[%s3823_s3 + $0xd80] sm:$0xff]  ;;  %v734_v57 = vld [vmem:[%s3823_s3 + $0xd88] sm:$0xff] }
  0x9a   : > { %v736_v58 = vld [vmem:[%s3823_s3 + $0xda0] sm:$0xff]  ;;  %733 = vst [vmem:[%s3828_s4 + $0x6c0] sm:$0xff] %v732_v56  ;;  %735 = vst [vmem:[%s3828_s4 + $0x6c8] sm:$0xff] %v734_v57  ;;  %v738_v59 = vld [vmem:[%s3823_s3 + $0xda8] sm:$0xff] }
  0x9b   : > { %737 = vst [vmem:[%s3828_s4 + $0x6d0] sm:$0xff] %v736_v58  ;;  %v740_v60 = vld [vmem:[%s3823_s3 + $0xdc0] sm:$0xff]  ;;  %v742_v61 = vld [vmem:[%s3823_s3 + $0xdc8] sm:$0xff]  ;;  %739 = vst [vmem:[%s3828_s4 + $0x6d8] sm:$0xff] %v738_v59 }
  0x9c   : > { %741 = vst [vmem:[%s3828_s4 + $0x6e0] sm:$0xff] %v740_v60  ;;  %743 = vst [vmem:[%s3828_s4 + $0x6e8] sm:$0xff] %v742_v61  ;;  %v744_v62 = vld [vmem:[%s3823_s3 + $0xde0] sm:$0xff]  ;;  %v746_v63 = vld [vmem:[%s3823_s3 + $0xde8] sm:$0xff] }
  0x9d   : > { %v748_v0 = vld [vmem:[%s3823_s3 + $0xe00] sm:$0xff]  ;;  %745 = vst [vmem:[%s3828_s4 + $0x6f0] sm:$0xff] %v744_v62  ;;  %747 = vst [vmem:[%s3828_s4 + $0x6f8] sm:$0xff] %v746_v63  ;;  %v750_v1 = vld [vmem:[%s3823_s3 + $0xe08] sm:$0xff] }
  0x9e   : > { %749 = vst [vmem:[%s3828_s4 + $0x700] sm:$0xff] %v748_v0  ;;  %v752_v2 = vld [vmem:[%s3823_s3 + $0xe20] sm:$0xff]  ;;  %v754_v3 = vld [vmem:[%s3823_s3 + $0xe28] sm:$0xff]  ;;  %751 = vst [vmem:[%s3828_s4 + $0x708] sm:$0xff] %v750_v1 }
  0x9f   : > { %753 = vst [vmem:[%s3828_s4 + $0x710] sm:$0xff] %v752_v2  ;;  %755 = vst [vmem:[%s3828_s4 + $0x718] sm:$0xff] %v754_v3  ;;  %v756_v4 = vld [vmem:[%s3823_s3 + $0xe40] sm:$0xff]  ;;  %v758_v5 = vld [vmem:[%s3823_s3 + $0xe48] sm:$0xff] }
  0xa0   : > { %v760_v6 = vld [vmem:[%s3823_s3 + $0xe60] sm:$0xff]  ;;  %757 = vst [vmem:[%s3828_s4 + $0x720] sm:$0xff] %v756_v4  ;;  %759 = vst [vmem:[%s3828_s4 + $0x728] sm:$0xff] %v758_v5  ;;  %v762_v7 = vld [vmem:[%s3823_s3 + $0xe68] sm:$0xff] }
  0xa1   : > { %761 = vst [vmem:[%s3828_s4 + $0x730] sm:$0xff] %v760_v6  ;;  %v764_v8 = vld [vmem:[%s3823_s3 + $0xe80] sm:$0xff]  ;;  %v766_v9 = vld [vmem:[%s3823_s3 + $0xe88] sm:$0xff]  ;;  %763 = vst [vmem:[%s3828_s4 + $0x738] sm:$0xff] %v762_v7 }
  0xa2   : > { %765 = vst [vmem:[%s3828_s4 + $0x740] sm:$0xff] %v764_v8  ;;  %767 = vst [vmem:[%s3828_s4 + $0x748] sm:$0xff] %v766_v9  ;;  %v768_v10 = vld [vmem:[%s3823_s3 + $0xea0] sm:$0xff]  ;;  %v770_v11 = vld [vmem:[%s3823_s3 + $0xea8] sm:$0xff] }
  0xa3   : > { %v772_v12 = vld [vmem:[%s3823_s3 + $0xec0] sm:$0xff]  ;;  %769 = vst [vmem:[%s3828_s4 + $0x750] sm:$0xff] %v768_v10  ;;  %771 = vst [vmem:[%s3828_s4 + $0x758] sm:$0xff] %v770_v11  ;;  %v774_v13 = vld [vmem:[%s3823_s3 + $0xec8] sm:$0xff] }
  0xa4   : > { %773 = vst [vmem:[%s3828_s4 + $0x760] sm:$0xff] %v772_v12  ;;  %v776_v14 = vld [vmem:[%s3823_s3 + $0xee0] sm:$0xff]  ;;  %v778_v15 = vld [vmem:[%s3823_s3 + $0xee8] sm:$0xff]  ;;  %775 = vst [vmem:[%s3828_s4 + $0x768] sm:$0xff] %v774_v13 }
  0xa5   : > { %777 = vst [vmem:[%s3828_s4 + $0x770] sm:$0xff] %v776_v14  ;;  %779 = vst [vmem:[%s3828_s4 + $0x778] sm:$0xff] %v778_v15  ;;  %v780_v16 = vld [vmem:[%s3823_s3 + $0xf00] sm:$0xff]  ;;  %v782_v17 = vld [vmem:[%s3823_s3 + $0xf08] sm:$0xff] }
  0xa6   : > { %v784_v18 = vld [vmem:[%s3823_s3 + $0xf20] sm:$0xff]  ;;  %781 = vst [vmem:[%s3828_s4 + $0x780] sm:$0xff] %v780_v16  ;;  %783 = vst [vmem:[%s3828_s4 + $0x788] sm:$0xff] %v782_v17  ;;  %v786_v19 = vld [vmem:[%s3823_s3 + $0xf28] sm:$0xff] }
  0xa7   : > { %785 = vst [vmem:[%s3828_s4 + $0x790] sm:$0xff] %v784_v18  ;;  %v788_v20 = vld [vmem:[%s3823_s3 + $0xf40] sm:$0xff]  ;;  %v790_v21 = vld [vmem:[%s3823_s3 + $0xf48] sm:$0xff]  ;;  %787 = vst [vmem:[%s3828_s4 + $0x798] sm:$0xff] %v786_v19 }
  0xa8   : > { %789 = vst [vmem:[%s3828_s4 + $0x7a0] sm:$0xff] %v788_v20  ;;  %791 = vst [vmem:[%s3828_s4 + $0x7a8] sm:$0xff] %v790_v21  ;;  %v792_v22 = vld [vmem:[%s3823_s3 + $0xf60] sm:$0xff]  ;;  %v794_v23 = vld [vmem:[%s3823_s3 + $0xf68] sm:$0xff] }
  0xa9   : > { %v796_v24 = vld [vmem:[%s3823_s3 + $0xf80] sm:$0xff]  ;;  %793 = vst [vmem:[%s3828_s4 + $0x7b0] sm:$0xff] %v792_v22  ;;  %795 = vst [vmem:[%s3828_s4 + $0x7b8] sm:$0xff] %v794_v23  ;;  %v798_v25 = vld [vmem:[%s3823_s3 + $0xf88] sm:$0xff] }
  0xaa   : > { %797 = vst [vmem:[%s3828_s4 + $0x7c0] sm:$0xff] %v796_v24  ;;  %v800_v26 = vld [vmem:[%s3823_s3 + $0xfa0] sm:$0xff]  ;;  %v802_v27 = vld [vmem:[%s3823_s3 + $0xfa8] sm:$0xff]  ;;  %799 = vst [vmem:[%s3828_s4 + $0x7c8] sm:$0xff] %v798_v25 }
  0xab   : > { %801 = vst [vmem:[%s3828_s4 + $0x7d0] sm:$0xff] %v800_v26  ;;  %803 = vst [vmem:[%s3828_s4 + $0x7d8] sm:$0xff] %v802_v27  ;;  %v804_v28 = vld [vmem:[%s3823_s3 + $0xfc0] sm:$0xff]  ;;  %v806_v29 = vld [vmem:[%s3823_s3 + $0xfc8] sm:$0xff] }
  0xac   : > { %v808_v30 = vld [vmem:[%s3823_s3 + $0xfe0] sm:$0xff]  ;;  %805 = vst [vmem:[%s3828_s4 + $0x7e0] sm:$0xff] %v804_v28  ;;  %807 = vst [vmem:[%s3828_s4 + $0x7e8] sm:$0xff] %v806_v29  ;;  %v810_v31 = vld [vmem:[%s3823_s3 + $0xfe8] sm:$0xff] }
  0xad   : > { %809 = vst [vmem:[%s3828_s4 + $0x7f0] sm:$0xff] %v808_v30  ;;  %811 = vst [vmem:[%s3828_s4 + $0x7f8] sm:$0xff] %v810_v31 }
  0xae PF: > { %p3316_p7 = scmp.ge.s32.totalorder %s3685_s11, 1  ;;  %p816_p8 = scmp.lt.s32.totalorder %s3685_s11, 3 }
  0xb0   : > { %p817_p9 = pnand %p3316_p7, %p816_p8 }
  0xb1   : > { %s823_s5 = sand.u32 (!%p817_p9), 1, %s3677_s9   ;;  %v875_v32 = vlaneseq (!%p817_p9) }
  0xb2   : > { %820 = sbr.rel (%p817_p9) target bundleno = 490 (0x1ea), region = 84  ;;  %s4342_s6 = sshll.u32 (!%p817_p9), %s823_s5, 7 }
  0xb3   : > { %s3318_s7 = sshll.u32 (!%p817_p9), %s823_s5, 11  ;;  %v876_v33 = vshrl.u32 (!%p817_p9), %v875_v32, 7  ;;  %s4345_s8 = scalar_lea.vmem (!%p817_p9), [#allocation2], %s4342_s6 }
  0xb4   : > { %v3320_v34 = vld.sshfl [vmem:[%s4345_s8] sm:$0x33 pattern:$0x75316420] (!%p817_p9)  ;;  %s4352_s14 = scalar_lea.vmem (!%p817_p9), [#allocation3], %s3318_s7  ;;  %s4846_s9 = scalar_lea.vmem (!%p817_p9), [#allocation4], %s4342_s6 }
  0xb5   : > { %v866_v35 = vcombine.high (!%p817_p9), %v3320_v34, %v3320_v34  ;;  %v4348_v36 = vsub.s32 (!%p817_p9), 0, %v876_v33  ;;  %v4350_v37 = vsub.s32 (!%p817_p9), 1, %v876_v33  ;;  %v867_v38 = vld [vmem:[%s4352_s14] sm:$0xff] (!%p817_p9)  ;;  %v868_v39 = vld [vmem:[%s4352_s14 + $0x8] sm:$0xff] (!%p817_p9)  ;;  %v869_v40 = vld [vmem:[%s4352_s14 + $0x10] sm:$0xff] (!%p817_p9) }
  0xb6   : > { %v870_v41 = vld [vmem:[%s4352_s14 + $0x18] sm:$0xff] (!%p817_p9)  ;;  %v871_v42 = vld [vmem:[%s4352_s14 + $0x20] sm:$0xff] (!%p817_p9)  ;;  %v872_v46 = vld [vmem:[%s4352_s14 + $0x28] sm:$0xff] (!%p817_p9) }
  0xb7   : > { %v878_v43 = vrot.slane (!%p817_p9), %v3320_v34, %v4348_v36  ;;  %v882_v44 = vrot.slane (!%p817_p9), %v3320_v34, %v4350_v37  ;;  %v3322_v45 = vld.sshfl [vmem:[%s4345_s8 + $0x4] sm:$0x33 pattern:$0x75316420] (!%p817_p9)  ;;  %v873_v47 = vld [vmem:[%s4352_s14 + $0x30] sm:$0xff] (!%p817_p9)  ;;  %v874_v48 = vld [vmem:[%s4352_s14 + $0x38] sm:$0xff] (!%p817_p9)  ;;  %v886_v49 = vrot.slane (!%p817_p9), %v866_v35, %v4348_v36  ;;  %v890_v50 = vrot.slane (!%p817_p9), %v866_v35, %v4350_v37 }
  0xb8   : > { %v937_v51 = vcombine.high (!%p817_p9), %v3322_v45, %v3322_v45  ;;  %v950_v52 = vrot.slane (!%p817_p9), %v3322_v45, %v4348_v36  ;;  %v954_v53 = vrot.slane (!%p817_p9), %v3322_v45, %v4350_v37  ;;  %v3323_v62 = vld [vmem:[%s4352_s14 + $0x40] sm:$0xff] (!%p817_p9)  ;;  %v3324_v63 = vld [vmem:[%s4352_s14 + $0x48] sm:$0xff] (!%p817_p9)  ;;  %v3325_v0 = vld [vmem:[%s4352_s14 + $0x50] sm:$0xff] (!%p817_p9) }
  0xb9   : > { %v895_v54 = vmul.f32 %v878_v43, %v867_v38  ;;  %v896_v55 = vmul.f32 %v882_v44, %v868_v39  ;;  %v897_v56 = vmul.f32 %v878_v43, %v869_v40  ;;  %v898_v57 = vmul.f32 %v882_v44, %v870_v41  ;;  %v3326_v5 = vld [vmem:[%s4352_s14 + $0x58] sm:$0xff]  ;;  %v3327_v6 = vld [vmem:[%s4352_s14 + $0x60] sm:$0xff]  ;;  %v3328_v7 = vld [vmem:[%s4352_s14 + $0x68] sm:$0xff]  ;;  %s3638_s15 = sshll.u32 (%p3736_p5), %s3306_s12, 4 }
  0xba   : > { %v899_v58 = vmul.f32 %v878_v43, %v871_v42  ;;  %v900_v59 = vmul.f32 %v882_v44, %v872_v46  ;;  %v901_v60 = vmul.f32 %v878_v43, %v873_v47  ;;  %v902_v61 = vmul.f32 %v882_v44, %v874_v48  ;;  %v3329_v10 = vld [vmem:[%s4352_s14 + $0x70] sm:$0xff]  ;;  %v3330_v11 = vld [vmem:[%s4352_s14 + $0x78] sm:$0xff]  ;;  %v3332_v34 = vld.sshfl [vmem:[%s4345_s8 + $0x8] sm:$0x33 pattern:$0x75316420]  ;;  %s3184_s18 = scalar_lea.vmem (%p3736_p5), %s4899_s2, %s3638_s15 }
  0xbb   : > { %v903_v1 = vmul.f32 %v886_v49, %v867_v38  ;;  %v904_v2 = vmul.f32 %v890_v50, %v868_v39  ;;  %v905_v3 = vmul.f32 %v886_v49, %v869_v40  ;;  %v906_v4 = vmul.f32 %v890_v50, %v870_v41  ;;  %v3342_v45 = vld.sshfl [vmem:[%s4345_s8 + $0xc] sm:$0x33 pattern:$0x75316420] }
  0xbc   : > { %v907_v8 = vmul.f32 %v886_v49, %v871_v42  ;;  %v908_v9 = vmul.f32 %v890_v50, %v872_v46  ;;  %v958_v12 = vrot.slane %v937_v51, %v4348_v36  ;;  %v962_v13 = vrot.slane %v937_v51, %v4350_v37  ;;  %v3335_v51 = vld [vmem:[%s4352_s14 + $0x90] sm:$0xff] }
  0xbd   : > { %v909_v14 = vmul.f32 %v886_v49, %v873_v47  ;;  %v910_v15 = vmul.f32 %v890_v50, %v874_v48  ;;  %v967_v16 = vmul.f32 %v3323_v62, %v950_v52  ;;  %v968_v17 = vmul.f32 %v3324_v63, %v954_v53  ;;  %v3333_v49 = vld [vmem:[%s4352_s14 + $0x80] sm:$0xff]  ;;  %v3334_v50 = vld [vmem:[%s4352_s14 + $0x88] sm:$0xff] }
  0xbe   : > { %v969_v18 = vmul.f32 %v3325_v0, %v950_v52  ;;  %v970_v19 = vmul.f32 %v3326_v5, %v954_v53  ;;  %v971_v20 = vmul.f32 %v3327_v6, %v950_v52  ;;  %v972_v21 = vmul.f32 %v3328_v7, %v954_v53 }
  0xbf   : > { %v973_v22 = vmul.f32 %v3329_v10, %v950_v52  ;;  %v974_v23 = vmul.f32 %v3330_v11, %v954_v53  ;;  %v975_v24 = vmul.f32 %v3323_v62, %v958_v12  ;;  %v976_v25 = vmul.f32 %v3324_v63, %v962_v13  ;;  %v3340_v62 = vld [vmem:[%s4352_s14 + $0xb8] sm:$0xff] }
  0xc0   : > { %v977_v26 = vmul.f32 %v3325_v0, %v958_v12  ;;  %v978_v27 = vmul.f32 %v3326_v5, %v962_v13  ;;  %v979_v28 = vmul.f32 %v3327_v6, %v958_v12  ;;  %v980_v29 = vmul.f32 %v3328_v7, %v962_v13 }
  0xc1   : > { %v981_v30 = vmul.f32 %v3329_v10, %v958_v12  ;;  %v982_v31 = vmul.f32 %v3330_v11, %v962_v13  ;;  %v983_v32 = vadd.f32 %v967_v16, %v895_v54  ;;  %v984_v33 = vadd.f32 %v968_v17, %v896_v55 }
  0xc2   : > { %v985_v35 = vadd.f32 %v969_v18, %v897_v56  ;;  %v986_v38 = vadd.f32 %v970_v19, %v898_v57  ;;  %v987_v39 = vadd.f32 %v971_v20, %v899_v58  ;;  %v988_v40 = vadd.f32 %v972_v21, %v900_v59  ;;  %v3336_v56 = vld [vmem:[%s4352_s14 + $0x98] sm:$0xff]  ;;  %v3337_v57 = vld [vmem:[%s4352_s14 + $0xa0] sm:$0xff]  ;;  %v3338_v58 = vld [vmem:[%s4352_s14 + $0xa8] sm:$0xff] }
  0xc3   : > { %v989_v41 = vadd.f32 %v973_v22, %v901_v60  ;;  %v990_v42 = vadd.f32 %v974_v23, %v902_v61  ;;  %v991_v43 = vadd.f32 %v975_v24, %v903_v1  ;;  %v992_v44 = vadd.f32 %v976_v25, %v904_v2  ;;  %v3339_v61 = vld [vmem:[%s4352_s14 + $0xb0] sm:$0xff] }
  0xc4   : > { %v993_v46 = vadd.f32 %v977_v26, %v905_v3  ;;  %v994_v47 = vadd.f32 %v978_v27, %v906_v4  ;;  %v1009_v48 = vcombine.high %v3332_v34, %v3332_v34  ;;  %v1022_v52 = vrot.slane %v3332_v34, %v4348_v36  ;;  %v3343_v26 = vld [vmem:[%s4352_s14 + $0xc0] sm:$0xff]  ;;  %v3344_v27 = vld [vmem:[%s4352_s14 + $0xc8] sm:$0xff] }
  0xc5   : > { %v995_v53 = vadd.f32 %v979_v28, %v907_v8  ;;  %v996_v54 = vadd.f32 %v980_v29, %v908_v9  ;;  %v997_v55 = vadd.f32 %v981_v30, %v909_v14  ;;  %v1026_v59 = vrot.slane %v3332_v34, %v4350_v37  ;;  %v3345_v34 = vld [vmem:[%s4352_s14 + $0xd0] sm:$0xff] }
  0xc6   : > { %v998_v60 = vadd.f32 %v982_v31, %v910_v15  ;;  %v1030_v63 = vrot.slane %v1009_v48, %v4348_v36  ;;  %v1034_v0 = vrot.slane %v1009_v48, %v4350_v37  ;;  %v1081_v1 = vcombine.high %v3342_v45, %v3342_v45  ;;  %v3347_v48 = vld [vmem:[%s4352_s14 + $0xe0] sm:$0xff] }
  0xc7   : > { %v1039_v2 = vmul.f32 %v3333_v49, %v1022_v52  ;;  %v1040_v3 = vmul.f32 %v3334_v50, %v1026_v59  ;;  %v1094_v4 = vrot.slane %v3342_v45, %v4348_v36  ;;  %v1098_v5 = vrot.slane %v3342_v45, %v4350_v37  ;;  %v3346_v45 = vld [vmem:[%s4352_s14 + $0xd8] sm:$0xff] }
  0xc8   : > { %v1041_v6 = vmul.f32 %v3335_v51, %v1022_v52  ;;  %v1042_v7 = vmul.f32 %v3336_v56, %v1026_v59  ;;  %v1043_v8 = vmul.f32 %v3337_v57, %v1022_v52  ;;  %v1044_v9 = vmul.f32 %v3338_v58, %v1026_v59 }
  0xc9   : > { %v1045_v10 = vmul.f32 %v3339_v61, %v1022_v52  ;;  %v1046_v11 = vmul.f32 %v3340_v62, %v1026_v59  ;;  %v1047_v12 = vmul.f32 %v3333_v49, %v1030_v63  ;;  %v1048_v13 = vmul.f32 %v3334_v50, %v1034_v0 }
  0xca   : > { %v1049_v14 = vmul.f32 %v3335_v51, %v1030_v63  ;;  %v1050_v15 = vmul.f32 %v3336_v56, %v1034_v0  ;;  %v1051_v16 = vmul.f32 %v3337_v57, %v1030_v63  ;;  %v1052_v17 = vmul.f32 %v3338_v58, %v1034_v0  ;;  %v3350_v51 = vld [vmem:[%s4352_s14 + $0xf8] sm:$0xff] }
  0xcb   : > { %v1053_v18 = vmul.f32 %v3339_v61, %v1030_v63  ;;  %v1054_v19 = vmul.f32 %v3340_v62, %v1034_v0  ;;  %v1055_v20 = vadd.f32 %v1039_v2, %v983_v32  ;;  %v1056_v21 = vadd.f32 %v1040_v3, %v984_v33  ;;  %v3348_v32 = vld [vmem:[%s4352_s14 + $0xe8] sm:$0xff]  ;;  %v3349_v33 = vld [vmem:[%s4352_s14 + $0xf0] sm:$0xff] }
  0xcc   : > { %v1057_v22 = vadd.f32 %v1041_v6, %v985_v35  ;;  %v1058_v23 = vadd.f32 %v1042_v7, %v986_v38  ;;  %v1059_v24 = vadd.f32 %v1043_v8, %v987_v39  ;;  %v1060_v25 = vadd.f32 %v1044_v9, %v988_v40  ;;  %v3352_v6 = vld.sshfl [vmem:[%s4345_s8 + $0x10] sm:$0x33 pattern:$0x75316420] }
  0xcd   : > { %v1061_v28 = vadd.f32 %v1045_v10, %v989_v41  ;;  %v1062_v29 = vadd.f32 %v1046_v11, %v990_v42  ;;  %v1063_v30 = vadd.f32 %v1047_v12, %v991_v43  ;;  %v1064_v31 = vadd.f32 %v1048_v13, %v992_v44  ;;  %v3362_v9 = vld.sshfl [vmem:[%s4345_s8 + $0x14] sm:$0x33 pattern:$0x75316420] }
  0xce   : > { %v1065_v49 = vadd.f32 %v1049_v14, %v993_v46  ;;  %v1066_v50 = vadd.f32 %v1050_v15, %v994_v47  ;;  %v1102_v35 = vrot.slane %v1081_v1, %v4348_v36  ;;  %v1106_v38 = vrot.slane %v1081_v1, %v4350_v37  ;;  %v3353_v14 = vld [vmem:[%s4352_s14 + $0x100] sm:$0xff] }
  0xcf   : > { %v1067_v39 = vadd.f32 %v1051_v16, %v995_v53  ;;  %v1068_v40 = vadd.f32 %v1052_v17, %v996_v54  ;;  %v1069_v52 = vadd.f32 %v1053_v18, %v997_v55  ;;  %v1070_v56 = vadd.f32 %v1054_v19, %v998_v60  ;;  %v3354_v17 = vld [vmem:[%s4352_s14 + $0x108] sm:$0xff]  ;;  %v3355_v18 = vld [vmem:[%s4352_s14 + $0x110] sm:$0xff] }
  0xd0   : > { %v1111_v41 = vmul.f32 %v3343_v26, %v1094_v4  ;;  %v1112_v42 = vmul.f32 %v3344_v27, %v1098_v5  ;;  %v1113_v43 = vmul.f32 %v3345_v34, %v1094_v4  ;;  %v1114_v44 = vmul.f32 %v3346_v45, %v1098_v5 }
  0xd1   : > { %v1115_v57 = vmul.f32 %v3347_v48, %v1094_v4  ;;  %v1116_v58 = vmul.f32 %v3348_v32, %v1098_v5  ;;  %v1117_v46 = vmul.f32 %v3349_v33, %v1094_v4  ;;  %v1118_v47 = vmul.f32 %v3350_v51, %v1098_v5 }
  0xd2   : > { %v1119_v59 = vmul.f32 %v3343_v26, %v1102_v35  ;;  %v1120_v61 = vmul.f32 %v3344_v27, %v1106_v38  ;;  %v1121_v62 = vmul.f32 %v3345_v34, %v1102_v35  ;;  %v1122_v63 = vmul.f32 %v3346_v45, %v1106_v38  ;;  %v3357_v26 = vld [vmem:[%s4352_s14 + $0x120] sm:$0xff]  ;;  %v3358_v27 = vld [vmem:[%s4352_s14 + $0x128] sm:$0xff] }
  0xd3   : > { %v1123_v0 = vmul.f32 %v3347_v48, %v1102_v35  ;;  %v1124_v1 = vmul.f32 %v3348_v32, %v1106_v38  ;;  %v1125_v53 = vmul.f32 %v3349_v33, %v1102_v35  ;;  %v1126_v54 = vmul.f32 %v3350_v51, %v1106_v38 }
  0xd4   : > { %v1127_v55 = vadd.f32 %v1111_v41, %v1055_v20  ;;  %v1128_v60 = vadd.f32 %v1112_v42, %v1056_v21  ;;  %v1129_v2 = vadd.f32 %v1113_v43, %v1057_v22  ;;  %v1130_v3 = vadd.f32 %v1114_v44, %v1058_v23  ;;  %v4413_v21 = vld.sshfl [vmem:[%s4345_s8 + $0x18] sm:$0x33 pattern:$0x75316420] }
  0xd5   : > { %v1131_v7 = vadd.f32 %v1115_v57, %v1059_v24  ;;  %v1132_v4 = vadd.f32 %v1116_v58, %v1060_v25  ;;  %v1133_v5 = vadd.f32 %v1117_v46, %v1061_v28  ;;  %v1134_v8 = vadd.f32 %v1118_v47, %v1062_v29  ;;  %v3356_v25 = vld [vmem:[%s4352_s14 + $0x118] sm:$0xff]  ;;  %v3359_v29 = vld [vmem:[%s4352_s14 + $0x130] sm:$0xff] }
  0xd6   : > { %v1135_v10 = vadd.f32 %v1119_v59, %v1063_v30  ;;  %v1136_v11 = vadd.f32 %v1120_v61, %v1064_v31  ;;  %v1137_v12 = vadd.f32 %v1121_v62, %v1065_v49  ;;  %v1138_v13 = vadd.f32 %v1122_v63, %v1066_v50  ;;  %v3360_v30 = vld [vmem:[%s4352_s14 + $0x138] sm:$0xff] }
  0xd7   : > { %v1139_v15 = vadd.f32 %v1123_v0, %v1067_v39  ;;  %v1153_v16 = vcombine.high %v3352_v6, %v3352_v6  ;;  %v1166_v19 = vrot.slane %v3352_v6, %v4348_v36  ;;  %v1170_v20 = vrot.slane %v3352_v6, %v4350_v37 }
  0xd8   : > { %v1140_v22 = vadd.f32 %v1124_v1, %v1068_v40  ;;  %v1141_v23 = vadd.f32 %v1125_v53, %v1069_v52  ;;  %v1142_v24 = vadd.f32 %v1126_v54, %v1070_v56  ;;  %v1225_v28 = vcombine.high %v3362_v9, %v3362_v9  ;;  %v3363_v1 = vld [vmem:[%s4352_s14 + $0x140] sm:$0xff]  ;;  %v3364_v53 = vld [vmem:[%s4352_s14 + $0x148] sm:$0xff] }
  0xd9   : > { %v1174_v31 = vrot.slane %v1153_v16, %v4348_v36  ;;  %v1178_v34 = vrot.slane %v1153_v16, %v4350_v37  ;;  %v1238_v45 = vrot.slane %v3362_v9, %v4348_v36  ;;  %v1242_v48 = vrot.slane %v3362_v9, %v4350_v37  ;;  %v3365_v16 = vld [vmem:[%s4352_s14 + $0x150] sm:$0xff] }
  0xda   : > { %v1183_v49 = vmul.f32 %v3353_v14, %v1166_v19  ;;  %v1184_v50 = vmul.f32 %v3354_v17, %v1170_v20  ;;  %v4426_v32 = vcombine.high %v4413_v21, %v4413_v21  ;;  %v4430_v33 = vrot.slane %v4413_v21, %v4348_v36 }
  0xdb   : > { %v1185_v51 = vmul.f32 %v3355_v18, %v1166_v19  ;;  %v1186_v35 = vmul.f32 %v3356_v25, %v1170_v20  ;;  %v1187_v38 = vmul.f32 %v3357_v26, %v1166_v19  ;;  %v1188_v39 = vmul.f32 %v3358_v27, %v1170_v20 }
  0xdc   : > { %v1189_v40 = vmul.f32 %v3359_v29, %v1166_v19  ;;  %v1190_v52 = vmul.f32 %v3360_v30, %v1170_v20  ;;  %v1191_v56 = vmul.f32 %v3353_v14, %v1174_v31  ;;  %v1192_v41 = vmul.f32 %v3354_v17, %v1178_v34  ;;  %v3366_v17 = vld [vmem:[%s4352_s14 + $0x158] sm:$0xff] }
  0xdd   : > { %v1193_v42 = vmul.f32 %v3355_v18, %v1174_v31  ;;  %v1194_v43 = vmul.f32 %v3356_v25, %v1178_v34  ;;  %v1195_v44 = vmul.f32 %v3357_v26, %v1174_v31  ;;  %v1196_v57 = vmul.f32 %v3358_v27, %v1178_v34  ;;  %v3367_v18 = vld [vmem:[%s4352_s14 + $0x160] sm:$0xff]  ;;  %v3370_v25 = vld [vmem:[%s4352_s14 + $0x178] sm:$0xff] }
  0xde   : > { %v1197_v58 = vmul.f32 %v3359_v29, %v1174_v31  ;;  %v1198_v46 = vmul.f32 %v3360_v30, %v1178_v34  ;;  %v1199_v47 = vadd.f32 %v1183_v49, %v1127_v55  ;;  %v1200_v59 = vadd.f32 %v1184_v50, %v1128_v60  ;;  %v3368_v55 = vld [vmem:[%s4352_s14 + $0x168] sm:$0xff]  ;;  %v3369_v60 = vld [vmem:[%s4352_s14 + $0x170] sm:$0xff] }
  0xdf   : > { %v1201_v61 = vadd.f32 %v1185_v51, %v1129_v2  ;;  %v1202_v62 = vadd.f32 %v1186_v35, %v1130_v3  ;;  %v1203_v63 = vadd.f32 %v1187_v38, %v1131_v7  ;;  %v1204_v0 = vadd.f32 %v1188_v39, %v1132_v4 }
  0xe0   : > { %v1205_v54 = vadd.f32 %v1189_v40, %v1133_v5  ;;  %v1206_v6 = vadd.f32 %v1190_v52, %v1134_v8  ;;  %v1207_v9 = vadd.f32 %v1191_v56, %v1135_v10  ;;  %v1208_v14 = vadd.f32 %v1192_v41, %v1136_v11  ;;  %v3373_v52 = vld [vmem:[%s4352_s14 + $0x180] sm:$0xff]  ;;  %v3374_v56 = vld [vmem:[%s4352_s14 + $0x188] sm:$0xff]  ;;  %v3375_v41 = vld [vmem:[%s4352_s14 + $0x190] sm:$0xff] }
  0xe1   : > { %v1209_v19 = vadd.f32 %v1193_v42, %v1137_v12  ;;  %v1210_v20 = vadd.f32 %v1194_v43, %v1138_v13  ;;  %v1246_v2 = vrot.slane %v1225_v28, %v4348_v36  ;;  %v1250_v3 = vrot.slane %v1225_v28, %v4350_v37 }
  0xe2   : > { %v1211_v7 = vadd.f32 %v1195_v44, %v1139_v15  ;;  %v1212_v4 = vadd.f32 %v1196_v57, %v1140_v22  ;;  %v1213_v26 = vadd.f32 %v1197_v58, %v1141_v23  ;;  %v1214_v27 = vadd.f32 %v1198_v46, %v1142_v24  ;;  %v3376_v58 = vld [vmem:[%s4352_s14 + $0x198] sm:$0xff]  ;;  %v3377_v46 = vld [vmem:[%s4352_s14 + $0x1a0] sm:$0xff] }
  0xe3   : > { %v1255_v5 = vmul.f32 %v3363_v1, %v1238_v45  ;;  %v1256_v8 = vmul.f32 %v3364_v53, %v1242_v48  ;;  %v1257_v10 = vmul.f32 %v3365_v16, %v1238_v45  ;;  %v1258_v11 = vmul.f32 %v3366_v17, %v1242_v48 }
  0xe4   : > { %v1259_v29 = vmul.f32 %v3367_v18, %v1238_v45  ;;  %v1260_v30 = vmul.f32 %v3368_v55, %v1242_v48  ;;  %v1261_v31 = vmul.f32 %v3369_v60, %v1238_v45  ;;  %v1262_v12 = vmul.f32 %v3370_v25, %v1242_v48 }
  0xe5   : > { %v1263_v13 = vmul.f32 %v3363_v1, %v1246_v2  ;;  %v1264_v34 = vmul.f32 %v3364_v53, %v1250_v3  ;;  %v1265_v49 = vmul.f32 %v3365_v16, %v1246_v2  ;;  %v1266_v50 = vmul.f32 %v3366_v17, %v1250_v3  ;;  %v3382_v53 = vld.sshfl [vmem:[%s4345_s8 + $0x1c] sm:$0x33 pattern:$0x75316420] }
  0xe6   : > { %v1267_v28 = vmul.f32 %v3367_v18, %v1246_v2  ;;  %v1268_v15 = vmul.f32 %v3368_v55, %v1250_v3  ;;  %v1269_v22 = vmul.f32 %v3369_v60, %v1246_v2  ;;  %v1270_v23 = vmul.f32 %v3370_v25, %v1250_v3 }
  0xe7   : > { %v1271_v24 = vadd.f32 %v1255_v5, %v1199_v47  ;;  %v1272_v51 = vadd.f32 %v1256_v8, %v1200_v59  ;;  %v1273_v35 = vadd.f32 %v1257_v10, %v1201_v61  ;;  %v1274_v38 = vadd.f32 %v1258_v11, %v1202_v62  ;;  %v3378_v47 = vld [vmem:[%s4352_s14 + $0x1a8] sm:$0xff]  ;;  %v3379_v61 = vld [vmem:[%s4352_s14 + $0x1b0] sm:$0xff]  ;;  %v3380_v62 = vld [vmem:[%s4352_s14 + $0x1b8] sm:$0xff] }
  0xe8   : > { %v1275_v45 = vadd.f32 %v1259_v29, %v1203_v63  ;;  %v1276_v48 = vadd.f32 %v1260_v30, %v1204_v0  ;;  %v1277_v39 = vadd.f32 %v1261_v31, %v1205_v54  ;;  %v1278_v40 = vadd.f32 %v1262_v12, %v1206_v6  ;;  %v3392_v12 = vld.sshfl [vmem:[%s4345_s8 + $0x20] sm:$0x33 pattern:$0x75316420] }
  0xe9   : > { %v1279_v42 = vadd.f32 %v1263_v13, %v1207_v9  ;;  %v1280_v43 = vadd.f32 %v1264_v34, %v1208_v14  ;;  %v1281_v44 = vadd.f32 %v1265_v49, %v1209_v19  ;;  %v1282_v57 = vadd.f32 %v1266_v50, %v1210_v20 }
  0xea   : > { %v1283_v59 = vadd.f32 %v1267_v28, %v1211_v7  ;;  %v1314_v63 = vrot.slane %v4413_v21, %v4350_v37  ;;  %v1318_v0 = vrot.slane %v4426_v32, %v4348_v36  ;;  %v1322_v1 = vrot.slane %v4426_v32, %v4350_v37  ;;  %v3383_v28 = vld [vmem:[%s4352_s14 + $0x1c0] sm:$0xff] }
  0xeb   : > { %v1284_v54 = vadd.f32 %v1268_v15, %v1212_v4  ;;  %v1285_v6 = vadd.f32 %v1269_v22, %v1213_v26  ;;  %v1286_v9 = vadd.f32 %v1270_v23, %v1214_v27  ;;  %v1327_v14 = vmul.f32 %v3373_v52, %v4430_v33  ;;  %v3384_v15 = vld [vmem:[%s4352_s14 + $0x1c8] sm:$0xff]  ;;  %v4465_v22 = vld.sshfl [vmem:[%s4345_s8 + $0x24] sm:$0x33 pattern:$0x75316420] }
  0xec   : > { %v1328_v16 = vmul.f32 %v3374_v56, %v1314_v63  ;;  %v1329_v17 = vmul.f32 %v3375_v41, %v4430_v33  ;;  %v1330_v18 = vmul.f32 %v3376_v58, %v1314_v63  ;;  %v1331_v19 = vmul.f32 %v3377_v46, %v4430_v33 }
  0xed   : > { %v1332_v20 = vmul.f32 %v3378_v47, %v1314_v63  ;;  %v1333_v21 = vmul.f32 %v3379_v61, %v4430_v33  ;;  %v1334_v55 = vmul.f32 %v3380_v62, %v1314_v63  ;;  %v1369_v60 = vcombine.high %v3382_v53, %v3382_v53 }
  0xee   : > { %v1335_v25 = vmul.f32 %v3373_v52, %v1318_v0  ;;  %v1336_v32 = vmul.f32 %v3374_v56, %v1322_v1  ;;  %v1337_v2 = vmul.f32 %v3375_v41, %v1318_v0  ;;  %v1338_v3 = vmul.f32 %v3376_v58, %v1322_v1  ;;  %v3388_v52 = vld [vmem:[%s4352_s14 + $0x1e8] sm:$0xff]  ;;  %v3389_v56 = vld [vmem:[%s4352_s14 + $0x1f0] sm:$0xff]  ;;  %v3390_v41 = vld [vmem:[%s4352_s14 + $0x1f8] sm:$0xff] }
  0xef   : > { %v1339_v7 = vmul.f32 %v3377_v46, %v1318_v0  ;;  %v1340_v4 = vmul.f32 %v3378_v47, %v1322_v1  ;;  %v1341_v26 = vmul.f32 %v3379_v61, %v1318_v0  ;;  %v1342_v27 = vmul.f32 %v3380_v62, %v1322_v1 }
  0xf0   : > { %v1343_v5 = vadd.f32 %v1327_v14, %v1271_v24  ;;  %v1344_v8 = vadd.f32 %v1328_v16, %v1272_v51  ;;  %v1345_v10 = vadd.f32 %v1329_v17, %v1273_v35  ;;  %v1346_v11 = vadd.f32 %v1330_v18, %v1274_v38  ;;  %v3385_v51 = vld [vmem:[%s4352_s14 + $0x1d0] sm:$0xff]  ;;  %v3386_v35 = vld [vmem:[%s4352_s14 + $0x1d8] sm:$0xff]  ;;  %v3387_v38 = vld [vmem:[%s4352_s14 + $0x1e0] sm:$0xff] }
  0xf1   : > { %v1347_v33 = vadd.f32 %v1331_v19, %v1275_v45  ;;  %v1348_v29 = vadd.f32 %v1332_v20, %v1276_v48  ;;  %v1349_v30 = vadd.f32 %v1333_v21, %v1277_v39  ;;  %v1350_v31 = vadd.f32 %v1334_v55, %v1278_v40 }
  0xf2   : > { %v1351_v13 = vadd.f32 %v1335_v25, %v1279_v42  ;;  %v1352_v34 = vadd.f32 %v1336_v32, %v1280_v43  ;;  %v1353_v49 = vadd.f32 %v1337_v2, %v1281_v44  ;;  %v1354_v50 = vadd.f32 %v1338_v3, %v1282_v57 }
  0xf3   : > { %v1355_v23 = vadd.f32 %v1339_v7, %v1283_v59  ;;  %v1356_v24 = vadd.f32 %v1340_v4, %v1284_v54  ;;  %v1382_v45 = vrot.slane %v3382_v53, %v4348_v36  ;;  %v1386_v48 = vrot.slane %v3382_v53, %v4350_v37  ;;  %v3393_v7 = vld [vmem:[%s4352_s14 + $0x200] sm:$0xff]  ;;  %v3394_v4 = vld [vmem:[%s4352_s14 + $0x208] sm:$0xff] }
  0xf4   : > { %v1357_v39 = vadd.f32 %v1341_v26, %v1285_v6  ;;  %v1358_v40 = vadd.f32 %v1342_v27, %v1286_v9  ;;  %v1390_v42 = vrot.slane %v1369_v60, %v4348_v36  ;;  %v1394_v43 = vrot.slane %v1369_v60, %v4350_v37  ;;  %v3395_v26 = vld [vmem:[%s4352_s14 + $0x210] sm:$0xff] }
  0xf5   : > { %v1441_v44 = vcombine.high %v3392_v12, %v3392_v12  ;;  %v1454_v57 = vrot.slane %v3392_v12, %v4348_v36  ;;  %v1458_v58 = vrot.slane %v3392_v12, %v4350_v37  ;;  %v4481_v46 = vcombine.high %v4465_v22, %v4465_v22 }
  0xf6   : > { %v1399_v47 = vmul.f32 %v3383_v28, %v1382_v45  ;;  %v1400_v59 = vmul.f32 %v3384_v15, %v1386_v48  ;;  %v1401_v61 = vmul.f32 %v3385_v51, %v1382_v45  ;;  %v1402_v62 = vmul.f32 %v3386_v35, %v1386_v48 }
  0xf7   : > { %v1403_v63 = vmul.f32 %v3387_v38, %v1382_v45  ;;  %v1404_v0 = vmul.f32 %v3388_v52, %v1386_v48  ;;  %v1405_v1 = vmul.f32 %v3389_v56, %v1382_v45  ;;  %v1406_v53 = vmul.f32 %v3390_v41, %v1386_v48 }
  0xf8   : > { %v1407_v54 = vmul.f32 %v3383_v28, %v1390_v42  ;;  %v1408_v6 = vmul.f32 %v3384_v15, %v1394_v43  ;;  %v1409_v9 = vmul.f32 %v3385_v51, %v1390_v42  ;;  %v1410_v14 = vmul.f32 %v3386_v35, %v1394_v43  ;;  %v3396_v51 = vld [vmem:[%s4352_s14 + $0x218] sm:$0xff]  ;;  %v3398_v35 = vld [vmem:[%s4352_s14 + $0x228] sm:$0xff] }
  0xf9   : > { %v1411_v16 = vmul.f32 %v3387_v38, %v1390_v42  ;;  %v1412_v17 = vmul.f32 %v3388_v52, %v1394_v43  ;;  %v1413_v18 = vmul.f32 %v3389_v56, %v1390_v42  ;;  %v1414_v19 = vmul.f32 %v3390_v41, %v1394_v43 }
  0xfa   : > { %v1415_v20 = vadd.f32 %v1399_v47, %v1343_v5  ;;  %v1416_v21 = vadd.f32 %v1400_v59, %v1344_v8  ;;  %v1417_v55 = vadd.f32 %v1401_v61, %v1345_v10  ;;  %v1418_v60 = vadd.f32 %v1402_v62, %v1346_v11  ;;  %v3397_v5 = vld [vmem:[%s4352_s14 + $0x220] sm:$0xff]  ;;  %v3399_v10 = vld [vmem:[%s4352_s14 + $0x230] sm:$0xff]  ;;  %v3400_v11 = vld [vmem:[%s4352_s14 + $0x238] sm:$0xff] }
  0xfb   : > { %v1419_v25 = vadd.f32 %v1403_v63, %v1347_v33  ;;  %v1420_v32 = vadd.f32 %v1404_v0, %v1348_v29  ;;  %v1421_v2 = vadd.f32 %v1405_v1, %v1349_v30  ;;  %v1422_v3 = vadd.f32 %v1406_v53, %v1350_v31 }
  0xfc   : > { %v1423_v27 = vadd.f32 %v1407_v54, %v1351_v13  ;;  %v1424_v12 = vadd.f32 %v1408_v6, %v1352_v34  ;;  %v1425_v28 = vadd.f32 %v1409_v9, %v1353_v49  ;;  %v1426_v15 = vadd.f32 %v1410_v14, %v1354_v50  ;;  %v3403_v54 = vld [vmem:[%s4352_s14 + $0x240] sm:$0xff]  ;;  %v3404_v6 = vld [vmem:[%s4352_s14 + $0x248] sm:$0xff] }
  0xfd   : > { %v1427_v8 = vadd.f32 %v1411_v16, %v1355_v23  ;;  %v1428_v38 = vadd.f32 %v1412_v17, %v1356_v24  ;;  %v1462_v33 = vrot.slane %v1441_v44, %v4348_v36  ;;  %v1466_v29 = vrot.slane %v1441_v44, %v4350_v37  ;;  %v3412_v9 = vld.sshfl [vmem:[%s4345_s8 + $0x28] sm:$0x33 pattern:$0x75316420]  ;;  %v3405_v17 = vld [vmem:[%s4352_s14 + $0x250] sm:$0xff] }
  0xfe   : > { %v1429_v30 = vadd.f32 %v1413_v18, %v1357_v39  ;;  %v1430_v31 = vadd.f32 %v1414_v19, %v1358_v40  ;;  %v1471_v45 = vmul.f32 %v3393_v7, %v1454_v57  ;;  %v1472_v48 = vmul.f32 %v3394_v4, %v1458_v58  ;;  %v3406_v18 = vld [vmem:[%s4352_s14 + $0x258] sm:$0xff]  ;;  %v3407_v19 = vld [vmem:[%s4352_s14 + $0x260] sm:$0xff] }
  0xff   : > { %v1473_v52 = vmul.f32 %v3395_v26, %v1454_v57  ;;  %v1474_v13 = vmul.f32 %v3396_v51, %v1458_v58  ;;  %v1475_v34 = vmul.f32 %v3397_v5, %v1454_v57  ;;  %v1476_v49 = vmul.f32 %v3398_v35, %v1458_v58 }
 0x100   : > { %v1477_v50 = vmul.f32 %v3399_v10, %v1454_v57  ;;  %v1478_v56 = vmul.f32 %v3400_v11, %v1458_v58  ;;  %v1479_v41 = vmul.f32 %v3393_v7, %v1462_v33  ;;  %v1480_v42 = vmul.f32 %v3394_v4, %v1466_v29 }
 0x101   : > { %v1481_v23 = vmul.f32 %v3395_v26, %v1462_v33  ;;  %v1482_v24 = vmul.f32 %v3396_v51, %v1466_v29  ;;  %v1483_v43 = vmul.f32 %v3397_v5, %v1462_v33  ;;  %v1484_v47 = vmul.f32 %v3398_v35, %v1466_v29 }
 0x102   : > { %v1485_v44 = vmul.f32 %v3399_v10, %v1462_v33  ;;  %v1486_v39 = vmul.f32 %v3400_v11, %v1466_v29  ;;  %v1487_v40 = vadd.f32 %v1471_v45, %v1415_v20  ;;  %v1488_v59 = vadd.f32 %v1472_v48, %v1416_v21 }
 0x103   : > { %v1489_v61 = vadd.f32 %v1473_v52, %v1417_v55  ;;  %v1490_v62 = vadd.f32 %v1474_v13, %v1418_v60  ;;  %v1491_v57 = vadd.f32 %v1475_v34, %v1419_v25  ;;  %v1492_v58 = vadd.f32 %v1476_v49, %v1420_v32  ;;  %v3408_v25 = vld [vmem:[%s4352_s14 + $0x268] sm:$0xff]  ;;  %v3409_v32 = vld [vmem:[%s4352_s14 + $0x270] sm:$0xff] }
 0x104   : > { %v1493_v63 = vadd.f32 %v1477_v50, %v1421_v2  ;;  %v1494_v0 = vadd.f32 %v1478_v56, %v1422_v3  ;;  %v1495_v1 = vadd.f32 %v1479_v41, %v1423_v27  ;;  %v1496_v53 = vadd.f32 %v1480_v42, %v1424_v12  ;;  %v3410_v2 = vld [vmem:[%s4352_s14 + $0x278] sm:$0xff]  ;;  %v3413_v42 = vld [vmem:[%s4352_s14 + $0x280] sm:$0xff] }
 0x105   : > { %v1497_v14 = vadd.f32 %v1481_v23, %v1425_v28  ;;  %v1498_v16 = vadd.f32 %v1482_v24, %v1426_v15  ;;  %v1526_v20 = vrot.slane %v4465_v22, %v4348_v36  ;;  %v1530_v21 = vrot.slane %v4465_v22, %v4350_v37  ;;  %v3414_v23 = vld [vmem:[%s4352_s14 + $0x288] sm:$0xff]  ;;  %v3415_v24 = vld [vmem:[%s4352_s14 + $0x290] sm:$0xff] }
 0x106   : > { %v1499_v55 = vadd.f32 %v1483_v43, %v1427_v8  ;;  %v1500_v60 = vadd.f32 %v1484_v47, %v1428_v38  ;;  %v1534_v3 = vrot.slane %v4481_v46, %v4348_v36  ;;  %v1538_v7 = vrot.slane %v4481_v46, %v4350_v37 }
 0x107   : > { %v1501_v4 = vadd.f32 %v1485_v44, %v1429_v30  ;;  %v1502_v26 = vadd.f32 %v1486_v39, %v1430_v31  ;;  %v1585_v27 = vcombine.high %v3412_v9, %v3412_v9  ;;  %v1598_v12 = vrot.slane %v3412_v9, %v4348_v36 }
 0x108   : > { %v1543_v28 = vmul.f32 %v3403_v54, %v1526_v20  ;;  %v1544_v15 = vmul.f32 %v3404_v6, %v1530_v21  ;;  %v1545_v51 = vmul.f32 %v3405_v17, %v1526_v20  ;;  %v1546_v22 = vmul.f32 %v3406_v18, %v1530_v21 }
 0x109   : > { %v1547_v5 = vmul.f32 %v3407_v19, %v1526_v20  ;;  %v1548_v35 = vmul.f32 %v3408_v25, %v1530_v21  ;;  %v1549_v8 = vmul.f32 %v3409_v32, %v1526_v20  ;;  %v1550_v38 = vmul.f32 %v3410_v2, %v1530_v21 }
 0x10a   : > { %v1551_v10 = vmul.f32 %v3403_v54, %v1534_v3  ;;  %v1552_v11 = vmul.f32 %v3404_v6, %v1538_v7  ;;  %v1553_v33 = vmul.f32 %v3405_v17, %v1534_v3  ;;  %v1554_v46 = vmul.f32 %v3406_v18, %v1538_v7  ;;  %v3417_v54 = vld [vmem:[%s4352_s14 + $0x2a0] sm:$0xff] }
 0x10b   : > { %v1555_v29 = vmul.f32 %v3407_v19, %v1534_v3  ;;  %v1556_v30 = vmul.f32 %v3408_v25, %v1538_v7  ;;  %v1557_v31 = vmul.f32 %v3409_v32, %v1534_v3  ;;  %v1558_v45 = vmul.f32 %v3410_v2, %v1538_v7 }
 0x10c   : > { %v1559_v48 = vadd.f32 %v1543_v28, %v1487_v40  ;;  %v1560_v52 = vadd.f32 %v1544_v15, %v1488_v59  ;;  %v1561_v13 = vadd.f32 %v1545_v51, %v1489_v61  ;;  %v1562_v34 = vadd.f32 %v1546_v22, %v1490_v62  ;;  %v3416_v40 = vld [vmem:[%s4352_s14 + $0x298] sm:$0xff]  ;;  %v3418_v59 = vld [vmem:[%s4352_s14 + $0x2a8] sm:$0xff]  ;;  %v3419_v61 = vld [vmem:[%s4352_s14 + $0x2b0] sm:$0xff] }
 0x10d   : > { %v1563_v49 = vadd.f32 %v1547_v5, %v1491_v57  ;;  %v1564_v50 = vadd.f32 %v1548_v35, %v1492_v58  ;;  %v1565_v56 = vadd.f32 %v1549_v8, %v1493_v63  ;;  %v1566_v41 = vadd.f32 %v1550_v38, %v1494_v0  ;;  %v3420_v62 = vld [vmem:[%s4352_s14 + $0x2b8] sm:$0xff]  ;;  %v3422_v0 = vld.sshfl [vmem:[%s4345_s8 + $0x2c] sm:$0x33 pattern:$0x75316420] }
 0x10e   : > { %v1567_v43 = vadd.f32 %v1551_v10, %v1495_v1  ;;  %v1568_v47 = vadd.f32 %v1552_v11, %v1496_v53  ;;  %v1569_v44 = vadd.f32 %v1553_v33, %v1497_v14  ;;  %v1570_v39 = vadd.f32 %v1554_v46, %v1498_v16  ;;  %v3432_v38 = vld.sshfl [vmem:[%s4345_s8 + $0x30] sm:$0x33 pattern:$0x75316420] }
 0x10f   : > { %v1571_v6 = vadd.f32 %v1555_v29, %v1499_v55  ;;  %v1602_v57 = vrot.slane %v3412_v9, %v4350_v37  ;;  %v1606_v58 = vrot.slane %v1585_v27, %v4348_v36  ;;  %v1610_v63 = vrot.slane %v1585_v27, %v4350_v37  ;;  %v3423_v29 = vld [vmem:[%s4352_s14 + $0x2c0] sm:$0xff] }
 0x110   : > { %v1572_v17 = vadd.f32 %v1556_v30, %v1500_v60  ;;  %v1573_v18 = vadd.f32 %v1557_v31, %v1501_v4  ;;  %v1574_v19 = vadd.f32 %v1558_v45, %v1502_v26  ;;  %v1615_v1 = vmul.f32 %v3413_v42, %v1598_v12  ;;  %v3424_v30 = vld [vmem:[%s4352_s14 + $0x2c8] sm:$0xff]  ;;  %v4527_v31 = vld.sshfl [vmem:[%s4345_s8 + $0x34] sm:$0x33 pattern:$0x75316420] }
 0x111   : > { %v1616_v53 = vmul.f32 %v3414_v23, %v1602_v57  ;;  %v1617_v14 = vmul.f32 %v3415_v24, %v1598_v12  ;;  %v1618_v16 = vmul.f32 %v3416_v40, %v1602_v57  ;;  %v1619_v20 = vmul.f32 %v3417_v54, %v1598_v12 }
 0x112   : > { %v1620_v21 = vmul.f32 %v3418_v59, %v1602_v57  ;;  %v1621_v25 = vmul.f32 %v3419_v61, %v1598_v12  ;;  %v1622_v55 = vmul.f32 %v3420_v62, %v1602_v57  ;;  %v1657_v32 = vcombine.high %v3422_v0, %v3422_v0 }
 0x113   : > { %v1623_v2 = vmul.f32 %v3413_v42, %v1606_v58  ;;  %v1624_v9 = vmul.f32 %v3414_v23, %v1610_v63  ;;  %v1625_v3 = vmul.f32 %v3415_v24, %v1606_v58  ;;  %v1626_v7 = vmul.f32 %v3416_v40, %v1610_v63  ;;  %v3428_v42 = vld [vmem:[%s4352_s14 + $0x2e8] sm:$0xff]  ;;  %v3429_v23 = vld [vmem:[%s4352_s14 + $0x2f0] sm:$0xff]  ;;  %v3430_v24 = vld [vmem:[%s4352_s14 + $0x2f8] sm:$0xff] }
 0x114   : > { %v1627_v28 = vmul.f32 %v3417_v54, %v1606_v58  ;;  %v1628_v27 = vmul.f32 %v3418_v59, %v1610_v63  ;;  %v1629_v60 = vmul.f32 %v3419_v61, %v1606_v58  ;;  %v1630_v4 = vmul.f32 %v3420_v62, %v1610_v63 }
 0x115   : > { %v1631_v26 = vadd.f32 %v1615_v1, %v1559_v48  ;;  %v1632_v15 = vadd.f32 %v1616_v53, %v1560_v52  ;;  %v1633_v51 = vadd.f32 %v1617_v14, %v1561_v13  ;;  %v1634_v22 = vadd.f32 %v1618_v16, %v1562_v34  ;;  %v3425_v52 = vld [vmem:[%s4352_s14 + $0x2d0] sm:$0xff]  ;;  %v3426_v13 = vld [vmem:[%s4352_s14 + $0x2d8] sm:$0xff]  ;;  %v3427_v34 = vld [vmem:[%s4352_s14 + $0x2e0] sm:$0xff] }
 0x116   : > { %v1635_v12 = vadd.f32 %v1619_v20, %v1563_v49  ;;  %v1636_v5 = vadd.f32 %v1620_v21, %v1564_v50  ;;  %v1637_v35 = vadd.f32 %v1621_v25, %v1565_v56  ;;  %v1638_v8 = vadd.f32 %v1622_v55, %v1566_v41 }
 0x117   : > { %v1639_v10 = vadd.f32 %v1623_v2, %v1567_v43  ;;  %v1640_v11 = vadd.f32 %v1624_v9, %v1568_v47  ;;  %v1641_v33 = vadd.f32 %v1625_v3, %v1569_v44  ;;  %v1642_v46 = vadd.f32 %v1626_v7, %v1570_v39 }
 0x118   : > { %v1643_v45 = vadd.f32 %v1627_v28, %v1571_v6  ;;  %v1644_v48 = vadd.f32 %v1628_v27, %v1572_v17  ;;  %v1670_v49 = vrot.slane %v3422_v0, %v4348_v36  ;;  %v1674_v50 = vrot.slane %v3422_v0, %v4350_v37  ;;  %v3433_v28 = vld [vmem:[%s4352_s14 + $0x300] sm:$0xff]  ;;  %v3434_v27 = vld [vmem:[%s4352_s14 + $0x308] sm:$0xff] }
 0x119   : > { %v1645_v56 = vadd.f32 %v1629_v60, %v1573_v18  ;;  %v1646_v41 = vadd.f32 %v1630_v4, %v1574_v19  ;;  %v1678_v43 = vrot.slane %v1657_v32, %v4348_v36  ;;  %v1682_v47 = vrot.slane %v1657_v32, %v4350_v37  ;;  %v3435_v60 = vld [vmem:[%s4352_s14 + $0x310] sm:$0xff] }
 0x11a   : > { %v1729_v44 = vcombine.high %v3432_v38, %v3432_v38  ;;  %v1742_v39 = vrot.slane %v3432_v38, %v4348_v36  ;;  %v1746_v40 = vrot.slane %v3432_v38, %v4350_v37  ;;  %v4543_v54 = vcombine.high %v4527_v31, %v4527_v31 }
 0x11b   : > { %v1687_v59 = vmul.f32 %v3423_v29, %v1670_v49  ;;  %v1688_v6 = vmul.f32 %v3424_v30, %v1674_v50  ;;  %v1689_v61 = vmul.f32 %v3425_v52, %v1670_v49  ;;  %v1690_v62 = vmul.f32 %v3426_v13, %v1674_v50 }
 0x11c   : > { %v1691_v57 = vmul.f32 %v3427_v34, %v1670_v49  ;;  %v1692_v58 = vmul.f32 %v3428_v42, %v1674_v50  ;;  %v1693_v63 = vmul.f32 %v3429_v23, %v1670_v49  ;;  %v1694_v0 = vmul.f32 %v3430_v24, %v1674_v50 }
 0x11d   : > { %v1695_v17 = vmul.f32 %v3423_v29, %v1678_v43  ;;  %v1696_v18 = vmul.f32 %v3424_v30, %v1682_v47  ;;  %v1697_v19 = vmul.f32 %v3425_v52, %v1678_v43  ;;  %v1698_v1 = vmul.f32 %v3426_v13, %v1682_v47  ;;  %v3436_v52 = vld [vmem:[%s4352_s14 + $0x318] sm:$0xff]  ;;  %v3438_v13 = vld [vmem:[%s4352_s14 + $0x328] sm:$0xff] }
 0x11e   : > { %v1699_v53 = vmul.f32 %v3427_v34, %v1678_v43  ;;  %v1700_v14 = vmul.f32 %v3428_v42, %v1682_v47  ;;  %v1701_v16 = vmul.f32 %v3429_v23, %v1678_v43  ;;  %v1702_v20 = vmul.f32 %v3430_v24, %v1682_v47 }
 0x11f   : > { %v1703_v21 = vadd.f32 %v1687_v59, %v1631_v26  ;;  %v1704_v25 = vadd.f32 %v1688_v6, %v1632_v15  ;;  %v1705_v55 = vadd.f32 %v1689_v61, %v1633_v51  ;;  %v1706_v32 = vadd.f32 %v1690_v62, %v1634_v22  ;;  %v3437_v26 = vld [vmem:[%s4352_s14 + $0x320] sm:$0xff]  ;;  %v3439_v51 = vld [vmem:[%s4352_s14 + $0x330] sm:$0xff]  ;;  %v3440_v22 = vld [vmem:[%s4352_s14 + $0x338] sm:$0xff] }
 0x120   : > { %v1707_v2 = vadd.f32 %v1691_v57, %v1635_v12  ;;  %v1708_v9 = vadd.f32 %v1692_v58, %v1636_v5  ;;  %v1709_v3 = vadd.f32 %v1693_v63, %v1637_v35  ;;  %v1710_v7 = vadd.f32 %v1694_v0, %v1638_v8 }
 0x121   : > { %v1711_v4 = vadd.f32 %v1695_v17, %v1639_v10  ;;  %v1712_v38 = vadd.f32 %v1696_v18, %v1640_v11  ;;  %v1713_v29 = vadd.f32 %v1697_v19, %v1641_v33  ;;  %v1714_v30 = vadd.f32 %v1698_v1, %v1642_v46  ;;  %v3443_v17 = vld [vmem:[%s4352_s14 + $0x340] sm:$0xff]  ;;  %v3444_v18 = vld [vmem:[%s4352_s14 + $0x348] sm:$0xff]  ;;  %v3452_v19 = vld.sshfl [vmem:[%s4345_s8 + $0x38] sm:$0x33 pattern:$0x75316420] }
 0x122   : > { %v1715_v15 = vadd.f32 %v1699_v53, %v1643_v45  ;;  %v1716_v34 = vadd.f32 %v1700_v14, %v1644_v48  ;;  %v1750_v12 = vrot.slane %v1729_v44, %v4348_v36  ;;  %v1754_v5 = vrot.slane %v1729_v44, %v4350_v37  ;;  %v3445_v14 = vld [vmem:[%s4352_s14 + $0x350] sm:$0xff] }
 0x123   : > { %v1717_v35 = vadd.f32 %v1701_v16, %v1645_v56  ;;  %v1718_v8 = vadd.f32 %v1702_v20, %v1646_v41  ;;  %v1759_v49 = vmul.f32 %v3433_v28, %v1742_v39  ;;  %v1760_v50 = vmul.f32 %v3434_v27, %v1746_v40  ;;  %v3446_v16 = vld [vmem:[%s4352_s14 + $0x358] sm:$0xff]  ;;  %v3447_v20 = vld [vmem:[%s4352_s14 + $0x360] sm:$0xff] }
 0x124   : > { %v1761_v42 = vmul.f32 %v3435_v60, %v1742_v39  ;;  %v1762_v10 = vmul.f32 %v3436_v52, %v1746_v40  ;;  %v1763_v11 = vmul.f32 %v3437_v26, %v1742_v39  ;;  %v1764_v33 = vmul.f32 %v3438_v13, %v1746_v40 }
 0x125   : > { %v1765_v46 = vmul.f32 %v3439_v51, %v1742_v39  ;;  %v1766_v23 = vmul.f32 %v3440_v22, %v1746_v40  ;;  %v1767_v24 = vmul.f32 %v3433_v28, %v1750_v12  ;;  %v1768_v43 = vmul.f32 %v3434_v27, %v1754_v5 }
 0x126   : > { %v1769_v45 = vmul.f32 %v3435_v60, %v1750_v12  ;;  %v1770_v48 = vmul.f32 %v3436_v52, %v1754_v5  ;;  %v1771_v47 = vmul.f32 %v3437_v26, %v1750_v12  ;;  %v1772_v59 = vmul.f32 %v3438_v13, %v1754_v5 }
 0x127   : > { %v1773_v44 = vmul.f32 %v3439_v51, %v1750_v12  ;;  %v1774_v56 = vmul.f32 %v3440_v22, %v1754_v5  ;;  %v1775_v41 = vadd.f32 %v1759_v49, %v1703_v21  ;;  %v1776_v6 = vadd.f32 %v1760_v50, %v1704_v25 }
 0x128   : > { %v1777_v61 = vadd.f32 %v1761_v42, %v1705_v55  ;;  %v1778_v62 = vadd.f32 %v1762_v10, %v1706_v32  ;;  %v1779_v39 = vadd.f32 %v1763_v11, %v1707_v2  ;;  %v1780_v40 = vadd.f32 %v1764_v33, %v1708_v9  ;;  %v3448_v2 = vld [vmem:[%s4352_s14 + $0x368] sm:$0xff]  ;;  %v3449_v9 = vld [vmem:[%s4352_s14 + $0x370] sm:$0xff] }
 0x129   : > { %v1781_v57 = vadd.f32 %v1765_v46, %v1709_v3  ;;  %v1782_v58 = vadd.f32 %v1766_v23, %v1710_v7  ;;  %v1783_v63 = vadd.f32 %v1767_v24, %v1711_v4  ;;  %v1784_v0 = vadd.f32 %v1768_v43, %v1712_v38  ;;  %v3450_v3 = vld [vmem:[%s4352_s14 + $0x378] sm:$0xff]  ;;  %v3453_v43 = vld [vmem:[%s4352_s14 + $0x380] sm:$0xff] }
 0x12a   : > { %v1785_v1 = vadd.f32 %v1769_v45, %v1713_v29  ;;  %v1786_v53 = vadd.f32 %v1770_v48, %v1714_v30  ;;  %v1814_v21 = vrot.slane %v4527_v31, %v4348_v36  ;;  %v1818_v25 = vrot.slane %v4527_v31, %v4350_v37  ;;  %v3454_v45 = vld [vmem:[%s4352_s14 + $0x388] sm:$0xff]  ;;  %v3455_v48 = vld [vmem:[%s4352_s14 + $0x390] sm:$0xff] }
 0x12b   : > { %v1787_v55 = vadd.f32 %v1771_v47, %v1715_v15  ;;  %v1788_v32 = vadd.f32 %v1772_v59, %v1716_v34  ;;  %v1822_v7 = vrot.slane %v4543_v54, %v4348_v36  ;;  %v1826_v28 = vrot.slane %v4543_v54, %v4350_v37 }
 0x12c   : > { %v1789_v27 = vadd.f32 %v1773_v44, %v1717_v35  ;;  %v1790_v60 = vadd.f32 %v1774_v56, %v1718_v8  ;;  %v1873_v4 = vcombine.high %v3452_v19, %v3452_v19  ;;  %v1886_v38 = vrot.slane %v3452_v19, %v4348_v36 }
 0x12d   : > { %v1831_v29 = vmul.f32 %v3443_v17, %v1814_v21  ;;  %v1832_v30 = vmul.f32 %v3444_v18, %v1818_v25  ;;  %v1833_v52 = vmul.f32 %v3445_v14, %v1814_v21  ;;  %v1834_v31 = vmul.f32 %v3446_v16, %v1818_v25 }
 0x12e   : > { %v1835_v26 = vmul.f32 %v3447_v20, %v1814_v21  ;;  %v1836_v13 = vmul.f32 %v3448_v2, %v1818_v25  ;;  %v1837_v15 = vmul.f32 %v3449_v9, %v1814_v21  ;;  %v1838_v34 = vmul.f32 %v3450_v3, %v1818_v25 }
 0x12f   : > { %v1839_v51 = vmul.f32 %v3443_v17, %v1822_v7  ;;  %v1840_v22 = vmul.f32 %v3444_v18, %v1826_v28  ;;  %v1841_v12 = vmul.f32 %v3445_v14, %v1822_v7  ;;  %v1842_v54 = vmul.f32 %v3446_v16, %v1826_v28  ;;  %v3457_v17 = vld [vmem:[%s4352_s14 + $0x3a0] sm:$0xff] }
 0x130   : > { %v1843_v5 = vmul.f32 %v3447_v20, %v1822_v7  ;;  %v1844_v35 = vmul.f32 %v3448_v2, %v1826_v28  ;;  %v1845_v8 = vmul.f32 %v3449_v9, %v1822_v7  ;;  %v1846_v49 = vmul.f32 %v3450_v3, %v1826_v28 }
 0x131   : > { %v1847_v50 = vadd.f32 %v1831_v29, %v1775_v41  ;;  %v1848_v42 = vadd.f32 %v1832_v30, %v1776_v6  ;;  %v1849_v10 = vadd.f32 %v1833_v52, %v1777_v61  ;;  %v1850_v11 = vadd.f32 %v1834_v31, %v1778_v62  ;;  %v3456_v41 = vld [vmem:[%s4352_s14 + $0x398] sm:$0xff]  ;;  %v3458_v6 = vld [vmem:[%s4352_s14 + $0x3a8] sm:$0xff]  ;;  %v3459_v61 = vld [vmem:[%s4352_s14 + $0x3b0] sm:$0xff] }
 0x132   : > { %v1851_v33 = vadd.f32 %v1835_v26, %v1779_v39  ;;  %v1852_v46 = vadd.f32 %v1836_v13, %v1780_v40  ;;  %v1853_v23 = vadd.f32 %v1837_v15, %v1781_v57  ;;  %v1854_v24 = vadd.f32 %v1838_v34, %v1782_v58  ;;  %v3460_v62 = vld [vmem:[%s4352_s14 + $0x3b8] sm:$0xff]  ;;  %v3472_v34 = vld.sshfl [vmem:[%s4345_s8 + $0x40] sm:$0x33 pattern:$0x75316420] }
 0x133   : > { %v1855_v47 = vadd.f32 %v1839_v51, %v1783_v63  ;;  %v1856_v59 = vadd.f32 %v1840_v22, %v1784_v0  ;;  %v1857_v44 = vadd.f32 %v1841_v12, %v1785_v1  ;;  %v1858_v56 = vadd.f32 %v1842_v54, %v1786_v53  ;;  %v3462_v58 = vld.sshfl [vmem:[%s4345_s8 + $0x3c] sm:$0x33 pattern:$0x75316420] }
 0x134   : > { %v1859_v18 = vadd.f32 %v1843_v5, %v1787_v55  ;;  %v1890_v39 = vrot.slane %v3452_v19, %v4350_v37  ;;  %v1894_v40 = vrot.slane %v1873_v4, %v4348_v36  ;;  %v1898_v57 = vrot.slane %v1873_v4, %v4350_v37  ;;  %v3463_v5 = vld [vmem:[%s4352_s14 + $0x3c0] sm:$0xff] }
 0x135   : > { %v1860_v14 = vadd.f32 %v1844_v35, %v1788_v32  ;;  %v1861_v16 = vadd.f32 %v1845_v8, %v1789_v27  ;;  %v1862_v20 = vadd.f32 %v1846_v49, %v1790_v60  ;;  %v1903_v63 = vmul.f32 %v3453_v43, %v1886_v38  ;;  %v3464_v35 = vld [vmem:[%s4352_s14 + $0x3c8] sm:$0xff]  ;;  %v4589_v8 = vld.sshfl [vmem:[%s4345_s8 + $0x44] sm:$0x33 pattern:$0x75316420] }
 0x136   : > { %v1904_v0 = vmul.f32 %v3454_v45, %v1890_v39  ;;  %v1905_v1 = vmul.f32 %v3455_v48, %v1886_v38  ;;  %v1906_v53 = vmul.f32 %v3456_v41, %v1890_v39  ;;  %v1907_v21 = vmul.f32 %v3457_v17, %v1886_v38 }
 0x137   : > { %v1908_v25 = vmul.f32 %v3458_v6, %v1890_v39  ;;  %v1909_v2 = vmul.f32 %v3459_v61, %v1886_v38  ;;  %v1910_v55 = vmul.f32 %v3460_v62, %v1890_v39  ;;  %v1945_v9 = vcombine.high %v3462_v58, %v3462_v58 }
 0x138   : > { %v1911_v3 = vmul.f32 %v3453_v43, %v1894_v40  ;;  %v1912_v19 = vmul.f32 %v3454_v45, %v1898_v57  ;;  %v1913_v7 = vmul.f32 %v3455_v48, %v1894_v40  ;;  %v1914_v28 = vmul.f32 %v3456_v41, %v1898_v57  ;;  %v3468_v43 = vld [vmem:[%s4352_s14 + $0x3e8] sm:$0xff]  ;;  %v3469_v45 = vld [vmem:[%s4352_s14 + $0x3f0] sm:$0xff]  ;;  %v3470_v48 = vld [vmem:[%s4352_s14 + $0x3f8] sm:$0xff] }
 0x139   : > { %v1915_v29 = vmul.f32 %v3457_v17, %v1894_v40  ;;  %v1916_v4 = vmul.f32 %v3458_v6, %v1898_v57  ;;  %v1917_v32 = vmul.f32 %v3459_v61, %v1894_v40  ;;  %v1918_v27 = vmul.f32 %v3460_v62, %v1898_v57 }
 0x13a   : > { %v1919_v60 = vadd.f32 %v1903_v63, %v1847_v50  ;;  %v1920_v30 = vadd.f32 %v1904_v0, %v1848_v42  ;;  %v1921_v52 = vadd.f32 %v1905_v1, %v1849_v10  ;;  %v1922_v31 = vadd.f32 %v1906_v53, %v1850_v11  ;;  %v3465_v42 = vld [vmem:[%s4352_s14 + $0x3d0] sm:$0xff]  ;;  %v3466_v10 = vld [vmem:[%s4352_s14 + $0x3d8] sm:$0xff]  ;;  %v3467_v11 = vld [vmem:[%s4352_s14 + $0x3e0] sm:$0xff] }
 0x13b   : > { %v1923_v38 = vadd.f32 %v1907_v21, %v1851_v33  ;;  %v1924_v26 = vadd.f32 %v1908_v25, %v1852_v46  ;;  %v1925_v13 = vadd.f32 %v1909_v2, %v1853_v23  ;;  %v1926_v15 = vadd.f32 %v1910_v55, %v1854_v24 }
 0x13c   : > { %v1927_v51 = vadd.f32 %v1911_v3, %v1855_v47  ;;  %v1928_v22 = vadd.f32 %v1912_v19, %v1856_v59  ;;  %v1929_v12 = vadd.f32 %v1913_v7, %v1857_v44  ;;  %v1930_v54 = vadd.f32 %v1914_v28, %v1858_v56 }
 0x13d   : > { %v1931_v49 = vadd.f32 %v1915_v29, %v1859_v18  ;;  %v1932_v50 = vadd.f32 %v1916_v4, %v1860_v14  ;;  %v1958_v33 = vrot.slane %v3462_v58, %v4348_v36  ;;  %v1962_v46 = vrot.slane %v3462_v58, %v4350_v37  ;;  %v3473_v29 = vld [vmem:[%s4352_s14 + $0x400] sm:$0xff]  ;;  %v3474_v4 = vld [vmem:[%s4352_s14 + $0x408] sm:$0xff] }
 0x13e   : > { %v1933_v23 = vadd.f32 %v1917_v32, %v1861_v16  ;;  %v1934_v24 = vadd.f32 %v1918_v27, %v1862_v20  ;;  %v1966_v47 = vrot.slane %v1945_v9, %v4348_v36  ;;  %v1970_v59 = vrot.slane %v1945_v9, %v4350_v37  ;;  %v3475_v32 = vld [vmem:[%s4352_s14 + $0x410] sm:$0xff] }
 0x13f   : > { %v2017_v44 = vcombine.high %v3472_v34, %v3472_v34  ;;  %v2030_v56 = vrot.slane %v3472_v34, %v4348_v36  ;;  %v2034_v41 = vrot.slane %v3472_v34, %v4350_v37  ;;  %v4605_v17 = vcombine.high %v4589_v8, %v4589_v8 }
 0x140   : > { %v1975_v6 = vmul.f32 %v3463_v5, %v1958_v33  ;;  %v1976_v18 = vmul.f32 %v3464_v35, %v1962_v46  ;;  %v1977_v61 = vmul.f32 %v3465_v42, %v1958_v33  ;;  %v1978_v62 = vmul.f32 %v3466_v10, %v1962_v46 }
 0x141   : > { %v1979_v39 = vmul.f32 %v3467_v11, %v1958_v33  ;;  %v1980_v40 = vmul.f32 %v3468_v43, %v1962_v46  ;;  %v1981_v57 = vmul.f32 %v3469_v45, %v1958_v33  ;;  %v1982_v58 = vmul.f32 %v3470_v48, %v1962_v46 }
 0x142   : > { %v1983_v14 = vmul.f32 %v3463_v5, %v1966_v47  ;;  %v1984_v16 = vmul.f32 %v3464_v35, %v1970_v59  ;;  %v1985_v20 = vmul.f32 %v3465_v42, %v1966_v47  ;;  %v1986_v63 = vmul.f32 %v3466_v10, %v1970_v59  ;;  %v3476_v42 = vld [vmem:[%s4352_s14 + $0x418] sm:$0xff]  ;;  %v3478_v10 = vld [vmem:[%s4352_s14 + $0x428] sm:$0xff] }
 0x143   : > { %v1987_v0 = vmul.f32 %v3467_v11, %v1966_v47  ;;  %v1988_v1 = vmul.f32 %v3468_v43, %v1970_v59  ;;  %v1989_v53 = vmul.f32 %v3469_v45, %v1966_v47  ;;  %v1990_v21 = vmul.f32 %v3470_v48, %v1970_v59 }
 0x144   : > { %v1991_v25 = vadd.f32 %v1975_v6, %v1919_v60  ;;  %v1992_v2 = vadd.f32 %v1976_v18, %v1920_v30  ;;  %v1993_v55 = vadd.f32 %v1977_v61, %v1921_v52  ;;  %v1994_v9 = vadd.f32 %v1978_v62, %v1922_v31  ;;  %v3477_v60 = vld [vmem:[%s4352_s14 + $0x420] sm:$0xff]  ;;  %v3479_v52 = vld [vmem:[%s4352_s14 + $0x430] sm:$0xff]  ;;  %v3480_v31 = vld [vmem:[%s4352_s14 + $0x438] sm:$0xff] }
 0x145   : > { %v1995_v3 = vadd.f32 %v1979_v39, %v1923_v38  ;;  %v1996_v19 = vadd.f32 %v1980_v40, %v1924_v26  ;;  %v1997_v7 = vadd.f32 %v1981_v57, %v1925_v13  ;;  %v1998_v28 = vadd.f32 %v1982_v58, %v1926_v15 }
 0x146   : > { %v1999_v27 = vadd.f32 %v1983_v14, %v1927_v51  ;;  %v2000_v34 = vadd.f32 %v1984_v16, %v1928_v22  ;;  %v2001_v5 = vadd.f32 %v1985_v20, %v1929_v12  ;;  %v2002_v35 = vadd.f32 %v1986_v63, %v1930_v54  ;;  %v3483_v14 = vld [vmem:[%s4352_s14 + $0x440] sm:$0xff]  ;;  %v3484_v16 = vld [vmem:[%s4352_s14 + $0x448] sm:$0xff] }
 0x147   : > { %v2003_v30 = vadd.f32 %v1987_v0, %v1931_v49  ;;  %v2004_v11 = vadd.f32 %v1988_v1, %v1932_v50  ;;  %v2038_v38 = vrot.slane %v2017_v44, %v4348_v36  ;;  %v2042_v26 = vrot.slane %v2017_v44, %v4350_v37  ;;  %v3492_v20 = vld.sshfl [vmem:[%s4345_s8 + $0x48] sm:$0x33 pattern:$0x75316420]  ;;  %v3485_v1 = vld [vmem:[%s4352_s14 + $0x450] sm:$0xff] }
 0x148   : > { %v2005_v13 = vadd.f32 %v1989_v53, %v1933_v23  ;;  %v2006_v15 = vadd.f32 %v1990_v21, %v1934_v24  ;;  %v2047_v33 = vmul.f32 %v3473_v29, %v2030_v56  ;;  %v2048_v46 = vmul.f32 %v3474_v4, %v2034_v41  ;;  %v3486_v53 = vld [vmem:[%s4352_s14 + $0x458] sm:$0xff]  ;;  %v3487_v21 = vld [vmem:[%s4352_s14 + $0x460] sm:$0xff] }
 0x149   : > { %v2049_v43 = vmul.f32 %v3475_v32, %v2030_v56  ;;  %v2050_v51 = vmul.f32 %v3476_v42, %v2034_v41  ;;  %v2051_v22 = vmul.f32 %v3477_v60, %v2030_v56  ;;  %v2052_v12 = vmul.f32 %v3478_v10, %v2034_v41 }
 0x14a   : > { %v2053_v54 = vmul.f32 %v3479_v52, %v2030_v56  ;;  %v2054_v45 = vmul.f32 %v3480_v31, %v2034_v41  ;;  %v2055_v48 = vmul.f32 %v3473_v29, %v2038_v38  ;;  %v2056_v47 = vmul.f32 %v3474_v4, %v2042_v26 }
 0x14b   : > { %v2057_v49 = vmul.f32 %v3475_v32, %v2038_v38  ;;  %v2058_v50 = vmul.f32 %v3476_v42, %v2042_v26  ;;  %v2059_v59 = vmul.f32 %v3477_v60, %v2038_v38  ;;  %v2060_v6 = vmul.f32 %v3478_v10, %v2042_v26 }
 0x14c   : > { %v2061_v44 = vmul.f32 %v3479_v52, %v2038_v38  ;;  %v2062_v23 = vmul.f32 %v3480_v31, %v2042_v26  ;;  %v2063_v24 = vadd.f32 %v2047_v33, %v1991_v25  ;;  %v2064_v18 = vadd.f32 %v2048_v46, %v1992_v2 }
 0x14d   : > { %v2065_v61 = vadd.f32 %v2049_v43, %v1993_v55  ;;  %v2066_v62 = vadd.f32 %v2050_v51, %v1994_v9  ;;  %v2067_v56 = vadd.f32 %v2051_v22, %v1995_v3  ;;  %v2068_v41 = vadd.f32 %v2052_v12, %v1996_v19  ;;  %v3488_v3 = vld [vmem:[%s4352_s14 + $0x468] sm:$0xff]  ;;  %v3489_v19 = vld [vmem:[%s4352_s14 + $0x470] sm:$0xff] }
 0x14e   : > { %v2069_v39 = vadd.f32 %v2053_v54, %v1997_v7  ;;  %v2070_v40 = vadd.f32 %v2054_v45, %v1998_v28  ;;  %v2071_v57 = vadd.f32 %v2055_v48, %v1999_v27  ;;  %v2072_v58 = vadd.f32 %v2056_v47, %v2000_v34  ;;  %v3490_v7 = vld [vmem:[%s4352_s14 + $0x478] sm:$0xff]  ;;  %v3493_v47 = vld [vmem:[%s4352_s14 + $0x480] sm:$0xff] }
 0x14f   : > { %v2073_v63 = vadd.f32 %v2057_v49, %v2001_v5  ;;  %v2074_v0 = vadd.f32 %v2058_v50, %v2002_v35  ;;  %v2102_v25 = vrot.slane %v4589_v8, %v4348_v36  ;;  %v2106_v2 = vrot.slane %v4589_v8, %v4350_v37  ;;  %v3494_v49 = vld [vmem:[%s4352_s14 + $0x488] sm:$0xff]  ;;  %v3495_v50 = vld [vmem:[%s4352_s14 + $0x490] sm:$0xff] }
 0x150   : > { %v2075_v55 = vadd.f32 %v2059_v59, %v2003_v30  ;;  %v2076_v9 = vadd.f32 %v2060_v6, %v2004_v11  ;;  %v2110_v28 = vrot.slane %v4605_v17, %v4348_v36  ;;  %v2114_v29 = vrot.slane %v4605_v17, %v4350_v37 }
 0x151   : > { %v2077_v4 = vadd.f32 %v2061_v44, %v2005_v13  ;;  %v2078_v32 = vadd.f32 %v2062_v23, %v2006_v15  ;;  %v2161_v27 = vcombine.high %v3492_v20, %v3492_v20  ;;  %v2174_v34 = vrot.slane %v3492_v20, %v4348_v36 }
 0x152   : > { %v2119_v5 = vmul.f32 %v3483_v14, %v2102_v25  ;;  %v2120_v35 = vmul.f32 %v3484_v16, %v2106_v2  ;;  %v2121_v42 = vmul.f32 %v3485_v1, %v2102_v25  ;;  %v2122_v8 = vmul.f32 %v3486_v53, %v2106_v2 }
 0x153   : > { %v2123_v60 = vmul.f32 %v3487_v21, %v2102_v25  ;;  %v2124_v10 = vmul.f32 %v3488_v3, %v2106_v2  ;;  %v2125_v30 = vmul.f32 %v3489_v19, %v2102_v25  ;;  %v2126_v11 = vmul.f32 %v3490_v7, %v2106_v2 }
 0x154   : > { %v2127_v52 = vmul.f32 %v3483_v14, %v2110_v28  ;;  %v2128_v31 = vmul.f32 %v3484_v16, %v2114_v29  ;;  %v2129_v38 = vmul.f32 %v3485_v1, %v2110_v28  ;;  %v2130_v17 = vmul.f32 %v3486_v53, %v2114_v29  ;;  %v3497_v14 = vld [vmem:[%s4352_s14 + $0x4a0] sm:$0xff] }
 0x155   : > { %v2131_v26 = vmul.f32 %v3487_v21, %v2110_v28  ;;  %v2132_v13 = vmul.f32 %v3488_v3, %v2114_v29  ;;  %v2133_v15 = vmul.f32 %v3489_v19, %v2110_v28  ;;  %v2134_v33 = vmul.f32 %v3490_v7, %v2114_v29 }
 0x156   : > { %v2135_v46 = vadd.f32 %v2119_v5, %v2063_v24  ;;  %v2136_v43 = vadd.f32 %v2120_v35, %v2064_v18  ;;  %v2137_v51 = vadd.f32 %v2121_v42, %v2065_v61  ;;  %v2138_v22 = vadd.f32 %v2122_v8, %v2066_v62  ;;  %v3496_v24 = vld [vmem:[%s4352_s14 + $0x498] sm:$0xff]  ;;  %v3498_v18 = vld [vmem:[%s4352_s14 + $0x4a8] sm:$0xff]  ;;  %v3499_v61 = vld [vmem:[%s4352_s14 + $0x4b0] sm:$0xff] }
 0x157   : > { %v2139_v12 = vadd.f32 %v2123_v60, %v2067_v56  ;;  %v2140_v54 = vadd.f32 %v2124_v10, %v2068_v41  ;;  %v2141_v45 = vadd.f32 %v2125_v30, %v2069_v39  ;;  %v2142_v48 = vadd.f32 %v2126_v11, %v2070_v40  ;;  %v3500_v62 = vld [vmem:[%s4352_s14 + $0x4b8] sm:$0xff]  ;;  %v3502_v40 = vld.sshfl [vmem:[%s4345_s8 + $0x4c] sm:$0x33 pattern:$0x75316420] }
 0x158   : > { %v2143_v59 = vadd.f32 %v2127_v52, %v2071_v57  ;;  %v2144_v6 = vadd.f32 %v2128_v31, %v2072_v58  ;;  %v2145_v44 = vadd.f32 %v2129_v38, %v2073_v63  ;;  %v2146_v23 = vadd.f32 %v2130_v17, %v2074_v0  ;;  %v3512_v11 = vld.sshfl [vmem:[%s4345_s8 + $0x50] sm:$0x33 pattern:$0x75316420] }
 0x159   : > { %v2147_v16 = vadd.f32 %v2131_v26, %v2075_v55  ;;  %v2178_v56 = vrot.slane %v3492_v20, %v4350_v37  ;;  %v2182_v41 = vrot.slane %v2161_v27, %v4348_v36  ;;  %v2186_v39 = vrot.slane %v2161_v27, %v4350_v37  ;;  %v3503_v26 = vld [vmem:[%s4352_s14 + $0x4c0] sm:$0xff] }
 0x15a   : > { %v2148_v1 = vadd.f32 %v2132_v13, %v2076_v9  ;;  %v2149_v53 = vadd.f32 %v2133_v15, %v2077_v4  ;;  %v2150_v21 = vadd.f32 %v2134_v33, %v2078_v32  ;;  %v2191_v57 = vmul.f32 %v3493_v47, %v2174_v34  ;;  %v3504_v13 = vld [vmem:[%s4352_s14 + $0x4c8] sm:$0xff]  ;;  %v4651_v15 = vld.sshfl [vmem:[%s4345_s8 + $0x54] sm:$0x33 pattern:$0x75316420] }
 0x15b   : > { %v2192_v58 = vmul.f32 %v3494_v49, %v2178_v56  ;;  %v2193_v63 = vmul.f32 %v3495_v50, %v2174_v34  ;;  %v2194_v0 = vmul.f32 %v3496_v24, %v2178_v56  ;;  %v2195_v25 = vmul.f32 %v3497_v14, %v2174_v34 }
 0x15c   : > { %v2196_v2 = vmul.f32 %v3498_v18, %v2178_v56  ;;  %v2197_v3 = vmul.f32 %v3499_v61, %v2174_v34  ;;  %v2198_v55 = vmul.f32 %v3500_v62, %v2178_v56  ;;  %v2233_v19 = vcombine.high %v3502_v40, %v3502_v40 }
 0x15d   : > { %v2199_v7 = vmul.f32 %v3493_v47, %v2182_v41  ;;  %v2200_v20 = vmul.f32 %v3494_v49, %v2186_v39  ;;  %v2201_v28 = vmul.f32 %v3495_v50, %v2182_v41  ;;  %v2202_v29 = vmul.f32 %v3496_v24, %v2186_v39  ;;  %v3508_v47 = vld [vmem:[%s4352_s14 + $0x4e8] sm:$0xff]  ;;  %v3509_v49 = vld [vmem:[%s4352_s14 + $0x4f0] sm:$0xff]  ;;  %v3510_v50 = vld [vmem:[%s4352_s14 + $0x4f8] sm:$0xff] }
 0x15e   : > { %v2203_v5 = vmul.f32 %v3497_v14, %v2182_v41  ;;  %v2204_v27 = vmul.f32 %v3498_v18, %v2186_v39  ;;  %v2205_v9 = vmul.f32 %v3499_v61, %v2182_v41  ;;  %v2206_v4 = vmul.f32 %v3500_v62, %v2186_v39 }
 0x15f   : > { %v2207_v32 = vadd.f32 %v2191_v57, %v2135_v46  ;;  %v2208_v35 = vadd.f32 %v2192_v58, %v2136_v43  ;;  %v2209_v42 = vadd.f32 %v2193_v63, %v2137_v51  ;;  %v2210_v8 = vadd.f32 %v2194_v0, %v2138_v22  ;;  %v3505_v43 = vld [vmem:[%s4352_s14 + $0x4d0] sm:$0xff]  ;;  %v3506_v51 = vld [vmem:[%s4352_s14 + $0x4d8] sm:$0xff]  ;;  %v3507_v22 = vld [vmem:[%s4352_s14 + $0x4e0] sm:$0xff] }
 0x160   : > { %v2211_v34 = vadd.f32 %v2195_v25, %v2139_v12  ;;  %v2212_v60 = vadd.f32 %v2196_v2, %v2140_v54  ;;  %v2213_v10 = vadd.f32 %v2197_v3, %v2141_v45  ;;  %v2214_v30 = vadd.f32 %v2198_v55, %v2142_v48 }
 0x161   : > { %v2215_v52 = vadd.f32 %v2199_v7, %v2143_v59  ;;  %v2216_v31 = vadd.f32 %v2200_v20, %v2144_v6  ;;  %v2217_v38 = vadd.f32 %v2201_v28, %v2145_v44  ;;  %v2218_v17 = vadd.f32 %v2202_v29, %v2146_v23 }
 0x162   : > { %v2219_v33 = vadd.f32 %v2203_v5, %v2147_v16  ;;  %v2220_v46 = vadd.f32 %v2204_v27, %v2148_v1  ;;  %v2246_v12 = vrot.slane %v3502_v40, %v4348_v36  ;;  %v2250_v54 = vrot.slane %v3502_v40, %v4350_v37  ;;  %v3513_v5 = vld [vmem:[%s4352_s14 + $0x500] sm:$0xff]  ;;  %v3514_v27 = vld [vmem:[%s4352_s14 + $0x508] sm:$0xff] }
 0x163   : > { %v2221_v45 = vadd.f32 %v2205_v9, %v2149_v53  ;;  %v2222_v48 = vadd.f32 %v2206_v4, %v2150_v21  ;;  %v2254_v59 = vrot.slane %v2233_v19, %v4348_v36  ;;  %v2258_v6 = vrot.slane %v2233_v19, %v4350_v37  ;;  %v3515_v9 = vld [vmem:[%s4352_s14 + $0x510] sm:$0xff] }
 0x164   : > { %v2305_v44 = vcombine.high %v3512_v11, %v3512_v11  ;;  %v2318_v23 = vrot.slane %v3512_v11, %v4348_v36  ;;  %v2322_v24 = vrot.slane %v3512_v11, %v4350_v37  ;;  %v4667_v14 = vcombine.high %v4651_v15, %v4651_v15 }
 0x165   : > { %v2263_v18 = vmul.f32 %v3503_v26, %v2246_v12  ;;  %v2264_v16 = vmul.f32 %v3504_v13, %v2250_v54  ;;  %v2265_v61 = vmul.f32 %v3505_v43, %v2246_v12  ;;  %v2266_v62 = vmul.f32 %v3506_v51, %v2250_v54 }
 0x166   : > { %v2267_v56 = vmul.f32 %v3507_v22, %v2246_v12  ;;  %v2268_v41 = vmul.f32 %v3508_v47, %v2250_v54  ;;  %v2269_v39 = vmul.f32 %v3509_v49, %v2246_v12  ;;  %v2270_v40 = vmul.f32 %v3510_v50, %v2250_v54 }
 0x167   : > { %v2271_v1 = vmul.f32 %v3503_v26, %v2254_v59  ;;  %v2272_v53 = vmul.f32 %v3504_v13, %v2258_v6  ;;  %v2273_v21 = vmul.f32 %v3505_v43, %v2254_v59  ;;  %v2274_v57 = vmul.f32 %v3506_v51, %v2258_v6  ;;  %v3516_v43 = vld [vmem:[%s4352_s14 + $0x518] sm:$0xff]  ;;  %v3518_v51 = vld [vmem:[%s4352_s14 + $0x528] sm:$0xff] }
 0x168   : > { %v2275_v58 = vmul.f32 %v3507_v22, %v2254_v59  ;;  %v2276_v63 = vmul.f32 %v3508_v47, %v2258_v6  ;;  %v2277_v0 = vmul.f32 %v3509_v49, %v2254_v59  ;;  %v2278_v25 = vmul.f32 %v3510_v50, %v2258_v6 }
 0x169   : > { %v2279_v2 = vadd.f32 %v2263_v18, %v2207_v32  ;;  %v2280_v3 = vadd.f32 %v2264_v16, %v2208_v35  ;;  %v2281_v55 = vadd.f32 %v2265_v61, %v2209_v42  ;;  %v2282_v19 = vadd.f32 %v2266_v62, %v2210_v8  ;;  %v3517_v32 = vld [vmem:[%s4352_s14 + $0x520] sm:$0xff]  ;;  %v3519_v42 = vld [vmem:[%s4352_s14 + $0x530] sm:$0xff]  ;;  %v3520_v8 = vld [vmem:[%s4352_s14 + $0x538] sm:$0xff] }
 0x16a   : > { %v2283_v7 = vadd.f32 %v2267_v56, %v2211_v34  ;;  %v2284_v20 = vadd.f32 %v2268_v41, %v2212_v60  ;;  %v2285_v28 = vadd.f32 %v2269_v39, %v2213_v10  ;;  %v2286_v29 = vadd.f32 %v2270_v40, %v2214_v30 }
 0x16b   : > { %v2287_v4 = vadd.f32 %v2271_v1, %v2215_v52  ;;  %v2288_v11 = vadd.f32 %v2272_v53, %v2216_v31  ;;  %v2289_v26 = vadd.f32 %v2273_v21, %v2217_v38  ;;  %v2290_v13 = vadd.f32 %v2274_v57, %v2218_v17  ;;  %v3523_v1 = vld [vmem:[%s4352_s14 + $0x540] sm:$0xff]  ;;  %v3524_v53 = vld [vmem:[%s4352_s14 + $0x548] sm:$0xff]  ;;  %v3532_v21 = vld.sshfl [vmem:[%s4345_s8 + $0x58] sm:$0x33 pattern:$0x75316420] }
 0x16c   : > { %v2291_v35 = vadd.f32 %v2275_v58, %v2219_v33  ;;  %v2292_v22 = vadd.f32 %v2276_v63, %v2220_v46  ;;  %v2326_v34 = vrot.slane %v2305_v44, %v4348_v36  ;;  %v2330_v60 = vrot.slane %v2305_v44, %v4350_v37  ;;  %v3525_v63 = vld [vmem:[%s4352_s14 + $0x550] sm:$0xff] }
 0x16d   : > { %v2293_v10 = vadd.f32 %v2277_v0, %v2221_v45  ;;  %v2294_v30 = vadd.f32 %v2278_v25, %v2222_v48  ;;  %v2335_v12 = vmul.f32 %v3513_v5, %v2318_v23  ;;  %v2336_v54 = vmul.f32 %v3514_v27, %v2322_v24  ;;  %v3526_v0 = vld [vmem:[%s4352_s14 + $0x558] sm:$0xff]  ;;  %v3527_v25 = vld [vmem:[%s4352_s14 + $0x560] sm:$0xff] }
 0x16e   : > { %v2337_v47 = vmul.f32 %v3515_v9, %v2318_v23  ;;  %v2338_v52 = vmul.f32 %v3516_v43, %v2322_v24  ;;  %v2339_v31 = vmul.f32 %v3517_v32, %v2318_v23  ;;  %v2340_v38 = vmul.f32 %v3518_v51, %v2322_v24 }
 0x16f   : > { %v2341_v17 = vmul.f32 %v3519_v42, %v2318_v23  ;;  %v2342_v49 = vmul.f32 %v3520_v8, %v2322_v24  ;;  %v2343_v50 = vmul.f32 %v3513_v5, %v2326_v34  ;;  %v2344_v59 = vmul.f32 %v3514_v27, %v2330_v60 }
 0x170   : > { %v2345_v33 = vmul.f32 %v3515_v9, %v2326_v34  ;;  %v2346_v46 = vmul.f32 %v3516_v43, %v2330_v60  ;;  %v2347_v6 = vmul.f32 %v3517_v32, %v2326_v34  ;;  %v2348_v18 = vmul.f32 %v3518_v51, %v2330_v60 }
 0x171   : > { %v2349_v44 = vmul.f32 %v3519_v42, %v2326_v34  ;;  %v2350_v45 = vmul.f32 %v3520_v8, %v2330_v60  ;;  %v2351_v48 = vadd.f32 %v2335_v12, %v2279_v2  ;;  %v2352_v16 = vadd.f32 %v2336_v54, %v2280_v3 }
 0x172   : > { %v2353_v61 = vadd.f32 %v2337_v47, %v2281_v55  ;;  %v2354_v62 = vadd.f32 %v2338_v52, %v2282_v19  ;;  %v2355_v23 = vadd.f32 %v2339_v31, %v2283_v7  ;;  %v2356_v24 = vadd.f32 %v2340_v38, %v2284_v20  ;;  %v3528_v7 = vld [vmem:[%s4352_s14 + $0x568] sm:$0xff]  ;;  %v3529_v20 = vld [vmem:[%s4352_s14 + $0x570] sm:$0xff] }
 0x173   : > { %v2357_v56 = vadd.f32 %v2341_v17, %v2285_v28  ;;  %v2358_v41 = vadd.f32 %v2342_v49, %v2286_v29  ;;  %v2359_v39 = vadd.f32 %v2343_v50, %v2287_v4  ;;  %v2360_v40 = vadd.f32 %v2344_v59, %v2288_v11  ;;  %v3530_v28 = vld [vmem:[%s4352_s14 + $0x578] sm:$0xff]  ;;  %v3533_v59 = vld [vmem:[%s4352_s14 + $0x580] sm:$0xff] }
 0x174   : > { %v2361_v57 = vadd.f32 %v2345_v33, %v2289_v26  ;;  %v2362_v58 = vadd.f32 %v2346_v46, %v2290_v13  ;;  %v2390_v2 = vrot.slane %v4651_v15, %v4348_v36  ;;  %v2394_v3 = vrot.slane %v4651_v15, %v4350_v37  ;;  %v3534_v33 = vld [vmem:[%s4352_s14 + $0x588] sm:$0xff]  ;;  %v3535_v46 = vld [vmem:[%s4352_s14 + $0x590] sm:$0xff] }
 0x175   : > { %v2363_v55 = vadd.f32 %v2347_v6, %v2291_v35  ;;  %v2364_v19 = vadd.f32 %v2348_v18, %v2292_v22  ;;  %v2398_v29 = vrot.slane %v4667_v14, %v4348_v36  ;;  %v2402_v5 = vrot.slane %v4667_v14, %v4350_v37 }
 0x176   : > { %v2365_v27 = vadd.f32 %v2349_v44, %v2293_v10  ;;  %v2366_v9 = vadd.f32 %v2350_v45, %v2294_v30  ;;  %v2449_v4 = vcombine.high %v3532_v21, %v3532_v21  ;;  %v2462_v11 = vrot.slane %v3532_v21, %v4348_v36 }
 0x177   : > { %v2407_v26 = vmul.f32 %v3523_v1, %v2390_v2  ;;  %v2408_v13 = vmul.f32 %v3524_v53, %v2394_v3  ;;  %v2409_v43 = vmul.f32 %v3525_v63, %v2390_v2  ;;  %v2410_v15 = vmul.f32 %v3526_v0, %v2394_v3 }
 0x178   : > { %v2411_v32 = vmul.f32 %v3527_v25, %v2390_v2  ;;  %v2412_v51 = vmul.f32 %v3528_v7, %v2394_v3  ;;  %v2413_v35 = vmul.f32 %v3529_v20, %v2390_v2  ;;  %v2414_v22 = vmul.f32 %v3530_v28, %v2394_v3 }
 0x179   : > { %v2415_v42 = vmul.f32 %v3523_v1, %v2398_v29  ;;  %v2416_v8 = vmul.f32 %v3524_v53, %v2402_v5  ;;  %v2417_v34 = vmul.f32 %v3525_v63, %v2398_v29  ;;  %v2418_v14 = vmul.f32 %v3526_v0, %v2402_v5  ;;  %v3537_v1 = vld [vmem:[%s4352_s14 + $0x5a0] sm:$0xff] }
 0x17a   : > { %v2419_v60 = vmul.f32 %v3527_v25, %v2398_v29  ;;  %v2420_v10 = vmul.f32 %v3528_v7, %v2402_v5  ;;  %v2421_v30 = vmul.f32 %v3529_v20, %v2398_v29  ;;  %v2422_v12 = vmul.f32 %v3530_v28, %v2402_v5 }
 0x17b   : > { %v2423_v54 = vadd.f32 %v2407_v26, %v2351_v48  ;;  %v2424_v47 = vadd.f32 %v2408_v13, %v2352_v16  ;;  %v2425_v52 = vadd.f32 %v2409_v43, %v2353_v61  ;;  %v2426_v31 = vadd.f32 %v2410_v15, %v2354_v62  ;;  %v3536_v48 = vld [vmem:[%s4352_s14 + $0x598] sm:$0xff]  ;;  %v3538_v16 = vld [vmem:[%s4352_s14 + $0x5a8] sm:$0xff]  ;;  %v3539_v61 = vld [vmem:[%s4352_s14 + $0x5b0] sm:$0xff] }
 0x17c   : > { %v2427_v38 = vadd.f32 %v2411_v32, %v2355_v23  ;;  %v2428_v17 = vadd.f32 %v2412_v51, %v2356_v24  ;;  %v2429_v49 = vadd.f32 %v2413_v35, %v2357_v56  ;;  %v2430_v50 = vadd.f32 %v2414_v22, %v2358_v41  ;;  %v3540_v62 = vld [vmem:[%s4352_s14 + $0x5b8] sm:$0xff]  ;;  %v3552_v22 = vld.sshfl [vmem:[%s4345_s8 + $0x60] sm:$0x33 pattern:$0x75316420] }
 0x17d   : > { %v2431_v6 = vadd.f32 %v2415_v42, %v2359_v39  ;;  %v2432_v18 = vadd.f32 %v2416_v8, %v2360_v40  ;;  %v2433_v44 = vadd.f32 %v2417_v34, %v2361_v57  ;;  %v2434_v45 = vadd.f32 %v2418_v14, %v2362_v58  ;;  %v3542_v41 = vld.sshfl [vmem:[%s4345_s8 + $0x5c] sm:$0x33 pattern:$0x75316420] }
 0x17e   : > { %v2435_v53 = vadd.f32 %v2419_v60, %v2363_v55  ;;  %v2466_v23 = vrot.slane %v3532_v21, %v4350_v37  ;;  %v2470_v24 = vrot.slane %v2449_v4, %v4348_v36  ;;  %v2474_v56 = vrot.slane %v2449_v4, %v4350_v37  ;;  %v3543_v60 = vld [vmem:[%s4352_s14 + $0x5c0] sm:$0xff] }
 0x17f   : > { %v2436_v63 = vadd.f32 %v2420_v10, %v2364_v19  ;;  %v2437_v0 = vadd.f32 %v2421_v30, %v2365_v27  ;;  %v2438_v25 = vadd.f32 %v2422_v12, %v2366_v9  ;;  %v2479_v39 = vmul.f32 %v3533_v59, %v2462_v11  ;;  %v3544_v10 = vld [vmem:[%s4352_s14 + $0x5c8] sm:$0xff]  ;;  %v4713_v30 = vld.sshfl [vmem:[%s4345_s8 + $0x64] sm:$0x33 pattern:$0x75316420] }
 0x180   : > { %v2480_v40 = vmul.f32 %v3534_v33, %v2466_v23  ;;  %v2481_v57 = vmul.f32 %v3535_v46, %v2462_v11  ;;  %v2482_v58 = vmul.f32 %v3536_v48, %v2466_v23  ;;  %v2483_v2 = vmul.f32 %v3537_v1, %v2462_v11 }
 0x181   : > { %v2484_v3 = vmul.f32 %v3538_v16, %v2466_v23  ;;  %v2485_v7 = vmul.f32 %v3539_v61, %v2462_v11  ;;  %v2486_v55 = vmul.f32 %v3540_v62, %v2466_v23  ;;  %v2521_v20 = vcombine.high %v3542_v41, %v3542_v41 }
 0x182   : > { %v2487_v28 = vmul.f32 %v3533_v59, %v2470_v24  ;;  %v2488_v21 = vmul.f32 %v3534_v33, %v2474_v56  ;;  %v2489_v29 = vmul.f32 %v3535_v46, %v2470_v24  ;;  %v2490_v5 = vmul.f32 %v3536_v48, %v2474_v56  ;;  %v3548_v59 = vld [vmem:[%s4352_s14 + $0x5e8] sm:$0xff]  ;;  %v3549_v33 = vld [vmem:[%s4352_s14 + $0x5f0] sm:$0xff]  ;;  %v3550_v46 = vld [vmem:[%s4352_s14 + $0x5f8] sm:$0xff] }
 0x183   : > { %v2491_v26 = vmul.f32 %v3537_v1, %v2470_v24  ;;  %v2492_v4 = vmul.f32 %v3538_v16, %v2474_v56  ;;  %v2493_v19 = vmul.f32 %v3539_v61, %v2470_v24  ;;  %v2494_v27 = vmul.f32 %v3540_v62, %v2474_v56 }
 0x184   : > { %v2495_v9 = vadd.f32 %v2479_v39, %v2423_v54  ;;  %v2496_v13 = vadd.f32 %v2480_v40, %v2424_v47  ;;  %v2497_v43 = vadd.f32 %v2481_v57, %v2425_v52  ;;  %v2498_v15 = vadd.f32 %v2482_v58, %v2426_v31  ;;  %v3545_v47 = vld [vmem:[%s4352_s14 + $0x5d0] sm:$0xff]  ;;  %v3546_v52 = vld [vmem:[%s4352_s14 + $0x5d8] sm:$0xff]  ;;  %v3547_v31 = vld [vmem:[%s4352_s14 + $0x5e0] sm:$0xff] }
 0x185   : > { %v2499_v11 = vadd.f32 %v2483_v2, %v2427_v38  ;;  %v2500_v32 = vadd.f32 %v2484_v3, %v2428_v17  ;;  %v2501_v51 = vadd.f32 %v2485_v7, %v2429_v49  ;;  %v2502_v35 = vadd.f32 %v2486_v55, %v2430_v50 }
 0x186   : > { %v2503_v42 = vadd.f32 %v2487_v28, %v2431_v6  ;;  %v2504_v8 = vadd.f32 %v2488_v21, %v2432_v18  ;;  %v2505_v34 = vadd.f32 %v2489_v29, %v2433_v44  ;;  %v2506_v14 = vadd.f32 %v2490_v5, %v2434_v45 }
 0x187   : > { %v2507_v12 = vadd.f32 %v2491_v26, %v2435_v53  ;;  %v2508_v54 = vadd.f32 %v2492_v4, %v2436_v63  ;;  %v2534_v38 = vrot.slane %v3542_v41, %v4348_v36  ;;  %v2538_v17 = vrot.slane %v3542_v41, %v4350_v37  ;;  %v3553_v26 = vld [vmem:[%s4352_s14 + $0x600] sm:$0xff]  ;;  %v3554_v4 = vld [vmem:[%s4352_s14 + $0x608] sm:$0xff] }
 0x188   : > { %v2509_v49 = vadd.f32 %v2493_v19, %v2437_v0  ;;  %v2510_v50 = vadd.f32 %v2494_v27, %v2438_v25  ;;  %v2542_v6 = vrot.slane %v2521_v20, %v4348_v36  ;;  %v2546_v18 = vrot.slane %v2521_v20, %v4350_v37  ;;  %v3555_v19 = vld [vmem:[%s4352_s14 + $0x610] sm:$0xff] }
 0x189   : > { %v2593_v44 = vcombine.high %v3552_v22, %v3552_v22  ;;  %v2606_v45 = vrot.slane %v3552_v22, %v4348_v36  ;;  %v2610_v48 = vrot.slane %v3552_v22, %v4350_v37  ;;  %v4729_v1 = vcombine.high %v4713_v30, %v4713_v30 }
 0x18a   : > { %v2551_v16 = vmul.f32 %v3543_v60, %v2534_v38  ;;  %v2552_v53 = vmul.f32 %v3544_v10, %v2538_v17  ;;  %v2553_v61 = vmul.f32 %v3545_v47, %v2534_v38  ;;  %v2554_v62 = vmul.f32 %v3546_v52, %v2538_v17 }
 0x18b   : > { %v2555_v23 = vmul.f32 %v3547_v31, %v2534_v38  ;;  %v2556_v24 = vmul.f32 %v3548_v59, %v2538_v17  ;;  %v2557_v56 = vmul.f32 %v3549_v33, %v2534_v38  ;;  %v2558_v41 = vmul.f32 %v3550_v46, %v2538_v17 }
 0x18c   : > { %v2559_v63 = vmul.f32 %v3543_v60, %v2542_v6  ;;  %v2560_v0 = vmul.f32 %v3544_v10, %v2546_v18  ;;  %v2561_v25 = vmul.f32 %v3545_v47, %v2542_v6  ;;  %v2562_v39 = vmul.f32 %v3546_v52, %v2546_v18  ;;  %v3556_v47 = vld [vmem:[%s4352_s14 + $0x618] sm:$0xff]  ;;  %v3558_v52 = vld [vmem:[%s4352_s14 + $0x628] sm:$0xff] }
 0x18d   : > { %v2563_v40 = vmul.f32 %v3547_v31, %v2542_v6  ;;  %v2564_v57 = vmul.f32 %v3548_v59, %v2546_v18  ;;  %v2565_v58 = vmul.f32 %v3549_v33, %v2542_v6  ;;  %v2566_v2 = vmul.f32 %v3550_v46, %v2546_v18 }
 0x18e   : > { %v2567_v3 = vadd.f32 %v2551_v16, %v2495_v9  ;;  %v2568_v7 = vadd.f32 %v2552_v53, %v2496_v13  ;;  %v2569_v55 = vadd.f32 %v2553_v61, %v2497_v43  ;;  %v2570_v20 = vadd.f32 %v2554_v62, %v2498_v15  ;;  %v3557_v9 = vld [vmem:[%s4352_s14 + $0x620] sm:$0xff]  ;;  %v3559_v43 = vld [vmem:[%s4352_s14 + $0x630] sm:$0xff]  ;;  %v3560_v15 = vld [vmem:[%s4352_s14 + $0x638] sm:$0xff] }
 0x18f   : > { %v2571_v28 = vadd.f32 %v2555_v23, %v2499_v11  ;;  %v2572_v21 = vadd.f32 %v2556_v24, %v2500_v32  ;;  %v2573_v29 = vadd.f32 %v2557_v56, %v2501_v51  ;;  %v2574_v5 = vadd.f32 %v2558_v41, %v2502_v35 }
 0x190   : > { %v2575_v27 = vadd.f32 %v2559_v63, %v2503_v42  ;;  %v2576_v22 = vadd.f32 %v2560_v0, %v2504_v8  ;;  %v2577_v60 = vadd.f32 %v2561_v25, %v2505_v34  ;;  %v2578_v10 = vadd.f32 %v2562_v39, %v2506_v14  ;;  %v3563_v63 = vld [vmem:[%s4352_s14 + $0x640] sm:$0xff]  ;;  %v3564_v0 = vld [vmem:[%s4352_s14 + $0x648] sm:$0xff] }
 0x191   : > { %v2579_v13 = vadd.f32 %v2563_v40, %v2507_v12  ;;  %v2580_v31 = vadd.f32 %v2564_v57, %v2508_v54  ;;  %v2614_v11 = vrot.slane %v2593_v44, %v4348_v36  ;;  %v2618_v32 = vrot.slane %v2593_v44, %v4350_v37  ;;  %v3572_v25 = vld.sshfl [vmem:[%s4345_s8 + $0x68] sm:$0x33 pattern:$0x75316420]  ;;  %v3565_v57 = vld [vmem:[%s4352_s14 + $0x650] sm:$0xff] }
 0x192   : > { %v2581_v51 = vadd.f32 %v2565_v58, %v2509_v49  ;;  %v2582_v35 = vadd.f32 %v2566_v2, %v2510_v50  ;;  %v2623_v38 = vmul.f32 %v3553_v26, %v2606_v45  ;;  %v2624_v17 = vmul.f32 %v3554_v4, %v2610_v48  ;;  %v3566_v58 = vld [vmem:[%s4352_s14 + $0x658] sm:$0xff]  ;;  %v3567_v2 = vld [vmem:[%s4352_s14 + $0x660] sm:$0xff] }
 0x193   : > { %v2625_v59 = vmul.f32 %v3555_v19, %v2606_v45  ;;  %v2626_v42 = vmul.f32 %v3556_v47, %v2610_v48  ;;  %v2627_v8 = vmul.f32 %v3557_v9, %v2606_v45  ;;  %v2628_v34 = vmul.f32 %v3558_v52, %v2610_v48 }
 0x194   : > { %v2629_v14 = vmul.f32 %v3559_v43, %v2606_v45  ;;  %v2630_v33 = vmul.f32 %v3560_v15, %v2610_v48  ;;  %v2631_v46 = vmul.f32 %v3553_v26, %v2614_v11  ;;  %v2632_v6 = vmul.f32 %v3554_v4, %v2618_v32 }
 0x195   : > { %v2633_v12 = vmul.f32 %v3555_v19, %v2614_v11  ;;  %v2634_v54 = vmul.f32 %v3556_v47, %v2618_v32  ;;  %v2635_v18 = vmul.f32 %v3557_v9, %v2614_v11  ;;  %v2636_v16 = vmul.f32 %v3558_v52, %v2618_v32 }
 0x196   : > { %v2637_v44 = vmul.f32 %v3559_v43, %v2614_v11  ;;  %v2638_v49 = vmul.f32 %v3560_v15, %v2618_v32  ;;  %v2639_v50 = vadd.f32 %v2623_v38, %v2567_v3  ;;  %v2640_v53 = vadd.f32 %v2624_v17, %v2568_v7 }
 0x197   : > { %v2641_v61 = vadd.f32 %v2625_v59, %v2569_v55  ;;  %v2642_v62 = vadd.f32 %v2626_v42, %v2570_v20  ;;  %v2643_v45 = vadd.f32 %v2627_v8, %v2571_v28  ;;  %v2644_v48 = vadd.f32 %v2628_v34, %v2572_v21  ;;  %v3568_v28 = vld [vmem:[%s4352_s14 + $0x668] sm:$0xff]  ;;  %v3569_v21 = vld [vmem:[%s4352_s14 + $0x670] sm:$0xff] }
 0x198   : > { %v2645_v23 = vadd.f32 %v2629_v14, %v2573_v29  ;;  %v2646_v24 = vadd.f32 %v2630_v33, %v2574_v5  ;;  %v2647_v56 = vadd.f32 %v2631_v46, %v2575_v27  ;;  %v2648_v41 = vadd.f32 %v2632_v6, %v2576_v22  ;;  %v3570_v29 = vld [vmem:[%s4352_s14 + $0x678] sm:$0xff]  ;;  %v3573_v6 = vld [vmem:[%s4352_s14 + $0x680] sm:$0xff] }
 0x199   : > { %v2649_v39 = vadd.f32 %v2633_v12, %v2577_v60  ;;  %v2650_v40 = vadd.f32 %v2634_v54, %v2578_v10  ;;  %v2678_v3 = vrot.slane %v4713_v30, %v4348_v36  ;;  %v2682_v7 = vrot.slane %v4713_v30, %v4350_v37  ;;  %v3574_v12 = vld [vmem:[%s4352_s14 + $0x688] sm:$0xff]  ;;  %v3575_v54 = vld [vmem:[%s4352_s14 + $0x690] sm:$0xff] }
 0x19a   : > { %v2651_v55 = vadd.f32 %v2635_v18, %v2579_v13  ;;  %v2652_v20 = vadd.f32 %v2636_v16, %v2580_v31  ;;  %v2686_v5 = vrot.slane %v4729_v1, %v4348_v36  ;;  %v2690_v26 = vrot.slane %v4729_v1, %v4350_v37 }
 0x19b   : > { %v2653_v4 = vadd.f32 %v2637_v44, %v2581_v51  ;;  %v2654_v19 = vadd.f32 %v2638_v49, %v2582_v35  ;;  %v2737_v27 = vcombine.high %v3572_v25, %v3572_v25  ;;  %v2750_v22 = vrot.slane %v3572_v25, %v4348_v36 }
 0x19c   : > { %v2695_v60 = vmul.f32 %v3563_v63, %v2678_v3  ;;  %v2696_v10 = vmul.f32 %v3564_v0, %v2682_v7  ;;  %v2697_v47 = vmul.f32 %v3565_v57, %v2678_v3  ;;  %v2698_v30 = vmul.f32 %v3566_v58, %v2682_v7 }
 0x19d   : > { %v2699_v9 = vmul.f32 %v3567_v2, %v2678_v3  ;;  %v2700_v52 = vmul.f32 %v3568_v28, %v2682_v7  ;;  %v2701_v13 = vmul.f32 %v3569_v21, %v2678_v3  ;;  %v2702_v31 = vmul.f32 %v3570_v29, %v2682_v7 }
 0x19e   : > { %v2703_v43 = vmul.f32 %v3563_v63, %v2686_v5  ;;  %v2704_v15 = vmul.f32 %v3564_v0, %v2690_v26  ;;  %v2705_v11 = vmul.f32 %v3565_v57, %v2686_v5  ;;  %v2706_v1 = vmul.f32 %v3566_v58, %v2690_v26  ;;  %v3577_v63 = vld [vmem:[%s4352_s14 + $0x6a0] sm:$0xff] }
 0x19f   : > { %v2707_v32 = vmul.f32 %v3567_v2, %v2686_v5  ;;  %v2708_v51 = vmul.f32 %v3568_v28, %v2690_v26  ;;  %v2709_v35 = vmul.f32 %v3569_v21, %v2686_v5  ;;  %v2710_v38 = vmul.f32 %v3570_v29, %v2690_v26 }
 0x1a0   : > { %v2711_v17 = vadd.f32 %v2695_v60, %v2639_v50  ;;  %v2712_v59 = vadd.f32 %v2696_v10, %v2640_v53  ;;  %v2713_v42 = vadd.f32 %v2697_v47, %v2641_v61  ;;  %v2714_v8 = vadd.f32 %v2698_v30, %v2642_v62  ;;  %v3576_v50 = vld [vmem:[%s4352_s14 + $0x698] sm:$0xff]  ;;  %v3578_v53 = vld [vmem:[%s4352_s14 + $0x6a8] sm:$0xff]  ;;  %v3579_v61 = vld [vmem:[%s4352_s14 + $0x6b0] sm:$0xff] }
 0x1a1   : > { %v2715_v34 = vadd.f32 %v2699_v9, %v2643_v45  ;;  %v2716_v14 = vadd.f32 %v2700_v52, %v2644_v48  ;;  %v2717_v33 = vadd.f32 %v2701_v13, %v2645_v23  ;;  %v2718_v46 = vadd.f32 %v2702_v31, %v2646_v24  ;;  %v3580_v62 = vld [vmem:[%s4352_s14 + $0x6b8] sm:$0xff]  ;;  %v3582_v24 = vld.sshfl [vmem:[%s4345_s8 + $0x6c] sm:$0x33 pattern:$0x75316420] }
 0x1a2   : > { %v2719_v18 = vadd.f32 %v2703_v43, %v2647_v56  ;;  %v2720_v16 = vadd.f32 %v2704_v15, %v2648_v41  ;;  %v2721_v44 = vadd.f32 %v2705_v11, %v2649_v39  ;;  %v2722_v49 = vadd.f32 %v2706_v1, %v2650_v40  ;;  %v3592_v31 = vld.sshfl [vmem:[%s4345_s8 + $0x70] sm:$0x33 pattern:$0x75316420] }
 0x1a3   : > { %v2723_v0 = vadd.f32 %v2707_v32, %v2651_v55  ;;  %v2754_v45 = vrot.slane %v3572_v25, %v4350_v37  ;;  %v2758_v48 = vrot.slane %v2737_v27, %v4348_v36  ;;  %v2762_v23 = vrot.slane %v2737_v27, %v4350_v37  ;;  %v3583_v32 = vld [vmem:[%s4352_s14 + $0x6c0] sm:$0xff] }
 0x1a4   : > { %v2724_v57 = vadd.f32 %v2708_v51, %v2652_v20  ;;  %v2725_v58 = vadd.f32 %v2709_v35, %v2653_v4  ;;  %v2726_v2 = vadd.f32 %v2710_v38, %v2654_v19  ;;  %v2767_v56 = vmul.f32 %v3573_v6, %v2750_v22  ;;  %v3584_v51 = vld [vmem:[%s4352_s14 + $0x6c8] sm:$0xff]  ;;  %v4775_v35 = vld.sshfl [vmem:[%s4345_s8 + $0x74] sm:$0x33 pattern:$0x75316420] }
 0x1a5   : > { %v2768_v41 = vmul.f32 %v3574_v12, %v2754_v45  ;;  %v2769_v39 = vmul.f32 %v3575_v54, %v2750_v22  ;;  %v2770_v40 = vmul.f32 %v3576_v50, %v2754_v45  ;;  %v2771_v3 = vmul.f32 %v3577_v63, %v2750_v22 }
 0x1a6   : > { %v2772_v7 = vmul.f32 %v3578_v53, %v2754_v45  ;;  %v2773_v28 = vmul.f32 %v3579_v61, %v2750_v22  ;;  %v2774_v55 = vmul.f32 %v3580_v62, %v2754_v45  ;;  %v2809_v21 = vcombine.high %v3582_v24, %v3582_v24 }
 0x1a7   : > { %v2775_v29 = vmul.f32 %v3573_v6, %v2758_v48  ;;  %v2776_v25 = vmul.f32 %v3574_v12, %v2762_v23  ;;  %v2777_v5 = vmul.f32 %v3575_v54, %v2758_v48  ;;  %v2778_v26 = vmul.f32 %v3576_v50, %v2762_v23  ;;  %v3588_v6 = vld [vmem:[%s4352_s14 + $0x6e8] sm:$0xff]  ;;  %v3589_v12 = vld [vmem:[%s4352_s14 + $0x6f0] sm:$0xff]  ;;  %v3590_v54 = vld [vmem:[%s4352_s14 + $0x6f8] sm:$0xff] }
 0x1a8   : > { %v2779_v60 = vmul.f32 %v3577_v63, %v2758_v48  ;;  %v2780_v27 = vmul.f32 %v3578_v53, %v2762_v23  ;;  %v2781_v20 = vmul.f32 %v3579_v61, %v2758_v48  ;;  %v2782_v4 = vmul.f32 %v3580_v62, %v2762_v23 }
 0x1a9   : > { %v2783_v19 = vadd.f32 %v2767_v56, %v2711_v17  ;;  %v2784_v10 = vadd.f32 %v2768_v41, %v2712_v59  ;;  %v2785_v47 = vadd.f32 %v2769_v39, %v2713_v42  ;;  %v2786_v30 = vadd.f32 %v2770_v40, %v2714_v8  ;;  %v3585_v59 = vld [vmem:[%s4352_s14 + $0x6d0] sm:$0xff]  ;;  %v3586_v42 = vld [vmem:[%s4352_s14 + $0x6d8] sm:$0xff]  ;;  %v3587_v8 = vld [vmem:[%s4352_s14 + $0x6e0] sm:$0xff] }
 0x1aa   : > { %v2787_v22 = vadd.f32 %v2771_v3, %v2715_v34  ;;  %v2788_v9 = vadd.f32 %v2772_v7, %v2716_v14  ;;  %v2789_v52 = vadd.f32 %v2773_v28, %v2717_v33  ;;  %v2790_v13 = vadd.f32 %v2774_v55, %v2718_v46 }
 0x1ab   : > { %v2791_v43 = vadd.f32 %v2775_v29, %v2719_v18  ;;  %v2792_v15 = vadd.f32 %v2776_v25, %v2720_v16  ;;  %v2793_v11 = vadd.f32 %v2777_v5, %v2721_v44  ;;  %v2794_v1 = vadd.f32 %v2778_v26, %v2722_v49 }
 0x1ac   : > { %v2795_v38 = vadd.f32 %v2779_v60, %v2723_v0  ;;  %v2796_v17 = vadd.f32 %v2780_v27, %v2724_v57  ;;  %v2822_v34 = vrot.slane %v3582_v24, %v4348_v36  ;;  %v2826_v14 = vrot.slane %v3582_v24, %v4350_v37  ;;  %v3593_v60 = vld [vmem:[%s4352_s14 + $0x700] sm:$0xff]  ;;  %v3594_v27 = vld [vmem:[%s4352_s14 + $0x708] sm:$0xff] }
 0x1ad   : > { %v2797_v33 = vadd.f32 %v2781_v20, %v2725_v58  ;;  %v2798_v46 = vadd.f32 %v2782_v4, %v2726_v2  ;;  %v2830_v18 = vrot.slane %v2809_v21, %v4348_v36  ;;  %v2834_v16 = vrot.slane %v2809_v21, %v4350_v37  ;;  %v3595_v20 = vld [vmem:[%s4352_s14 + $0x710] sm:$0xff] }
 0x1ae   : > { %v2881_v44 = vcombine.high %v3592_v31, %v3592_v31  ;;  %v2894_v49 = vrot.slane %v3592_v31, %v4348_v36  ;;  %v2898_v50 = vrot.slane %v3592_v31, %v4350_v37  ;;  %v4791_v63 = vcombine.high %v4775_v35, %v4775_v35 }
 0x1af   : > { %v2839_v53 = vmul.f32 %v3583_v32, %v2822_v34  ;;  %v2840_v0 = vmul.f32 %v3584_v51, %v2826_v14  ;;  %v2841_v61 = vmul.f32 %v3585_v59, %v2822_v34  ;;  %v2842_v62 = vmul.f32 %v3586_v42, %v2826_v14 }
 0x1b0   : > { %v2843_v45 = vmul.f32 %v3587_v8, %v2822_v34  ;;  %v2844_v48 = vmul.f32 %v3588_v6, %v2826_v14  ;;  %v2845_v23 = vmul.f32 %v3589_v12, %v2822_v34  ;;  %v2846_v24 = vmul.f32 %v3590_v54, %v2826_v14 }
 0x1b1   : > { %v2847_v57 = vmul.f32 %v3583_v32, %v2830_v18  ;;  %v2848_v58 = vmul.f32 %v3584_v51, %v2834_v16  ;;  %v2849_v2 = vmul.f32 %v3585_v59, %v2830_v18  ;;  %v2850_v56 = vmul.f32 %v3586_v42, %v2834_v16  ;;  %v3596_v59 = vld [vmem:[%s4352_s14 + $0x718] sm:$0xff]  ;;  %v3598_v42 = vld [vmem:[%s4352_s14 + $0x728] sm:$0xff] }
 0x1b2   : > { %v2851_v41 = vmul.f32 %v3587_v8, %v2830_v18  ;;  %v2852_v39 = vmul.f32 %v3588_v6, %v2834_v16  ;;  %v2853_v40 = vmul.f32 %v3589_v12, %v2830_v18  ;;  %v2854_v3 = vmul.f32 %v3590_v54, %v2834_v16 }
 0x1b3   : > { %v2855_v7 = vadd.f32 %v2839_v53, %v2783_v19  ;;  %v2856_v28 = vadd.f32 %v2840_v0, %v2784_v10  ;;  %v2857_v55 = vadd.f32 %v2841_v61, %v2785_v47  ;;  %v2858_v21 = vadd.f32 %v2842_v62, %v2786_v30  ;;  %v3597_v19 = vld [vmem:[%s4352_s14 + $0x720] sm:$0xff]  ;;  %v3599_v47 = vld [vmem:[%s4352_s14 + $0x730] sm:$0xff]  ;;  %v3600_v30 = vld [vmem:[%s4352_s14 + $0x738] sm:$0xff] }
 0x1b4   : > { %v2859_v29 = vadd.f32 %v2843_v45, %v2787_v22  ;;  %v2860_v25 = vadd.f32 %v2844_v48, %v2788_v9  ;;  %v2861_v5 = vadd.f32 %v2845_v23, %v2789_v52  ;;  %v2862_v26 = vadd.f32 %v2846_v24, %v2790_v13 }
 0x1b5   : > { %v2863_v4 = vadd.f32 %v2847_v57, %v2791_v43  ;;  %v2864_v31 = vadd.f32 %v2848_v58, %v2792_v15  ;;  %v2865_v32 = vadd.f32 %v2849_v2, %v2793_v11  ;;  %v2866_v51 = vadd.f32 %v2850_v56, %v2794_v1  ;;  %v3603_v57 = vld [vmem:[%s4352_s14 + $0x740] sm:$0xff]  ;;  %v3604_v58 = vld [vmem:[%s4352_s14 + $0x748] sm:$0xff]  ;;  %v3612_v2 = vld.sshfl [vmem:[%s4345_s8 + $0x78] sm:$0x33 pattern:$0x75316420] }
 0x1b6   : > { %v2867_v10 = vadd.f32 %v2851_v41, %v2795_v38  ;;  %v2868_v8 = vadd.f32 %v2852_v39, %v2796_v17  ;;  %v2902_v22 = vrot.slane %v2881_v44, %v4348_v36  ;;  %v2906_v9 = vrot.slane %v2881_v44, %v4350_v37  ;;  %v3605_v39 = vld [vmem:[%s4352_s14 + $0x750] sm:$0xff] }
 0x1b7   : > { %v2869_v52 = vadd.f32 %v2853_v40, %v2797_v33  ;;  %v2870_v13 = vadd.f32 %v2854_v3, %v2798_v46  ;;  %v2911_v34 = vmul.f32 %v3593_v60, %v2894_v49  ;;  %v2912_v14 = vmul.f32 %v3594_v27, %v2898_v50  ;;  %v3606_v40 = vld [vmem:[%s4352_s14 + $0x758] sm:$0xff]  ;;  %v3607_v3 = vld [vmem:[%s4352_s14 + $0x760] sm:$0xff] }
 0x1b8   : > { %v2913_v6 = vmul.f32 %v3595_v20, %v2894_v49  ;;  %v2914_v43 = vmul.f32 %v3596_v59, %v2898_v50  ;;  %v2915_v15 = vmul.f32 %v3597_v19, %v2894_v49  ;;  %v2916_v11 = vmul.f32 %v3598_v42, %v2898_v50 }
 0x1b9   : > { %v2917_v1 = vmul.f32 %v3599_v47, %v2894_v49  ;;  %v2918_v12 = vmul.f32 %v3600_v30, %v2898_v50  ;;  %v2919_v54 = vmul.f32 %v3593_v60, %v2902_v22  ;;  %v2920_v18 = vmul.f32 %v3594_v27, %v2906_v9 }
 0x1ba   : > { %v2921_v38 = vmul.f32 %v3595_v20, %v2902_v22  ;;  %v2922_v17 = vmul.f32 %v3596_v59, %v2906_v9  ;;  %v2923_v16 = vmul.f32 %v3597_v19, %v2902_v22  ;;  %v2924_v53 = vmul.f32 %v3598_v42, %v2906_v9 }
 0x1bb   : > { %v2925_v44 = vmul.f32 %v3599_v47, %v2902_v22  ;;  %v2926_v33 = vmul.f32 %v3600_v30, %v2906_v9  ;;  %v2927_v46 = vadd.f32 %v2911_v34, %v2855_v7  ;;  %v2928_v0 = vadd.f32 %v2912_v14, %v2856_v28 }
 0x1bc   : > { %v2929_v61 = vadd.f32 %v2913_v6, %v2857_v55  ;;  %v2930_v62 = vadd.f32 %v2914_v43, %v2858_v21  ;;  %v2931_v49 = vadd.f32 %v2915_v15, %v2859_v29  ;;  %v2932_v50 = vadd.f32 %v2916_v11, %v2860_v25  ;;  %v3608_v29 = vld [vmem:[%s4352_s14 + $0x768] sm:$0xff]  ;;  %v3609_v25 = vld [vmem:[%s4352_s14 + $0x770] sm:$0xff] }
 0x1bd   : > { %v2933_v45 = vadd.f32 %v2917_v1, %v2861_v5  ;;  %v2934_v48 = vadd.f32 %v2918_v12, %v2862_v26  ;;  %v2935_v23 = vadd.f32 %v2919_v54, %v2863_v4  ;;  %v2936_v24 = vadd.f32 %v2920_v18, %v2864_v31  ;;  %v3610_v5 = vld [vmem:[%s4352_s14 + $0x778] sm:$0xff]  ;;  %v3613_v18 = vld [vmem:[%s4352_s14 + $0x780] sm:$0xff] }
 0x1be   : > { %v2937_v56 = vadd.f32 %v2921_v38, %v2865_v32  ;;  %v2938_v41 = vadd.f32 %v2922_v17, %v2866_v51  ;;  %v2966_v7 = vrot.slane %v4775_v35, %v4348_v36  ;;  %v2970_v28 = vrot.slane %v4775_v35, %v4350_v37  ;;  %v3614_v38 = vld [vmem:[%s4352_s14 + $0x788] sm:$0xff]  ;;  %v3615_v17 = vld [vmem:[%s4352_s14 + $0x790] sm:$0xff] }
 0x1bf   : > { %v2939_v55 = vadd.f32 %v2923_v16, %v2867_v10  ;;  %v2940_v21 = vadd.f32 %v2924_v53, %v2868_v8  ;;  %v2974_v26 = vrot.slane %v4791_v63, %v4348_v36  ;;  %v2978_v60 = vrot.slane %v4791_v63, %v4350_v37 }
 0x1c0   : > { %v2941_v27 = vadd.f32 %v2925_v44, %v2869_v52  ;;  %v2942_v20 = vadd.f32 %v2926_v33, %v2870_v13  ;;  %v3025_v4 = vcombine.high %v3612_v2, %v3612_v2  ;;  %v3038_v31 = vrot.slane %v3612_v2, %v4348_v36 }
 0x1c1   : > { %v2983_v32 = vmul.f32 %v3603_v57, %v2966_v7  ;;  %v2984_v51 = vmul.f32 %v3604_v58, %v2970_v28  ;;  %v2985_v59 = vmul.f32 %v3605_v39, %v2966_v7  ;;  %v2986_v35 = vmul.f32 %v3606_v40, %v2970_v28 }
 0x1c2   : > { %v2987_v19 = vmul.f32 %v3607_v3, %v2966_v7  ;;  %v2988_v42 = vmul.f32 %v3608_v29, %v2970_v28  ;;  %v2989_v10 = vmul.f32 %v3609_v25, %v2966_v7  ;;  %v2990_v8 = vmul.f32 %v3610_v5, %v2970_v28 }
 0x1c3   : > { %v2991_v47 = vmul.f32 %v3603_v57, %v2974_v26  ;;  %v2992_v30 = vmul.f32 %v3604_v58, %v2978_v60  ;;  %v2993_v22 = vmul.f32 %v3605_v39, %v2974_v26  ;;  %v2994_v63 = vmul.f32 %v3606_v40, %v2978_v60  ;;  %v3617_v57 = vld [vmem:[%s4352_s14 + $0x7a0] sm:$0xff] }
 0x1c4   : > { %v2995_v9 = vmul.f32 %v3607_v3, %v2974_v26  ;;  %v2996_v52 = vmul.f32 %v3608_v29, %v2978_v60  ;;  %v2997_v13 = vmul.f32 %v3609_v25, %v2974_v26  ;;  %v2998_v34 = vmul.f32 %v3610_v5, %v2978_v60 }
 0x1c5   : > { %v2999_v14 = vadd.f32 %v2983_v32, %v2927_v46  ;;  %v3000_v6 = vadd.f32 %v2984_v51, %v2928_v0  ;;  %v3001_v43 = vadd.f32 %v2985_v59, %v2929_v61  ;;  %v3002_v15 = vadd.f32 %v2986_v35, %v2930_v62  ;;  %v3616_v46 = vld [vmem:[%s4352_s14 + $0x798] sm:$0xff]  ;;  %v3618_v0 = vld [vmem:[%s4352_s14 + $0x7a8] sm:$0xff]  ;;  %v3619_v61 = vld [vmem:[%s4352_s14 + $0x7b0] sm:$0xff] }
 0x1c6   : > { %v3003_v11 = vadd.f32 %v2987_v19, %v2931_v49  ;;  %v3004_v1 = vadd.f32 %v2988_v42, %v2932_v50  ;;  %v3005_v12 = vadd.f32 %v2989_v10, %v2933_v45  ;;  %v3006_v54 = vadd.f32 %v2990_v8, %v2934_v48  ;;  %v3620_v62 = vld [vmem:[%s4352_s14 + $0x7b8] sm:$0xff]  ;;  %v3623_v8 = vld [vmem:[%s4352_s14 + $0x7c0] sm:$0xff] }
 0x1c7   : > { %v3007_v16 = vadd.f32 %v2991_v47, %v2935_v23  ;;  %v3008_v53 = vadd.f32 %v2992_v30, %v2936_v24  ;;  %v3009_v44 = vadd.f32 %v2993_v22, %v2937_v56  ;;  %v3010_v33 = vadd.f32 %v2994_v63, %v2938_v41  ;;  %v3622_v48 = vld.sshfl [vmem:[%s4345_s8 + $0x7c] sm:$0x33 pattern:$0x75316420]  ;;  %v3624_v47 = vld [vmem:[%s4352_s14 + $0x7c8] sm:$0xff] }
 0x1c8   : > { %v3011_v58 = vadd.f32 %v2995_v9, %v2939_v55  ;;  %v3042_v49 = vrot.slane %v3612_v2, %v4350_v37  ;;  %v3046_v50 = vrot.slane %v3025_v4, %v4348_v36  ;;  %v3050_v45 = vrot.slane %v3025_v4, %v4350_v37 }
 0x1c9   : > { %v3012_v39 = vadd.f32 %v2996_v52, %v2940_v21  ;;  %v3013_v40 = vadd.f32 %v2997_v13, %v2941_v27  ;;  %v3014_v3 = vadd.f32 %v2998_v34, %v2942_v20  ;;  %v3055_v23 = vmul.f32 %v3613_v18, %v3038_v31  ;;  %v3625_v52 = vld [vmem:[%s4352_s14 + $0x7d0] sm:$0xff]  ;;  %v3626_v13 = vld [vmem:[%s4352_s14 + $0x7d8] sm:$0xff]  ;;  %v3627_v34 = vld [vmem:[%s4352_s14 + $0x7e0] sm:$0xff] }
 0x1ca   : > { %v3056_v24 = vmul.f32 %v3614_v38, %v3042_v49  ;;  %v3057_v56 = vmul.f32 %v3615_v17, %v3038_v31  ;;  %v3058_v41 = vmul.f32 %v3616_v46, %v3042_v49  ;;  %v3059_v7 = vmul.f32 %v3617_v57, %v3038_v31 }
 0x1cb   : > { %v3060_v28 = vmul.f32 %v3618_v0, %v3042_v49  ;;  %v3061_v29 = vmul.f32 %v3619_v61, %v3038_v31  ;;  %v3062_v55 = vmul.f32 %v3620_v62, %v3042_v49  ;;  %v3097_v25 = vcombine.high %v3622_v48, %v3622_v48 }
 0x1cc   : > { %v3063_v5 = vmul.f32 %v3613_v18, %v3046_v50  ;;  %v3064_v2 = vmul.f32 %v3614_v38, %v3050_v45  ;;  %v3065_v26 = vmul.f32 %v3615_v17, %v3046_v50  ;;  %v3066_v60 = vmul.f32 %v3616_v46, %v3050_v45  ;;  %v3630_v18 = vld [vmem:[%s4352_s14 + $0x7f8] sm:$0xff] }
 0x1cd   : > { %v3067_v4 = vmul.f32 %v3617_v57, %v3046_v50  ;;  %v3068_v32 = vmul.f32 %v3618_v0, %v3050_v45  ;;  %v3069_v21 = vmul.f32 %v3619_v61, %v3046_v50  ;;  %v3070_v27 = vmul.f32 %v3620_v62, %v3050_v45 }
 0x1ce   : > { %v3071_v20 = vadd.f32 %v3055_v23, %v2999_v14  ;;  %v3072_v51 = vadd.f32 %v3056_v24, %v3000_v6  ;;  %v3073_v59 = vadd.f32 %v3057_v56, %v3001_v43  ;;  %v3074_v31 = vadd.f32 %v3058_v41, %v3002_v15  ;;  %v3628_v14 = vld [vmem:[%s4352_s14 + $0x7e8] sm:$0xff]  ;;  %v3629_v6 = vld [vmem:[%s4352_s14 + $0x7f0] sm:$0xff] }
 0x1cf   : > { %v3075_v35 = vadd.f32 %v3059_v7, %v3003_v11  ;;  %v3076_v19 = vadd.f32 %v3060_v28, %v3004_v1  ;;  %v3077_v42 = vadd.f32 %v3061_v29, %v3005_v12  ;;  %v3078_v10 = vadd.f32 %v3062_v55, %v3006_v54 }
 0x1d0   : > { %v3079_v30 = vadd.f32 %v3063_v5, %v3007_v16  ;;  %v3080_v22 = vadd.f32 %v3064_v2, %v3008_v53  ;;  %v3081_v63 = vadd.f32 %v3065_v26, %v3009_v44  ;;  %v3082_v9 = vadd.f32 %v3066_v60, %v3010_v33 }
 0x1d1   : > { %v3110_v43 = vrot.slane %v3622_v48, %v4348_v36  ;;  %v3114_v15 = vrot.slane %v3622_v48, %v4350_v37  ;;  %v3118_v11 = vrot.slane %v3097_v25, %v4348_v36  ;;  %v3122_v1 = vrot.slane %v3097_v25, %v4350_v37 }
 0x1d2   : > { %v3083_v12 = vadd.f32 %v3067_v4, %v3011_v58  ;;  %v3084_v54 = vadd.f32 %v3068_v32, %v3012_v39  ;;  %v3085_v38 = vadd.f32 %v3069_v21, %v3013_v40  ;;  %v3086_v17 = vadd.f32 %v3070_v27, %v3014_v3 }
 0x1d3   : > { %v3127_v16 = vmul.f32 %v3623_v8, %v3110_v43  ;;  %v3128_v53 = vmul.f32 %v3624_v47, %v3114_v15  ;;  %v3129_v44 = vmul.f32 %v3625_v52, %v3110_v43  ;;  %v3130_v33 = vmul.f32 %v3626_v13, %v3114_v15 }
 0x1d4   : > { %v3131_v46 = vmul.f32 %v3627_v34, %v3110_v43  ;;  %v3132_v57 = vmul.f32 %v3628_v14, %v3114_v15  ;;  %v3133_v0 = vmul.f32 %v3629_v6, %v3110_v43  ;;  %v3134_v61 = vmul.f32 %v3630_v18, %v3114_v15 }
 0x1d5   : > { %v3135_v62 = vmul.f32 %v3623_v8, %v3118_v11  ;;  %v3136_v49 = vmul.f32 %v3624_v47, %v3122_v1  ;;  %v3137_v50 = vmul.f32 %v3625_v52, %v3118_v11  ;;  %v3138_v45 = vmul.f32 %v3626_v13, %v3122_v1 }
 0x1d6   : > { %v3139_v48 = vmul.f32 %v3627_v34, %v3118_v11  ;;  %v3140_v36 = vmul.f32 %v3628_v14, %v3122_v1  ;;  %v3141_v37 = vmul.f32 %v3629_v6, %v3118_v11  ;;  %v3142_v58 = vmul.f32 %v3630_v18, %v3122_v1 }
 0x1d7   : > { %v3143_v39 = vadd.f32 %v3127_v16, %v3071_v20  ;;  %v3144_v40 = vadd.f32 %v3128_v53, %v3072_v51  ;;  %v3145_v3 = vadd.f32 %v3129_v44, %v3073_v59  ;;  %v3146_v23 = vadd.f32 %v3130_v33, %v3074_v31 }
 0x1d8   : > { %v3147_v24 = vadd.f32 %v3131_v46, %v3075_v35  ;;  %v3148_v56 = vadd.f32 %v3132_v57, %v3076_v19  ;;  %v3149_v41 = vadd.f32 %v3133_v0, %v3077_v42  ;;  %v3150_v7 = vadd.f32 %v3134_v61, %v3078_v10 }
 0x1d9   : > { %v3151_v28 = vadd.f32 %v3135_v62, %v3079_v30  ;;  %v3152_v29 = vadd.f32 %v3136_v49, %v3080_v22  ;;  %v3153_v55 = vadd.f32 %v3137_v50, %v3081_v63  ;;  %v3154_v25 = vadd.f32 %v3138_v45, %v3082_v9  ;;  %3159 = vst [vmem:[%s4846_s9] sm:$0xff] %v3143_v39 }
 0x1da   : > { %3160 = vst [vmem:[%s4846_s9 + $0x8] sm:$0xff] %v3144_v40  ;;  %3161 = vst [vmem:[%s4846_s9 + $0x10] sm:$0xff] %v3145_v3  ;;  %v3155_v5 = vadd.f32 %v3139_v48, %v3083_v12  ;;  %v3156_v2 = vadd.f32 %v3140_v36, %v3084_v54  ;;  %v3157_v26 = vadd.f32 %v3141_v37, %v3085_v38 }
 0x1db   : > { %3162 = vst [vmem:[%s4846_s9 + $0x18] sm:$0xff] %v3146_v23  ;;  %v3158_v60 = vadd.f32 %v3142_v58, %v3086_v17  ;;  %3163 = vst [vmem:[%s4846_s9 + $0x20] sm:$0xff] %v3147_v24  ;;  %3181 = sbr.rel (!%p3736_p5) target bundleno = 490 (0x1ea), region = 96 }
 0x1dc   : > { %3164 = vst [vmem:[%s4846_s9 + $0x28] sm:$0xff] %v3148_v56  ;;  %3165 = vst [vmem:[%s4846_s9 + $0x30] sm:$0xff] %v3149_v41 }
 0x1dd   : > { %3166 = vst [vmem:[%s4846_s9 + $0x38] sm:$0xff] %v3150_v7  ;;  %3167 = vst [vmem:[%s4846_s9 + $0x40] sm:$0xff] %v3151_v28 }
 0x1de   : > { %3168 = vst [vmem:[%s4846_s9 + $0x48] sm:$0xff] %v3152_v29  ;;  %3169 = vst [vmem:[%s4846_s9 + $0x50] sm:$0xff] %v3153_v55 }
 0x1df   : > { %3170 = vst [vmem:[%s4846_s9 + $0x58] sm:$0xff] %v3154_v25  ;;  %3171 = vst [vmem:[%s4846_s9 + $0x60] sm:$0xff] %v3155_v5 }
 0x1e0   : > { %3172 = vst [vmem:[%s4846_s9 + $0x68] sm:$0xff] %v3156_v2  ;;  %3173 = vst [vmem:[%s4846_s9 + $0x70] sm:$0xff] %v3157_v26  ;;  %v3197_v4 = vld [vmem:[%s4846_s9] sm:$0xff] (%p3736_p5) }
 0x1e1   : > { %3174 = vst [vmem:[%s4846_s9 + $0x78] sm:$0xff] %v3158_v60  ;;  %v3199_v32 = vld [vmem:[%s4846_s9 + $0x8] sm:$0xff] (%p3736_p5)  ;;  %v3201_v21 = vld [vmem:[%s4846_s9 + $0x10] sm:$0xff] (%p3736_p5)  ;;  %3198 = vst [vmem:[%s3184_s18] sm:$0xff] (%p3736_p5), %v3197_v4 }
 0x1e2   : > { %v3203_v27 = vld [vmem:[%s4846_s9 + $0x18] sm:$0xff]  ;;  %v3205_v20 = vld [vmem:[%s4846_s9 + $0x20] sm:$0xff]  ;;  %3200 = vst [vmem:[%s3184_s18 + $0x8] sm:$0xff] %v3199_v32  ;;  %3202 = vst [vmem:[%s3184_s18 + $0x20] sm:$0xff] %v3201_v21 }
 0x1e3   : > { %v3207_v51 = vld [vmem:[%s4846_s9 + $0x28] sm:$0xff]  ;;  %3204 = vst [vmem:[%s3184_s18 + $0x28] sm:$0xff] %v3203_v27  ;;  %3206 = vst [vmem:[%s3184_s18 + $0x40] sm:$0xff] %v3205_v20  ;;  %v3209_v59 = vld [vmem:[%s4846_s9 + $0x30] sm:$0xff] }
 0x1e4   : > { %3208 = vst [vmem:[%s3184_s18 + $0x48] sm:$0xff] %v3207_v51  ;;  %v3211_v31 = vld [vmem:[%s4846_s9 + $0x38] sm:$0xff]  ;;  %v3213_v35 = vld [vmem:[%s4846_s9 + $0x40] sm:$0xff]  ;;  %3210 = vst [vmem:[%s3184_s18 + $0x60] sm:$0xff] %v3209_v59 }
 0x1e5   : > { %3212 = vst [vmem:[%s3184_s18 + $0x68] sm:$0xff] %v3211_v31  ;;  %3214 = vst [vmem:[%s3184_s18 + $0x80] sm:$0xff] %v3213_v35  ;;  %v3215_v19 = vld [vmem:[%s4846_s9 + $0x48] sm:$0xff]  ;;  %v3217_v42 = vld [vmem:[%s4846_s9 + $0x50] sm:$0xff] }
 0x1e6   : > { %v3219_v10 = vld [vmem:[%s4846_s9 + $0x58] sm:$0xff]  ;;  %3216 = vst [vmem:[%s3184_s18 + $0x88] sm:$0xff] %v3215_v19  ;;  %3218 = vst [vmem:[%s3184_s18 + $0xa0] sm:$0xff] %v3217_v42  ;;  %v3221_v8 = vld [vmem:[%s4846_s9 + $0x60] sm:$0xff] }
 0x1e7   : > { %3220 = vst [vmem:[%s3184_s18 + $0xa8] sm:$0xff] %v3219_v10  ;;  %v3223_v47 = vld [vmem:[%s4846_s9 + $0x68] sm:$0xff]  ;;  %v3225_v30 = vld [vmem:[%s4846_s9 + $0x70] sm:$0xff]  ;;  %3222 = vst [vmem:[%s3184_s18 + $0xc0] sm:$0xff] %v3221_v8 }
 0x1e8   : > { %3224 = vst [vmem:[%s3184_s18 + $0xc8] sm:$0xff] %v3223_v47  ;;  %3226 = vst [vmem:[%s3184_s18 + $0xe0] sm:$0xff] %v3225_v30  ;;  %v3227_v22 = vld [vmem:[%s4846_s9 + $0x78] sm:$0xff] }
 0x1e9   : > { %3228 = vst [vmem:[%s3184_s18 + $0xe8] sm:$0xff] %v3227_v22 }
 0x1ea PF: > { %p9_p10 = scmp.ge.s32.totalorder %s3719_s13, 4   ;;  %s4902_s9 = smov %s3681_s10 }
 0x1eb   : > { %s4903_s10 = smov %s3730_s16  ;;  %s4904_s11 = smov %s3719_s13 }
 0x1ec   :  { %11 = sbr.rel (!%p9_p10) target bundleno = 2 (0x2), region = 220 }

// kernel: wno_recon_forward.18
= control target key start
LH: loop header
LB: loop body
LE: loop exit
PB: predicated region body
PF: predicated region fallthrough
CT: control target
= control target key end

     0   :  { %v508_v3 = vmov 0.0   ;;  %v509_v8 = vmov 0   ;;  %vm61_vm0 = vcmask 261120   ;;  %s831_s0 = inlined_call_operand.vmem [shape: f32[32,512], index: 0, kind: input, shape index: {}]   ;;  %s832_s2 = inlined_call_operand.vmem [shape: f32[32,1], index: 2, kind: input, shape index: {}]   ;;  %s833_s1 = inlined_call_operand.vmem [shape: f32[32,32], index: 1, kind: input, shape index: {}]   ;;  %s834_s3 = inlined_call_operand.vmem [shape: f32[32,512], index: 3, kind: input, shape index: {}]   ;;  %s835_s4 = inlined_call_operand.vmem [shape: f32[32,512], index: 4, kind: output, shape index: {}]  }
   0x1   :  { %v22_v0 = vld [vmem:[%s831_s0 + $0x8] sm:$0xff]  ;;  %v24_v2 = vld [vmem:[%s831_s0 + $0x18] sm:$0xff]  ;;  %138 = vmatprep.mubr.f32.mxu0 %v508_v3  ;;  %227 = vmatprep.mubr.f32.mxu1 %v508_v3  ;;  %v21_v6 = vld [vmem:[%s831_s0] sm:$0xff] }
   0x2   :  { %v26_v1 = vld [vmem:[%s831_s0 + $0x28] sm:$0xff]  ;;  %v28_v5 = vld [vmem:[%s831_s0 + $0x38] sm:$0xff]  ;;  %v25_v7 = vld [vmem:[%s831_s0 + $0x20] sm:$0xff]  ;;  %474 = vset.pattern.permute.xlu0 %v509_v8  ;;  %475 = vset.pattern.permute.xlu1 %v509_v8 }
   0x3   :  { %v456_v4 = vpack.c.bf16 %v26_v1, %v22_v0  ;;  %v464_v9 = vpack.c.bf16 %v28_v5, %v24_v2  ;;  %v458_v10 = vpack.c.bf16 %v25_v7, %v21_v6  ;;  %v23_v11 = vld [vmem:[%s831_s0 + $0x10] sm:$0xff]  ;;  %v30_v13 = vld [vmem:[%s831_s0 + $0x48] sm:$0xff]  ;;  %v32_v16 = vld [vmem:[%s831_s0 + $0x58] sm:$0xff] }
   0x4   :  { %v27_v12 = vld [vmem:[%s831_s0 + $0x30] sm:$0xff]  ;;  %v34_v15 = vld [vmem:[%s831_s0 + $0x68] sm:$0xff]  ;;  %v36_v17 = vld [vmem:[%s831_s0 + $0x78] sm:$0xff] }
   0x5   :  { %457 = vmatprep.subr.bf16.mxu0 %v456_v4  ;;  %v466_v14 = vpack.c.bf16 %v27_v12, %v23_v11  ;;  %465 = vmatprep.subr.bf16.mxu1 %v464_v9  ;;  %v460_v18 = vpack.c.bf16 %v34_v15, %v30_v13  ;;  %v468_v19 = vpack.c.bf16 %v36_v17, %v32_v16  ;;  %v29_v20 = vld [vmem:[%s831_s0 + $0x40] sm:$0xff]  ;;  %v31_v22 = vld [vmem:[%s831_s0 + $0x50] sm:$0xff]  ;;  %v38_v29 = vld [vmem:[%s832_s2 + $0x8] sm:$0xff] }
   0x6   :  { %459 = vmatpush1.bf16.msra.mxu0 %v458_v10  ;;  %v33_v21 = vld [vmem:[%s831_s0 + $0x60] sm:$0xff]  ;;  %v35_v24 = vld [vmem:[%s831_s0 + $0x70] sm:$0xff]  ;;  %v40_v30 = vld [vmem:[%s832_s2 + $0x18] sm:$0xff] }
   0x7   :  { %467 = vmatpush1.bf16.msra.mxu1 %v466_v14  ;;  %v462_v23 = vpack.c.bf16 %v33_v21, %v29_v20  ;;  %461 = vmatprep.subr.bf16.mxu0 %v460_v18  ;;  %v470_v25 = vpack.c.bf16 %v35_v24, %v31_v22  ;;  %v37_v26 = vld [vmem:[%s832_s2] sm:$0xff]  ;;  %v39_v27 = vld [vmem:[%s832_s2 + $0x10] sm:$0xff]  ;;  %v18_v31 = vld [vmem:[%s833_s1 + $0x8] sm:$0xff] }
   0x8   :  { %469 = vmatprep.subr.bf16.mxu1 %v468_v19  ;;  %43 = vperm.xlu0 %474, %v37_v26   ;;  %v17_v28 = vld [vmem:[%s833_s1] sm:$0xff]  ;;  %v19_v32 = vld [vmem:[%s833_s1 + $0x10] sm:$0xff]  ;;  %v20_v33 = vld [vmem:[%s833_s1 + $0x18] sm:$0xff] }
   0x9   :  { %53 = vperm.xlu1 %475, %v39_v27   ;;  %v252_v36 = vld [vmem:[%s834_s3] sm:$0xff]  ;;  %v254_v39 = vld [vmem:[%s834_s3 + $0x10] sm:$0xff]  ;;  %v253_v41 = vld [vmem:[%s834_s3 + $0x8] sm:$0xff] }
   0xa   :  { %463 = vmatpush1.bf16.msra.mxu0 %v462_v23  ;;  %v255_v45 = vld [vmem:[%s834_s3 + $0x18] sm:$0xff]  ;;  %v256_v52 = vld [vmem:[%s834_s3 + $0x20] sm:$0xff]  ;;  %v258_v63 = vld [vmem:[%s834_s3 + $0x30] sm:$0xff] }
   0xb   :  { %471 = vmatpush1.bf16.msra.mxu1 %v470_v25  ;;  %v257_v0 = vld [vmem:[%s834_s3 + $0x28] sm:$0xff]  ;;  %v259_v24 = vld [vmem:[%s834_s3 + $0x38] sm:$0xff] }
   0xc   :  { %48 = vperm.xlu0 %474, %v38_v29  }
   0xd   :  { %448 = vmatmul.mubr.msk.f32.vlgmr.msra.gmra.mrb[0].mxu0 %vm61_vm0, %v17_v28  ;;  %58 = vperm.xlu1 %475, %v40_v30  }
   0xe   :  { %452 = vmatmul.mubr.msk.f32.vlgmr.msra.gmra.mrb[0].mxu1 %vm61_vm0, %v17_v28  ;;  %144 = vmatprep.mubr.f32.mxu0 %v508_v3 }
   0xf   :  { %233 = vmatprep.mubr.f32.mxu1 %v508_v3 }
  0x11   :  { %449 = vmatmul.mubr.msk.f32.gmra.mrb[2].mxu0 %vm61_vm0, %v18_v31 }
  0x12   :  { %453 = vmatmul.mubr.msk.f32.gmra.mrb[2].mxu1 %vm61_vm0, %v18_v31  ;;  %150 = vmatprep.mubr.f32.mxu0 %v508_v3 }
  0x13   :  { %239 = vmatprep.mubr.f32.mxu1 %v508_v3 }
  0x15   :  { %450 = vmatmul.mubr.msk.f32.gmra.mrb[4].mxu0 %vm61_vm0, %v19_v32 }
  0x16   :  { %454 = vmatmul.mubr.msk.f32.gmra.mrb[4].mxu1 %vm61_vm0, %v19_v32  ;;  %156 = vmatprep.mubr.f32.mxu0 %v508_v3 }
  0x17   :  { %245 = vmatprep.mubr.f32.mxu1 %v508_v3 }
  0x19   :  { %451 = vmatmul.mubr.msk.f32.gmra.mrb[6].mxu0 %vm61_vm0, %v20_v33 }
  0x1a   :  { %455 = vmatmul.mubr.msk.f32.gmra.mrb[6].mxu1 %vm61_vm0, %v20_v33 }
  0x87   :  { %v44_v34 = vpop.permute.xlu0 %43 }
  0x8b   :  { %v49_v46 = vpop.permute.xlu0 %48 }
  0xe0   :  { %v140_v35 = vpop.f32.mrb[0].mxu0 }
  0xe1   :  { %v141_v37 = vadd.f32 %v140_v35, %v44_v34  ;;  %v229_v38 = vpop.f32.mrb[0].mxu1  ;;  %v142_v40 = vpop.f32.mrb[1].mxu0 }
  0xe2   :  { %v230_v42 = vadd.f32 %v229_v38, %v44_v34  ;;  %v143_v43 = vadd.f32 %v142_v40, %v44_v34  ;;  %v231_v44 = vpop.f32.mrb[1].mxu1 }
  0xe3   :  { %v627_v47 = vadd.f32 %v252_v36, %v141_v37  ;;  %v232_v48 = vadd.f32 %v231_v44, %v44_v34  ;;  %v54_v37 = vpop.permute.xlu1 %53 }
  0xe4   :  { %v629_v49 = vadd.f32 %v254_v39, %v230_v42  ;;  %v631_v50 = vadd.f32 %v253_v41, %v143_v43  ;;  %v146_v51 = vpop.f32.mrb[2].mxu0  ;;  %v260_v39 = vld [vmem:[%s834_s3 + $0x40] sm:$0xff] }
  0xe5   :  { %v300_v53 = vmul.f32 0.044715, %v627_v47  ;;  %v637_v54 = vadd.f32 %v255_v45, %v232_v48  ;;  %v147_v55 = vadd.f32 %v146_v51, %v49_v46  ;;  %v235_v56 = vpop.f32.mrb[2].mxu1  ;;  %v148_v57 = vpop.f32.mrb[3].mxu0  ;;  %v284_v44 = vmul.f32 0.5, %v627_v47 }
  0xe6   :  { %v302_v58 = vmul.f32 0.044715, %v629_v49  ;;  %v301_v59 = vmul.f32 0.044715, %v631_v50  ;;  %v237_v1 = vpop.f32.mrb[3].mxu1  ;;  %v236_v4 = vadd.f32 %v235_v56, %v49_v46  ;;  %v149_v5 = vadd.f32 %v148_v57, %v49_v46 }
  0xe7   :  { %v316_v60 = vmul.f32 %v300_v53, %v627_v47  ;;  %v303_v61 = vmul.f32 0.044715, %v637_v54  ;;  %v643_v62 = vadd.f32 %v256_v52, %v147_v55  ;;  %v238_v20 = vadd.f32 %v237_v1, %v49_v46  ;;  %v262_v53 = vld [vmem:[%s834_s3 + $0x50] sm:$0xff]  ;;  %v261_v55 = vld [vmem:[%s834_s3 + $0x48] sm:$0xff]  ;;  %v708_v1 = vpop.permute.xlu1 %58 }
  0xe8   :  { %v318_v2 = vmul.f32 %v302_v58, %v629_v49  ;;  %v317_v3 = vmul.f32 %v301_v59, %v631_v50  ;;  %v152_v6 = vpop.f32.mrb[4].mxu0  ;;  %v658_v14 = vadd.f32 %v258_v63, %v236_v4  ;;  %v660_v15 = vadd.f32 %v257_v0, %v149_v5  ;;  %v263_v4 = vld [vmem:[%s834_s3 + $0x58] sm:$0xff] }
  0xe9   :  { %v332_v7 = vmul.f32 %v316_v60, %v627_v47  ;;  %v319_v8 = vmul.f32 %v303_v61, %v637_v54  ;;  %v304_v9 = vmul.f32 0.044715, %v643_v62  ;;  %v241_v10 = vpop.f32.mrb[4].mxu1  ;;  %v154_v11 = vpop.f32.mrb[5].mxu0  ;;  %v680_v38 = vadd.f32 %v259_v24, %v238_v20 }
  0xea   :  { %v334_v12 = vmul.f32 %v318_v2, %v629_v49  ;;  %v333_v13 = vmul.f32 %v317_v3, %v631_v50  ;;  %v243_v16 = vpop.f32.mrb[5].mxu1  ;;  %v306_v23 = vmul.f32 0.044715, %v658_v14  ;;  %v305_v34 = vmul.f32 0.044715, %v660_v15 }
  0xeb   :  { %v348_v17 = vadd.f32 %v332_v7, %v627_v47  ;;  %v335_v18 = vmul.f32 %v319_v8, %v637_v54  ;;  %v320_v19 = vmul.f32 %v304_v9, %v643_v62  ;;  %v153_v43 = vadd.f32 %v152_v6, %v54_v37  ;;  %v264_v7 = vld [vmem:[%s834_s3 + $0x60] sm:$0xff] }
  0xec   :  { %v350_v21 = vadd.f32 %v334_v12, %v629_v49  ;;  %v349_v22 = vadd.f32 %v333_v13, %v631_v50  ;;  %v158_v25 = vpop.f32.mrb[6].mxu0  ;;  %v322_v33 = vmul.f32 %v306_v23, %v658_v14  ;;  %v321_v42 = vmul.f32 %v305_v34, %v660_v15 }
  0xed   :  { %v364_v26 = vmul.f32 0.7978846, %v348_v17  ;;  %v351_v27 = vadd.f32 %v335_v18, %v637_v54  ;;  %v336_v28 = vmul.f32 %v320_v19, %v643_v62  ;;  %v673_v29 = vpop.f32.mrb[6].mxu1  ;;  %v675_v30 = vpop.f32.mrb[7].mxu0  ;;  %v307_v46 = vmul.f32 0.044715, %v680_v38 }
  0xee   :  { %v366_v31 = vmul.f32 0.7978846, %v350_v21  ;;  %v365_v32 = vmul.f32 0.7978846, %v349_v22  ;;  %v685_v40 = vpop.f32.mrb[7].mxu1  ;;  %v338_v41 = vmul.f32 %v322_v33, %v658_v14  ;;  %v337_v51 = vmul.f32 %v321_v42, %v660_v15 }
  0xef   :  { %476 = vtanh.f32 %v364_v26  ;;  %v367_v35 = vmul.f32 0.7978846, %v351_v27  ;;  %v352_v36 = vadd.f32 %v336_v28, %v643_v62  ;;  %v693_v52 = vadd.f32 %v260_v39, %v153_v43 }
  0xf0   :  { %478 = vtanh.f32 %v366_v31  ;;  %v354_v48 = vadd.f32 %v338_v41, %v658_v14  ;;  %v323_v47 = vmul.f32 %v307_v46, %v680_v38  ;;  %v242_v56 = vadd.f32 %v241_v10, %v54_v37  ;;  %v266_v41 = vld [vmem:[%s834_s3 + $0x70] sm:$0xff] }
  0xf1   :  { %480 = vtanh.f32 %v365_v32  ;;  %v368_v45 = vmul.f32 0.7978846, %v352_v36  ;;  %v155_v57 = vadd.f32 %v154_v11, %v54_v37  ;;  %v286_v58 = vmul.f32 0.5, %v629_v49 }
  0xf2   :  { %482 = vtanh.f32 %v367_v35  ;;  %v370_v59 = vmul.f32 0.7978846, %v354_v48  ;;  %v353_v60 = vadd.f32 %v337_v51, %v660_v15  ;;  %v308_v61 = vmul.f32 0.044715, %v693_v52 }
  0xf3   :  { %484 = vtanh.f32 %v368_v45  ;;  %v339_v63 = vmul.f32 %v323_v47, %v680_v38  ;;  %v706_v0 = vadd.f32 %v262_v53, %v242_v56  ;;  %v710_v2 = vadd.f32 %v261_v55, %v155_v57 }
  0xf4   :  { %v244_v3 = vadd.f32 %v243_v16, %v54_v37  ;;  %486 = vtanh.f32 %v370_v59  ;;  %v369_v49 = vmul.f32 0.7978846, %v353_v60  ;;  %v324_v5 = vmul.f32 %v308_v61, %v693_v52 }
  0xf5   :  { %v159_v6 = vadd.f32 %v158_v25, %v708_v1  ;;  %v285_v8 = vmul.f32 0.5, %v631_v50  ;;  %v287_v9 = vmul.f32 0.5, %v637_v54  ;;  %v355_v10 = vadd.f32 %v339_v63, %v680_v38 }
  0xf6   :  { %v310_v11 = vmul.f32 0.044715, %v706_v0  ;;  %488 = vtanh.f32 %v369_v49  ;;  %v340_v12 = vmul.f32 %v324_v5, %v693_v52  ;;  %v309_v13 = vmul.f32 0.044715, %v710_v2 }
  0xf7   :  { %v726_v16 = vadd.f32 %v263_v4, %v244_v3  ;;  %v288_v18 = vmul.f32 0.5, %v643_v62  ;;  %v371_v19 = vmul.f32 0.7978846, %v355_v10  ;;  %v730_v50 = vadd.f32 %v264_v7, %v159_v6 }
  0xf8   :  { %v326_v20 = vmul.f32 %v310_v11, %v706_v0  ;;  %v356_v22 = vadd.f32 %v340_v12, %v693_v52  ;;  %v325_v23 = vmul.f32 %v309_v13, %v710_v2  ;;  %v248_v24 = vadd.f32 %v673_v29, %v708_v1 }
  0xf9   :  { %v477_v17 = vpop.eup %476  ;;  %490 = vtanh.f32 %v371_v19  ;;  %v311_v62 = vmul.f32 0.044715, %v726_v16  ;;  %v290_v46 = vmul.f32 0.5, %v658_v14  ;;  %v312_v56 = vmul.f32 0.044715, %v730_v50 }
  0xfa   :  { %v479_v54 = vpop.eup %478  ;;  %v396_v21 = vadd.f32 1.0, %v477_v17  ;;  %v342_v27 = vmul.f32 %v326_v20, %v706_v0  ;;  %v372_v33 = vmul.f32 0.7978846, %v356_v22  ;;  %v341_v34 = vmul.f32 %v325_v23, %v710_v2 }
  0xfb   :  { %v481_v25 = vpop.eup %480  ;;  %v398_v26 = vadd.f32 1.0, %v479_v54  ;;  %v327_v29 = vmul.f32 %v311_v62, %v726_v16  ;;  %v757_v57 = vadd.f32 %v266_v41, %v248_v24  ;;  %v161_v60 = vadd.f32 %v675_v30, %v708_v1  ;;  %v267_v30 = vld [vmem:[%s834_s3 + $0x78] sm:$0xff] }
  0xfc   :  { %v483_v28 = vpop.eup %482  ;;  %v412_v31 = vmul.f32 %v396_v21, %v284_v44  ;;  %v397_v32 = vadd.f32 1.0, %v481_v25  ;;  %v358_v39 = vadd.f32 %v342_v27, %v706_v0  ;;  %492 = vtanh.f32 %v372_v33 }
  0xfd   :  { %v485_v35 = vpop.eup %484  ;;  %v414_v36 = vmul.f32 %v398_v26, %v286_v58  ;;  %v399_v37 = vadd.f32 1.0, %v483_v28  ;;  %v357_v44 = vadd.f32 %v341_v34, %v710_v2  ;;  %v343_v51 = vmul.f32 %v327_v29, %v726_v16  ;;  %v265_v58 = vld [vmem:[%s834_s3 + $0x68] sm:$0xff] }
  0xfe   :  { %428 = vst [vmem:[%s835_s4] sm:$0xff] %v412_v31  ;;  %v413_v42 = vmul.f32 %v397_v32, %v285_v8  ;;  %v400_v43 = vadd.f32 1.0, %v485_v35  ;;  %v374_v48 = vmul.f32 0.7978846, %v358_v39  ;;  %v487_v53 = vpop.eup %486  ;;  %v289_v63 = vmul.f32 0.5, %v660_v15 }
  0xff   :  { %430 = vst [vmem:[%s835_s4 + $0x10] sm:$0xff] %v414_v36  ;;  %v415_v45 = vmul.f32 %v399_v37, %v287_v9  ;;  %v373_v47 = vmul.f32 0.7978846, %v357_v44  ;;  %v402_v14 = vadd.f32 1.0, %v487_v53  ;;  %v359_v59 = vadd.f32 %v343_v51, %v726_v16 }
 0x100   :  { %429 = vst [vmem:[%s835_s4 + $0x8] sm:$0xff] %v413_v42  ;;  %v416_v55 = vmul.f32 %v400_v43, %v288_v18  ;;  %494 = vtanh.f32 %v374_v48  ;;  %v489_v61 = vpop.eup %488  ;;  %v328_v3 = vmul.f32 %v312_v56, %v730_v50  ;;  %v314_v4 = vmul.f32 0.044715, %v757_v57 }
 0x101   :  { %431 = vst [vmem:[%s835_s4 + $0x18] sm:$0xff] %v415_v45  ;;  %496 = vtanh.f32 %v373_v47  ;;  %v418_v49 = vmul.f32 %v402_v14, %v290_v46  ;;  %v401_v5 = vadd.f32 1.0, %v489_v61  ;;  %v375_v6 = vmul.f32 0.7978846, %v359_v59 }
 0x102   :  { %432 = vst [vmem:[%s835_s4 + $0x20] sm:$0xff] %v416_v55  ;;  %v774_v7 = vadd.f32 %v265_v58, %v161_v60  ;;  %v344_v8 = vmul.f32 %v328_v3, %v730_v50  ;;  %v330_v9 = vmul.f32 %v314_v4, %v757_v57  ;;  %v250_v15 = vadd.f32 %v685_v40, %v708_v1 }
 0x103   :  { %v491_v10 = vpop.eup %490  ;;  %434 = vst [vmem:[%s835_s4 + $0x30] sm:$0xff] %v418_v49  ;;  %v417_v11 = vmul.f32 %v401_v5, %v289_v63  ;;  %v291_v12 = vmul.f32 0.5, %v680_v38  ;;  %498 = vtanh.f32 %v375_v6  ;;  %v292_v22 = vmul.f32 0.5, %v693_v52 }
 0x104   :  { %v313_v13 = vmul.f32 0.044715, %v774_v7  ;;  %v403_v17 = vadd.f32 1.0, %v491_v10  ;;  %v360_v18 = vadd.f32 %v344_v8, %v730_v50  ;;  %v346_v19 = vmul.f32 %v330_v9, %v757_v57 }
 0x105   :  { %v283_v20 = vadd.f32 %v267_v30, %v250_v15  ;;  %433 = vst [vmem:[%s835_s4 + $0x28] sm:$0xff] %v417_v11  ;;  %v294_v33 = vmul.f32 0.5, %v706_v0  ;;  %v293_v52 = vmul.f32 0.5, %v710_v2  ;;  %v295_v0 = vmul.f32 0.5, %v726_v16 }
 0x106   :  { %v329_v40 = vmul.f32 %v313_v13, %v774_v7  ;;  %v493_v1 = vpop.eup %492  ;;  %v419_v54 = vmul.f32 %v403_v17, %v291_v12  ;;  %v376_v21 = vmul.f32 0.7978846, %v360_v18  ;;  %v362_v38 = vadd.f32 %v346_v19, %v757_v57 }
 0x107   :  { %v404_v23 = vadd.f32 1.0, %v493_v1  ;;  %v315_v25 = vmul.f32 0.044715, %v283_v20  ;;  %v296_v46 = vmul.f32 0.5, %v730_v50  ;;  %v298_v16 = vmul.f32 0.5, %v757_v57 }
 0x108   :  { %v345_v24 = vmul.f32 %v329_v40, %v774_v7  ;;  %435 = vst [vmem:[%s835_s4 + $0x38] sm:$0xff] %v419_v54  ;;  %500 = vtanh.f32 %v376_v21  ;;  %v378_v26 = vmul.f32 0.7978846, %v362_v38  ;;  %v297_v58 = vmul.f32 0.5, %v774_v7 }
 0x109   :  { %v420_v62 = vmul.f32 %v404_v23, %v292_v22  ;;  %v331_v31 = vmul.f32 %v315_v25, %v283_v20  ;;  %v299_v57 = vmul.f32 0.5, %v283_v20 }
 0x10a   :  { %v495_v27 = vpop.eup %494  ;;  %v361_v28 = vadd.f32 %v345_v24, %v774_v7  ;;  %502 = vtanh.f32 %v378_v26 }
 0x10b   :  { %v497_v32 = vpop.eup %496  ;;  %v406_v34 = vadd.f32 1.0, %v495_v27  ;;  %436 = vst [vmem:[%s835_s4 + $0x40] sm:$0xff] %v420_v62  ;;  %v347_v37 = vmul.f32 %v331_v31, %v283_v20 }
 0x10c   :  { %v405_v35 = vadd.f32 1.0, %v497_v32  ;;  %v377_v36 = vmul.f32 0.7978846, %v361_v28 }
 0x10d   :  { %v422_v39 = vmul.f32 %v406_v34, %v294_v33  ;;  %v499_v29 = vpop.eup %498  ;;  %v363_v42 = vadd.f32 %v347_v37, %v283_v20 }
 0x10e   :  { %v421_v41 = vmul.f32 %v405_v35, %v293_v52  ;;  %504 = vtanh.f32 %v377_v36  ;;  %v407_v43 = vadd.f32 1.0, %v499_v29 }
 0x10f   :  { %438 = vst [vmem:[%s835_s4 + $0x50] sm:$0xff] %v422_v39  ;;  %v379_v2 = vmul.f32 0.7978846, %v363_v42 }
 0x110   :  { %437 = vst [vmem:[%s835_s4 + $0x48] sm:$0xff] %v421_v41  ;;  %v423_v44 = vmul.f32 %v407_v43, %v295_v0 }
 0x111   :  { %506 = vtanh.f32 %v379_v2 }
 0x112   :  { %v501_v45 = vpop.eup %500  ;;  %439 = vst [vmem:[%s835_s4 + $0x58] sm:$0xff] %v423_v44 }
 0x113   :  { %v408_v48 = vadd.f32 1.0, %v501_v45 }
 0x114   :  { %v503_v51 = vpop.eup %502 }
 0x115   :  { %v424_v53 = vmul.f32 %v408_v48, %v296_v46  ;;  %v410_v55 = vadd.f32 1.0, %v503_v51 }
 0x117   :  { %440 = vst [vmem:[%s835_s4 + $0x60] sm:$0xff] %v424_v53  ;;  %v426_v56 = vmul.f32 %v410_v55, %v298_v16 }
 0x118   :  { %v505_v47 = vpop.eup %504 }
 0x119   :  { %v409_v14 = vadd.f32 1.0, %v505_v47  ;;  %442 = vst [vmem:[%s835_s4 + $0x70] sm:$0xff] %v426_v56 }
 0x11b   :  { %v425_v50 = vmul.f32 %v409_v14, %v297_v58  ;;  %v507_v59 = vpop.eup %506 }
 0x11c   :  { %v411_v60 = vadd.f32 1.0, %v507_v59 }
 0x11d   :  { %441 = vst [vmem:[%s835_s4 + $0x68] sm:$0xff] %v425_v50 }
 0x11e   :  { %v427_v61 = vmul.f32 %v411_v60, %v299_v57 }
 0x120   :  { %443 = vst [vmem:[%s835_s4 + $0x78] sm:$0xff] %v427_v61 }

// kernel: wno_recon_forward.25
= control target key start
LH: loop header
LB: loop body
LE: loop exit
PB: predicated region body
PF: predicated region fallthrough
CT: control target
= control target key end

     0   :  { %v2125_v3 = vmov 0.0   ;;  %v2126_v9 = vmov 0   ;;  %vm206_vm0 = vcmask 261120   ;;  %vm1582_vm1 = vcmask 523264   ;;  %s3851_s0 = inlined_call_operand.vmem [shape: f32[32,512], index: 0, kind: input, shape index: {}]   ;;  %s3852_s4 = inlined_call_operand.<no memory space> [shape: f32[1,1], index: 4, kind: input, shape index: {}]   ;;  %s3853_s1 = inlined_call_operand.vmem [shape: f32[192,32], index: 1, kind: input, shape index: {}]   ;;  %s3854_s2 = inlined_call_operand.vmem [shape: f32[192,1], index: 2, kind: input, shape index: {}]   ;;  %s3855_s3 = inlined_call_operand.vmem [shape: f32[1,192], index: 3, kind: input, shape index: {}]   ;;  %s3856_s5 = inlined_call_operand.vmem [shape: f32[1,512], index: 5, kind: output, shape index: {}]  }
   0x1   :  { %v47_v0 = vld [vmem:[%s3851_s0 + $0x8] sm:$0xff]  ;;  %v49_v2 = vld [vmem:[%s3851_s0 + $0x18] sm:$0xff]  ;;  %343 = vmatprep.mubr.f32.mxu0 %v2125_v3  ;;  %552 = vmatprep.mubr.f32.mxu1 %v2125_v3  ;;  %v10_v4 = vstv %s3852_s4  ;;  %v46_v7 = vld [vmem:[%s3851_s0] sm:$0xff] }
   0x2   :  { %v51_v1 = vld [vmem:[%s3851_s0 + $0x28] sm:$0xff]  ;;  %v53_v6 = vld [vmem:[%s3851_s0 + $0x38] sm:$0xff]  ;;  %v50_v8 = vld [vmem:[%s3851_s0 + $0x20] sm:$0xff]  ;;  %1930 = vset.pattern.permute.xlu0 %v2126_v9  ;;  %1931 = vset.pattern.permute.xlu1 %v2126_v9  ;;  %11 = vst [vmem:[#allocation2] sm:$0x1] %v10_v4 }
   0x3   :  { %v1815_v5 = vpack.c.bf16 %v51_v1, %v47_v0  ;;  %v1823_v10 = vpack.c.bf16 %v53_v6, %v49_v2  ;;  %v1817_v11 = vpack.c.bf16 %v50_v8, %v46_v7  ;;  %v48_v12 = vld [vmem:[%s3851_s0 + $0x10] sm:$0xff]  ;;  %v55_v14 = vld [vmem:[%s3851_s0 + $0x48] sm:$0xff]  ;;  %v57_v17 = vld [vmem:[%s3851_s0 + $0x58] sm:$0xff] }
   0x4   :  { %v52_v13 = vld [vmem:[%s3851_s0 + $0x30] sm:$0xff]  ;;  %v59_v16 = vld [vmem:[%s3851_s0 + $0x68] sm:$0xff]  ;;  %v61_v18 = vld [vmem:[%s3851_s0 + $0x78] sm:$0xff] }
   0x5   :  { %1816 = vmatprep.subr.bf16.mxu0 %v1815_v5  ;;  %v1825_v15 = vpack.c.bf16 %v52_v13, %v48_v12  ;;  %1824 = vmatprep.subr.bf16.mxu1 %v1823_v10  ;;  %v1819_v19 = vpack.c.bf16 %v59_v16, %v55_v14  ;;  %v1827_v20 = vpack.c.bf16 %v61_v18, %v57_v17  ;;  %v54_v21 = vld [vmem:[%s3851_s0 + $0x40] sm:$0xff]  ;;  %v56_v23 = vld [vmem:[%s3851_s0 + $0x50] sm:$0xff]  ;;  %v63_v29 = vld [vmem:[%s3854_s2 + $0x8] sm:$0xff]  ;;  %v3857_v13 = vlaneseq }
   0x6   :  { %1818 = vmatpush1.bf16.msra.mxu0 %v1817_v11  ;;  %v58_v22 = vld [vmem:[%s3851_s0 + $0x60] sm:$0xff]  ;;  %v60_v25 = vld [vmem:[%s3851_s0 + $0x70] sm:$0xff]  ;;  %v23_v31 = vld [vmem:[%s3853_s1 + $0x8] sm:$0xff] }
   0x7   :  { %1826 = vmatpush1.bf16.msra.mxu1 %v1825_v15  ;;  %v1821_v24 = vpack.c.bf16 %v58_v22, %v54_v21  ;;  %1820 = vmatprep.subr.bf16.mxu0 %v1819_v19  ;;  %v1829_v26 = vpack.c.bf16 %v60_v25, %v56_v23  ;;  %v22_v27 = vld [vmem:[%s3853_s1] sm:$0xff]  ;;  %v64_v30 = vld [vmem:[%s3854_s2 + $0x10] sm:$0xff]  ;;  %v65_v32 = vld [vmem:[%s3854_s2 + $0x18] sm:$0xff]  ;;  %v2450_v16 = vshrl.u32 %v3857_v13, 7 }
   0x8   :  { %1828 = vmatprep.subr.bf16.mxu1 %v1827_v20  ;;  %v62_v28 = vld [vmem:[%s3854_s2] sm:$0xff]  ;;  %98 = vperm.xlu1 %1931, %v64_v30   ;;  %v24_v34 = vld [vmem:[%s3853_s1 + $0x10] sm:$0xff]  ;;  %v67_v35 = vld [vmem:[%s3854_s2 + $0x28] sm:$0xff] }
   0x9   :  { %88 = vperm.xlu0 %1930, %v62_v28   ;;  %v66_v33 = vld [vmem:[%s3854_s2 + $0x20] sm:$0xff]  ;;  %v68_v36 = vld [vmem:[%s3854_s2 + $0x30] sm:$0xff]  ;;  %v25_v37 = vld [vmem:[%s3853_s1 + $0x18] sm:$0xff]  ;;  %3928 = vst [vmem:[#allocation3_spill] sm:$0xff] %v2450_v16  ;;  %v1579_v21 = vsub.s32 1, %v2450_v16 }
   0xa   :  { %1822 = vmatpush1.bf16.msra.mxu0 %v1821_v24  ;;  %v69_v38 = vld [vmem:[%s3854_s2 + $0x38] sm:$0xff]  ;;  %v70_v39 = vld [vmem:[%s3854_s2 + $0x40] sm:$0xff]  ;;  %v71_v41 = vld [vmem:[%s3854_s2 + $0x48] sm:$0xff] }
   0xb   :  { %1830 = vmatpush1.bf16.msra.mxu1 %v1829_v26  ;;  %v26_v40 = vld [vmem:[%s3853_s1 + $0x20] sm:$0xff]  ;;  %v72_v42 = vld [vmem:[%s3854_s2 + $0x50] sm:$0xff]  ;;  %v27_v43 = vld [vmem:[%s3853_s1 + $0x28] sm:$0xff] }
   0xc   :  { %103 = vperm.xlu1 %1931, %v65_v32   ;;  %v73_v44 = vld [vmem:[%s3854_s2 + $0x58] sm:$0xff]  ;;  %v74_v45 = vld [vmem:[%s3854_s2 + $0x60] sm:$0xff]  ;;  %v28_v46 = vld [vmem:[%s3853_s1 + $0x30] sm:$0xff] }
   0xd   :  { %1765 = vmatmul.mubr.msk.f32.vlgmr.msra.gmra.mrb[0].mxu0 %vm206_vm0, %v22_v27  ;;  %93 = vperm.xlu0 %1930, %v63_v29   ;;  %v75_v47 = vld [vmem:[%s3854_s2 + $0x68] sm:$0xff]  ;;  %v76_v48 = vld [vmem:[%s3854_s2 + $0x70] sm:$0xff]  ;;  %v29_v49 = vld [vmem:[%s3853_s1 + $0x38] sm:$0xff] }
   0xe   :  { %1789 = vmatmul.mubr.msk.f32.vlgmr.msra.gmra.mrb[0].mxu1 %vm206_vm0, %v22_v27  ;;  %349 = vmatprep.mubr.f32.mxu0 %v2125_v3  ;;  %v77_v50 = vld [vmem:[%s3854_s2 + $0x78] sm:$0xff]  ;;  %v78_v51 = vld [vmem:[%s3854_s2 + $0x80] sm:$0xff]  ;;  %v79_v53 = vld [vmem:[%s3854_s2 + $0x88] sm:$0xff] }
   0xf   :  { %558 = vmatprep.mubr.f32.mxu1 %v2125_v3  ;;  %v30_v52 = vld [vmem:[%s3853_s1 + $0x40] sm:$0xff]  ;;  %v80_v54 = vld [vmem:[%s3854_s2 + $0x90] sm:$0xff]  ;;  %v31_v55 = vld [vmem:[%s3853_s1 + $0x48] sm:$0xff] }
  0x10   :  { %113 = vperm.xlu1 %1931, %v67_v35   ;;  %v81_v56 = vld [vmem:[%s3854_s2 + $0x98] sm:$0xff]  ;;  %v82_v57 = vld [vmem:[%s3854_s2 + $0xa0] sm:$0xff]  ;;  %v32_v58 = vld [vmem:[%s3853_s1 + $0x50] sm:$0xff] }
  0x11   :  { %1766 = vmatmul.mubr.msk.f32.gmra.mrb[2].mxu0 %vm206_vm0, %v23_v31  ;;  %108 = vperm.xlu0 %1930, %v66_v33   ;;  %v83_v59 = vld [vmem:[%s3854_s2 + $0xa8] sm:$0xff]  ;;  %v84_v60 = vld [vmem:[%s3854_s2 + $0xb0] sm:$0xff]  ;;  %v33_v61 = vld [vmem:[%s3853_s1 + $0x58] sm:$0xff] }
  0x12   :  { %1790 = vmatmul.mubr.msk.f32.gmra.mrb[2].mxu1 %vm206_vm0, %v23_v31  ;;  %355 = vmatprep.mubr.f32.mxu0 %v2125_v3  ;;  %v85_v62 = vld [vmem:[%s3854_s2 + $0xb8] sm:$0xff]  ;;  %v1562_v63 = vld [vmem:[#allocation2] sm:$0x1]  ;;  %v35_v1 = vld [vmem:[%s3853_s1 + $0x68] sm:$0xff] }
  0x13   :  { %564 = vmatprep.mubr.f32.mxu1 %v2125_v3  ;;  %v34_v0 = vld [vmem:[%s3853_s1 + $0x60] sm:$0xff]  ;;  %v36_v2 = vld [vmem:[%s3853_s1 + $0x70] sm:$0xff]  ;;  %v37_v4 = vld [vmem:[%s3853_s1 + $0x78] sm:$0xff] }
  0x14   :  { %123 = vperm.xlu1 %1931, %v69_v38   ;;  %v38_v5 = vld [vmem:[%s3853_s1 + $0x80] sm:$0xff]  ;;  %v39_v6 = vld [vmem:[%s3853_s1 + $0x88] sm:$0xff]  ;;  %v40_v7 = vld [vmem:[%s3853_s1 + $0x90] sm:$0xff] }
  0x15   :  { %1767 = vmatmul.mubr.msk.f32.gmra.mrb[4].mxu0 %vm206_vm0, %v24_v34  ;;  %118 = vperm.xlu0 %1930, %v68_v36   ;;  %v41_v8 = vld [vmem:[%s3853_s1 + $0x98] sm:$0xff]  ;;  %v42_v9 = vld [vmem:[%s3853_s1 + $0xa0] sm:$0xff]  ;;  %v43_v10 = vld [vmem:[%s3853_s1 + $0xa8] sm:$0xff] }
  0x16   :  { %1791 = vmatmul.mubr.msk.f32.gmra.mrb[4].mxu1 %vm206_vm0, %v24_v34  ;;  %361 = vmatprep.mubr.f32.mxu0 %v2125_v3  ;;  %v44_v11 = vld [vmem:[%s3853_s1 + $0xb0] sm:$0xff]  ;;  %v45_v12 = vld [vmem:[%s3853_s1 + $0xb8] sm:$0xff]  ;;  %v1561_v24 = vld [vmem:[%s3855_s3] sm:$0x3] }
  0x17   :  { %570 = vmatprep.mubr.f32.mxu1 %v2125_v3  ;;  %v2468_v36 = vrot.slane %v1561_v24, %v1579_v21 }
  0x18   :  { %133 = vperm.xlu1 %1931, %v71_v41  }
  0x19   :  { %1768 = vmatmul.mubr.msk.f32.gmra.mrb[6].mxu0 %vm206_vm0, %v25_v37  ;;  %128 = vperm.xlu0 %1930, %v70_v39   ;;  %3929 = vst [vmem:[#allocation4_spill] sm:$0xff] %v2468_v36 }
  0x1a   :  { %1792 = vmatmul.mubr.msk.f32.gmra.mrb[6].mxu1 %vm206_vm0, %v25_v37  ;;  %367 = vmatprep.mubr.f32.mxu0 %v2125_v3 }
  0x1b   :  { %576 = vmatprep.mubr.f32.mxu1 %v2125_v3 }
  0x1c   :  { %143 = vperm.xlu1 %1931, %v73_v44  }
  0x1d   :  { %1769 = vmatmul.mubr.msk.f32.gmra.mrb[8].mxu0 %vm206_vm0, %v26_v40  ;;  %138 = vperm.xlu0 %1930, %v72_v42  }
  0x1e   :  { %1793 = vmatmul.mubr.msk.f32.gmra.mrb[8].mxu1 %vm206_vm0, %v26_v40  ;;  %373 = vmatprep.mubr.f32.mxu0 %v2125_v3 }
  0x1f   :  { %582 = vmatprep.mubr.f32.mxu1 %v2125_v3 }
  0x20   :  { %153 = vperm.xlu1 %1931, %v75_v47  }
  0x21   :  { %1770 = vmatmul.mubr.msk.f32.gmra.mrb[10].mxu0 %vm206_vm0, %v27_v43  ;;  %148 = vperm.xlu0 %1930, %v74_v45  }
  0x22   :  { %1794 = vmatmul.mubr.msk.f32.gmra.mrb[10].mxu1 %vm206_vm0, %v27_v43  ;;  %379 = vmatprep.mubr.f32.mxu0 %v2125_v3 }
  0x23   :  { %588 = vmatprep.mubr.f32.mxu1 %v2125_v3 }
  0x24   :  { %163 = vperm.xlu1 %1931, %v77_v50  }
  0x25   :  { %1771 = vmatmul.mubr.msk.f32.gmra.mrb[12].mxu0 %vm206_vm0, %v28_v46  ;;  %158 = vperm.xlu0 %1930, %v76_v48  }
  0x26   :  { %1795 = vmatmul.mubr.msk.f32.gmra.mrb[12].mxu1 %vm206_vm0, %v28_v46  ;;  %385 = vmatprep.mubr.f32.mxu0 %v2125_v3 }
  0x27   :  { %594 = vmatprep.mubr.f32.mxu1 %v2125_v3 }
  0x28   :  { %173 = vperm.xlu1 %1931, %v79_v53  }
  0x29   :  { %1772 = vmatmul.mubr.msk.f32.gmra.mrb[14].mxu0 %vm206_vm0, %v29_v49  ;;  %168 = vperm.xlu0 %1930, %v78_v51  }
  0x2a   :  { %1796 = vmatmul.mubr.msk.f32.gmra.mrb[14].mxu1 %vm206_vm0, %v29_v49  ;;  %391 = vmatprep.mubr.f32.mxu0 %v2125_v3 }
  0x2b   :  { %600 = vmatprep.mubr.f32.mxu1 %v2125_v3 }
  0x2c   :  { %183 = vperm.xlu1 %1931, %v81_v56  }
  0x2d   :  { %1773 = vmatmul.mubr.msk.f32.gmra.mrb[16].mxu0 %vm206_vm0, %v30_v52  ;;  %178 = vperm.xlu0 %1930, %v80_v54  }
  0x2e   :  { %1797 = vmatmul.mubr.msk.f32.gmra.mrb[16].mxu1 %vm206_vm0, %v30_v52  ;;  %397 = vmatprep.mubr.f32.mxu0 %v2125_v3 }
  0x2f   :  { %606 = vmatprep.mubr.f32.mxu1 %v2125_v3 }
  0x30   :  { %193 = vperm.xlu1 %1931, %v83_v59  }
  0x31   :  { %1774 = vmatmul.mubr.msk.f32.gmra.mrb[18].mxu0 %vm206_vm0, %v31_v55  ;;  %188 = vperm.xlu0 %1930, %v82_v57  }
  0x32   :  { %1798 = vmatmul.mubr.msk.f32.gmra.mrb[18].mxu1 %vm206_vm0, %v31_v55  ;;  %403 = vmatprep.mubr.f32.mxu0 %v2125_v3 }
  0x33   :  { %612 = vmatprep.mubr.f32.mxu1 %v2125_v3 }
  0x34   :  { %203 = vperm.xlu1 %1931, %v85_v62  }
  0x35   :  { %1775 = vmatmul.mubr.msk.f32.gmra.mrb[20].mxu0 %vm206_vm0, %v32_v58  ;;  %198 = vperm.xlu0 %1930, %v84_v60  }
  0x36   :  { %1799 = vmatmul.mubr.msk.f32.gmra.mrb[20].mxu1 %vm206_vm0, %v32_v58  ;;  %409 = vmatprep.mubr.f32.mxu0 %v2125_v3 }
  0x37   :  { %618 = vmatprep.mubr.f32.mxu1 %v2125_v3 }
  0x39   :  { %1776 = vmatmul.mubr.msk.f32.gmra.mrb[22].mxu0 %vm206_vm0, %v33_v61  ;;  %1565 = vperm.xlu0 %1930, %v1562_v63  }
  0x3a   :  { %1800 = vmatmul.mubr.msk.f32.gmra.mrb[22].mxu1 %vm206_vm0, %v33_v61  ;;  %415 = vmatprep.mubr.f32.mxu0 %v2125_v3 }
  0x3b   :  { %624 = vmatprep.mubr.f32.mxu1 %v2125_v3 }
  0x3d   :  { %1777 = vmatmul.mubr.msk.f32.gmra.mrb[24].mxu0 %vm206_vm0, %v34_v0 }
  0x3e   :  { %1801 = vmatmul.mubr.msk.f32.gmra.mrb[24].mxu1 %vm206_vm0, %v34_v0  ;;  %421 = vmatprep.mubr.f32.mxu0 %v2125_v3 }
  0x3f   :  { %630 = vmatprep.mubr.f32.mxu1 %v2125_v3 }
  0x41   :  { %1778 = vmatmul.mubr.msk.f32.gmra.mrb[26].mxu0 %vm206_vm0, %v35_v1 }
  0x42   :  { %1802 = vmatmul.mubr.msk.f32.gmra.mrb[26].mxu1 %vm206_vm0, %v35_v1  ;;  %427 = vmatprep.mubr.f32.mxu0 %v2125_v3 }
  0x43   :  { %636 = vmatprep.mubr.f32.mxu1 %v2125_v3 }
  0x45   :  { %1779 = vmatmul.mubr.msk.f32.gmra.mrb[28].mxu0 %vm206_vm0, %v36_v2 }
  0x46   :  { %1803 = vmatmul.mubr.msk.f32.gmra.mrb[28].mxu1 %vm206_vm0, %v36_v2  ;;  %433 = vmatprep.mubr.f32.mxu0 %v2125_v3 }
  0x47   :  { %642 = vmatprep.mubr.f32.mxu1 %v2125_v3 }
  0x49   :  { %1780 = vmatmul.mubr.msk.f32.gmra.mrb[30].mxu0 %vm206_vm0, %v37_v4 }
  0x4a   :  { %1804 = vmatmul.mubr.msk.f32.gmra.mrb[30].mxu1 %vm206_vm0, %v37_v4  ;;  %439 = vmatprep.mubr.f32.mxu0 %v2125_v3 }
  0x4b   :  { %648 = vmatprep.mubr.f32.mxu1 %v2125_v3 }
  0x4d   :  { %1781 = vmatmul.mubr.msk.f32.gmra.mrb[32].mxu0 %vm206_vm0, %v38_v5 }
  0x4e   :  { %1805 = vmatmul.mubr.msk.f32.gmra.mrb[32].mxu1 %vm206_vm0, %v38_v5  ;;  %445 = vmatprep.mubr.f32.mxu0 %v2125_v3 }
  0x4f   :  { %654 = vmatprep.mubr.f32.mxu1 %v2125_v3 }
  0x51   :  { %1782 = vmatmul.mubr.msk.f32.gmra.mrb[34].mxu0 %vm206_vm0, %v39_v6 }
  0x52   :  { %1806 = vmatmul.mubr.msk.f32.gmra.mrb[34].mxu1 %vm206_vm0, %v39_v6  ;;  %451 = vmatprep.mubr.f32.mxu0 %v2125_v3 }
  0x53   :  { %660 = vmatprep.mubr.f32.mxu1 %v2125_v3 }
  0x55   :  { %1783 = vmatmul.mubr.msk.f32.gmra.mrb[36].mxu0 %vm206_vm0, %v40_v7 }
  0x56   :  { %1807 = vmatmul.mubr.msk.f32.gmra.mrb[36].mxu1 %vm206_vm0, %v40_v7  ;;  %457 = vmatprep.mubr.f32.mxu0 %v2125_v3 }
  0x57   :  { %666 = vmatprep.mubr.f32.mxu1 %v2125_v3 }
  0x59   :  { %1784 = vmatmul.mubr.msk.f32.gmra.mrb[38].mxu0 %vm206_vm0, %v41_v8 }
  0x5a   :  { %1808 = vmatmul.mubr.msk.f32.gmra.mrb[38].mxu1 %vm206_vm0, %v41_v8  ;;  %463 = vmatprep.mubr.f32.mxu0 %v2125_v3 }
  0x5b   :  { %672 = vmatprep.mubr.f32.mxu1 %v2125_v3 }
  0x5d   :  { %1785 = vmatmul.mubr.msk.f32.gmra.mrb[40].mxu0 %vm206_vm0, %v42_v9 }
  0x5e   :  { %1809 = vmatmul.mubr.msk.f32.gmra.mrb[40].mxu1 %vm206_vm0, %v42_v9  ;;  %469 = vmatprep.mubr.f32.mxu0 %v2125_v3 }
  0x5f   :  { %678 = vmatprep.mubr.f32.mxu1 %v2125_v3 }
  0x61   :  { %1786 = vmatmul.mubr.msk.f32.gmra.mrb[42].mxu0 %vm206_vm0, %v43_v10 }
  0x62   :  { %1810 = vmatmul.mubr.msk.f32.gmra.mrb[42].mxu1 %vm206_vm0, %v43_v10  ;;  %475 = vmatprep.mubr.f32.mxu0 %v2125_v3 }
  0x63   :  { %684 = vmatprep.mubr.f32.mxu1 %v2125_v3 }
  0x65   :  { %1787 = vmatmul.mubr.msk.f32.gmra.mrb[44].mxu0 %vm206_vm0, %v44_v11 }
  0x66   :  { %1811 = vmatmul.mubr.msk.f32.gmra.mrb[44].mxu1 %vm206_vm0, %v44_v11  ;;  %481 = vmatprep.mubr.f32.mxu0 %v2125_v3 }
  0x67   :  { %690 = vmatprep.mubr.f32.mxu1 %v2125_v3 }
  0x69   :  { %1788 = vmatmul.mubr.msk.f32.gmra.mrb[46].mxu0 %vm206_vm0, %v45_v12 }
  0x6a   :  { %1812 = vmatmul.mubr.msk.f32.gmra.mrb[46].mxu1 %vm206_vm0, %v45_v12 }
  0x87   :  { %v99_v44 = vpop.permute.xlu1 %98 }
  0x88   :  { %v89_v14 = vpop.permute.xlu0 %88 }
  0x8c   :  { %v94_v26 = vpop.permute.xlu0 %93 }
  0xe0   :  { %v345_v15 = vpop.f32.mrb[0].mxu0 }
  0xe1   :  { %v346_v17 = vadd.f32 %v345_v15, %v89_v14  ;;  %v554_v18 = vpop.f32.mrb[0].mxu1  ;;  %v347_v19 = vpop.f32.mrb[1].mxu0 }
  0xe2   :  { %v2452_v20 = vadd.f32 %v554_v18, %v89_v14  ;;  %v2455_v22 = vadd.f32 %v347_v19, %v89_v14  ;;  %v556_v3 = vpop.f32.mrb[1].mxu1 }
  0xe3   :  { %v793_v23 = vmul.f32 0.044715, %v346_v17  ;;  %v2460_v25 = vadd.f32 %v556_v3, %v89_v14  ;;  %v2484_v55 = vmul.f32 0.5, %v346_v17  ;;  %v104_v14 = vpop.permute.xlu1 %103 }
  0xe4   :  { %v795_v27 = vmul.f32 0.044715, %v2452_v20  ;;  %v794_v28 = vmul.f32 0.044715, %v2455_v22  ;;  %v351_v29 = vpop.f32.mrb[2].mxu0  ;;  %v2491_v60 = vmul.f32 0.5, %v2455_v22 }
  0xe5   :  { %v889_v30 = vmul.f32 %v793_v23, %v346_v17  ;;  %v796_v31 = vmul.f32 0.044715, %v2460_v25  ;;  %v2465_v32 = vadd.f32 %v351_v29, %v94_v26  ;;  %v560_v33 = vpop.f32.mrb[2].mxu1  ;;  %v353_v34 = vpop.f32.mrb[3].mxu0  ;;  %v2498_v0 = vmul.f32 0.5, %v2460_v25 }
  0xe6   :  { %v891_v35 = vmul.f32 %v795_v27, %v2452_v20  ;;  %v2470_v37 = vadd.f32 %v560_v33, %v94_v26  ;;  %v2472_v38 = vadd.f32 %v353_v34, %v94_v26  ;;  %v562_v39 = vpop.f32.mrb[3].mxu1  ;;  %v890_v41 = vmul.f32 %v794_v28, %v2455_v22 }
  0xe7   :  { %v985_v40 = vmul.f32 %v889_v30, %v346_v17  ;;  %v797_v42 = vmul.f32 0.044715, %v2465_v32  ;;  %v2476_v43 = vadd.f32 %v562_v39, %v94_v26  ;;  %v892_v46 = vmul.f32 %v796_v31, %v2460_v25 }
  0xe8   :  { %v987_v45 = vmul.f32 %v891_v35, %v2452_v20  ;;  %v799_v47 = vmul.f32 0.044715, %v2470_v37  ;;  %v798_v48 = vmul.f32 0.044715, %v2472_v38  ;;  %v357_v49 = vpop.f32.mrb[4].mxu0  ;;  %v2501_v1 = vmul.f32 %v890_v41, %v2455_v22 }
  0xe9   :  { %v1081_v50 = vadd.f32 %v985_v40, %v346_v17  ;;  %v893_v51 = vmul.f32 %v797_v42, %v2465_v32  ;;  %v800_v52 = vmul.f32 0.044715, %v2476_v43  ;;  %v566_v53 = vpop.f32.mrb[4].mxu1  ;;  %v359_v54 = vpop.f32.mrb[5].mxu0  ;;  %v2488_v58 = vadd.f32 %v357_v49, %v99_v44 }
  0xea   :  { %v1083_v56 = vadd.f32 %v987_v45, %v2452_v20  ;;  %v895_v57 = vmul.f32 %v799_v47, %v2470_v37  ;;  %v568_v59 = vpop.f32.mrb[5].mxu1  ;;  %v894_v62 = vmul.f32 %v798_v48, %v2472_v38  ;;  %v2495_v63 = vadd.f32 %v566_v53, %v99_v44 }
  0xeb   :  { %3930 = vst [vmem:[#allocation5_spill] sm:$0xff] %v2488_v58  ;;  %v989_v61 = vmul.f32 %v893_v51, %v2465_v32  ;;  %v2504_v2 = vmul.f32 %v892_v46, %v2460_v25  ;;  %v801_v5 = vmul.f32 0.044715, %v2488_v58  ;;  %v1177_v7 = vmul.f32 0.7978846, %v1081_v50  ;;  %v109_v50 = vpop.permute.xlu0 %108 }
  0xec   :  { %3931 = vst [vmem:[#allocation6_spill] sm:$0xff] %v2495_v63  ;;  %v991_v4 = vmul.f32 %v895_v57, %v2470_v37  ;;  %v363_v6 = vpop.f32.mrb[6].mxu0  ;;  %v896_v9 = vmul.f32 %v800_v52, %v2476_v43  ;;  %v803_v10 = vmul.f32 0.044715, %v2495_v63  ;;  %v1179_v15 = vmul.f32 0.7978846, %v1083_v56 }
  0xed   :  { %v1085_v8 = vadd.f32 %v989_v61, %v2465_v32  ;;  %v572_v11 = vpop.f32.mrb[6].mxu1  ;;  %v365_v12 = vpop.f32.mrb[7].mxu0  ;;  %v897_v18 = vmul.f32 %v801_v5, %v2488_v58  ;;  %v2513_v19 = vadd.f32 %v359_v54, %v99_v44  ;;  %v2516_v3 = vmul.f32 %v894_v62, %v2472_v38 }
  0xee   :  { %v1087_v17 = vadd.f32 %v991_v4, %v2470_v37  ;;  %v574_v21 = vpop.f32.mrb[7].mxu1  ;;  %v899_v23 = vmul.f32 %v803_v10, %v2495_v63  ;;  %v2519_v24 = vadd.f32 %v568_v59, %v99_v44  ;;  %v2521_v26 = vadd.f32 %v363_v6, %v104_v14 }
  0xef   :  { %v1181_v27 = vmul.f32 0.7978846, %v1085_v8  ;;  %v993_v28 = vmul.f32 %v897_v18, %v2488_v58  ;;  %v802_v29 = vmul.f32 0.044715, %v2513_v19  ;;  %v2525_v30 = vadd.f32 %v572_v11, %v104_v14 }
  0xf0   :  { %3932 = vst [vmem:[#allocation7_spill] sm:$0xff] %v2521_v26  ;;  %v369_v31 = vpop.f32.mrb[8].mxu0  ;;  %1932 = vtanh.f32 %v1177_v7  ;;  %v995_v33 = vmul.f32 %v899_v23, %v2495_v63  ;;  %v804_v34 = vmul.f32 0.044715, %v2519_v24  ;;  %v805_v35 = vmul.f32 0.044715, %v2521_v26 }
  0xf1   :  { %3933 = vst [vmem:[#allocation8_spill] sm:$0xff] %v2525_v30  ;;  %v578_v39 = vpop.f32.mrb[8].mxu1  ;;  %v371_v40 = vpop.f32.mrb[9].mxu0  ;;  %1934 = vtanh.f32 %v1179_v15  ;;  %v1183_v41 = vmul.f32 0.7978846, %v1087_v17  ;;  %v1089_v42 = vadd.f32 %v993_v28, %v2488_v58  ;;  %v898_v47 = vmul.f32 %v802_v29, %v2513_v19 }
  0xf2   :  { %v807_v44 = vmul.f32 0.044715, %v2525_v30  ;;  %v580_v45 = vpop.f32.mrb[9].mxu1  ;;  %v1091_v46 = vadd.f32 %v995_v33, %v2495_v63  ;;  %v901_v48 = vmul.f32 %v805_v35, %v2521_v26  ;;  %v2535_v49 = vadd.f32 %v365_v12, %v104_v14  ;;  %v114_v33 = vpop.permute.xlu1 %113 }
  0xf3   :  { %1936 = vtanh.f32 %v1181_v27  ;;  %v2538_v51 = vmul.f32 %v896_v9, %v2476_v43  ;;  %v2541_v53 = vadd.f32 %v574_v21, %v104_v14  ;;  %v1185_v56 = vmul.f32 0.7978846, %v1089_v42 }
  0xf4   :  { %v903_v52 = vmul.f32 %v807_v44, %v2525_v30  ;;  %v375_v54 = vpop.f32.mrb[10].mxu0  ;;  %v900_v57 = vmul.f32 %v804_v34, %v2519_v24  ;;  %v997_v59 = vmul.f32 %v901_v48, %v2521_v26  ;;  %v806_v61 = vmul.f32 0.044715, %v2535_v49 }
  0xf5   :  { %v584_v62 = vpop.f32.mrb[10].mxu1  ;;  %v377_v4 = vpop.f32.mrb[11].mxu0  ;;  %v1187_v5 = vmul.f32 0.7978846, %v1091_v46  ;;  %v808_v7 = vmul.f32 0.044715, %v2541_v53  ;;  %v2548_v8 = vadd.f32 %v369_v31, %v109_v50  ;;  %1938 = vtanh.f32 %v1183_v41 }
  0xf6   :  { %v999_v6 = vmul.f32 %v903_v52, %v2525_v30  ;;  %v586_v9 = vpop.f32.mrb[11].mxu1  ;;  %v2551_v10 = vmul.f32 %v898_v47, %v2513_v19  ;;  %v1093_v11 = vadd.f32 %v997_v59, %v2521_v26  ;;  %v2554_v12 = vadd.f32 %v578_v39, %v109_v50 }
  0xf7   :  { %3934 = vst [vmem:[#allocation9_spill] sm:$0xff] %v2548_v8  ;;  %v902_v15 = vmul.f32 %v806_v61, %v2535_v49  ;;  %v809_v17 = vmul.f32 0.044715, %v2548_v8  ;;  %v2559_v18 = vadd.f32 %v371_v40, %v109_v50  ;;  %1940 = vtanh.f32 %v1185_v56 }
  0xf8   :  { %3935 = vst [vmem:[#allocation10_spill] sm:$0xff] %v2554_v12  ;;  %v1095_v14 = vadd.f32 %v999_v6, %v2525_v30  ;;  %v381_v21 = vpop.f32.mrb[12].mxu0  ;;  %v2562_v23 = vmul.f32 %v900_v57, %v2519_v24  ;;  %v811_v27 = vmul.f32 0.044715, %v2554_v12  ;;  %v2565_v28 = vadd.f32 %v580_v45, %v109_v50 }
  0xf9   :  { %3936 = vst [vmem:[#allocation11_spill] sm:$0xff] %v2559_v18  ;;  %v590_v29 = vpop.f32.mrb[12].mxu1  ;;  %v383_v31 = vpop.f32.mrb[13].mxu0  ;;  %1942 = vtanh.f32 %v1187_v5  ;;  %v904_v34 = vmul.f32 %v808_v7, %v2541_v53  ;;  %v905_v35 = vmul.f32 %v809_v17, %v2548_v8  ;;  %v810_v39 = vmul.f32 0.044715, %v2559_v18 }
  0xfa   :  { %3937 = vst [vmem:[#allocation12_spill] sm:$0xff] %v2565_v28  ;;  %v592_v40 = vpop.f32.mrb[13].mxu1  ;;  %v2570_v41 = vpop.eup %1932  ;;  %v1189_v42 = vmul.f32 0.7978846, %v1093_v11  ;;  %v907_v44 = vmul.f32 %v811_v27, %v2554_v12  ;;  %v812_v46 = vmul.f32 0.044715, %v2565_v28  ;;  %v2574_v45 = vadd.f32 %v375_v54, %v114_v33 }
  0xfb   :  { %v2576_v47 = vpop.eup %1934  ;;  %v1191_v48 = vmul.f32 0.7978846, %v1095_v14  ;;  %v2579_v50 = vmul.f32 %v902_v15, %v2535_v49  ;;  %v1001_v52 = vmul.f32 %v905_v35, %v2548_v8  ;;  %v2582_v56 = vadd.f32 %v584_v62, %v114_v33  ;;  %v119_v35 = vpop.permute.xlu0 %118 }
  0xfc   :  { %3938 = vst [vmem:[#allocation13_spill] sm:$0xff] %v2574_v45  ;;  %v387_v57 = vpop.f32.mrb[14].mxu0  ;;  %v1003_v59 = vmul.f32 %v907_v44, %v2554_v12  ;;  %v906_v61 = vmul.f32 %v810_v39, %v2559_v18  ;;  %v813_v5 = vmul.f32 0.044715, %v2574_v45  ;;  %v2587_v6 = vadd.f32 %v377_v4, %v114_v33 }
  0xfd   :  { %3939 = vst [vmem:[#allocation14_spill] sm:$0xff] %v2582_v56  ;;  %v596_v54 = vpop.f32.mrb[14].mxu1  ;;  %v2589_v7 = vpop.f32.mrb[15].mxu0  ;;  %v1097_v14 = vadd.f32 %v1001_v52, %v2548_v8  ;;  %v908_v15 = vmul.f32 %v812_v46, %v2565_v28  ;;  %v815_v62 = vmul.f32 0.044715, %v2582_v56  ;;  %v2596_v17 = vadd.f32 %v586_v9, %v114_v33 }
  0xfe   :  { %3940 = vst [vmem:[#allocation15_spill] sm:$0xff] %v2587_v6  ;;  %v2591_v11 = vpop.eup %1936  ;;  %v2598_v27 = vpop.f32.mrb[15].mxu1  ;;  %v2601_v39 = vmul.f32 %v904_v34, %v2541_v53  ;;  %v1099_v4 = vadd.f32 %v1003_v59, %v2554_v12  ;;  %v909_v44 = vmul.f32 %v813_v5, %v2574_v45  ;;  %v814_v13 = vmul.f32 0.044715, %v2587_v6 }
  0xff   :  { %3941 = vst [vmem:[#allocation16_spill] sm:$0xff] %v2596_v17  ;;  %1944 = vtanh.f32 %v1189_v42  ;;  %v1193_v52 = vmul.f32 0.7978846, %v1097_v14  ;;  %v911_v46 = vmul.f32 %v815_v62, %v2582_v56  ;;  %v2607_v16 = vadd.f32 %v381_v21, %v119_v35  ;;  %v2611_v33 = vpop.eup %1938 }
 0x100   :  { %v2609_v9 = vpop.f32.mrb[16].mxu0  ;;  %1946 = vtanh.f32 %v1191_v48  ;;  %v2614_v34 = vmul.f32 %v906_v61, %v2559_v18  ;;  %v1005_v59 = vmul.f32 %v909_v44, %v2574_v45  ;;  %v2617_v36 = vadd.f32 %v590_v29, %v119_v35 }
 0x101   :  { %3942 = vst [vmem:[#allocation17_spill] sm:$0xff] %v2607_v16  ;;  %v2619_v5 = vpop.f32.mrb[16].mxu1  ;;  %v2621_v42 = vpop.f32.mrb[17].mxu0  ;;  %v2624_v14 = vmul.f32 %v908_v15, %v2565_v28  ;;  %v1007_v21 = vmul.f32 %v911_v46, %v2582_v56  ;;  %v816_v62 = vmul.f32 0.044715, %v2596_v17  ;;  %v910_v8 = vmul.f32 %v814_v13, %v2587_v6 }
 0x102   :  { %3943 = vst [vmem:[#allocation18_spill] sm:$0xff] %v2614_v34  ;;  %3944 = vst [vmem:[#allocation19_spill] sm:$0xff] %v2617_v36  ;;  %v817_v48 = vmul.f32 0.044715, %v2607_v16  ;;  %v2629_v12 = vpop.f32.mrb[17].mxu1  ;;  %v2631_v61 = vpop.eup %1940  ;;  %v1101_v29 = vadd.f32 %v1005_v59, %v2574_v45  ;;  %1948 = vtanh.f32 %v1193_v52  ;;  %v2640_v28 = vadd.f32 %v383_v31, %v119_v35 }
 0x103   :  { %3945 = vst [vmem:[#allocation20_spill] sm:$0xff] %v2624_v14  ;;  %3946 = vst [vmem:[#allocation21_spill] sm:$0xff] %v2631_v61  ;;  %v1195_v44 = vmul.f32 0.7978846, %v1099_v4  ;;  %v819_v34 = vmul.f32 0.044715, %v2617_v36  ;;  %v2636_v18 = vpop.eup %1942  ;;  %v124_v15 = vpop.permute.xlu1 %123  ;;  %v1103_v46 = vadd.f32 %v1007_v21, %v2582_v56  ;;  %v2645_v59 = vadd.f32 %v592_v40, %v119_v35 }
 0x104   :  { %3947 = vst [vmem:[#allocation22_spill] sm:$0xff] %v2636_v18  ;;  %v913_v14 = vmul.f32 %v817_v48, %v2607_v16  ;;  %3948 = vst [vmem:[#allocation23_spill] sm:$0xff] %v2640_v28  ;;  %v2642_v30 = vpop.f32.mrb[18].mxu0  ;;  %v1197_v63 = vmul.f32 0.7978846, %v1101_v29  ;;  %v2647_v13 = vadd.f32 %v387_v57, %v124_v15  ;;  %v912_v21 = vmul.f32 %v816_v62, %v2596_v17 }
 0x105   :  { %v915_v4 = vmul.f32 %v819_v34, %v2617_v36  ;;  %3949 = vst [vmem:[#allocation24_spill] sm:$0xff] %v2645_v59  ;;  %v2649_v45 = vpop.f32.mrb[18].mxu1  ;;  %v2651_v18 = vpop.f32.mrb[19].mxu0  ;;  %v1199_v52 = vmul.f32 0.7978846, %v1103_v46  ;;  %v2655_v31 = vadd.f32 %v596_v54, %v124_v15  ;;  %1950 = vtanh.f32 %v1195_v44 }
 0x106   :  { %3950 = vst [vmem:[#allocation25_spill] sm:$0xff] %v2647_v13  ;;  %v1009_v48 = vmul.f32 %v913_v14, %v2607_v16  ;;  %v2657_v56 = vpop.f32.mrb[19].mxu1  ;;  %v818_v40 = vmul.f32 0.044715, %v2640_v28  ;;  %v820_v57 = vmul.f32 0.044715, %v2645_v59  ;;  %v2664_v34 = vmul.f32 %v910_v8, %v2587_v6 }
 0x107   :  { %3951 = vst [vmem:[#allocation26_spill] sm:$0xff] %v2655_v31  ;;  %v1011_v29 = vmul.f32 %v915_v4, %v2617_v36  ;;  %v821_v35 = vmul.f32 0.044715, %v2647_v13  ;;  %v823_v14 = vmul.f32 0.044715, %v2655_v31  ;;  %1952 = vtanh.f32 %v1197_v63 }
 0x108   :  { %3952 = vst [vmem:[#allocation27_spill] sm:$0xff] %v2664_v34  ;;  %v1105_v62 = vadd.f32 %v1009_v48, %v2607_v16  ;;  %v2668_v54 = vpop.f32.mrb[20].mxu0  ;;  %v2673_v61 = vadd.f32 %v2589_v7, %v124_v15  ;;  %1954 = vtanh.f32 %v1199_v52  ;;  %v2682_v48 = vmul.f32 %v912_v21, %v2596_v17  ;;  %v129_v7 = vpop.permute.xlu0 %128 }
 0x109   :  { %v1107_v46 = vadd.f32 %v1011_v29, %v2617_v36  ;;  %v917_v4 = vmul.f32 %v821_v35, %v2647_v13  ;;  %v2675_v26 = vpop.f32.mrb[20].mxu1  ;;  %v2677_v44 = vpop.f32.mrb[21].mxu0  ;;  %v919_v16 = vmul.f32 %v823_v14, %v2655_v31  ;;  %v2686_v63 = vadd.f32 %v2598_v27, %v124_v15 }
 0x10a   :  { %3953 = vst [vmem:[#allocation28_spill] sm:$0xff] %v2673_v61  ;;  %v2679_v8 = vpop.eup %1944  ;;  %3955 = vst [vmem:[#allocation30_spill] sm:$0xff] %v2682_v48  ;;  %v2688_v29 = vpop.f32.mrb[21].mxu1  ;;  %v914_v36 = vmul.f32 %v818_v40, %v2640_v28  ;;  %v916_v34 = vmul.f32 %v820_v57, %v2645_v59  ;;  %v822_v52 = vmul.f32 0.044715, %v2673_v61  ;;  %v2699_v27 = vadd.f32 %v2609_v9, %v129_v7 }
 0x10b   :  { %3954 = vst [vmem:[#allocation29_spill] sm:$0xff] %v2679_v8  ;;  %3956 = vst [vmem:[#allocation31_spill] sm:$0xff] %v2686_v63  ;;  %v2690_v35 = vpop.eup %1946  ;;  %v1013_v6 = vmul.f32 %v917_v4, %v2647_v13  ;;  %v1201_v21 = vmul.f32 0.7978846, %v1105_v62  ;;  %v1015_v48 = vmul.f32 %v919_v16, %v2655_v31  ;;  %v824_v14 = vmul.f32 0.044715, %v2686_v63 }
 0x10c   :  { %3957 = vst [vmem:[#allocation32_spill] sm:$0xff] %v2690_v35  ;;  %3958 = vst [vmem:[#allocation33_spill] sm:$0xff] %v2699_v27  ;;  %v2701_v15 = vpop.f32.mrb[22].mxu0  ;;  %v1203_v17 = vmul.f32 0.7978846, %v1107_v46  ;;  %v918_v40 = vmul.f32 %v822_v52, %v2673_v61  ;;  %v2706_v57 = vadd.f32 %v2619_v5, %v129_v7  ;;  %v2712_v16 = vpop.eup %1948  ;;  %v2718_v46 = vadd.f32 %v2621_v42, %v129_v7 }
 0x10d   :  { %v1109_v35 = vadd.f32 %v1013_v6, %v2647_v13  ;;  %v2708_v4 = vpop.f32.mrb[22].mxu1  ;;  %v2710_v62 = vpop.f32.mrb[23].mxu0  ;;  %3961 = vst [vmem:[#allocation36_spill] sm:$0xff] %v2712_v16  ;;  %v1111_v8 = vadd.f32 %v1015_v48, %v2655_v31  ;;  %v920_v9 = vmul.f32 %v824_v14, %v2686_v63  ;;  %v825_v58 = vmul.f32 0.044715, %v2699_v27 }
 0x10e   :  { %3959 = vst [vmem:[#allocation34_spill] sm:$0xff] %v2706_v57  ;;  %3960 = vst [vmem:[#allocation35_spill] sm:$0xff] %v2710_v62  ;;  %v2720_v6 = vpop.f32.mrb[23].mxu1  ;;  %v2723_v5 = vmul.f32 %v914_v36, %v2640_v28  ;;  %v827_v13 = vmul.f32 0.044715, %v2706_v57  ;;  %v2727_v62 = vadd.f32 %v2629_v12, %v129_v7  ;;  %1956 = vtanh.f32 %v1201_v21 }
 0x10f   :  { %3962 = vst [vmem:[#allocation37_spill] sm:$0xff] %v2718_v46  ;;  %v1205_v52 = vmul.f32 0.7978846, %v1109_v35  ;;  %v2730_v48 = vmul.f32 %v916_v34, %v2645_v59  ;;  %v1207_v14 = vmul.f32 0.7978846, %v1111_v8  ;;  %v921_v31 = vmul.f32 %v825_v58, %v2699_v27  ;;  %v2744_v7 = vpop.eup %1950 }
 0x110   :  { %3963 = vst [vmem:[#allocation38_spill] sm:$0xff] %v2723_v5  ;;  %3964 = vst [vmem:[#allocation39_spill] sm:$0xff] %v2727_v62  ;;  %v2733_v42 = vpop.f32.mrb[24].mxu0  ;;  %1958 = vtanh.f32 %v1203_v17  ;;  %v2736_v16 = vmul.f32 %v918_v40, %v2673_v61  ;;  %v923_v36 = vmul.f32 %v827_v13, %v2706_v57  ;;  %v826_v35 = vmul.f32 0.044715, %v2718_v46 }
 0x111   :  { %3965 = vst [vmem:[#allocation40_spill] sm:$0xff] %v2730_v48  ;;  %v2740_v5 = vpop.f32.mrb[24].mxu1  ;;  %v2742_v12 = vpop.f32.mrb[25].mxu0  ;;  %1960 = vtanh.f32 %v1205_v52  ;;  %v2747_v34 = vmul.f32 %v920_v9, %v2686_v63  ;;  %v1017_v58 = vmul.f32 %v921_v31, %v2699_v27  ;;  %v1082_v17 = vadd.f32 %v2501_v1, %v2455_v22 }
 0x112   :  { %3966 = vst [vmem:[#allocation41_spill] sm:$0xff] %v2736_v16  ;;  %v2752_v8 = vpop.f32.mrb[25].mxu1  ;;  %v2754_v13 = vpop.eup %1952  ;;  %v1019_v21 = vmul.f32 %v923_v36, %v2706_v57  ;;  %v828_v40 = vmul.f32 0.044715, %v2727_v62  ;;  %v2759_v48 = vmul.f32 0.5, %v2472_v38  ;;  %v1086_v9 = vadd.f32 %v2516_v3, %v2472_v38 }
 0x113   :  { %3967 = vst [vmem:[#allocation42_spill] sm:$0xff] %v2747_v34  ;;  %v2763_v52 = vpop.eup %1954  ;;  %v134_v31 = vpop.permute.xlu1 %133  ;;  %1962 = vtanh.f32 %v1207_v14  ;;  %v1113_v22 = vadd.f32 %v1017_v58, %v2699_v27  ;;  %v1178_v1 = vmul.f32 0.7978846, %v1082_v17  ;;  %v1084_v34 = vadd.f32 %v2504_v2, %v2460_v25 }
 0x114   :  { %v2768_v63 = vpop.f32.mrb[26].mxu0  ;;  %v1115_v36 = vadd.f32 %v1019_v21, %v2706_v57  ;;  %v922_v59 = vmul.f32 %v826_v35, %v2718_v46  ;;  %v1182_v16 = vmul.f32 0.7978846, %v1086_v9  ;;  %v1088_v38 = vadd.f32 %v2538_v51, %v2476_v43 }
 0x115   :  { %v2774_v3 = vpop.f32.mrb[26].mxu1  ;;  %v2776_v61 = vpop.f32.mrb[27].mxu0  ;;  %v1209_v14 = vmul.f32 0.7978846, %v1113_v22  ;;  %1964 = vtanh.f32 %v1178_v1  ;;  %v1180_v58 = vmul.f32 0.7978846, %v1084_v34  ;;  %v2779_v17 = vadd.f32 %v2642_v30, %v134_v31 }
 0x116   :  { %v2781_v25 = vpop.f32.mrb[27].mxu1  ;;  %v1211_v2 = vmul.f32 0.7978846, %v1115_v36  ;;  %1966 = vtanh.f32 %v1182_v16  ;;  %v1184_v21 = vmul.f32 0.7978846, %v1088_v38  ;;  %v2784_v35 = vadd.f32 %v2649_v45, %v134_v31 }
 0x117   :  { %3968 = vst [vmem:[#allocation43_spill] sm:$0xff] %v2779_v17  ;;  %v2787_v51 = vmul.f32 0.5, %v2476_v43  ;;  %v829_v9 = vmul.f32 0.044715, %v2779_v17  ;;  %v701_v22 = vmul.f32 0.5, %v2465_v32  ;;  %v1369_v34 = vadd.f32 1.0, %v2570_v41 }
 0x118   :  { %3969 = vst [vmem:[#allocation44_spill] sm:$0xff] %v2784_v35  ;;  %v2792_v1 = vpop.f32.mrb[28].mxu0  ;;  %v924_v30 = vmul.f32 %v828_v40, %v2727_v62  ;;  %v831_v36 = vmul.f32 0.044715, %v2784_v35  ;;  %v1373_v16 = vadd.f32 1.0, %v2591_v11  ;;  %v699_v45 = vmul.f32 0.5, %v2452_v20  ;;  %v2802_v57 = vpop.eup %1956 }
 0x119   :  { %v2798_v38 = vpop.f32.mrb[28].mxu1  ;;  %v2800_v43 = vpop.f32.mrb[29].mxu0  ;;  %3971 = vst [vmem:[#allocation46_spill] sm:$0xff] %v2802_v57  ;;  %1968 = vtanh.f32 %v1180_v58  ;;  %v925_v32 = vmul.f32 %v829_v9, %v2779_v17  ;;  %v2806_v41 = vmul.f32 %v1369_v34, %v2484_v55  ;;  %v703_v40 = vmul.f32 0.5, %v2470_v37 }
 0x11a   :  { %3970 = vst [vmem:[#allocation45_spill] sm:$0xff] %v2800_v43  ;;  %v2809_v27 = vpop.f32.mrb[29].mxu1  ;;  %v2811_v28 = vpop.eup %1958  ;;  %1970 = vtanh.f32 %v1184_v21  ;;  %v927_v20 = vmul.f32 %v831_v36, %v2784_v35  ;;  %v2814_v11 = vmul.f32 %v1373_v16, %v701_v22  ;;  %v1371_v43 = vadd.f32 1.0, %v2576_v47 }
 0x11b   :  { %3972 = vst [vmem:[#allocation47_spill] sm:$0xff] %v2811_v28  ;;  %v2817_v57 = vpop.eup %1960  ;;  %v139_v58 = vpop.permute.xlu0 %138  ;;  %v1021_v9 = vmul.f32 %v925_v32, %v2779_v17  ;;  %v1375_v55 = vadd.f32 1.0, %v2611_v33  ;;  %v2822_v37 = vadd.f32 %v2651_v18, %v134_v31  ;;  %v2825_v34 = vadd.f32 %v2657_v56, %v134_v31 }
 0x11c   :  { %v2827_v21 = vpop.f32.mrb[30].mxu0  ;;  %v1023_v22 = vmul.f32 %v927_v20, %v2784_v35  ;;  %v2832_v36 = vmul.f32 %v1371_v43, %v699_v45  ;;  %v2835_v16 = vadd.f32 %v2668_v54, %v139_v58  ;;  %v2851_v45 = vmul.f32 %v922_v59, %v2718_v46 }
 0x11d   :  { %v2837_v32 = vpop.f32.mrb[30].mxu1  ;;  %v2839_v33 = vpop.f32.mrb[31].mxu0  ;;  %v1117_v56 = vadd.f32 %v1021_v9, %v2779_v17  ;;  %v2844_v31 = vmul.f32 %v1375_v55, %v703_v40  ;;  %v830_v20 = vmul.f32 0.044715, %v2822_v37  ;;  %v832_v28 = vmul.f32 0.044715, %v2825_v34 }
 0x11e   :  { %3973 = vst [vmem:[#allocation48_spill] sm:$0xff] %v2835_v16  ;;  %3974 = vst [vmem:[#allocation49_spill] sm:$0xff] %v2839_v33  ;;  %v2841_v18 = vpop.eup %1962  ;;  %v2848_v47 = vpop.f32.mrb[31].mxu1  ;;  %v1119_v54 = vadd.f32 %v1023_v22, %v2784_v35  ;;  %v833_v43 = vmul.f32 0.044715, %v2835_v16  ;;  %v2856_v33 = vadd.f32 %v2675_v26, %v139_v58  ;;  %1972 = vtanh.f32 %v1209_v14 }
 0x11f   :  { %3975 = vst [vmem:[#allocation50_spill] sm:$0xff] %v2841_v18  ;;  %3976 = vst [vmem:[#allocation51_spill] sm:$0xff] %v2848_v47  ;;  %v1965_v18 = vpop.eup %1964  ;;  %v1213_v40 = vmul.f32 0.7978846, %v1117_v56  ;;  %v2861_v55 = vadd.f32 %v2677_v44, %v139_v58  ;;  %v926_v22 = vmul.f32 %v830_v20, %v2822_v37  ;;  %1974 = vtanh.f32 %v1211_v2 }
 0x120   :  { %3977 = vst [vmem:[#allocation52_spill] sm:$0xff] %v2851_v45  ;;  %3978 = vst [vmem:[#allocation53_spill] sm:$0xff] %v2856_v33  ;;  %v2863_v17 = vpop.f32.mrb[32].mxu0  ;;  %v1967_v59 = vpop.eup %1966  ;;  %v1370_v45 = vadd.f32 1.0, %v1965_v18  ;;  %v929_v35 = vmul.f32 %v833_v43, %v2835_v16  ;;  %v835_v26 = vmul.f32 0.044715, %v2856_v33  ;;  %v2871_v14 = vmul.f32 %v924_v30, %v2727_v62 }
 0x121   :  { %3979 = vst [vmem:[#allocation54_spill] sm:$0xff] %v2861_v55  ;;  %3980 = vst [vmem:[#allocation55_spill] sm:$0xff] %v2863_v17  ;;  %v2868_v46 = vpop.f32.mrb[32].mxu1  ;;  %v1374_v56 = vadd.f32 1.0, %v1967_v59  ;;  %v928_v44 = vmul.f32 %v832_v28, %v2825_v34  ;;  %v2874_v9 = vpop.f32.mrb[33].mxu0  ;;  %1976 = vtanh.f32 %v1213_v40  ;;  %v2884_v59 = vadd.f32 %v2688_v29, %v139_v58 }
 0x122   :  { %3981 = vst [vmem:[#allocation56_spill] sm:$0xff] %v2868_v46  ;;  %3982 = vst [vmem:[#allocation57_spill] sm:$0xff] %v2871_v14  ;;  %v2876_v17 = vpop.f32.mrb[33].mxu1  ;;  %v1215_v18 = vmul.f32 0.7978846, %v1119_v54  ;;  %v1025_v20 = vmul.f32 %v929_v35, %v2835_v16  ;;  %v931_v43 = vmul.f32 %v835_v26, %v2856_v33  ;;  %v1466_v46 = vmul.f32 %v1370_v45, %v2491_v60 }
 0x123   :  { %v1969_v47 = vpop.eup %1968  ;;  %v1470_v2 = vmul.f32 %v1374_v56, %v2759_v48  ;;  %v834_v30 = vmul.f32 0.044715, %v2861_v55  ;;  %v2889_v54 = vmul.f32 %v926_v22, %v2822_v37  ;;  %v836_v58 = vmul.f32 0.044715, %v2884_v59 }
 0x124   :  { %v2886_v28 = vpop.f32.mrb[34].mxu0  ;;  %v1971_v14 = vpop.eup %1970  ;;  %v1372_v62 = vadd.f32 1.0, %v1969_v47  ;;  %v1121_v35 = vadd.f32 %v1025_v20, %v2835_v16  ;;  %v1027_v40 = vmul.f32 %v931_v43, %v2856_v33  ;;  %1978 = vtanh.f32 %v1215_v18 }
 0x125   :  { %v2893_v26 = vpop.f32.mrb[34].mxu1  ;;  %v2895_v60 = vpop.f32.mrb[35].mxu0  ;;  %v1831_v48 = vpack.c.bf16 %v1470_v2, %v1466_v46  ;;  %v1376_v45 = vadd.f32 1.0, %v1971_v14  ;;  %v930_v29 = vmul.f32 %v834_v30, %v2861_v55  ;;  %v2902_v47 = vmul.f32 %v928_v44, %v2825_v34 }
 0x126   :  { %v2899_v56 = vpop.f32.mrb[35].mxu1  ;;  %v1123_v22 = vadd.f32 %v1027_v40, %v2856_v33  ;;  %v1090_v20 = vadd.f32 %v2551_v10, %v2513_v19  ;;  %v1468_v43 = vmul.f32 %v1372_v62, %v2498_v0  ;;  %v2910_v14 = vmul.f32 0.5, %v2513_v19  ;;  %v144_v44 = vpop.permute.xlu1 %143 }
 0x127   :  { %1832 = vmatprep.subr.bf16.mxu0 %v1831_v48  ;;  %v1472_v46 = vmul.f32 %v1376_v45, %v2787_v51  ;;  %v1094_v2 = vadd.f32 %v2579_v50, %v2535_v49  ;;  %v3984_v30 = vpack.c.bf16 %v2814_v11, %v2806_v41  ;;  %v2919_v40 = vmul.f32 0.7978846, %v1121_v35 }
 0x128   :  { %v2914_v18 = vpop.f32.mrb[36].mxu0  ;;  %v2922_v10 = vmul.f32 %v930_v29, %v2861_v55  ;;  %v2925_v0 = vmul.f32 0.5, %v2535_v49  ;;  %v1186_v19 = vmul.f32 0.7978846, %v1090_v20  ;;  %v2929_v51 = vpop.eup %1972  ;;  %v2931_v48 = vmul.f32 0.7978846, %v1123_v22 }
 0x129   :  { %3983 = vst [vmem:[#allocation58_spill] sm:$0xff] %v2914_v18  ;;  %1834 = vmatpush1.bf16.msra.mxu0 %v3984_v30  ;;  %v2927_v62 = vpop.f32.mrb[36].mxu1  ;;  %v1879_v50 = vpack.c.bf16 %v1472_v46, %v1468_v43  ;;  %v2934_v45 = vmul.f32 %v836_v58, %v2884_v59  ;;  %v1190_v41 = vmul.f32 0.7978846, %v1094_v2  ;;  %v2936_v11 = vpop.f32.mrb[37].mxu0  ;;  %v2941_v29 = vmul.f32 0.5, %v2519_v24 }
 0x12a   :  { %3985 = vst [vmem:[#allocation59_spill] sm:$0xff] %v2922_v10  ;;  %3986 = vst [vmem:[#allocation60_spill] sm:$0xff] %v2927_v62  ;;  %v2938_v35 = vpop.f32.mrb[37].mxu1  ;;  %v1092_v49 = vadd.f32 %v2562_v23, %v2519_v24  ;;  %v1096_v20 = vadd.f32 %v2601_v39, %v2541_v53  ;;  %v2948_v22 = vadd.f32 %v2701_v15, %v144_v44  ;;  %v2950_v43 = vpop.eup %1974  ;;  %1980 = vtanh.f32 %v1186_v19  ;;  %v3991_v46 = vld [vmem:[#allocation5_spill] sm:$0xff]  ;;  %v3992_v30 = vld [vmem:[#allocation7_spill] sm:$0xff] }
 0x12b   :  { %3987 = vst [vmem:[#allocation61_spill] sm:$0xff] %v2936_v11  ;;  %3988 = vst [vmem:[#allocation62_spill] sm:$0xff] %v2938_v35  ;;  %1880 = vmatprep.subr.bf16.mxu1 %v1879_v50  ;;  %v2953_v58 = vadd.f32 %v2708_v4, %v144_v44  ;;  %v705_v2 = vmul.f32 0.5, %v3991_v46  ;;  %v709_v33 = vmul.f32 0.5, %v3992_v30  ;;  %v2959_v24 = vpop.eup %1976  ;;  %v3994_v23 = vpack.c.bf16 %v2844_v31, %v2832_v36  ;;  %v3995_v50 = vld [vmem:[#allocation21_spill] sm:$0xff]  ;;  %v3997_v30 = vld [vmem:[#allocation6_spill] sm:$0xff]  ;;  %v149_v62 = vpop.permute.xlu0 %148 }
 0x12c   :  { %3989 = vst [vmem:[#allocation63_spill] sm:$0xff] %v2948_v22  ;;  %v2957_v16 = vpop.f32.mrb[38].mxu0  ;;  %1982 = vtanh.f32 %v1190_v41  ;;  %v1188_v39 = vmul.f32 0.7978846, %v1092_v49  ;;  %v1192_v15 = vmul.f32 0.7978846, %v1096_v20 }
 0x12d   :  { %3990 = vst [vmem:[#allocation64_spill] sm:$0xff] %v2953_v58  ;;  %3993 = vst [vmem:[#allocation5_spill] sm:$0xff] %v2957_v16  ;;  %1882 = vmatpush1.bf16.msra.mxu1 %v3994_v23  ;;  %v837_v19 = vmul.f32 0.044715, %v2948_v22  ;;  %v839_v4 = vmul.f32 0.044715, %v2953_v58 }
 0x12e   :  { %v1377_v10 = vadd.f32 1.0, %v3995_v50  ;;  %v3996_v46 = vld [vmem:[#allocation29_spill] sm:$0xff]  ;;  %v707_v35 = vmul.f32 0.5, %v3997_v30  ;;  %v2969_v16 = vpop.f32.mrb[38].mxu1  ;;  %1984 = vtanh.f32 %v1188_v39  ;;  %v3999_v36 = vld [vmem:[#allocation8_spill] sm:$0xff]  ;;  %v4000_v41 = vld [vmem:[#allocation22_spill] sm:$0xff]  ;;  %v2985_v39 = vpop.eup %1978 }
 0x12f   :  { %v1381_v55 = vadd.f32 1.0, %v3996_v46  ;;  %3998 = vst [vmem:[#allocation7_spill] sm:$0xff] %v2969_v16  ;;  %v933_v11 = vmul.f32 %v837_v19, %v2948_v22  ;;  %v711_v31 = vmul.f32 0.5, %v3999_v36  ;;  %v1379_v49 = vadd.f32 1.0, %v4000_v41  ;;  %v2974_v20 = vpop.f32.mrb[39].mxu0  ;;  %v2976_v23 = vpop.f32.mrb[39].mxu1 }
 0x130   :  { %4001 = vst [vmem:[#allocation21_spill] sm:$0xff] %v2974_v20  ;;  %4002 = vst [vmem:[#allocation29_spill] sm:$0xff] %v2976_v23  ;;  %1986 = vtanh.f32 %v1192_v15  ;;  %v935_v50 = vmul.f32 %v839_v4, %v2953_v58  ;;  %v2979_v46 = vmul.f32 %v1377_v10, %v705_v2  ;;  %v2983_v16 = vpop.f32.mrb[40].mxu0  ;;  %v4004_v36 = vld [vmem:[#allocation32_spill] sm:$0xff]  ;;  %v4005_v20 = vld [vmem:[#allocation35_spill] sm:$0xff]  ;;  %v3002_v10 = vadd.f32 %v2720_v6, %v144_v44 }
 0x131   :  { %v2981_v30 = vmul.f32 %v1381_v55, %v709_v33  ;;  %4003 = vst [vmem:[#allocation6_spill] sm:$0xff] %v2983_v16  ;;  %v1029_v19 = vmul.f32 %v933_v11, %v2948_v22  ;;  %v1383_v41 = vadd.f32 1.0, %v4004_v36  ;;  %v2989_v18 = vmul.f32 %v1379_v49, %v707_v35  ;;  %v2994_v15 = vpop.f32.mrb[40].mxu1  ;;  %v2996_v4 = vpop.f32.mrb[41].mxu0 }
 0x132   :  { %v2992_v23 = vadd.f32 %v4005_v20, %v144_v44  ;;  %4006 = vst [vmem:[#allocation8_spill] sm:$0xff] %v2994_v15  ;;  %4007 = vst [vmem:[#allocation22_spill] sm:$0xff] %v2996_v4  ;;  %v1031_v33 = vmul.f32 %v935_v50, %v2953_v58  ;;  %v3005_v11 = vadd.f32 %v2733_v42, %v149_v62  ;;  %v3007_v35 = vpop.f32.mrb[41].mxu1  ;;  %v840_v55 = vmul.f32 0.044715, %v3002_v10 }
 0x133   :  { %4009 = vst [vmem:[#allocation35_spill] sm:$0xff] %v3007_v35  ;;  %v1125_v2 = vadd.f32 %v1029_v19, %v2948_v22  ;;  %v3010_v49 = vmul.f32 %v1383_v41, %v711_v31  ;;  %v3014_v36 = vadd.f32 %v2740_v5, %v149_v62  ;;  %v3020_v42 = vadd.f32 %v2742_v12, %v149_v62 }
 0x134   :  { %4008 = vst [vmem:[#allocation32_spill] sm:$0xff] %v3005_v11  ;;  %v838_v20 = vmul.f32 0.044715, %v2992_v23  ;;  %v1127_v50 = vadd.f32 %v1031_v33, %v2953_v58  ;;  %v841_v6 = vmul.f32 0.044715, %v3005_v11  ;;  %v3022_v44 = vpop.f32.mrb[42].mxu0  ;;  %1988 = vtanh.f32 %v2919_v40  ;;  %v1981_v35 = vpop.eup %1980 }
 0x135   :  { %4010 = vst [vmem:[#allocation65_spill] sm:$0xff] %v3014_v36  ;;  %4011 = vst [vmem:[#allocation66_spill] sm:$0xff] %v3022_v44  ;;  %v1221_v31 = vmul.f32 0.7978846, %v1125_v2  ;;  %v843_v5 = vmul.f32 0.044715, %v3014_v36  ;;  %v3034_v4 = vmul.f32 %v2934_v45, %v2884_v59  ;;  %1990 = vtanh.f32 %v2931_v48 }
 0x136   :  { %v3028_v41 = vpop.f32.mrb[42].mxu1  ;;  %v3030_v33 = vpop.f32.mrb[43].mxu0  ;;  %v712_v12 = vmul.f32 0.5, %v2541_v53  ;;  %v937_v44 = vmul.f32 %v841_v6, %v3005_v11  ;;  %v842_v40 = vmul.f32 0.044715, %v3020_v42  ;;  %v1378_v15 = vadd.f32 1.0, %v1981_v35 }
 0x137   :  { %4012 = vst [vmem:[#allocation67_spill] sm:$0xff] %v3028_v41  ;;  %4013 = vst [vmem:[#allocation68_spill] sm:$0xff] %v3030_v33  ;;  %v3039_v2 = vpop.f32.mrb[43].mxu1  ;;  %v1983_v19 = vpop.eup %1982  ;;  %v934_v41 = vmul.f32 %v838_v20, %v2992_v23  ;;  %v939_v33 = vmul.f32 %v843_v5, %v3014_v36  ;;  %v1223_v58 = vmul.f32 0.7978846, %v1127_v50  ;;  %v936_v45 = vmul.f32 %v840_v55, %v3002_v10 }
 0x138   :  { %4014 = vst [vmem:[#allocation69_spill] sm:$0xff] %v3034_v4  ;;  %4015 = vst [vmem:[#allocation70_spill] sm:$0xff] %v3039_v2  ;;  %v1382_v16 = vadd.f32 1.0, %v1983_v19  ;;  %v1033_v53 = vmul.f32 %v937_v44, %v3005_v11  ;;  %v3046_v22 = vpop.f32.mrb[44].mxu0  ;;  %v1985_v6 = vpop.eup %1984  ;;  %v1474_v4 = vmul.f32 %v1378_v15, %v2910_v14  ;;  %1992 = vtanh.f32 %v1221_v31 }
 0x139   :  { %4016 = vst [vmem:[#allocation71_spill] sm:$0xff] %v3046_v22  ;;  %v1035_v2 = vmul.f32 %v939_v33, %v3014_v36  ;;  %v3051_v48 = vadd.f32 %v2752_v8, %v149_v62  ;;  %v3053_v35 = vpop.f32.mrb[44].mxu1  ;;  %v3055_v20 = vpop.f32.mrb[45].mxu0  ;;  %v1380_v19 = vadd.f32 1.0, %v1985_v6  ;;  %v938_v5 = vmul.f32 %v842_v40, %v3020_v42  ;;  %v4020_v40 = vld [vmem:[#allocation11_spill] sm:$0xff] }
 0x13a   :  { %4017 = vst [vmem:[#allocation72_spill] sm:$0xff] %v3053_v35  ;;  %4018 = vst [vmem:[#allocation73_spill] sm:$0xff] %v3055_v20  ;;  %v1987_v50 = vpop.eup %1986  ;;  %v1478_v55 = vmul.f32 %v1382_v16, %v2925_v0  ;;  %v1129_v44 = vadd.f32 %v1033_v53, %v3005_v11  ;;  %v3060_v22 = vpop.f32.mrb[45].mxu1  ;;  %v3063_v15 = vmul.f32 %v934_v41, %v2992_v23  ;;  %1994 = vtanh.f32 %v1223_v58  ;;  %v4022_v58 = vld [vmem:[#allocation15_spill] sm:$0xff]  ;;  %v4028_v20 = vld [vmem:[#allocation20_spill] sm:$0xff] }
 0x13b   :  { %4019 = vst [vmem:[#allocation74_spill] sm:$0xff] %v3060_v22  ;;  %v1384_v14 = vadd.f32 1.0, %v1987_v50  ;;  %v1131_v8 = vadd.f32 %v1035_v2, %v3014_v36  ;;  %v844_v62 = vmul.f32 0.044715, %v3051_v48  ;;  %v3068_v33 = vmul.f32 %v936_v45, %v3002_v10  ;;  %v4021_v50 = vld [vmem:[#allocation18_spill] sm:$0xff]  ;;  %v154_v22 = vpop.permute.xlu1 %153 }
 0x13c   :  { %v1835_v31 = vpack.c.bf16 %v1478_v55, %v1474_v4  ;;  %v1225_v16 = vmul.f32 0.7978846, %v1129_v44  ;;  %v1476_v0 = vmul.f32 %v1380_v19, %v2941_v29  ;;  %v3072_v6 = vmul.f32 0.5, %v4020_v40  ;;  %v4023_v55 = vld [vmem:[#allocation27_spill] sm:$0xff]  ;;  %v4030_v35 = vld [vmem:[#allocation30_spill] sm:$0xff] }
 0x13d   :  { %v1480_v53 = vmul.f32 %v1384_v14, %v712_v12  ;;  %v1098_v41 = vadd.f32 %v4021_v50, %v4020_v40  ;;  %v3076_v2 = vmul.f32 0.7978846, %v1131_v8  ;;  %v3079_v4 = vmul.f32 %v938_v5, %v3020_v42  ;;  %v3094_v5 = vpop.f32.mrb[46].mxu0  ;;  %v4027_v50 = vld [vmem:[#allocation12_spill] sm:$0xff] }
 0x13e   :  { %1836 = vmatprep.subr.bf16.mxu0 %v1835_v31  ;;  %v3082_v45 = vmul.f32 0.5, %v4022_v58  ;;  %v1102_v29 = vadd.f32 %v4023_v55, %v4022_v58  ;;  %v3086_v12 = vpop.eup %1988  ;;  %v4024_v44 = vpack.c.bf16 %v2981_v30, %v2979_v46  ;;  %1996 = vtanh.f32 %v1225_v16  ;;  %4025 = vst [vmem:[#allocation11_spill] sm:$0xff] %v3094_v5  ;;  %v3096_v31 = vpop.f32.mrb[46].mxu1  ;;  %v4029_v55 = vld [vmem:[#allocation16_spill] sm:$0xff] }
 0x13f   :  { %v1883_v19 = vpack.c.bf16 %v1480_v53, %v1476_v0  ;;  %v3092_v14 = vmul.f32 %v844_v62, %v3051_v48  ;;  %v1194_v8 = vmul.f32 0.7978846, %v1098_v41  ;;  %4026 = vst [vmem:[#allocation18_spill] sm:$0xff] %v3096_v31  ;;  %v1100_v58 = vadd.f32 %v4028_v20, %v4027_v50  ;;  %v3105_v46 = vpop.f32.mrb[47].mxu0  ;;  %v3107_v30 = vpop.f32.mrb[47].mxu1  ;;  %v4035_v41 = vld [vmem:[#allocation9_spill] sm:$0xff] }
 0x140   :  { %1838 = vmatpush1.bf16.msra.mxu0 %v4024_v44  ;;  %v1198_v40 = vmul.f32 0.7978846, %v1102_v29  ;;  %v1104_v0 = vadd.f32 %v4030_v35, %v4029_v55  ;;  %v3103_v53 = vadd.f32 %v2768_v63, %v154_v22  ;;  %4032 = vst [vmem:[#allocation27_spill] sm:$0xff] %v3105_v46  ;;  %4033 = vst [vmem:[#allocation12_spill] sm:$0xff] %v3107_v30  ;;  %v3109_v62 = vpop.eup %1990  ;;  %v713_v29 = vmul.f32 0.5, %v4035_v41  ;;  %v4036_v20 = vld [vmem:[#allocation13_spill] sm:$0xff] }
 0x141   :  { %1884 = vmatprep.subr.bf16.mxu1 %v1883_v19  ;;  %1998 = vtanh.f32 %v1194_v8  ;;  %v3112_v16 = vadd.f32 %v2774_v3, %v154_v22  ;;  %v717_v44 = vmul.f32 0.5, %v4036_v20  ;;  %v4037_v35 = vpack.c.bf16 %v3010_v49, %v2989_v18  ;;  %v4038_v8 = vld [vmem:[#allocation36_spill] sm:$0xff]  ;;  %v4039_v41 = vld [vmem:[#allocation10_spill] sm:$0xff] }
 0x142   :  { %4031 = vst [vmem:[#allocation15_spill] sm:$0xff] %v3103_v53  ;;  %2000 = vtanh.f32 %v1198_v40  ;;  %v1196_v63 = vmul.f32 0.7978846, %v1100_v58  ;;  %v1200_v46 = vmul.f32 0.7978846, %v1104_v0  ;;  %v3120_v31 = vpop.eup %1992  ;;  %v1385_v3 = vadd.f32 1.0, %v4038_v8  ;;  %v159_v8 = vpop.permute.xlu0 %158 }
 0x143   :  { %4034 = vst [vmem:[#allocation20_spill] sm:$0xff] %v3112_v16  ;;  %1886 = vmatpush1.bf16.msra.mxu1 %v4037_v35  ;;  %v845_v30 = vmul.f32 0.044715, %v3103_v53  ;;  %v847_v19 = vmul.f32 0.044715, %v3112_v16  ;;  %v1389_v5 = vadd.f32 1.0, %v2754_v13 }
 0x144   :  { %v715_v36 = vmul.f32 0.5, %v4039_v41  ;;  %2002 = vtanh.f32 %v1196_v63  ;;  %v4040_v18 = vld [vmem:[#allocation14_spill] sm:$0xff]  ;;  %v1387_v40 = vadd.f32 1.0, %v2744_v7  ;;  %v3130_v0 = vmul.f32 %v1385_v3, %v713_v29  ;;  %v3134_v11 = vpop.eup %1994 }
 0x145   :  { %v941_v20 = vmul.f32 %v845_v30, %v3103_v53  ;;  %v719_v49 = vmul.f32 0.5, %v4040_v18  ;;  %2004 = vtanh.f32 %v1200_v46  ;;  %v943_v58 = vmul.f32 %v847_v19, %v3112_v16 }
 0x146   :  { %v3132_v35 = vmul.f32 %v1389_v5, %v717_v44  ;;  %v1391_v63 = vadd.f32 1.0, %v2763_v52  ;;  %v3138_v41 = vmul.f32 %v1387_v40, %v715_v36  ;;  %v3141_v30 = vadd.f32 %v2776_v61, %v154_v22 }
 0x147   :  { %v1037_v13 = vmul.f32 %v941_v20, %v3103_v53  ;;  %v1039_v7 = vmul.f32 %v943_v58, %v3112_v16  ;;  %v3147_v5 = vadd.f32 %v2781_v25, %v154_v22  ;;  %v3150_v29 = vadd.f32 %v2792_v1, %v159_v8  ;;  %v4044_v22 = vld [vmem:[#allocation45_spill] sm:$0xff] }
 0x148   :  { %v1841_v46 = vpack.c.bf16 %v3132_v35, %v3130_v0  ;;  %v3153_v19 = vmul.f32 %v1391_v63, %v719_v49  ;;  %v846_v52 = vmul.f32 0.044715, %v3141_v30  ;;  %v3157_v61 = vadd.f32 %v2798_v38, %v159_v8  ;;  %v3159_v36 = vpop.eup %1996 }
 0x149   :  { %4041 = vst [vmem:[#allocation16_spill] sm:$0xff] %v3150_v29  ;;  %v1133_v44 = vadd.f32 %v1037_v13, %v3103_v53  ;;  %4043 = vst [vmem:[#allocation9_spill] sm:$0xff] %v3159_v36  ;;  %v1135_v3 = vadd.f32 %v1039_v7, %v3112_v16  ;;  %v848_v20 = vmul.f32 0.044715, %v3147_v5  ;;  %v849_v25 = vmul.f32 0.044715, %v3150_v29 }
 0x14a   :  { %4042 = vst [vmem:[#allocation30_spill] sm:$0xff] %v3157_v61  ;;  %v3165_v1 = vadd.f32 %v4044_v22, %v159_v8  ;;  %v716_v18 = vmul.f32 0.5, %v4027_v50  ;;  %v1889_v40 = vpack.c.bf16 %v3153_v19, %v3138_v41  ;;  %v851_v38 = vmul.f32 0.044715, %v3157_v61 }
 0x14b   :  { %v1229_v49 = vmul.f32 0.7978846, %v1133_v44  ;;  %v1999_v58 = vpop.eup %1998  ;;  %2006 = vtanh.f32 %v3076_v2  ;;  %v720_v0 = vmul.f32 0.5, %v4029_v55  ;;  %v945_v35 = vmul.f32 %v849_v25, %v3150_v29 }
 0x14c   :  { %4045 = vst [vmem:[#allocation13_spill] sm:$0xff] %v3165_v1  ;;  %v850_v13 = vmul.f32 0.044715, %v3165_v1  ;;  %v2001_v63 = vpop.eup %2000  ;;  %v3177_v7 = vmul.f32 %v3092_v14, %v3051_v48  ;;  %v1386_v50 = vadd.f32 1.0, %v1999_v58  ;;  %v942_v44 = vmul.f32 %v846_v52, %v3141_v30 }
 0x14d   :  { %v947_v41 = vmul.f32 %v851_v38, %v3157_v61  ;;  %v1390_v19 = vadd.f32 1.0, %v2001_v63  ;;  %v1231_v22 = vmul.f32 0.7978846, %v1135_v3  ;;  %v944_v2 = vmul.f32 %v848_v20, %v3147_v5 }
 0x14e   :  { %v1041_v55 = vmul.f32 %v945_v35, %v3150_v29  ;;  %v2003_v16 = vpop.eup %2002  ;;  %v1482_v25 = vmul.f32 %v1386_v50, %v3072_v6  ;;  %2008 = vtanh.f32 %v1229_v49  ;;  %v3186_v14 = vadd.f32 %v2809_v27, %v159_v8  ;;  %v4046_v50 = vld [vmem:[#allocation23_spill] sm:$0xff] }
 0x14f   :  { %v1043_v36 = vmul.f32 %v947_v41, %v3157_v61  ;;  %v2005_v58 = vpop.eup %2004  ;;  %v1486_v52 = vmul.f32 %v1390_v19, %v3082_v45  ;;  %v1388_v53 = vadd.f32 1.0, %v2003_v16  ;;  %v946_v3 = vmul.f32 %v850_v13, %v3165_v1  ;;  %v4047_v13 = vld [vmem:[#allocation38_spill] sm:$0xff] }
 0x150   :  { %v1137_v38 = vadd.f32 %v1041_v55, %v3150_v29  ;;  %v1392_v20 = vadd.f32 1.0, %v2005_v58  ;;  %v3192_v35 = vmul.f32 %v942_v44, %v3141_v30  ;;  %v852_v49 = vmul.f32 0.044715, %v3186_v14  ;;  %v4049_v55 = vld [vmem:[#allocation28_spill] sm:$0xff]  ;;  %v164_v58 = vpop.permute.xlu1 %163 }
 0x151   :  { %v1139_v6 = vadd.f32 %v1043_v36, %v3157_v61  ;;  %v1839_v63 = vpack.c.bf16 %v1486_v52, %v1482_v25  ;;  %2010 = vtanh.f32 %v1231_v22  ;;  %v3197_v27 = vmul.f32 %v944_v2, %v3147_v5  ;;  %v4050_v22 = vld [vmem:[#allocation41_spill] sm:$0xff] }
 0x152   :  { %v1233_v8 = vmul.f32 0.7978846, %v1137_v38  ;;  %v1484_v45 = vmul.f32 %v1388_v53, %v716_v18  ;;  %v1488_v16 = vmul.f32 %v1392_v20, %v720_v0  ;;  %v3200_v41 = vmul.f32 0.5, %v4046_v50  ;;  %v4052_v20 = vld [vmem:[#allocation24_spill] sm:$0xff] }
 0x153   :  { %v1106_v19 = vadd.f32 %v4047_v13, %v4046_v50  ;;  %1840 = vmatprep.subr.bf16.mxu0 %v1839_v63  ;;  %v1235_v44 = vmul.f32 0.7978846, %v1139_v6  ;;  %v3205_v36 = vmul.f32 %v946_v3, %v3165_v1  ;;  %v3208_v25 = vmul.f32 0.5, %v4049_v55  ;;  %v4053_v6 = vld [vmem:[#allocation40_spill] sm:$0xff]  ;;  %v4054_v63 = vld [vmem:[#allocation31_spill] sm:$0xff]  ;;  %v4055_v50 = vld [vmem:[#allocation42_spill] sm:$0xff] }
 0x154   :  { %v1110_v2 = vadd.f32 %v4050_v22, %v4049_v55  ;;  %v1887_v53 = vpack.c.bf16 %v1488_v16, %v1484_v45  ;;  %1842 = vmatpush1.bf16.msra.mxu0 %v1841_v46  ;;  %2012 = vtanh.f32 %v1233_v8  ;;  %v948_v18 = vmul.f32 %v852_v49, %v3186_v14  ;;  %v4058_v8 = vld [vmem:[#allocation17_spill] sm:$0xff] }
 0x155   :  { %4048 = vst [vmem:[#allocation36_spill] sm:$0xff] %v3205_v36  ;;  %v1202_v0 = vmul.f32 0.7978846, %v1106_v19  ;;  %v3213_v52 = vpop.eup %2006  ;;  %v1108_v3 = vadd.f32 %v4053_v6, %v4052_v20  ;;  %v1112_v13 = vadd.f32 %v4055_v50, %v4054_v63  ;;  %v3220_v61 = vadd.f32 %v2827_v21, %v164_v58  ;;  %v4059_v45 = vld [vmem:[#allocation25_spill] sm:$0xff]  ;;  %v4061_v6 = vld [vmem:[#allocation46_spill] sm:$0xff] }
 0x156   :  { %4051 = vst [vmem:[#allocation10_spill] sm:$0xff] %v3213_v52  ;;  %v1206_v38 = vmul.f32 0.7978846, %v1110_v2  ;;  %1888 = vmatprep.subr.bf16.mxu1 %v1887_v53  ;;  %v3223_v46 = vadd.f32 %v2837_v32, %v164_v58  ;;  %v721_v49 = vmul.f32 0.5, %v4058_v8  ;;  %v725_v16 = vmul.f32 0.5, %v4059_v45  ;;  %v4062_v32 = vld [vmem:[#allocation19_spill] sm:$0xff] }
 0x157   :  { %4056 = vst [vmem:[#allocation14_spill] sm:$0xff] %v3220_v61  ;;  %2014 = vtanh.f32 %v1202_v0  ;;  %1890 = vmatpush1.bf16.msra.mxu1 %v1889_v40  ;;  %v1204_v19 = vmul.f32 0.7978846, %v1108_v3  ;;  %v1208_v55 = vmul.f32 0.7978846, %v1112_v13  ;;  %v1393_v53 = vadd.f32 1.0, %v4061_v6  ;;  %v169_v6 = vpop.permute.xlu0 %168 }
 0x158   :  { %4057 = vst [vmem:[#allocation45_spill] sm:$0xff] %v3223_v46  ;;  %2016 = vtanh.f32 %v1206_v38  ;;  %v853_v22 = vmul.f32 0.044715, %v3220_v61  ;;  %v3228_v2 = vpop.eup %2008  ;;  %v855_v21 = vmul.f32 0.044715, %v3223_v46  ;;  %v1397_v0 = vadd.f32 1.0, %v2817_v57 }
 0x159   :  { %4060 = vst [vmem:[#allocation23_spill] sm:$0xff] %v3228_v2  ;;  %v723_v50 = vmul.f32 0.5, %v4062_v32  ;;  %2018 = vtanh.f32 %v1204_v19  ;;  %v4063_v45 = vld [vmem:[#allocation26_spill] sm:$0xff]  ;;  %v4064_v38 = vld [vmem:[#allocation47_spill] sm:$0xff]  ;;  %v3238_v29 = vmul.f32 %v1393_v53, %v721_v49 }
 0x15a   :  { %v949_v8 = vmul.f32 %v853_v22, %v3220_v61  ;;  %v727_v40 = vmul.f32 0.5, %v4063_v45  ;;  %v1395_v3 = vadd.f32 1.0, %v4064_v38  ;;  %2020 = vtanh.f32 %v1208_v55  ;;  %v4066_v32 = vld [vmem:[#allocation50_spill] sm:$0xff]  ;;  %v4067_v22 = vld [vmem:[#allocation49_spill] sm:$0xff]  ;;  %v4069_v53 = vld [vmem:[#allocation55_spill] sm:$0xff] }
 0x15b   :  { %v951_v13 = vmul.f32 %v855_v21, %v3223_v46  ;;  %v3240_v36 = vmul.f32 %v1397_v0, %v725_v16  ;;  %v3242_v1 = vpop.eup %2010  ;;  %v1399_v19 = vadd.f32 1.0, %v4066_v32  ;;  %v3249_v45 = vadd.f32 %v4067_v22, %v164_v58  ;;  %v4068_v21 = vld [vmem:[#allocation51_spill] sm:$0xff] }
 0x15c   :  { %4065 = vst [vmem:[#allocation38_spill] sm:$0xff] %v3242_v1  ;;  %v1045_v57 = vmul.f32 %v949_v8, %v3220_v61  ;;  %v3246_v52 = vmul.f32 %v1395_v3, %v723_v50  ;;  %v3255_v16 = vadd.f32 %v4068_v21, %v164_v58  ;;  %v3258_v0 = vadd.f32 %v4069_v53, %v169_v6  ;;  %v4070_v3 = vld [vmem:[#allocation56_spill] sm:$0xff] }
 0x15d   :  { %v1047_v55 = vmul.f32 %v951_v13, %v3223_v46  ;;  %v1845_v49 = vpack.c.bf16 %v3240_v36, %v3238_v29  ;;  %v3261_v38 = vmul.f32 %v1399_v19, %v727_v40  ;;  %v854_v50 = vmul.f32 0.044715, %v3249_v45 }
 0x15e   :  { %v1141_v8 = vadd.f32 %v1045_v57, %v3220_v61  ;;  %v3265_v32 = vadd.f32 %v4070_v3, %v169_v6  ;;  %v3267_v22 = vpop.eup %2012  ;;  %v856_v29 = vmul.f32 0.044715, %v3255_v16  ;;  %v857_v36 = vmul.f32 0.044715, %v3258_v0 }
 0x15f   :  { %4072 = vst [vmem:[#allocation41_spill] sm:$0xff] %v3267_v22  ;;  %v1143_v13 = vadd.f32 %v1047_v55, %v3223_v46  ;;  %v3273_v58 = vadd.f32 %v2874_v9, %v169_v6  ;;  %v724_v57 = vmul.f32 0.5, %v4052_v20  ;;  %v1893_v19 = vpack.c.bf16 %v3261_v38, %v3246_v52 }
 0x160   :  { %4071 = vst [vmem:[#allocation28_spill] sm:$0xff] %v3265_v32  ;;  %v1237_v40 = vmul.f32 0.7978846, %v1141_v8  ;;  %v859_v21 = vmul.f32 0.044715, %v3265_v32  ;;  %2022 = vtanh.f32 %v1235_v44  ;;  %v728_v3 = vmul.f32 0.5, %v4054_v63 }
 0x161   :  { %v2015_v53 = vpop.eup %2014  ;;  %v953_v55 = vmul.f32 %v857_v36, %v3258_v0  ;;  %v858_v46 = vmul.f32 0.044715, %v3273_v58  ;;  %v3283_v9 = vmul.f32 %v948_v18, %v3186_v14  ;;  %v950_v20 = vmul.f32 %v854_v50, %v3249_v45 }
 0x162   :  { %v2017_v22 = vpop.eup %2016  ;;  %v1394_v61 = vadd.f32 1.0, %v2015_v53  ;;  %v955_v8 = vmul.f32 %v859_v21, %v3265_v32  ;;  %v1239_v38 = vmul.f32 0.7978846, %v1143_v13  ;;  %v952_v1 = vmul.f32 %v856_v29, %v3255_v16 }
 0x163   :  { %4073 = vst [vmem:[#allocation24_spill] sm:$0xff] %v3283_v9  ;;  %v1398_v52 = vadd.f32 1.0, %v2017_v22  ;;  %v1049_v44 = vmul.f32 %v953_v55, %v3258_v0  ;;  %v2019_v63 = vpop.eup %2018  ;;  %2024 = vtanh.f32 %v1237_v40  ;;  %v3292_v18 = vadd.f32 %v2876_v17, %v169_v6 }
 0x164   :  { %v1490_v36 = vmul.f32 %v1394_v61, %v3200_v41  ;;  %v1051_v2 = vmul.f32 %v955_v8, %v3265_v32  ;;  %v2021_v53 = vpop.eup %2020  ;;  %v1396_v9 = vadd.f32 1.0, %v2019_v63  ;;  %v954_v13 = vmul.f32 %v858_v46, %v3273_v58  ;;  %v4074_v8 = vld [vmem:[#allocation37_spill] sm:$0xff]  ;;  %v4075_v46 = vld [vmem:[#allocation52_spill] sm:$0xff] }
 0x165   :  { %v1494_v50 = vmul.f32 %v1398_v52, %v3208_v25  ;;  %v1145_v22 = vadd.f32 %v1049_v44, %v3258_v0  ;;  %v1400_v29 = vadd.f32 1.0, %v2021_v53  ;;  %v3298_v21 = vmul.f32 %v950_v20, %v3249_v45 }
 0x166   :  { %v1147_v61 = vadd.f32 %v1051_v2, %v3265_v32  ;;  %v860_v41 = vmul.f32 0.044715, %v3292_v18  ;;  %2026 = vtanh.f32 %v1239_v38  ;;  %v3303_v17 = vmul.f32 %v952_v1, %v3255_v16  ;;  %v174_v38 = vpop.permute.xlu1 %173 }
 0x167   :  { %v1843_v40 = vpack.c.bf16 %v1494_v50, %v1490_v36  ;;  %v1241_v6 = vmul.f32 0.7978846, %v1145_v22  ;;  %v1492_v25 = vmul.f32 %v1396_v9, %v724_v57  ;;  %v1496_v55 = vmul.f32 %v1400_v29, %v728_v3  ;;  %v4076_v50 = vld [vmem:[#allocation39_spill] sm:$0xff]  ;;  %v4077_v22 = vld [vmem:[#allocation57_spill] sm:$0xff] }
 0x168   :  { %v3306_v52 = vmul.f32 0.5, %v4074_v8  ;;  %v1114_v44 = vadd.f32 %v4075_v46, %v4074_v8  ;;  %v1243_v20 = vmul.f32 0.7978846, %v1147_v61  ;;  %v3311_v2 = vmul.f32 %v954_v13, %v3273_v58 }
 0x169   :  { %1844 = vmatprep.subr.bf16.mxu0 %v1843_v40  ;;  %v3314_v63 = vmul.f32 0.5, %v2822_v37  ;;  %v1118_v1 = vadd.f32 %v2889_v54, %v2822_v37  ;;  %v1891_v57 = vpack.c.bf16 %v1496_v55, %v1492_v25  ;;  %2028 = vtanh.f32 %v1241_v6  ;;  %v4080_v54 = vld [vmem:[#allocation33_spill] sm:$0xff] }
 0x16a   :  { %1846 = vmatpush1.bf16.msra.mxu0 %v1845_v49  ;;  %v956_v3 = vmul.f32 %v860_v41, %v3292_v18  ;;  %v1210_v9 = vmul.f32 0.7978846, %v1114_v44  ;;  %v3319_v36 = vpop.eup %2022  ;;  %v1116_v13 = vadd.f32 %v4077_v22, %v4076_v50  ;;  %v1120_v29 = vadd.f32 %v2902_v47, %v2825_v34  ;;  %v4081_v41 = vld [vmem:[#allocation43_spill] sm:$0xff] }
 0x16b   :  { %v1214_v53 = vmul.f32 0.7978846, %v1118_v1  ;;  %v3326_v61 = vadd.f32 %v2886_v28, %v174_v38  ;;  %1892 = vmatprep.subr.bf16.mxu1 %v1891_v57  ;;  %v3329_v37 = vadd.f32 %v2893_v26, %v174_v38  ;;  %v729_v49 = vmul.f32 0.5, %v4080_v54  ;;  %v4082_v26 = vld [vmem:[#allocation34_spill] sm:$0xff]  ;;  %v4083_v57 = vld [vmem:[#allocation44_spill] sm:$0xff] }
 0x16c   :  { %2030 = vtanh.f32 %v1210_v9  ;;  %v733_v40 = vmul.f32 0.5, %v4081_v41  ;;  %1894 = vmatpush1.bf16.msra.mxu1 %v1893_v19  ;;  %v1212_v6 = vmul.f32 0.7978846, %v1116_v13  ;;  %v1216_v25 = vmul.f32 0.7978846, %v1120_v29 }
 0x16d   :  { %4078 = vst [vmem:[#allocation40_spill] sm:$0xff] %v3326_v61  ;;  %4079 = vst [vmem:[#allocation31_spill] sm:$0xff] %v3329_v37  ;;  %2032 = vtanh.f32 %v1214_v53  ;;  %v861_v55 = vmul.f32 0.044715, %v3326_v61  ;;  %v3334_v8 = vpop.eup %2024  ;;  %v863_v28 = vmul.f32 0.044715, %v3329_v37 }
 0x16e   :  { %v1401_v47 = vadd.f32 1.0, %v2929_v51  ;;  %v1405_v46 = vadd.f32 1.0, %v2959_v24  ;;  %v731_v44 = vmul.f32 0.5, %v4082_v26  ;;  %2034 = vtanh.f32 %v1212_v6  ;;  %v179_v51 = vpop.permute.xlu0 %178 }
 0x16f   :  { %v957_v1 = vmul.f32 %v861_v55, %v3326_v61  ;;  %v735_v19 = vmul.f32 0.5, %v4083_v57  ;;  %v1403_v9 = vadd.f32 1.0, %v2950_v43  ;;  %2036 = vtanh.f32 %v1216_v25  ;;  %v4084_v25 = vld [vmem:[#allocation58_spill] sm:$0xff] }
 0x170   :  { %v959_v53 = vmul.f32 %v863_v28, %v3329_v37  ;;  %v3344_v22 = vmul.f32 %v1401_v47, %v729_v49  ;;  %v3346_v13 = vmul.f32 %v1405_v46, %v733_v40  ;;  %v3348_v29 = vpop.eup %2026  ;;  %v1407_v54 = vadd.f32 1.0, %v2985_v39  ;;  %v4086_v46 = vld [vmem:[#allocation60_spill] sm:$0xff] }
 0x171   :  { %v1053_v24 = vmul.f32 %v957_v1, %v3326_v61  ;;  %v3352_v41 = vmul.f32 %v1403_v9, %v731_v44  ;;  %v3355_v6 = vadd.f32 %v2895_v60, %v174_v38  ;;  %v3361_v40 = vadd.f32 %v2899_v56, %v174_v38  ;;  %v4089_v38 = vld [vmem:[#allocation61_spill] sm:$0xff] }
 0x172   :  { %v1055_v43 = vmul.f32 %v959_v53, %v3329_v37  ;;  %v1849_v49 = vpack.c.bf16 %v3346_v13, %v3344_v22  ;;  %v3364_v55 = vadd.f32 %v4084_v25, %v179_v51  ;;  %v3367_v47 = vmul.f32 %v1407_v54, %v735_v19 }
 0x173   :  { %v1149_v28 = vadd.f32 %v1053_v24, %v3326_v61  ;;  %v862_v39 = vmul.f32 0.044715, %v3355_v6  ;;  %v3371_v60 = vadd.f32 %v4086_v46, %v179_v51  ;;  %v3373_v26 = vpop.eup %2028  ;;  %v864_v1 = vmul.f32 0.044715, %v3361_v40 }
 0x174   :  { %4085 = vst [vmem:[#allocation42_spill] sm:$0xff] %v3364_v55  ;;  %4088 = vst [vmem:[#allocation25_spill] sm:$0xff] %v3373_v26  ;;  %v1151_v44 = vadd.f32 %v1055_v43, %v3329_v37  ;;  %v865_v56 = vmul.f32 0.044715, %v3364_v55  ;;  %v3379_v57 = vadd.f32 %v4089_v38, %v179_v51  ;;  %v732_v9 = vmul.f32 0.5, %v4076_v50  ;;  %v4090_v26 = vld [vmem:[#allocation62_spill] sm:$0xff] }
 0x175   :  { %4087 = vst [vmem:[#allocation17_spill] sm:$0xff] %v3371_v60  ;;  %v1245_v19 = vmul.f32 0.7978846, %v1149_v28  ;;  %v1897_v53 = vpack.c.bf16 %v3367_v47, %v3352_v41  ;;  %v867_v22 = vmul.f32 0.044715, %v3371_v60  ;;  %2038 = vtanh.f32 %v1243_v20 }
 0x176   :  { %v2031_v13 = vpop.eup %2030  ;;  %v736_v24 = vmul.f32 0.5, %v2825_v34  ;;  %v961_v54 = vmul.f32 %v865_v56, %v3364_v55  ;;  %v866_v43 = vmul.f32 0.044715, %v3379_v57  ;;  %v3389_v46 = vmul.f32 %v956_v3, %v3292_v18 }
 0x177   :  { %v2033_v25 = vpop.eup %2032  ;;  %v1402_v38 = vadd.f32 1.0, %v2031_v13  ;;  %v958_v50 = vmul.f32 %v862_v39, %v3355_v6  ;;  %v963_v28 = vmul.f32 %v867_v22, %v3371_v60  ;;  %v1247_v47 = vmul.f32 0.7978846, %v1151_v44 }
 0x178   :  { %v1406_v41 = vadd.f32 1.0, %v2033_v25  ;;  %v960_v37 = vmul.f32 %v864_v1, %v3361_v40  ;;  %v1057_v20 = vmul.f32 %v961_v54, %v3364_v55  ;;  %v2035_v34 = vpop.eup %2034  ;;  %2040 = vtanh.f32 %v1245_v19 }
 0x179   :  { %v1498_v56 = vmul.f32 %v1402_v38, %v3306_v52  ;;  %v1059_v32 = vmul.f32 %v963_v28, %v3371_v60  ;;  %v3398_v3 = vadd.f32 %v4090_v26, %v179_v51  ;;  %v2037_v13 = vpop.eup %2036  ;;  %v1404_v61 = vadd.f32 1.0, %v2035_v34  ;;  %v4091_v28 = vld [vmem:[#allocation54_spill] sm:$0xff] }
 0x17a   :  { %v1502_v39 = vmul.f32 %v1406_v41, %v3314_v63  ;;  %v1153_v22 = vadd.f32 %v1057_v20, %v3364_v55  ;;  %v962_v44 = vmul.f32 %v866_v43, %v3379_v57  ;;  %v1408_v1 = vadd.f32 1.0, %v2037_v13  ;;  %v4092_v43 = vld [vmem:[#allocation59_spill] sm:$0xff] }
 0x17b   :  { %v3404_v54 = vmul.f32 %v958_v50, %v3355_v6  ;;  %v1155_v52 = vadd.f32 %v1059_v32, %v3371_v60  ;;  %v868_v19 = vmul.f32 0.044715, %v3398_v3  ;;  %2042 = vtanh.f32 %v1247_v47  ;;  %v184_v47 = vpop.permute.xlu1 %183 }
 0x17c   :  { %v1847_v25 = vpack.c.bf16 %v1502_v39, %v1498_v56  ;;  %v3409_v51 = vmul.f32 %v960_v37, %v3361_v40  ;;  %v1249_v26 = vmul.f32 0.7978846, %v1153_v22  ;;  %v1500_v63 = vmul.f32 %v1404_v61, %v732_v9  ;;  %v4094_v39 = vld [vmem:[#allocation69_spill] sm:$0xff] }
 0x17d   :  { %v1504_v38 = vmul.f32 %v1408_v1, %v736_v24  ;;  %v3412_v41 = vmul.f32 0.5, %v4091_v28  ;;  %v1122_v20 = vadd.f32 %v4092_v43, %v4091_v28  ;;  %v1251_v50 = vmul.f32 0.7978846, %v1155_v52  ;;  %v4095_v1 = vld [vmem:[#allocation5_spill] sm:$0xff] }
 0x17e   :  { %1848 = vmatprep.subr.bf16.mxu0 %v1847_v25  ;;  %v3417_v32 = vmul.f32 %v962_v44, %v3379_v57  ;;  %v3420_v34 = vmul.f32 0.5, %v2992_v23  ;;  %v1126_v37 = vadd.f32 %v3063_v15, %v2992_v23  ;;  %2044 = vtanh.f32 %v1249_v26  ;;  %v4097_v23 = vld [vmem:[#allocation7_spill] sm:$0xff] }
 0x17f   :  { %v1895_v61 = vpack.c.bf16 %v1504_v38, %v1500_v63  ;;  %1850 = vmatpush1.bf16.msra.mxu0 %v1849_v49  ;;  %v964_v9 = vmul.f32 %v868_v19, %v3398_v3  ;;  %v1218_v24 = vmul.f32 0.7978846, %v1122_v20  ;;  %v3425_v56 = vpop.eup %2038  ;;  %v1124_v22 = vadd.f32 %v4094_v39, %v2884_v59  ;;  %v4099_v49 = vld [vmem:[#allocation48_spill] sm:$0xff]  ;;  %v4100_v25 = vld [vmem:[#allocation63_spill] sm:$0xff] }
 0x180   :  { %4093 = vst [vmem:[#allocation46_spill] sm:$0xff] %v3417_v32  ;;  %v1222_v13 = vmul.f32 0.7978846, %v1126_v37  ;;  %v1128_v44 = vadd.f32 %v3068_v33, %v3002_v10  ;;  %v3432_v52 = vadd.f32 %v4095_v1, %v184_v47  ;;  %v3435_v15 = vadd.f32 %v4097_v23, %v184_v47  ;;  %v4102_v1 = vld [vmem:[#allocation64_spill] sm:$0xff]  ;;  %v4113_v32 = vld [vmem:[#allocation35_spill] sm:$0xff] }
 0x181   :  { %1896 = vmatprep.subr.bf16.mxu1 %v1895_v61  ;;  %2046 = vtanh.f32 %v1218_v24  ;;  %v737_v19 = vmul.f32 0.5, %v4099_v49  ;;  %v741_v26 = vmul.f32 0.5, %v4100_v25  ;;  %v1220_v63 = vmul.f32 0.7978846, %v1124_v22  ;;  %v4101_v61 = vld [vmem:[#allocation53_spill] sm:$0xff] }
 0x182   :  { %4096 = vst [vmem:[#allocation19_spill] sm:$0xff] %v3432_v52  ;;  %4098 = vst [vmem:[#allocation26_spill] sm:$0xff] %v3435_v15  ;;  %1898 = vmatpush1.bf16.msra.mxu1 %v1897_v53  ;;  %2048 = vtanh.f32 %v1222_v13  ;;  %v1224_v38 = vmul.f32 0.7978846, %v1128_v44  ;;  %v869_v28 = vmul.f32 0.044715, %v3432_v52  ;;  %v3440_v43 = vpop.eup %2040 }
 0x183   :  { %v871_v33 = vmul.f32 0.044715, %v3435_v15  ;;  %v1409_v20 = vadd.f32 1.0, %v3086_v12  ;;  %v1413_v37 = vadd.f32 1.0, %v3120_v31  ;;  %v739_v24 = vmul.f32 0.5, %v4101_v61  ;;  %v189_v12 = vpop.permute.xlu0 %188 }
 0x184   :  { %2050 = vtanh.f32 %v1220_v63  ;;  %v965_v39 = vmul.f32 %v869_v28, %v3432_v52  ;;  %v743_v53 = vmul.f32 0.5, %v4102_v1  ;;  %v1411_v13 = vadd.f32 1.0, %v3109_v62  ;;  %v4103_v28 = vld [vmem:[#allocation21_spill] sm:$0xff] }
 0x185   :  { %2052 = vtanh.f32 %v1224_v38  ;;  %v967_v22 = vmul.f32 %v871_v33, %v3435_v15  ;;  %v3450_v44 = vmul.f32 %v1409_v20, %v737_v19  ;;  %v3452_v23 = vmul.f32 %v1413_v37, %v741_v26  ;;  %v3454_v49 = vpop.eup %2042  ;;  %v4104_v38 = vld [vmem:[#allocation29_spill] sm:$0xff]  ;;  %v4105_v33 = vld [vmem:[#allocation6_spill] sm:$0xff] }
 0x186   :  { %v1061_v31 = vmul.f32 %v965_v39, %v3432_v52  ;;  %v1415_v25 = vadd.f32 1.0, %v3134_v11  ;;  %v3458_v63 = vmul.f32 %v1411_v13, %v739_v24  ;;  %v3461_v61 = vadd.f32 %v4103_v28, %v184_v47  ;;  %v4107_v24 = vld [vmem:[#allocation8_spill] sm:$0xff] }
 0x187   :  { %v1063_v62 = vmul.f32 %v967_v22, %v3435_v15  ;;  %v1853_v19 = vpack.c.bf16 %v3452_v23, %v3450_v44  ;;  %v3467_v26 = vadd.f32 %v4104_v38, %v184_v47  ;;  %v3470_v20 = vadd.f32 %v4105_v33, %v189_v12  ;;  %v4110_v23 = vld [vmem:[#allocation22_spill] sm:$0xff] }
 0x188   :  { %v1157_v37 = vadd.f32 %v1061_v31, %v3432_v52  ;;  %v3473_v39 = vmul.f32 %v1415_v25, %v743_v53  ;;  %v870_v11 = vmul.f32 0.044715, %v3461_v61  ;;  %v3477_v1 = vadd.f32 %v4107_v24, %v189_v12  ;;  %v3479_v13 = vpop.eup %2044 }
 0x189   :  { %4106 = vst [vmem:[#allocation47_spill] sm:$0xff] %v3470_v20  ;;  %4109 = vst [vmem:[#allocation49_spill] sm:$0xff] %v3479_v13  ;;  %v1159_v22 = vadd.f32 %v1063_v62, %v3435_v15  ;;  %v872_v44 = vmul.f32 0.044715, %v3467_v26  ;;  %v873_v47 = vmul.f32 0.044715, %v3470_v20  ;;  %v3485_v28 = vadd.f32 %v4110_v23, %v189_v12 }
 0x18a   :  { %4108 = vst [vmem:[#allocation50_spill] sm:$0xff] %v3477_v1  ;;  %v740_v31 = vmul.f32 0.5, %v2884_v59  ;;  %v1253_v53 = vmul.f32 0.7978846, %v1157_v37  ;;  %v1901_v25 = vpack.c.bf16 %v3473_v39, %v3458_v63  ;;  %v875_v38 = vmul.f32 0.044715, %v3477_v1 }
 0x18b   :  { %4111 = vst [vmem:[#allocation51_spill] sm:$0xff] %v3485_v28  ;;  %v2047_v33 = vpop.eup %2046  ;;  %2054 = vtanh.f32 %v1251_v50  ;;  %v744_v24 = vmul.f32 0.5, %v3002_v10  ;;  %v969_v62 = vmul.f32 %v873_v47, %v3470_v20  ;;  %v874_v15 = vmul.f32 0.044715, %v3485_v28 }
 0x18c   :  { %v2049_v60 = vpop.eup %2048  ;;  %v3495_v23 = vmul.f32 %v964_v9, %v3398_v3  ;;  %v1410_v13 = vadd.f32 1.0, %v2047_v33  ;;  %v966_v59 = vmul.f32 %v870_v11, %v3461_v61  ;;  %v971_v37 = vmul.f32 %v875_v38, %v3477_v1 }
 0x18d   :  { %v1414_v63 = vadd.f32 1.0, %v2049_v60  ;;  %v1255_v39 = vmul.f32 0.7978846, %v1159_v22  ;;  %v968_v52 = vmul.f32 %v872_v44, %v3467_v26  ;;  %v1065_v50 = vmul.f32 %v969_v62, %v3470_v20 }
 0x18e   :  { %4112 = vst [vmem:[#allocation55_spill] sm:$0xff] %v3495_v23  ;;  %v2051_v10 = vpop.eup %2050  ;;  %v1506_v47 = vmul.f32 %v1410_v13, %v3412_v41  ;;  %2056 = vtanh.f32 %v1253_v53  ;;  %v1067_v55 = vmul.f32 %v971_v37, %v3477_v1  ;;  %v3504_v9 = vadd.f32 %v4113_v32, %v189_v12 }
 0x18f   :  { %v2053_v33 = vpop.eup %2052  ;;  %v1510_v11 = vmul.f32 %v1414_v63, %v3420_v34  ;;  %v1412_v23 = vadd.f32 1.0, %v2051_v10  ;;  %v1161_v60 = vadd.f32 %v1065_v50, %v3470_v20  ;;  %v970_v22 = vmul.f32 %v874_v15, %v3485_v28 }
 0x190   :  { %v1416_v44 = vadd.f32 1.0, %v2053_v33  ;;  %v3510_v38 = vmul.f32 %v966_v59, %v3461_v61  ;;  %v1163_v41 = vadd.f32 %v1067_v55, %v3477_v1  ;;  %v876_v13 = vmul.f32 0.044715, %v3504_v9 }
 0x191   :  { %v1851_v53 = vpack.c.bf16 %v1510_v11, %v1506_v47  ;;  %2058 = vtanh.f32 %v1255_v39  ;;  %v3515_v32 = vmul.f32 %v968_v52, %v3467_v26  ;;  %v1257_v12 = vmul.f32 0.7978846, %v1161_v60  ;;  %v194_v39 = vpop.permute.xlu1 %193  ;;  %v4115_v47 = vld [vmem:[#allocation66_spill] sm:$0xff]  ;;  %v4120_v60 = vld [vmem:[#allocation15_spill] sm:$0xff] }
 0x192   :  { %v1508_v34 = vmul.f32 %v1412_v23, %v740_v31  ;;  %v1512_v62 = vmul.f32 %v1416_v44, %v744_v24  ;;  %v3518_v37 = vmul.f32 0.5, %v3020_v42  ;;  %v1130_v15 = vadd.f32 %v3079_v4, %v3020_v42 }
 0x193   :  { %1852 = vmatprep.subr.bf16.mxu0 %v1851_v53  ;;  %v1259_v59 = vmul.f32 0.7978846, %v1163_v41  ;;  %v3523_v55 = vmul.f32 %v970_v22, %v3485_v28  ;;  %v3526_v63 = vmul.f32 0.5, %v3141_v30  ;;  %v1134_v52 = vadd.f32 %v3192_v35, %v3141_v30  ;;  %v4117_v30 = vld [vmem:[#allocation67_spill] sm:$0xff]  ;;  %v4121_v53 = vld [vmem:[#allocation9_spill] sm:$0xff]  ;;  %v4135_v28 = vld [vmem:[#allocation74_spill] sm:$0xff] }
 0x194   :  { %v1899_v31 = vpack.c.bf16 %v1512_v62, %v1508_v34  ;;  %1854 = vmatpush1.bf16.msra.mxu0 %v1853_v19  ;;  %2060 = vtanh.f32 %v1257_v12  ;;  %v972_v24 = vmul.f32 %v876_v13, %v3504_v9  ;;  %v1226_v23 = vmul.f32 0.7978846, %v1130_v15  ;;  %v4119_v19 = vld [vmem:[#allocation32_spill] sm:$0xff]  ;;  %v4122_v34 = vld [vmem:[#allocation23_spill] sm:$0xff]  ;;  %v4123_v15 = vld [vmem:[#allocation65_spill] sm:$0xff] }
 0x195   :  { %4114 = vst [vmem:[#allocation56_spill] sm:$0xff] %v3523_v55  ;;  %v3531_v50 = vpop.eup %2054  ;;  %v1230_v42 = vmul.f32 0.7978846, %v1134_v52  ;;  %v1132_v4 = vadd.f32 %v3177_v7, %v3051_v48  ;;  %v1136_v10 = vadd.f32 %v3197_v27, %v3147_v5  ;;  %v3538_v33 = vadd.f32 %v4115_v47, %v194_v39 }
 0x196   :  { %1900 = vmatprep.subr.bf16.mxu1 %v1899_v31  ;;  %2062 = vtanh.f32 %v1226_v23  ;;  %v3541_v35 = vadd.f32 %v4117_v30, %v194_v39  ;;  %v745_v11 = vmul.f32 0.5, %v4119_v19  ;;  %v749_v22 = vmul.f32 0.5, %v4120_v60  ;;  %v4124_v23 = vld [vmem:[#allocation20_spill] sm:$0xff]  ;;  %v199_v60 = vpop.permute.xlu0 %198 }
 0x197   :  { %4116 = vst [vmem:[#allocation37_spill] sm:$0xff] %v3538_v33  ;;  %1902 = vmatpush1.bf16.msra.mxu1 %v1901_v25  ;;  %2064 = vtanh.f32 %v1230_v42  ;;  %v1228_v44 = vmul.f32 0.7978846, %v1132_v4  ;;  %v1232_v41 = vmul.f32 0.7978846, %v1136_v10  ;;  %v1417_v12 = vadd.f32 1.0, %v4121_v53 }
 0x198   :  { %4118 = vst [vmem:[#allocation52_spill] sm:$0xff] %v3541_v35  ;;  %v877_v7 = vmul.f32 0.044715, %v3538_v33  ;;  %v3546_v13 = vpop.eup %2056  ;;  %v879_v27 = vmul.f32 0.044715, %v3541_v35  ;;  %v1421_v62 = vadd.f32 1.0, %v4122_v34 }
 0x199   :  { %v747_v52 = vmul.f32 0.5, %v4123_v15  ;;  %2066 = vtanh.f32 %v1228_v44  ;;  %v751_v25 = vmul.f32 0.5, %v4124_v23  ;;  %v4125_v42 = vld [vmem:[#allocation10_spill] sm:$0xff]  ;;  %v3556_v47 = vmul.f32 %v1417_v12, %v745_v11  ;;  %v4129_v12 = vld [vmem:[#allocation71_spill] sm:$0xff] }
 0x19a   :  { %v973_v31 = vmul.f32 %v877_v7, %v3538_v33  ;;  %v1419_v4 = vadd.f32 1.0, %v4125_v42  ;;  %2068 = vtanh.f32 %v1232_v41  ;;  %v975_v10 = vmul.f32 %v879_v27, %v3541_v35  ;;  %v4126_v34 = vld [vmem:[#allocation38_spill] sm:$0xff]  ;;  %v4127_v7 = vld [vmem:[#allocation68_spill] sm:$0xff] }
 0x19b   :  { %v3558_v30 = vmul.f32 %v1421_v62, %v749_v22  ;;  %v3560_v19 = vpop.eup %2058  ;;  %v1423_v44 = vadd.f32 1.0, %v4126_v34  ;;  %v3567_v23 = vadd.f32 %v4127_v7, %v194_v39  ;;  %v4128_v27 = vld [vmem:[#allocation70_spill] sm:$0xff]  ;;  %v3576_v62 = vadd.f32 %v4129_v12, %v199_v60 }
 0x19c   :  { %v1069_v53 = vmul.f32 %v973_v31, %v3538_v33  ;;  %v3564_v15 = vmul.f32 %v1419_v4, %v747_v52  ;;  %v1071_v41 = vmul.f32 %v975_v10, %v3541_v35  ;;  %v3573_v22 = vadd.f32 %v4128_v27, %v194_v39  ;;  %v4130_v4 = vld [vmem:[#allocation72_spill] sm:$0xff] }
 0x19d   :  { %v1857_v11 = vpack.c.bf16 %v3558_v30, %v3556_v47  ;;  %v3579_v42 = vmul.f32 %v1423_v44, %v751_v25  ;;  %v878_v52 = vmul.f32 0.044715, %v3567_v23  ;;  %v3583_v34 = vadd.f32 %v4130_v4, %v199_v60  ;;  %v4133_v30 = vld [vmem:[#allocation73_spill] sm:$0xff] }
 0x19e   :  { %v1165_v31 = vadd.f32 %v1069_v53, %v3538_v33  ;;  %v3585_v7 = vpop.eup %2060  ;;  %v1167_v10 = vadd.f32 %v1071_v41, %v3541_v35  ;;  %v880_v47 = vmul.f32 0.044715, %v3573_v22  ;;  %v881_v39 = vmul.f32 0.044715, %v3576_v62 }
 0x19f   :  { %4131 = vst [vmem:[#allocation39_spill] sm:$0xff] %v3583_v34  ;;  %4132 = vst [vmem:[#allocation57_spill] sm:$0xff] %v3585_v7  ;;  %v3591_v27 = vadd.f32 %v4133_v30, %v199_v60  ;;  %v748_v53 = vmul.f32 0.5, %v3051_v48  ;;  %v1905_v44 = vpack.c.bf16 %v3579_v42, %v3564_v15  ;;  %v883_v12 = vmul.f32 0.044715, %v3583_v34 }
 0x1a0   :  { %v1261_v25 = vmul.f32 0.7978846, %v1165_v31  ;;  %v2063_v4 = vpop.eup %2062  ;;  %2070 = vtanh.f32 %v1259_v59  ;;  %v752_v1 = vmul.f32 0.5, %v3147_v5  ;;  %v977_v41 = vmul.f32 %v881_v39, %v3576_v62 }
 0x1a1   :  { %v882_v35 = vmul.f32 0.044715, %v3591_v27  ;;  %v2065_v33 = vpop.eup %2064  ;;  %v3601_v30 = vmul.f32 %v972_v24, %v3504_v9  ;;  %v1418_v7 = vadd.f32 1.0, %v2063_v4  ;;  %v974_v48 = vmul.f32 %v878_v52, %v3567_v23 }
 0x1a2   :  { %v979_v31 = vmul.f32 %v883_v12, %v3583_v34  ;;  %v1422_v15 = vadd.f32 1.0, %v2065_v33  ;;  %v1263_v42 = vmul.f32 0.7978846, %v1167_v10  ;;  %v976_v20 = vmul.f32 %v880_v47, %v3573_v22 }
 0x1a3   :  { %4134 = vst [vmem:[#allocation33_spill] sm:$0xff] %v3601_v30  ;;  %v1073_v59 = vmul.f32 %v977_v41, %v3576_v62  ;;  %v2067_v5 = vpop.eup %2066  ;;  %v1514_v39 = vmul.f32 %v1418_v7, %v3518_v37  ;;  %2072 = vtanh.f32 %v1261_v25  ;;  %v3610_v24 = vadd.f32 %v4135_v28, %v199_v60 }
 0x1a4   :  { %v1075_v55 = vmul.f32 %v979_v31, %v3583_v34  ;;  %v2069_v4 = vpop.eup %2068  ;;  %v1518_v52 = vmul.f32 %v1422_v15, %v3526_v63  ;;  %v1420_v30 = vadd.f32 1.0, %v2067_v5  ;;  %v978_v10 = vmul.f32 %v882_v35, %v3591_v27  ;;  %v4136_v31 = vld [vmem:[#allocation13_spill] sm:$0xff]  ;;  %v4137_v35 = vld [vmem:[#allocation36_spill] sm:$0xff] }
 0x1a5   :  { %v1169_v33 = vadd.f32 %v1073_v59, %v3576_v62  ;;  %v1424_v47 = vadd.f32 1.0, %v2069_v4  ;;  %v3616_v12 = vmul.f32 %v974_v48, %v3567_v23  ;;  %v884_v7 = vmul.f32 0.044715, %v3610_v24 }
 0x1a6   :  { %v1171_v37 = vadd.f32 %v1075_v55, %v3583_v34  ;;  %v1855_v25 = vpack.c.bf16 %v1518_v52, %v1514_v39  ;;  %2074 = vtanh.f32 %v1263_v42  ;;  %v3621_v28 = vmul.f32 %v976_v20, %v3573_v22  ;;  %v204_v42 = vpop.permute.xlu1 %203  ;;  %v4138_v52 = vld [vmem:[#allocation24_spill] sm:$0xff] }
 0x1a7   :  { %v1265_v60 = vmul.f32 0.7978846, %v1169_v33  ;;  %v1516_v63 = vmul.f32 %v1420_v30, %v748_v53  ;;  %v1520_v41 = vmul.f32 %v1424_v47, %v752_v1  ;;  %v3624_v15 = vmul.f32 0.5, %v4136_v31  ;;  %v4139_v47 = vld [vmem:[#allocation11_spill] sm:$0xff] }
 0x1a8   :  { %v1138_v59 = vadd.f32 %v4137_v35, %v4136_v31  ;;  %1856 = vmatprep.subr.bf16.mxu0 %v1855_v25  ;;  %v1267_v48 = vmul.f32 0.7978846, %v1171_v37  ;;  %v3629_v55 = vmul.f32 %v978_v10, %v3591_v27  ;;  %v3632_v5 = vmul.f32 0.5, %v3249_v45  ;;  %v4143_v35 = vld [vmem:[#allocation14_spill] sm:$0xff] }
 0x1a9   :  { %v1142_v20 = vadd.f32 %v3298_v21, %v3249_v45  ;;  %v1903_v53 = vpack.c.bf16 %v1520_v41, %v1516_v63  ;;  %1858 = vmatpush1.bf16.msra.mxu0 %v1857_v11  ;;  %2076 = vtanh.f32 %v1265_v60  ;;  %v980_v1 = vmul.f32 %v884_v7, %v3610_v24  ;;  %v4140_v21 = vld [vmem:[#allocation18_spill] sm:$0xff]  ;;  %v4142_v7 = vld [vmem:[#allocation16_spill] sm:$0xff] }
 0x1aa   :  { %v1234_v30 = vmul.f32 0.7978846, %v1138_v59  ;;  %v3637_v39 = vpop.eup %2070  ;;  %v1140_v33 = vadd.f32 %v4138_v52, %v3186_v14  ;;  %v1144_v10 = vadd.f32 %v3303_v17, %v3255_v16  ;;  %v3644_v37 = vadd.f32 %v4139_v47, %v204_v42  ;;  %v4145_v52 = vld [vmem:[#allocation30_spill] sm:$0xff] }
 0x1ab   :  { %v1238_v4 = vmul.f32 0.7978846, %v1142_v20  ;;  %1904 = vmatprep.subr.bf16.mxu1 %v1903_v53  ;;  %v3647_v45 = vmul.f32 0.5, %v3186_v14  ;;  %v3650_v11 = vadd.f32 %v4140_v21, %v204_v42  ;;  %v753_v25 = vmul.f32 0.5, %v4142_v7  ;;  %v4144_v20 = vld [vmem:[#allocation41_spill] sm:$0xff] }
 0x1ac   :  { %2078 = vtanh.f32 %v1234_v30  ;;  %1906 = vmatpush1.bf16.msra.mxu1 %v1905_v44  ;;  %v1236_v60 = vmul.f32 0.7978846, %v1140_v33  ;;  %v1240_v63 = vmul.f32 0.7978846, %v1144_v10  ;;  %v885_v41 = vmul.f32 0.044715, %v3644_v37 }
 0x1ad   :  { %4141 = vst [vmem:[#allocation43_spill] sm:$0xff] %v3650_v11  ;;  %2080 = vtanh.f32 %v1238_v4  ;;  %v3654_v17 = vpop.eup %2072  ;;  %v887_v31 = vmul.f32 0.044715, %v3650_v11  ;;  %v757_v59 = vmul.f32 0.5, %v4143_v35  ;;  %v1425_v14 = vadd.f32 1.0, %v4144_v20  ;;  %v4146_v35 = vld [vmem:[#allocation45_spill] sm:$0xff] }
 0x1ae   :  { %v1429_v53 = vadd.f32 1.0, %v3334_v8  ;;  %2082 = vtanh.f32 %v1236_v60  ;;  %v981_v30 = vmul.f32 %v885_v41, %v3644_v37  ;;  %v755_v44 = vmul.f32 0.5, %v4145_v52  ;;  %v4147_v41 = vld [vmem:[#allocation27_spill] sm:$0xff] }
 0x1af   :  { %v1427_v4 = vadd.f32 1.0, %v3319_v36  ;;  %2084 = vtanh.f32 %v1240_v63  ;;  %v983_v33 = vmul.f32 %v887_v31, %v3650_v11  ;;  %v3664_v10 = vmul.f32 %v1425_v14, %v753_v25  ;;  %v4148_v31 = vld [vmem:[#allocation12_spill] sm:$0xff] }
 0x1b0   :  { %v3666_v47 = vmul.f32 %v1429_v53, %v757_v59  ;;  %v3668_v21 = vpop.eup %2074  ;;  %v1077_v7 = vmul.f32 %v981_v30, %v3644_v37  ;;  %v759_v8 = vmul.f32 0.5, %v4146_v35  ;;  %v1431_v60 = vadd.f32 1.0, %v3348_v29 }
 0x1b1   :  { %v3674_v20 = vadd.f32 %v4147_v41, %v204_v42  ;;  %v760_v36 = vmul.f32 0.5, %v3255_v16  ;;  %v1079_v63 = vmul.f32 %v983_v33, %v3650_v11  ;;  %v3681_v59 = vadd.f32 %v4148_v31, %v204_v42 }
 0x1b2   :  { %v1861_v25 = vpack.c.bf16 %v3666_v47, %v3664_v10  ;;  %v1173_v14 = vadd.f32 %v1077_v7, %v3644_v37  ;;  %v3684_v53 = vmul.f32 %v1427_v4, %v755_v44  ;;  %v3686_v30 = vmul.f32 %v1431_v60, %v759_v8 }
 0x1b3   :  { %v886_v29 = vmul.f32 0.044715, %v3674_v20  ;;  %v3689_v52 = vpop.eup %2076  ;;  %v1175_v16 = vadd.f32 %v1079_v63, %v3650_v11  ;;  %v888_v33 = vmul.f32 0.044715, %v3681_v59  ;;  %v1146_v10 = vadd.f32 %v3311_v2, %v3273_v58 }
 0x1b4   :  { %v1150_v42 = vadd.f32 %v3404_v54, %v3355_v6  ;;  %2086 = vtanh.f32 %v1267_v48  ;;  %v3698_v44 = vmul.f32 %v980_v1, %v3610_v24  ;;  %v1269_v4 = vmul.f32 0.7978846, %v1173_v14 }
 0x1b5   :  { %v1909_v47 = vpack.c.bf16 %v3686_v30, %v3684_v53  ;;  %v3703_v35 = vmul.f32 0.5, %v3273_v58  ;;  %v3706_v8 = vmul.f32 0.5, %v3355_v6  ;;  %v1242_v60 = vmul.f32 0.7978846, %v1146_v10 }
 0x1b6   :  { %v2079_v7 = vpop.eup %2078  ;;  %v1246_v2 = vmul.f32 0.7978846, %v1150_v42  ;;  %v1271_v54 = vmul.f32 0.7978846, %v1175_v16  ;;  %v982_v48 = vmul.f32 %v886_v29, %v3674_v20  ;;  %v3710_v1 = vmul.f32 0.5, %v3292_v18 }
 0x1b7   :  { %v2081_v41 = vpop.eup %2080  ;;  %v1426_v63 = vadd.f32 1.0, %v2079_v7  ;;  %2088 = vtanh.f32 %v1269_v4  ;;  %v984_v14 = vmul.f32 %v888_v33, %v3681_v59  ;;  %v1148_v58 = vadd.f32 %v3389_v46, %v3292_v18  ;;  %v4150_v18 = vld [vmem:[#allocation25_spill] sm:$0xff] }
 0x1b8   :  { %v1430_v31 = vadd.f32 1.0, %v2081_v41  ;;  %v2083_v53 = vpop.eup %2082  ;;  %2090 = vtanh.f32 %v1242_v60  ;;  %v1152_v30 = vadd.f32 %v3409_v51, %v3361_v40  ;;  %v761_v16 = vmul.f32 0.5, %v3258_v0  ;;  %v4149_v41 = vld [vmem:[#allocation40_spill] sm:$0xff] }
 0x1b9   :  { %v1522_v6 = vmul.f32 %v1426_v63, %v3624_v15  ;;  %v2085_v29 = vpop.eup %2084  ;;  %v1428_v42 = vadd.f32 1.0, %v2083_v53  ;;  %2092 = vtanh.f32 %v1246_v2  ;;  %v1244_v4 = vmul.f32 0.7978846, %v1148_v58 }
 0x1ba   :  { %v1526_v10 = vmul.f32 %v1430_v31, %v3632_v5  ;;  %v1432_v7 = vadd.f32 1.0, %v2085_v29  ;;  %v1248_v33 = vmul.f32 0.7978846, %v1152_v30  ;;  %v765_v11 = vmul.f32 0.5, %v4149_v41  ;;  %v4151_v5 = vld [vmem:[#allocation28_spill] sm:$0xff]  ;;  %v4152_v31 = vld [vmem:[#allocation31_spill] sm:$0xff] }
 0x1bb   :  { %v1433_v46 = vadd.f32 1.0, %v4150_v18  ;;  %v1524_v15 = vmul.f32 %v1428_v42, %v3647_v45  ;;  %2094 = vtanh.f32 %v1244_v4  ;;  %v1437_v51 = vadd.f32 1.0, %v3440_v43  ;;  %v4156_v18 = vld [vmem:[#allocation19_spill] sm:$0xff] }
 0x1bc   :  { %v1859_v34 = vpack.c.bf16 %v1526_v10, %v1522_v6  ;;  %v1528_v60 = vmul.f32 %v1432_v7, %v760_v36  ;;  %2096 = vtanh.f32 %v1248_v33  ;;  %v763_v63 = vmul.f32 0.5, %v4151_v5 }
 0x1bd   :  { %v3724_v0 = vmul.f32 %v1433_v46, %v761_v16  ;;  %v3727_v2 = vmul.f32 %v1437_v51, %v765_v11  ;;  %v767_v58 = vmul.f32 0.5, %v4152_v31  ;;  %v1435_v53 = vadd.f32 1.0, %v3425_v56  ;;  %v4153_v16 = vld [vmem:[#allocation46_spill] sm:$0xff] }
 0x1be   :  { %1860 = vmatprep.subr.bf16.mxu0 %v1859_v34  ;;  %v1439_v6 = vadd.f32 1.0, %v3454_v49  ;;  %v3732_v30 = vpop.eup %2086  ;;  %v1907_v45 = vpack.c.bf16 %v1528_v60, %v1524_v15  ;;  %v3735_v43 = vmul.f32 %v982_v48, %v3674_v20  ;;  %v768_v36 = vmul.f32 0.5, %v3361_v40  ;;  %v4154_v40 = vld [vmem:[#allocation55_spill] sm:$0xff]  ;;  %v4157_v15 = vld [vmem:[#allocation49_spill] sm:$0xff] }
 0x1bf   :  { %1862 = vmatpush1.bf16.msra.mxu0 %v1861_v25  ;;  %v1154_v34 = vadd.f32 %v4153_v16, %v3379_v57  ;;  %v1865_v11 = vpack.c.bf16 %v3727_v2, %v3724_v0  ;;  %v3742_v29 = vmul.f32 %v1435_v53, %v763_v63  ;;  %v1158_v49 = vadd.f32 %v3510_v38, %v3461_v61  ;;  %v4155_v38 = vld [vmem:[#allocation42_spill] sm:$0xff] }
 0x1c0   :  { %v3744_v56 = vmul.f32 %v1439_v6, %v767_v58  ;;  %1908 = vmatprep.subr.bf16.mxu1 %v1907_v45  ;;  %2098 = vtanh.f32 %v1271_v54  ;;  %v3749_v25 = vmul.f32 %v984_v14, %v3681_v59  ;;  %v1156_v10 = vadd.f32 %v4154_v40, %v3398_v3  ;;  %v4159_v45 = vld [vmem:[#allocation26_spill] sm:$0xff] }
 0x1c1   :  { %v1250_v48 = vmul.f32 0.7978846, %v1154_v34  ;;  %v3753_v42 = vpop.eup %2088  ;;  %1910 = vmatpush1.bf16.msra.mxu1 %v1909_v47  ;;  %v1254_v7 = vmul.f32 0.7978846, %v1158_v49  ;;  %v1160_v33 = vadd.f32 %v3515_v32, %v3467_v26  ;;  %v769_v41 = vmul.f32 0.5, %v4155_v38  ;;  %v4158_v32 = vld [vmem:[#allocation17_spill] sm:$0xff] }
 0x1c2   :  { %v1913_v4 = vpack.c.bf16 %v3744_v56, %v3742_v29  ;;  %v2091_v54 = vpop.eup %2090  ;;  %v1252_v14 = vmul.f32 0.7978846, %v1156_v10  ;;  %v773_v46 = vmul.f32 0.5, %v4156_v18  ;;  %v1441_v51 = vadd.f32 1.0, %v4157_v15 }
 0x1c3   :  { %2100 = vtanh.f32 %v1250_v48  ;;  %v2093_v60 = vpop.eup %2092  ;;  %v1434_v0 = vadd.f32 1.0, %v2091_v54  ;;  %v1256_v47 = vmul.f32 0.7978846, %v1160_v33  ;;  %v1445_v5 = vadd.f32 1.0, %v3546_v13  ;;  %v4160_v54 = vld [vmem:[#allocation51_spill] sm:$0xff] }
 0x1c4   :  { %2102 = vtanh.f32 %v1254_v7  ;;  %v1438_v63 = vadd.f32 1.0, %v2093_v60  ;;  %v3763_v2 = vmul.f32 %v1441_v51, %v769_v41  ;;  %v771_v31 = vmul.f32 0.5, %v4158_v32  ;;  %v4164_v32 = vld [vmem:[#allocation57_spill] sm:$0xff] }
 0x1c5   :  { %2104 = vtanh.f32 %v1252_v14  ;;  %v2095_v58 = vpop.eup %2094  ;;  %v1530_v53 = vmul.f32 %v1434_v0, %v3703_v35  ;;  %v3767_v6 = vmul.f32 %v1445_v5, %v773_v46  ;;  %v775_v16 = vmul.f32 0.5, %v4159_v45  ;;  %v4162_v46 = vld [vmem:[#allocation33_spill] sm:$0xff] }
 0x1c6   :  { %2106 = vtanh.f32 %v1256_v47  ;;  %v2097_v34 = vpop.eup %2096  ;;  %v1534_v29 = vmul.f32 %v1438_v63, %v3706_v8  ;;  %v1436_v56 = vadd.f32 1.0, %v2095_v58  ;;  %v1443_v13 = vadd.f32 1.0, %v3531_v50  ;;  %v4165_v45 = vld [vmem:[#allocation37_spill] sm:$0xff] }
 0x1c7   :  { %v1447_v49 = vadd.f32 1.0, %v3560_v19  ;;  %v1440_v48 = vadd.f32 1.0, %v2097_v34  ;;  %v770_v40 = vmul.f32 0.5, %v3379_v57  ;;  %v774_v10 = vmul.f32 0.5, %v3461_v61  ;;  %v4161_v19 = vld [vmem:[#allocation56_spill] sm:$0xff] }
 0x1c8   :  { %v1869_v35 = vpack.c.bf16 %v3767_v6, %v3763_v2  ;;  %v1863_v7 = vpack.c.bf16 %v1534_v29, %v1530_v53  ;;  %v772_v33 = vmul.f32 0.5, %v3398_v3  ;;  %v3778_v38 = vmul.f32 %v1443_v13, %v771_v31  ;;  %v4169_v6 = vld [vmem:[#allocation43_spill] sm:$0xff] }
 0x1c9   :  { %v3780_v41 = vmul.f32 %v1447_v49, %v775_v16  ;;  %v1532_v8 = vmul.f32 %v1436_v56, %v3710_v1  ;;  %v1536_v50 = vmul.f32 %v1440_v48, %v768_v36  ;;  %v1162_v14 = vadd.f32 %v4161_v19, %v4160_v54 }
 0x1ca   :  { %v1166_v57 = vadd.f32 %v3616_v12, %v3567_v23  ;;  %v3787_v61 = vpop.eup %2098  ;;  %1864 = vmatprep.subr.bf16.mxu0 %v1863_v7  ;;  %v776_v18 = vmul.f32 0.5, %v3467_v26  ;;  %v1164_v15 = vadd.f32 %v4162_v46, %v3504_v9  ;;  %v1168_v1 = vadd.f32 %v3621_v28, %v3573_v22  ;;  %v4163_v26 = vld [vmem:[#allocation47_spill] sm:$0xff] }
 0x1cb   :  { %v1917_v3 = vpack.c.bf16 %v3780_v41, %v3778_v38  ;;  %v1911_v36 = vpack.c.bf16 %v1536_v50, %v1532_v8  ;;  %1866 = vmatpush1.bf16.msra.mxu0 %v1865_v11  ;;  %v3797_v51 = vmul.f32 0.5, %v4160_v54  ;;  %v1258_v12 = vmul.f32 0.7978846, %v1162_v14 }
 0x1cc   :  { %v1262_v60 = vmul.f32 0.7978846, %v1166_v57  ;;  %v1260_v47 = vmul.f32 0.7978846, %v1164_v15  ;;  %v1264_v5 = vmul.f32 0.7978846, %v1168_v1  ;;  %v1170_v1 = vadd.f32 %v3629_v55, %v3591_v27 }
 0x1cd   :  { %v2101_v0 = vpop.eup %2100  ;;  %v777_v63 = vmul.f32 0.5, %v4163_v26  ;;  %v1449_v31 = vadd.f32 1.0, %v4164_v32  ;;  %1912 = vmatprep.subr.bf16.mxu1 %v1911_v36  ;;  %2108 = vtanh.f32 %v1258_v12  ;;  %v781_v28 = vmul.f32 0.5, %v4165_v45 }
 0x1ce   :  { %v2103_v58 = vpop.eup %2102  ;;  %v1442_v53 = vadd.f32 1.0, %v2101_v0  ;;  %v1453_v11 = vadd.f32 1.0, %v3654_v17  ;;  %1914 = vmatpush1.bf16.msra.mxu1 %v1913_v4  ;;  %v782_v29 = vmul.f32 0.5, %v3567_v23  ;;  %2110 = vtanh.f32 %v1262_v60  ;;  %v4166_v4 = vld [vmem:[#allocation50_spill] sm:$0xff]  ;;  %v4167_v23 = vld [vmem:[#allocation52_spill] sm:$0xff] }
 0x1cf   :  { %v2105_v16 = vpop.eup %2104  ;;  %v1446_v34 = vadd.f32 1.0, %v2103_v58  ;;  %v3804_v56 = vmul.f32 %v1449_v31, %v777_v63  ;;  %2112 = vtanh.f32 %v1260_v47  ;;  %v1451_v8 = vadd.f32 1.0, %v3637_v39 }
 0x1d0   :  { %v2107_v13 = vpop.eup %2106  ;;  %v1538_v49 = vmul.f32 %v1442_v53, %v770_v40  ;;  %v1444_v48 = vadd.f32 1.0, %v2105_v16  ;;  %v3806_v7 = vmul.f32 %v1453_v11, %v781_v28  ;;  %2114 = vtanh.f32 %v1264_v5  ;;  %v4168_v5 = vld [vmem:[#allocation39_spill] sm:$0xff] }
 0x1d1   :  { %v1542_v38 = vmul.f32 %v1446_v34, %v774_v10  ;;  %v1448_v41 = vadd.f32 1.0, %v2107_v13  ;;  %v779_v50 = vmul.f32 0.5, %v4166_v4  ;;  %v783_v54 = vmul.f32 0.5, %v4167_v23 }
 0x1d2   :  { %v1873_v17 = vpack.c.bf16 %v3806_v7, %v3804_v56  ;;  %v1455_v19 = vadd.f32 1.0, %v3668_v21  ;;  %v1540_v40 = vmul.f32 %v1444_v48, %v772_v33  ;;  %v780_v46 = vmul.f32 0.5, %v3504_v9  ;;  %v4170_v48 = vld [vmem:[#allocation4_spill] sm:$0xff] }
 0x1d3   :  { %v1867_v14 = vpack.c.bf16 %v1542_v38, %v1538_v49  ;;  %v1544_v57 = vmul.f32 %v1448_v41, %v776_v18  ;;  %v1547_v15 = vmul.f32 %v1451_v8, %v779_v50  ;;  %v1174_v39 = vadd.f32 %v3735_v43, %v3674_v20  ;;  %1813 = vmatprep.mubr.msk.f32.mxu0 %vm1582_vm1, %v4170_v48 }
 0x1d4   :  { %v1551_v10 = vmul.f32 %v1455_v19, %v783_v54  ;;  %v784_v12 = vmul.f32 0.5, %v3573_v22  ;;  %v1172_v21 = vadd.f32 %v3698_v44, %v3610_v24  ;;  %v1176_v33 = vadd.f32 %v3749_v25, %v3681_v59  ;;  %1814 = vmatprep.mubr.msk.f32.mxu1 %vm1582_vm1, %v4170_v48 }
 0x1d5   :  { %1868 = vmatprep.subr.bf16.mxu0 %v1867_v14  ;;  %v1915_v36 = vpack.c.bf16 %v1544_v57, %v1540_v40  ;;  %v1266_v18 = vmul.f32 0.7978846, %v1170_v1  ;;  %v1270_v55 = vmul.f32 0.7978846, %v1174_v39  ;;  %v785_v60 = vmul.f32 0.5, %v3576_v62  ;;  %v4171_v57 = vld [vmem:[#allocation3_spill] sm:$0xff] }
 0x1d6   :  { %1870 = vmatpush1.bf16.msra.mxu0 %v1869_v35  ;;  %v1921_v9 = vpack.c.bf16 %v1551_v10, %v1547_v15  ;;  %v1268_v43 = vmul.f32 0.7978846, %v1172_v21  ;;  %v1272_v0 = vmul.f32 0.7978846, %v1176_v33  ;;  %v789_v22 = vmul.f32 0.5, %v3644_v37 }
 0x1d7   :  { %1916 = vmatprep.subr.bf16.mxu1 %v1915_v36  ;;  %v1457_v47 = vadd.f32 1.0, %v3689_v52  ;;  %v2109_v44 = vpop.eup %2108  ;;  %2116 = vtanh.f32 %v1266_v18  ;;  %v1461_v25 = vadd.f32 1.0, %v3753_v42  ;;  %v787_v2 = vmul.f32 0.5, %v4168_v5  ;;  %v1566_v36 = vpop.permute.xlu0 %1565 }
 0x1d8   :  { %1918 = vmatpush1.bf16.msra.mxu1 %v1917_v3  ;;  %v791_v35 = vmul.f32 0.5, %v4169_v6  ;;  %v2111_v26 = vpop.eup %2110  ;;  %v1450_v63 = vadd.f32 1.0, %v2109_v44  ;;  %2118 = vtanh.f32 %v1270_v55  ;;  %v1459_v32 = vadd.f32 1.0, %v3732_v30 }
 0x1d9   :  { %v1553_v62 = vmul.f32 %v1457_v47, %v785_v60  ;;  %v2113_v31 = vpop.eup %2112  ;;  %v1454_v58 = vadd.f32 1.0, %v2111_v26  ;;  %2120 = vtanh.f32 %v1268_v43  ;;  %v1557_v37 = vmul.f32 %v1461_v25, %v789_v22 }
 0x1da   :  { %v1463_v52 = vadd.f32 1.0, %v3787_v61  ;;  %v2115_v3 = vpop.eup %2114  ;;  %v1546_v53 = vmul.f32 %v1450_v63, %v3797_v51  ;;  %v1452_v42 = vadd.f32 1.0, %v2113_v31  ;;  %2122 = vtanh.f32 %v1272_v0 }
 0x1db   :  { %v1555_v45 = vmul.f32 %v1459_v32, %v787_v2  ;;  %v1550_v28 = vmul.f32 %v1454_v58, %v782_v29  ;;  %v1456_v11 = vadd.f32 1.0, %v2115_v3  ;;  %v1877_v16 = vpack.c.bf16 %v1557_v37, %v1553_v62 }
 0x1dc   :  { %v1559_v34 = vmul.f32 %v1463_v52, %v791_v35  ;;  %v1548_v56 = vmul.f32 %v1452_v42, %v780_v46  ;;  %v786_v41 = vmul.f32 0.5, %v3591_v27  ;;  %v790_v8 = vmul.f32 0.5, %v3674_v20  ;;  %v2124_v27 = vld [vmem:[%s3855_s3] sm:$0x3] }
 0x1dd   :  { %v1871_v13 = vpack.c.bf16 %v1550_v28, %v1546_v53  ;;  %v1552_v30 = vmul.f32 %v1456_v11, %v784_v12  ;;  %v788_v23 = vmul.f32 0.5, %v3610_v24  ;;  %v792_v40 = vmul.f32 0.5, %v3681_v59 }
 0x1de   :  { %v1925_v49 = vpack.c.bf16 %v1559_v34, %v1555_v45  ;;  %v1570_v46 = vsub.s32 0, %v4171_v57  ;;  %v2127_v24 = vmov 1966171168   ;;  %v4172_v35 = vlaneseq }
 0x1df   :  { %1872 = vmatprep.subr.bf16.mxu0 %v1871_v13  ;;  %v1919_v61 = vpack.c.bf16 %v1552_v30, %v1548_v56  ;;  %v1734_v59 = vunpack.c.l.s4 %v2127_v24 }
 0x1e0   :  { %1874 = vmatpush1.bf16.msra.mxu0 %v1873_v17  ;;  %v1576_v20 = vrot.slane %v2124_v27, %v1570_v46  ;;  %v1571_v21 = vrot.slane %v1566_v36, %v1570_v46  ;;  %vm1758_vm2 = vcmp.lt.s32.totalorder %v4172_v35, 512 }
 0x1e1   :  { %v2117_v51 = vpop.eup %2116  ;;  %1920 = vmatprep.subr.bf16.mxu1 %v1919_v61  ;;  %v1735_v12 = vunpack.c.0.s8 %v1734_v59 }
 0x1e2   :  { %v2119_v7 = vpop.eup %2118  ;;  %1922 = vmatpush1.bf16.msra.mxu1 %v1921_v9  ;;  %v1458_v29 = vadd.f32 1.0, %v2117_v51 }
 0x1e3   :  { %v2121_v38 = vpop.eup %2120  ;;  %v1462_v4 = vadd.f32 1.0, %v2119_v7  ;;  %v1738_v43 = vsub.s32 %v1735_v12, %v4171_v57 }
 0x1e4   :  { %v2123_v50 = vpop.eup %2122  ;;  %v1460_v54 = vadd.f32 1.0, %v2121_v38  ;;  %v1554_v19 = vmul.f32 %v1458_v29, %v786_v41 }
 0x1e5   :  { %v1558_v14 = vmul.f32 %v1462_v4, %v790_v8  ;;  %v1464_v17 = vadd.f32 1.0, %v2123_v50 }
 0x1e6   :  { %v1556_v10 = vmul.f32 %v1460_v54, %v788_v23 }
 0x1e7   :  { %v1875_v15 = vpack.c.bf16 %v1558_v14, %v1554_v19  ;;  %v1560_v1 = vmul.f32 %v1464_v17, %v792_v40 }
 0x1e9   :  { %1876 = vmatprep.subr.bf16.mxu0 %v1875_v15  ;;  %v1923_v39 = vpack.c.bf16 %v1560_v1, %v1556_v10 }
 0x1ea   :  { %1878 = vmatpush1.bf16.msra.mxu0 %v1877_v16 }
 0x1eb   :  { %1924 = vmatprep.subr.bf16.mxu1 %v1923_v39 }
 0x1ec   :  { %1926 = vmatpush1.bf16.msra.mxu1 %v1925_v49 }
 0x1ed   :  { %1650 = vmatmul.mubr.f32.vlgmr.msra.gmra.mrb[48].mxu0 %v1576_v20 }
 0x1ef   :  { %1721 = vmatmul.mubr.f32.vlgmr.msra.gmra.mrb[48].mxu1 %v1576_v20 }
 0x2c0   :  { %v1651_v33 = vpop.f32.mrb[48].mxu0 }
 0x2c1   :  { %v1652_v9 = vadd.f32 %v1651_v33, %v1571_v21  ;;  %v1653_v18 = vpop.f32.mrb[49].mxu0 }
 0x2c2   :  { %v1722_v55 = vpop.f32.mrb[48].mxu1  ;;  %v1654_v60 = vadd.f32 %v1653_v18, %v1571_v21 }
 0x2c3   :  { %v1723_v0 = vadd.f32 %v1722_v55, %v1571_v21  ;;  %v1724_v22 = vpop.f32.mrb[49].mxu1 }
 0x2c4   :  { %v1731_v47 = vcombine.low %v1652_v9, %v1654_v60  ;;  %v1725_v44 = vadd.f32 %v1724_v22, %v1571_v21 }
 0x2c6   :  { %v1739_v25 = vrot.slane %v1731_v47, %v1738_v43  ;;  %v1732_v5 = vcombine.low %v1723_v0, %v1725_v44 }
 0x2c8   :  { %v1746_v2 = vrot.slane %v1732_v5, %v1738_v43 }
 0x2ca   :  { %v1747_v6 = vcombine.low %v1739_v25, %v1746_v2 }
 0x2cc   :  { %v1754_v26 = vrot.slane %v1747_v6, %v1738_v43 }
 0x2ce   :  { %1760 = vst.msk [vmem:[%s3856_s5] sm:$0xf] %vm1758_vm2, %v1754_v26 }

</bundles_post_ra>
